<compile_context>
chip_gen: v6e
topology: v6e:2x2x1
jax: 0.10.0
libtpu: 0.0.40
codegen_flags: <defaults>
</compile_context>

<pallas_src>
import jax
import jax.numpy as jnp
from jax.experimental import pallas as pl
from jax.experimental.pallas import tpu as pltpu

BN_EPS = 1e-5


def _full_vmem():
    # whole-array operand resident in VMEM (weights / small per-channel vectors)
    return pl.BlockSpec(memory_space=pltpu.MemorySpace.VMEM)


def _parallel(n_axes=1):
    return pltpu.CompilerParams(dimension_semantics=("parallel",) * n_axes)


# ------------------- kernel 1: ConvTranspose2d(k=2, s=2) + pixel shuffle -------------------

def up_kernel(x_ref, w0_ref, w1_ref, b_ref, o_ref):
    """One input row -> two interleaved output rows (pixel shuffle fused).

    x_ref : (1, 1, W, Ci)
    w0/w1 : (Ci, 2*Co)  taps kh=0 / kh=1, columns ordered (kw, o)
    b_ref : (1, 2*Co)
    o_ref : (1, 2, W, 2*Co)  output rows (2h, 2h+1); bit-identical to NHWC rows (2W, Co)
    """
    x = x_ref[0, 0, :, :]                                        # (W, Ci)
    o_ref[0, 0, :, :] = (jnp.dot(x, w0_ref[...], preferred_element_type=jnp.float32)
                         + b_ref[...])
    o_ref[0, 1, :, :] = (jnp.dot(x, w1_ref[...], preferred_element_type=jnp.float32)
                         + b_ref[...])


# ---------------- kernel 2: conv1 (fused concat) + partial BN1 stats ----------------

def conv1_kernel(up_ref, x2_ref, w_ref, z_ref, st_ref, pa_ref, pb_ref, patch_ref):
    """3x3 SAME conv over concat([up, x2]) as ONE im2col matmul + BN partial stats.

    up_ref : (1, H2, W2, Ca)      x2_ref: (1, H2, W2, Cb)
    w_ref  : (9*Ca + 9*Cb, Cout)  (w1 split along Cin, tap-major / channel-minor rows)
    z_ref  : (1, H2, W2, Cout)    pre-BN conv output
    st_ref : (1, 2, Cout)         per-image (sum, sum-of-squares)
    pa/pb  : VMEM (Hp, Wp, C)     zero-padded copies    patch: VMEM (H2*W2, 9*(Ca+Cb))
    """
    _, H2, W2, Ca = up_ref.shape
    Cb = x2_ref.shape[3]
    Cout = st_ref.shape[2]
    Hp, Wp = H2 + 2, W2 + 2

    # in-kernel SAME zero padding (replaces wrapper jnp.pad -> one fewer HBM round trip)
    pa_ref[...] = jnp.zeros_like(pa_ref)
    pb_ref[...] = jnp.zeros_like(pb_ref)
    pa_ref[1:Hp - 1, 1:Wp - 1, :] = up_ref[0]
    pb_ref[1:Hp - 1, 1:Wp - 1, :] = x2_ref[0]

    # build the im2col patch once, then a single K = 9*(Ca+Cb) MXU dot
    off = 9 * Ca
    for dh in range(3):
        for dw in range(3):
            t = dh * 3 + dw
            patch_ref[:, t * Ca:(t + 1) * Ca] = (
                pa_ref[dh:dh + H2, dw:dw + W2, :].reshape(H2 * W2, Ca))
            patch_ref[:, off + t * Cb:off + (t + 1) * Cb] = (
                pb_ref[dh:dh + H2, dw:dw + W2, :].reshape(H2 * W2, Cb))

    acc = jnp.dot(patch_ref[...], w_ref[...], preferred_element_type=jnp.float32)
    z_ref[0] = acc.reshape(H2, W2, Cout)
    st_ref[0, 0:1, :] = jnp.sum(acc, axis=0, keepdims=True)
    st_ref[0, 1:2, :] = jnp.sum(acc * acc, axis=0, keepdims=True)


# ------------- kernel 3: BN1 + ReLU -> conv2 (single im2col dot) + BN2 stats -------------

def conv2_kernel(z1_ref, sc_ref, sh_ref, w_ref, z_ref, st_ref, pc_ref, patch_ref):
    """BN1 affine + ReLU fused into the padded-scratch interior write, then 3x3 conv.

    z1_ref : (1, H2, W2, C)   pre-BN conv1 output
    sc/sh  : (1, 1, C)        BN1 scale / shift
    w_ref  : (9*C, Cout)
    z_ref  : (1, H2, W2, Cout)   st_ref: (1, 2, Cout)
    pc_ref : VMEM (Hp, Wp, C)    patch: VMEM (H2*W2, 9*C)
    """
    _, H2, W2, C = z1_ref.shape
    Cout = st_ref.shape[2]
    Hp, Wp = H2 + 2, W2 + 2

    pc_ref[...] = jnp.zeros_like(pc_ref)
    # border stays exactly zero -> no iota interior mask needed
    pc_ref[1:Hp - 1, 1:Wp - 1, :] = jnp.maximum(
        z1_ref[0] * sc_ref[...] + sh_ref[...], 0.0)

    for dh in range(3):
        for dw in range(3):
            t = dh * 3 + dw
            patch_ref[:, t * C:(t + 1) * C] = (
                pc_ref[dh:dh + H2, dw:dw + W2, :].reshape(H2 * W2, C))

    acc = jnp.dot(patch_ref[...], w_ref[...], preferred_element_type=jnp.float32)
    z_ref[0] = acc.reshape(H2, W2, Cout)
    st_ref[0, 0:1, :] = jnp.sum(acc, axis=0, keepdims=True)
    st_ref[0, 1:2, :] = jnp.sum(acc * acc, axis=0, keepdims=True)


# ------------------------- kernel 4: final BN2 + ReLU (lane-dense) -------------------------

def bn_relu_kernel(z_ref, sc_ref, sh_ref, o_ref):
    """z_ref: (tm, W2*C) lane-dense rows; sc/sh: (1, W2*C) (per-channel, tiled along W)."""
    o_ref[...] = jnp.maximum(z_ref[...] * sc_ref[...] + sh_ref[...], 0.0)


# --------------------------------------- wrappers ---------------------------------------

def conv_transpose_up(x_nhwc, w_up, b_up):
    """w_up: PyTorch ConvTranspose2d layout (Cin, Cout, 2, 2)."""
    N, H, W, Ci = x_nhwc.shape
    Co = w_up.shape[1]
    # (Ci, Co, 2, 2) -> (Ci, kh, kw, o) -> split by kh
    w4 = jnp.transpose(w_up, (0, 2, 3, 1)).reshape(Ci, 4 * Co)
    w0, w1 = w4[:, :2 * Co], w4[:, 2 * Co:]
    b2 = jnp.tile(b_up, 2).reshape(1, 2 * Co)
    out = pl.pallas_call(
        up_kernel,
        out_shape=jax.ShapeDtypeStruct((N, 2 * H, W, 2 * Co), jnp.float32),
        grid=(N, H),
        in_specs=[pl.BlockSpec((1, 1, W, Ci), lambda n, h: (n, h, 0, 0)),
                  _full_vmem(), _full_vmem(), _full_vmem()],
        out_specs=pl.BlockSpec((1, 2, W, 2 * Co), lambda n, h: (n, h, 0, 0)),
        compiler_params=_parallel(2),
    )(x_nhwc, w0, w1, b2)
    # bit-compatible (free) reshape to NHWC (N, 2H, 2W, Co): column w*2Co + kw*Co + o
    # is exactly pixel (2w+kw), channel o.
    return out.reshape(N, 2 * H, 2 * W, Co)


def conv1_bn_stats(up_nhwc, x2_nhwc, w1):
    N, H2, W2, Ca = up_nhwc.shape
    Cb = x2_nhwc.shape[3]
    Cout = w1.shape[-1]
    Hp, Wp = H2 + 2, W2 + 2
    wa = w1[:, :, :Ca, :].reshape(9 * Ca, Cout)
    wb = w1[:, :, Ca:, :].reshape(9 * Cb, Cout)
    wcat = jnp.concatenate([wa, wb], axis=0)                    # (9*(Ca+Cb), Cout)
    z, st = pl.pallas_call(
        conv1_kernel,
        out_shape=(jax.ShapeDtypeStruct((N, H2, W2, Cout), jnp.float32),
                   jax.ShapeDtypeStruct((N, 2, Cout), jnp.float32)),
        grid=(N,),
        in_specs=[pl.BlockSpec((1, H2, W2, Ca), lambda n: (n, 0, 0, 0)),
                  pl.BlockSpec((1, H2, W2, Cb), lambda n: (n, 0, 0, 0)),
                  _full_vmem()],
        out_specs=(pl.BlockSpec((1, H2, W2, Cout), lambda n: (n, 0, 0, 0)),
                   pl.BlockSpec((1, 2, Cout), lambda n: (n, 0, 0))),
        scratch_shapes=[pltpu.VMEM((Hp, Wp, Ca), jnp.float32),
                        pltpu.VMEM((Hp, Wp, Cb), jnp.float32),
                        pltpu.VMEM((H2 * W2, 9 * (Ca + Cb)), jnp.float32)],
        compiler_params=_parallel(1),
    )(up_nhwc, x2_nhwc, wcat)
    return z, st


def bn_relu_conv2_stats(z1, scale1, shift1, w2):
    N, H2, W2, C = z1.shape
    Cout = w2.shape[-1]
    Hp, Wp = H2 + 2, W2 + 2
    w9 = w2.reshape(9 * C, Cout)
    sc3 = scale1.reshape(1, 1, C)
    sh3 = shift1.reshape(1, 1, C)
    z, st = pl.pallas_call(
        conv2_kernel,
        out_shape=(jax.ShapeDtypeStruct((N, H2, W2, Cout), jnp.float32),
                   jax.ShapeDtypeStruct((N, 2, Cout), jnp.float32)),
        grid=(N,),
        in_specs=[pl.BlockSpec((1, H2, W2, C), lambda n: (n, 0, 0, 0)),
                  _full_vmem(), _full_vmem(), _full_vmem()],
        out_specs=(pl.BlockSpec((1, H2, W2, Cout), lambda n: (n, 0, 0, 0)),
                   pl.BlockSpec((1, 2, Cout), lambda n: (n, 0, 0))),
        scratch_shapes=[pltpu.VMEM((Hp, Wp, C), jnp.float32),
                        pltpu.VMEM((H2 * W2, 9 * C), jnp.float32)],
        compiler_params=_parallel(1),
    )(z1, sc3, sh3, w9)
    return z, st


def bn_relu_apply(z, scale, shift):
    """Lane-dense final BN + ReLU: rows of width W2*C (>=128 lanes) instead of C=8."""
    N, H2, W2, C = z.shape
    M = N * H2
    zf = z.reshape(M, W2 * C)                      # free, bit-compatible reshape
    sc_t = jnp.tile(scale, (1, W2))                # (1, W2*C): sc_t[0, w*C + c] = scale[c]
    sh_t = jnp.tile(shift, (1, W2))
    tm = min(M, 512)
    out = pl.pallas_call(
        bn_relu_kernel,
        out_shape=jax.ShapeDtypeStruct((M, W2 * C), jnp.float32),
        grid=(pl.cdiv(M, tm),),
        in_specs=[pl.BlockSpec((tm, W2 * C), lambda i: (i, 0)),
                  _full_vmem(), _full_vmem()],
        out_specs=pl.BlockSpec((tm, W2 * C), lambda i: (i, 0)),
        compiler_params=_parallel(1),
    )(zf, sc_t, sh_t)
    return out.reshape(N, H2, W2, C)


def _bn_scale_shift(stats, count, gamma, beta):
    """Finalize two-phase BatchNorm: partial (sum, sumsq) -> affine scale/shift."""
    s = jnp.sum(stats[:, 0, :], axis=0)
    ss = jnp.sum(stats[:, 1, :], axis=0)
    mean = s / count
    var = ss / count - mean * mean
    scale = gamma * jax.lax.rsqrt(var + BN_EPS)
    shift = beta - mean * scale
    return scale.reshape(1, -1), shift.reshape(1, -1)


def normal_up_forward(x1_nchw, x2_nchw, p):
    # NCHW (PyTorch) -> NHWC (kernel layout)
    x1 = jnp.transpose(x1_nchw, (0, 2, 3, 1))
    x2 = jnp.transpose(x2_nchw, (0, 2, 3, 1))
    up = conv_transpose_up(x1, p['w_up'], p['b_up'])           # (N, H2, W2, Ca)
    N, H2, W2, _ = up.shape
    count = N * H2 * W2
    # DoubleConv layer 1 (conv bias is a no-op under training-mode BN -> dropped)
    z1, st1 = conv1_bn_stats(up, x2, p['w1'])
    sc1, sh1 = _bn_scale_shift(st1, count, p['g1'], p['be1'])
    # layer-1 BN + ReLU fused into layer-2 conv kernel
    z2, st2 = bn_relu_conv2_stats(z1, sc1, sh1, p['w2'])
    sc2, sh2 = _bn_scale_shift(st2, count, p['g2'], p['be2'])
    out = bn_relu_apply(z2, sc2, sh2)
    return jnp.transpose(out, (0, 3, 1, 2))                    # back to NCHW


# ----------------------------- pure-JAX reference -----------------------------

def _ref_conv_bn_relu(x, w, b, g, be):
    z = jax.lax.conv_general_dilated(
        x, w, (1, 1), 'SAME',
        dimension_numbers=('NHWC', 'HWIO', 'NHWC'),
        precision=jax.lax.Precision.HIGHEST) + b
    mean = z.mean(axis=(0, 1, 2), keepdims=True)
    var = ((z - mean) ** 2).mean(axis=(0, 1, 2), keepdims=True)
    z = (z - mean) * jax.lax.rsqrt(var + BN_EPS) * g + be
    return jnp.maximum(z, 0.0)


def ref_forward(x1_nchw, x2_nchw, p):
    x1 = jnp.transpose(x1_nchw, (0, 2, 3, 1))
    x2 = jnp.transpose(x2_nchw, (0, 2, 3, 1))
    N, H, W, Ci = x1.shape
    Co = p['w_up'].shape[1]
    y = jnp.einsum('nhwc,cokl->nhkwlo', x1, p['w_up'])
    y = y.reshape(N, 2 * H, 2 * W, Co) + p['b_up']
    x = jnp.concatenate([y, x2], axis=-1)
    x = _ref_conv_bn_relu(x, p['w1'], p['b1'], p['g1'], p['be1'])
    x = _ref_conv_bn_relu(x, p['w2'], p['b2'], p['g2'], p['be2'])
    return jnp.transpose(x, (0, 3, 1, 2))


# ------------------------------------ main ------------------------------------

if __name__ == "__main__":
    key = jax.random.PRNGKey(0)
    ks = jax.random.split(key, 12)

    in_channels, out_channels = 8, 8
    N, H, W = 2, 8, 8
    co2 = in_channels // 2

    # x1: coarse feature map (to be upsampled); x2: skip connection.
    x1 = jax.random.normal(ks[0], (N, in_channels, H, W), jnp.float32)
    x2 = jax.random.normal(ks[1], (N, co2, 2 * H, 2 * W), jnp.float32)

    params = {
        'w_up': 0.1 * jax.random.normal(ks[2], (in_channels, co2, 2, 2), jnp.float32),
        'b_up': 0.1 * jax.random.normal(ks[3], (co2,), jnp.float32),
        'w1':   0.1 * jax.random.normal(ks[4], (3, 3, in_channels, out_channels), jnp.float32),
        'b1':   0.1 * jax.random.normal(ks[5], (out_channels,), jnp.float32),
        'g1':   1.0 + 0.1 * jax.random.normal(ks[6], (out_channels,), jnp.float32),
        'be1':  0.1 * jax.random.normal(ks[7], (out_channels,), jnp.float32),
        'w2':   0.1 * jax.random.normal(ks[8], (3, 3, out_channels, out_channels), jnp.float32),
        'b2':   0.1 * jax.random.normal(ks[9], (out_channels,), jnp.float32),
        'g2':   1.0 + 0.1 * jax.random.normal(ks[10], (out_channels,), jnp.float32),
        'be2':  0.1 * jax.random.normal(ks[11], (out_channels,), jnp.float32),
    }

    out = jax.jit(normal_up_forward)(x1, x2, params)
    out = jax.block_until_ready(out)

    ref = ref_forward(x1, x2, params)
    assert out.shape == (N, out_channels, 2 * H, 2 * W), out.shape
    assert jnp.allclose(out, ref, rtol=5e-3, atol=5e-3), float(jnp.max(jnp.abs(out - ref)))
    print("KERNEL_OK")
</pallas_src>

<mosaic_0001>
module attributes {stable_mosaic.version = 11 : i64} {
  func.func @up_kernel(%arg0: i32, %arg1: i32, %arg2: memref<1x1x8x8xf32, #tpu.memory_space<vmem>>, %arg3: memref<8x8xf32, #tpu.memory_space<vmem>>, %arg4: memref<8x8xf32, #tpu.memory_space<vmem>>, %arg5: memref<1x8xf32, #tpu.memory_space<vmem>>, %arg6: memref<1x2x8x8xf32, #tpu.memory_space<vmem>>) attributes {dimension_semantics = [#tpu.dimension_semantics<parallel>, #tpu.dimension_semantics<parallel>], iteration_bounds = array<i64: 2, 8>, scalar_prefetch = 0 : i64, scratch_operands = 0 : i64, tpu.core_type = #tpu.core_type<tc>, window_params = [{transform_indices = @transform_0, window_bounds = array<i64: 1, 1, 8, 8>}, {pipeline_mode = #tpu.pipeline_mode<synchronous>, transform_indices = @transform_1, window_bounds = array<i64: 8, 8>}, {pipeline_mode = #tpu.pipeline_mode<synchronous>, transform_indices = @transform_2, window_bounds = array<i64: 8, 8>}, {pipeline_mode = #tpu.pipeline_mode<synchronous>, transform_indices = @transform_3, window_bounds = array<i64: 1, 8>}, {transform_indices = @transform_4, window_bounds = array<i64: 1, 2, 8, 8>}]} {
    %c0 = arith.constant 0 : index
    %c0_0 = arith.constant 0 : index
    %c0_1 = arith.constant 0 : index
    %c0_2 = arith.constant 0 : index
    %0 = vector.load %arg2[%c0, %c0_0, %c0_1, %c0_2] : memref<1x1x8x8xf32, #tpu.memory_space<vmem>>, vector<1x1x8x8xf32>
    %1 = vector.shape_cast %0 : vector<1x1x8x8xf32> to vector<8x8xf32>
    %c0_3 = arith.constant 0 : index
    %c0_4 = arith.constant 0 : index
    %2 = vector.load %arg3[%c0_3, %c0_4] : memref<8x8xf32, #tpu.memory_space<vmem>>, vector<8x8xf32>
    %cst = arith.constant dense<0.000000e+00> : vector<8x8xf32>
    %3 = tpu.matmul %1, %2, %cst {dimension_numbers = #tpu.dot_dimension_numbers<[1], [0], [0], [1], [0, 0, 1, 1], [], []>} : vector<8x8xf32>, vector<8x8xf32>, vector<8x8xf32> -> vector<8x8xf32>
    %c0_5 = arith.constant 0 : index
    %c0_6 = arith.constant 0 : index
    %4 = vector.load %arg5[%c0_5, %c0_6] : memref<1x8xf32, #tpu.memory_space<vmem>>, vector<1x8xf32>
    %5 = vector.broadcast %4 : vector<1x8xf32> to vector<8x8xf32>
    %6 = arith.addf %3, %5 : vector<8x8xf32>
    %c0_7 = arith.constant 0 : index
    %c0_8 = arith.constant 0 : index
    %c0_9 = arith.constant 0 : index
    %c0_10 = arith.constant 0 : index
    %7 = vector.load %arg6[%c0_7, %c0_8, %c0_9, %c0_10] : memref<1x2x8x8xf32, #tpu.memory_space<vmem>>, vector<1x1x8x8xf32>
    %8 = vector.shape_cast %7 : vector<1x1x8x8xf32> to vector<8x8xf32>
    %9 = vector.shape_cast %6 : vector<8x8xf32> to vector<1x1x8x8xf32>
    tpu.vector_store %arg6[%c0_7, %c0_8, %c0_9, %c0_10], %9 {strides = array<i32>} : memref<1x2x8x8xf32, #tpu.memory_space<vmem>>, vector<1x1x8x8xf32>,
    %c0_11 = arith.constant 0 : index
    %c0_12 = arith.constant 0 : index
    %10 = vector.load %arg4[%c0_11, %c0_12] : memref<8x8xf32, #tpu.memory_space<vmem>>, vector<8x8xf32>
    %cst_13 = arith.constant dense<0.000000e+00> : vector<8x8xf32>
    %11 = tpu.matmul %1, %10, %cst_13 {dimension_numbers = #tpu.dot_dimension_numbers<[1], [0], [0], [1], [0, 0, 1, 1], [], []>} : vector<8x8xf32>, vector<8x8xf32>, vector<8x8xf32> -> vector<8x8xf32>
    %c0_14 = arith.constant 0 : index
    %c0_15 = arith.constant 0 : index
    %12 = vector.load %arg5[%c0_14, %c0_15] : memref<1x8xf32, #tpu.memory_space<vmem>>, vector<1x8xf32>
    %13 = vector.broadcast %12 : vector<1x8xf32> to vector<8x8xf32>
    %14 = arith.addf %11, %13 : vector<8x8xf32>
    %c0_16 = arith.constant 0 : index
    %c1 = arith.constant 1 : index
    %c0_17 = arith.constant 0 : index
    %c0_18 = arith.constant 0 : index
    %15 = vector.load %arg6[%c0_16, %c1, %c0_17, %c0_18] : memref<1x2x8x8xf32, #tpu.memory_space<vmem>>, vector<1x1x8x8xf32>
    %16 = vector.shape_cast %15 : vector<1x1x8x8xf32> to vector<8x8xf32>
    %17 = vector.shape_cast %14 : vector<8x8xf32> to vector<1x1x8x8xf32>
    tpu.vector_store %arg6[%c0_16, %c1, %c0_17, %c0_18], %17 {strides = array<i32>} : memref<1x2x8x8xf32, #tpu.memory_space<vmem>>, vector<1x1x8x8xf32>,
    return
  }
  func.func @transform_0(%arg0: i32, %arg1: i32) -> (i32, i32, i32, i32) {
    %c0_i32 = arith.constant 0 : i32
    %c0_i32_0 = arith.constant 0 : i32
    %c0_i32_1 = arith.constant 0 : i32
    return %arg0, %arg1, %c0_i32, %c0_i32_0 : i32, i32, i32, i32
  }
  func.func @transform_1(%arg0: i32, %arg1: i32) -> (i32, i32) {
    %c0_i32 = arith.constant 0 : i32
    %c0_i32_0 = arith.constant 0 : i32
    %c0_i32_1 = arith.constant 0 : i32
    return %c0_i32, %c0_i32_0 : i32, i32
  }
  func.func @transform_2(%arg0: i32, %arg1: i32) -> (i32, i32) {
    %c0_i32 = arith.constant 0 : i32
    %c0_i32_0 = arith.constant 0 : i32
    %c0_i32_1 = arith.constant 0 : i32
    return %c0_i32, %c0_i32_0 : i32, i32
  }
  func.func @transform_3(%arg0: i32, %arg1: i32) -> (i32, i32) {
    %c0_i32 = arith.constant 0 : i32
    %c0_i32_0 = arith.constant 0 : i32
    %c0_i32_1 = arith.constant 0 : i32
    return %c0_i32, %c0_i32_0 : i32, i32
  }
  func.func @transform_4(%arg0: i32, %arg1: i32) -> (i32, i32, i32, i32) {
    %c0_i32 = arith.constant 0 : i32
    %c0_i32_0 = arith.constant 0 : i32
    %c0_i32_1 = arith.constant 0 : i32
    return %arg0, %arg1, %c0_i32, %c0_i32_0 : i32, i32, i32, i32
  }
}

module attributes {stable_mosaic.version = 11 : i64} {
  func.func @conv2_kernel(%arg0: i32, %arg1: memref<1x16x16x8xf32, #tpu.memory_space<vmem>>, %arg2: memref<1x1x8xf32, #tpu.memory_space<vmem>>, %arg3: memref<1x1x8xf32, #tpu.memory_space<vmem>>, %arg4: memref<72x8xf32, #tpu.memory_space<vmem>>, %arg5: memref<1x16x16x8xf32, #tpu.memory_space<vmem>>, %arg6: memref<1x2x8xf32, #tpu.memory_space<vmem>>, %arg7: memref<18x18x8xf32, #tpu.memory_space<vmem>>, %arg8: memref<256x72xf32, #tpu.memory_space<vmem>>) attributes {dimension_semantics = [#tpu.dimension_semantics<parallel>], iteration_bounds = array<i64: 2>, scalar_prefetch = 0 : i64, scratch_operands = 2 : i64, tpu.core_type = #tpu.core_type<tc>, window_params = [{transform_indices = @transform_0, window_bounds = array<i64: 1, 16, 16, 8>}, {pipeline_mode = #tpu.pipeline_mode<synchronous>, transform_indices = @transform_1, window_bounds = array<i64: 1, 1, 8>}, {pipeline_mode = #tpu.pipeline_mode<synchronous>, transform_indices = @transform_2, window_bounds = array<i64: 1, 1, 8>}, {pipeline_mode = #tpu.pipeline_mode<synchronous>, transform_indices = @transform_3, window_bounds = array<i64: 72, 8>}, {transform_indices = @transform_4, window_bounds = array<i64: 1, 16, 16, 8>}, {transform_indices = @transform_5, window_bounds = array<i64: 1, 2, 8>}]} {
    %cst = arith.constant 0.000000e+00 : f32
    %0 = vector.broadcast %cst : f32 to vector<18x18x8xf32>
    %c0 = arith.constant 0 : index
    %c0_0 = arith.constant 0 : index
    %c0_1 = arith.constant 0 : index
    %1 = vector.load %arg7[%c0, %c0_0, %c0_1] : memref<18x18x8xf32, #tpu.memory_space<vmem>>, vector<18x18x8xf32>
    tpu.vector_store %arg7[%c0, %c0_0, %c0_1], %0 {strides = array<i32>} : memref<18x18x8xf32, #tpu.memory_space<vmem>>, vector<18x18x8xf32>,
    %c0_2 = arith.constant 0 : index
    %c0_3 = arith.constant 0 : index
    %c0_4 = arith.constant 0 : index
    %c0_5 = arith.constant 0 : index
    %2 = vector.load %arg1[%c0_2, %c0_3, %c0_4, %c0_5] : memref<1x16x16x8xf32, #tpu.memory_space<vmem>>, vector<1x16x16x8xf32>
    %3 = vector.shape_cast %2 : vector<1x16x16x8xf32> to vector<16x16x8xf32>
    %c0_6 = arith.constant 0 : index
    %c0_7 = arith.constant 0 : index
    %c0_8 = arith.constant 0 : index
    %4 = vector.load %arg2[%c0_6, %c0_7, %c0_8] : memref<1x1x8xf32, #tpu.memory_space<vmem>>, vector<1x1x8xf32>
    %5 = vector.broadcast %4 : vector<1x1x8xf32> to vector<16x16x8xf32>
    %6 = arith.mulf %3, %5 : vector<16x16x8xf32>
    %c0_9 = arith.constant 0 : index
    %c0_10 = arith.constant 0 : index
    %c0_11 = arith.constant 0 : index
    %7 = vector.load %arg3[%c0_9, %c0_10, %c0_11] : memref<1x1x8xf32, #tpu.memory_space<vmem>>, vector<1x1x8xf32>
    %8 = vector.broadcast %7 : vector<1x1x8xf32> to vector<16x16x8xf32>
    %9 = arith.addf %6, %8 : vector<16x16x8xf32>
    %cst_12 = arith.constant 0.000000e+00 : f32
    %10 = vector.broadcast %cst_12 : f32 to vector<16x16x8xf32>
    %11 = arith.maximumf %9, %10 : vector<16x16x8xf32>
    %c1 = arith.constant 1 : index
    %c1_13 = arith.constant 1 : index
    %c0_14 = arith.constant 0 : index
    %12 = vector.load %arg7[%c1, %c1_13, %c0_14] : memref<18x18x8xf32, #tpu.memory_space<vmem>>, vector<16x16x8xf32>
    tpu.vector_store %arg7[%c1, %c1_13, %c0_14], %11 {strides = array<i32>} : memref<18x18x8xf32, #tpu.memory_space<vmem>>, vector<16x16x8xf32>,
    %c0_15 = arith.constant 0 : index
    %c0_16 = arith.constant 0 : index
    %c0_17 = arith.constant 0 : index
    %13 = vector.load %arg7[%c0_15, %c0_16, %c0_17] : memref<18x18x8xf32, #tpu.memory_space<vmem>>, vector<16x16x8xf32>
    %14 = vector.shape_cast %13 : vector<16x16x8xf32> to vector<256x8xf32>
    %c0_18 = arith.constant 0 : index
    %c0_19 = arith.constant 0 : index
    %15 = vector.load %arg8[%c0_18, %c0_19] : memref<256x72xf32, #tpu.memory_space<vmem>>, vector<256x8xf32>
    tpu.vector_store %arg8[%c0_18, %c0_19], %14 {strides = array<i32>} : memref<256x72xf32, #tpu.memory_space<vmem>>, vector<256x8xf32>,
    %c0_20 = arith.constant 0 : index
    %c1_21 = arith.constant 1 : index
    %c0_22 = arith.constant 0 : index
    %16 = vector.load %arg7[%c0_20, %c1_21, %c0_22] : memref<18x18x8xf32, #tpu.memory_space<vmem>>, vector<16x16x8xf32>
    %17 = vector.shape_cast %16 : vector<16x16x8xf32> to vector<256x8xf32>
    %c0_23 = arith.constant 0 : index
    %c8 = arith.constant 8 : index
    %18 = vector.load %arg8[%c0_23, %c8] : memref<256x72xf32, #tpu.memory_space<vmem>>, vector<256x8xf32>
    tpu.vector_store %arg8[%c0_23, %c8], %17 {strides = array<i32>} : memref<256x72xf32, #tpu.memory_space<vmem>>, vector<256x8xf32>,
    %c0_24 = arith.constant 0 : index
    %c2 = arith.constant 2 : index
    %c0_25 = arith.constant 0 : index
    %19 = vector.load %arg7[%c0_24, %c2, %c0_25] : memref<18x18x8xf32, #tpu.memory_space<vmem>>, vector<16x16x8xf32>
    %20 = vector.shape_cast %19 : vector<16x16x8xf32> to vector<256x8xf32>
    %c0_26 = arith.constant 0 : index
    %c16 = arith.constant 16 : index
    %21 = vector.load %arg8[%c0_26, %c16] : memref<256x72xf32, #tpu.memory_space<vmem>>, vector<256x8xf32>
    tpu.vector_store %arg8[%c0_26, %c16], %20 {strides = array<i32>} : memref<256x72xf32, #tpu.memory_space<vmem>>, vector<256x8xf32>,
    %c1_27 = arith.constant 1 : index
    %c0_28 = arith.constant 0 : index
    %c0_29 = arith.constant 0 : index
    %22 = vector.load %arg7[%c1_27, %c0_28, %c0_29] : memref<18x18x8xf32, #tpu.memory_space<vmem>>, vector<16x16x8xf32>
    %23 = vector.shape_cast %22 : vector<16x16x8xf32> to vector<256x8xf32>
    %c0_30 = arith.constant 0 : index
    %c24 = arith.constant 24 : index
    %24 = vector.load %arg8[%c0_30, %c24] : memref<256x72xf32, #tpu.memory_space<vmem>>, vector<256x8xf32>
    tpu.vector_store %arg8[%c0_30, %c24], %23 {strides = array<i32>} : memref<256x72xf32, #tpu.memory_space<vmem>>, vector<256x8xf32>,
    %c1_31 = arith.constant 1 : index
    %c1_32 = arith.constant 1 : index
    %c0_33 = arith.constant 0 : index
    %25 = vector.load %arg7[%c1_31, %c1_32, %c0_33] : memref<18x18x8xf32, #tpu.memory_space<vmem>>, vector<16x16x8xf32>
    %26 = vector.shape_cast %25 : vector<16x16x8xf32> to vector<256x8xf32>
    %c0_34 = arith.constant 0 : index
    %c32 = arith.constant 32 : index
    %27 = vector.load %arg8[%c0_34, %c32] : memref<256x72xf32, #tpu.memory_space<vmem>>, vector<256x8xf32>
    tpu.vector_store %arg8[%c0_34, %c32], %26 {strides = array<i32>} : memref<256x72xf32, #tpu.memory_space<vmem>>, vector<256x8xf32>,
    %c1_35 = arith.constant 1 : index
    %c2_36 = arith.constant 2 : index
    %c0_37 = arith.constant 0 : index
    %28 = vector.load %arg7[%c1_35, %c2_36, %c0_37] : memref<18x18x8xf32, #tpu.memory_space<vmem>>, vector<16x16x8xf32>
    %29 = vector.shape_cast %28 : vector<16x16x8xf32> to vector<256x8xf32>
    %c0_38 = arith.constant 0 : index
    %c40 = arith.constant 40 : index
    %30 = vector.load %arg8[%c0_38, %c40] : memref<256x72xf32, #tpu.memory_space<vmem>>, vector<256x8xf32>
    tpu.vector_store %arg8[%c0_38, %c40], %29 {strides = array<i32>} : memref<256x72xf32, #tpu.memory_space<vmem>>, vector<256x8xf32>,
    %c2_39 = arith.constant 2 : index
    %c0_40 = arith.constant 0 : index
    %c0_41 = arith.constant 0 : index
    %31 = vector.load %arg7[%c2_39, %c0_40, %c0_41] : memref<18x18x8xf32, #tpu.memory_space<vmem>>, vector<16x16x8xf32>
    %32 = vector.shape_cast %31 : vector<16x16x8xf32> to vector<256x8xf32>
    %c0_42 = arith.constant 0 : index
    %c48 = arith.constant 48 : index
    %33 = vector.load %arg8[%c0_42, %c48] : memref<256x72xf32, #tpu.memory_space<vmem>>, vector<256x8xf32>
    tpu.vector_store %arg8[%c0_42, %c48], %32 {strides = array<i32>} : memref<256x72xf32, #tpu.memory_space<vmem>>, vector<256x8xf32>,
    %c2_43 = arith.constant 2 : index
    %c1_44 = arith.constant 1 : index
    %c0_45 = arith.constant 0 : index
    %34 = vector.load %arg7[%c2_43, %c1_44, %c0_45] : memref<18x18x8xf32, #tpu.memory_space<vmem>>, vector<16x16x8xf32>
    %35 = vector.shape_cast %34 : vector<16x16x8xf32> to vector<256x8xf32>
    %c0_46 = arith.constant 0 : index
    %c56 = arith.constant 56 : index
    %36 = vector.load %arg8[%c0_46, %c56] : memref<256x72xf32, #tpu.memory_space<vmem>>, vector<256x8xf32>
    tpu.vector_store %arg8[%c0_46, %c56], %35 {strides = array<i32>} : memref<256x72xf32, #tpu.memory_space<vmem>>, vector<256x8xf32>,
    %c2_47 = arith.constant 2 : index
    %c2_48 = arith.constant 2 : index
    %c0_49 = arith.constant 0 : index
    %37 = vector.load %arg7[%c2_47, %c2_48, %c0_49] : memref<18x18x8xf32, #tpu.memory_space<vmem>>, vector<16x16x8xf32>
    %38 = vector.shape_cast %37 : vector<16x16x8xf32> to vector<256x8xf32>
    %c0_50 = arith.constant 0 : index
    %c64 = arith.constant 64 : index
    %39 = vector.load %arg8[%c0_50, %c64] : memref<256x72xf32, #tpu.memory_space<vmem>>, vector<256x8xf32>
    tpu.vector_store %arg8[%c0_50, %c64], %38 {strides = array<i32>} : memref<256x72xf32, #tpu.memory_space<vmem>>, vector<256x8xf32>,
    %c0_51 = arith.constant 0 : index
    %c0_52 = arith.constant 0 : index
    %40 = vector.load %arg8[%c0_51, %c0_52] : memref<256x72xf32, #tpu.memory_space<vmem>>, vector<256x72xf32>
    %c0_53 = arith.constant 0 : index
    %c0_54 = arith.constant 0 : index
    %41 = vector.load %arg4[%c0_53, %c0_54] : memref<72x8xf32, #tpu.memory_space<vmem>>, vector<72x8xf32>
    %cst_55 = arith.constant dense<0.000000e+00> : vector<256x8xf32>
    %42 = tpu.matmul %40, %41, %cst_55 {dimension_numbers = #tpu.dot_dimension_numbers<[1], [0], [0], [1], [0, 0, 1, 1], [], []>} : vector<256x72xf32>, vector<72x8xf32>, vector<256x8xf32> -> vector<256x8xf32>
    %43 = vector.shape_cast %42 : vector<256x8xf32> to vector<16x16x8xf32>
    %c0_56 = arith.constant 0 : index
    %c0_57 = arith.constant 0 : index
    %c0_58 = arith.constant 0 : index
    %c0_59 = arith.constant 0 : index
    %44 = vector.load %arg5[%c0_56, %c0_57, %c0_58, %c0_59] : memref<1x16x16x8xf32, #tpu.memory_space<vmem>>, vector<1x16x16x8xf32>
    %45 = vector.shape_cast %44 : vector<1x16x16x8xf32> to vector<16x16x8xf32>
    %46 = vector.shape_cast %43 : vector<16x16x8xf32> to vector<1x16x16x8xf32>
    tpu.vector_store %arg5[%c0_56, %c0_57, %c0_58, %c0_59], %46 {strides = array<i32>} : memref<1x16x16x8xf32, #tpu.memory_space<vmem>>, vector<1x16x16x8xf32>,
    %cst_60 = arith.constant dense<0.000000e+00> : vector<8xf32>
    %47 = vector.multi_reduction <add>, %42, %cst_60 [0] : vector<256x8xf32> to vector<8xf32>
    %48 = vector.shape_cast %47 : vector<8xf32> to vector<1x8xf32>
    %c0_61 = arith.constant 0 : index
    %c0_62 = arith.constant 0 : index
    %c0_63 = arith.constant 0 : index
    %49 = vector.load %arg6[%c0_61, %c0_62, %c0_63] : memref<1x2x8xf32, #tpu.memory_space<vmem>>, vector<1x1x8xf32>
    %50 = vector.shape_cast %49 : vector<1x1x8xf32> to vector<1x8xf32>
    %51 = vector.shape_cast %48 : vector<1x8xf32> to vector<1x1x8xf32>
    tpu.vector_store %arg6[%c0_61, %c0_62, %c0_63], %51 {strides = array<i32>} : memref<1x2x8xf32, #tpu.memory_space<vmem>>, vector<1x1x8xf32>,
    %52 = arith.mulf %42, %42 : vector<256x8xf32>
    %cst_64 = arith.constant dense<0.000000e+00> : vector<8xf32>
    %53 = vector.multi_reduction <add>, %52, %cst_64 [0] : vector<256x8xf32> to vector<8xf32>
    %54 = vector.shape_cast %53 : vector<8xf32> to vector<1x8xf32>
    %c0_65 = arith.constant 0 : index
    %c1_66 = arith.constant 1 : index
    %c0_67 = arith.constant 0 : index
    %55 = vector.load %arg6[%c0_65, %c1_66, %c0_67] : memref<1x2x8xf32, #tpu.memory_space<vmem>>, vector<1x1x8xf32>
    %56 = vector.shape_cast %55 : vector<1x1x8xf32> to vector<1x8xf32>
    %57 = vector.shape_cast %54 : vector<1x8xf32> to vector<1x1x8xf32>
    tpu.vector_store %arg6[%c0_65, %c1_66, %c0_67], %57 {strides = array<i32>} : memref<1x2x8xf32, #tpu.memory_space<vmem>>, vector<1x1x8xf32>,
    return
  }
  func.func @transform_0(%arg0: i32) -> (i32, i32, i32, i32) {
    %c0_i32 = arith.constant 0 : i32
    %c0_i32_0 = arith.constant 0 : i32
    %c0_i32_1 = arith.constant 0 : i32
    %c0_i32_2 = arith.constant 0 : i32
    return %arg0, %c0_i32, %c0_i32_0, %c0_i32_1 : i32, i32, i32, i32
  }
  func.func @transform_1(%arg0: i32) -> (i32, i32, i32) {
    %c0_i32 = arith.constant 0 : i32
    %c0_i32_0 = arith.constant 0 : i32
    %c0_i32_1 = arith.constant 0 : i32
    %c0_i32_2 = arith.constant 0 : i32
    return %c0_i32, %c0_i32_0, %c0_i32_1 : i32, i32, i32
  }
  func.func @transform_2(%arg0: i32) -> (i32, i32, i32) {
    %c0_i32 = arith.constant 0 : i32
    %c0_i32_0 = arith.constant 0 : i32
    %c0_i32_1 = arith.constant 0 : i32
    %c0_i32_2 = arith.constant 0 : i32
    return %c0_i32, %c0_i32_0, %c0_i32_1 : i32, i32, i32
  }
  func.func @transform_3(%arg0: i32) -> (i32, i32) {
    %c0_i32 = arith.constant 0 : i32
    %c0_i32_0 = arith.constant 0 : i32
    %c0_i32_1 = arith.constant 0 : i32
    return %c0_i32, %c0_i32_0 : i32, i32
  }
  func.func @transform_4(%arg0: i32) -> (i32, i32, i32, i32) {
    %c0_i32 = arith.constant 0 : i32
    %c0_i32_0 = arith.constant 0 : i32
    %c0_i32_1 = arith.constant 0 : i32
    %c0_i32_2 = arith.constant 0 : i32
    return %arg0, %c0_i32, %c0_i32_0, %c0_i32_1 : i32, i32, i32, i32
  }
  func.func @transform_5(%arg0: i32) -> (i32, i32, i32) {
    %c0_i32 = arith.constant 0 : i32
    %c0_i32_0 = arith.constant 0 : i32
    %c0_i32_1 = arith.constant 0 : i32
    return %arg0, %c0_i32, %c0_i32_0 : i32, i32, i32
  }
}

module attributes {stable_mosaic.version = 11 : i64} {
  func.func @conv1_kernel(%arg0: i32, %arg1: memref<1x16x16x4xf32, #tpu.memory_space<vmem>>, %arg2: memref<1x16x16x4xf32, #tpu.memory_space<vmem>>, %arg3: memref<72x8xf32, #tpu.memory_space<vmem>>, %arg4: memref<1x16x16x8xf32, #tpu.memory_space<vmem>>, %arg5: memref<1x2x8xf32, #tpu.memory_space<vmem>>, %arg6: memref<18x18x4xf32, #tpu.memory_space<vmem>>, %arg7: memref<18x18x4xf32, #tpu.memory_space<vmem>>, %arg8: memref<256x72xf32, #tpu.memory_space<vmem>>) attributes {dimension_semantics = [#tpu.dimension_semantics<parallel>], iteration_bounds = array<i64: 2>, scalar_prefetch = 0 : i64, scratch_operands = 3 : i64, tpu.core_type = #tpu.core_type<tc>, window_params = [{transform_indices = @transform_0, window_bounds = array<i64: 1, 16, 16, 4>}, {transform_indices = @transform_1, window_bounds = array<i64: 1, 16, 16, 4>}, {pipeline_mode = #tpu.pipeline_mode<synchronous>, transform_indices = @transform_2, window_bounds = array<i64: 72, 8>}, {transform_indices = @transform_3, window_bounds = array<i64: 1, 16, 16, 8>}, {transform_indices = @transform_4, window_bounds = array<i64: 1, 2, 8>}]} {
    %cst = arith.constant 0.000000e+00 : f32
    %0 = vector.broadcast %cst : f32 to vector<18x18x4xf32>
    %c0 = arith.constant 0 : index
    %c0_0 = arith.constant 0 : index
    %c0_1 = arith.constant 0 : index
    %1 = vector.load %arg6[%c0, %c0_0, %c0_1] : memref<18x18x4xf32, #tpu.memory_space<vmem>>, vector<18x18x4xf32>
    tpu.vector_store %arg6[%c0, %c0_0, %c0_1], %0 {strides = array<i32>} : memref<18x18x4xf32, #tpu.memory_space<vmem>>, vector<18x18x4xf32>,
    %cst_2 = arith.constant 0.000000e+00 : f32
    %2 = vector.broadcast %cst_2 : f32 to vector<18x18x4xf32>
    %c0_3 = arith.constant 0 : index
    %c0_4 = arith.constant 0 : index
    %c0_5 = arith.constant 0 : index
    %3 = vector.load %arg7[%c0_3, %c0_4, %c0_5] : memref<18x18x4xf32, #tpu.memory_space<vmem>>, vector<18x18x4xf32>
    tpu.vector_store %arg7[%c0_3, %c0_4, %c0_5], %2 {strides = array<i32>} : memref<18x18x4xf32, #tpu.memory_space<vmem>>, vector<18x18x4xf32>,
    %c0_6 = arith.constant 0 : index
    %c0_7 = arith.constant 0 : index
    %c0_8 = arith.constant 0 : index
    %c0_9 = arith.constant 0 : index
    %4 = vector.load %arg1[%c0_6, %c0_7, %c0_8, %c0_9] : memref<1x16x16x4xf32, #tpu.memory_space<vmem>>, vector<1x16x16x4xf32>
    %5 = vector.shape_cast %4 : vector<1x16x16x4xf32> to vector<16x16x4xf32>
    %c1 = arith.constant 1 : index
    %c1_10 = arith.constant 1 : index
    %c0_11 = arith.constant 0 : index
    %6 = vector.load %arg6[%c1, %c1_10, %c0_11] : memref<18x18x4xf32, #tpu.memory_space<vmem>>, vector<16x16x4xf32>
    tpu.vector_store %arg6[%c1, %c1_10, %c0_11], %5 {strides = array<i32>} : memref<18x18x4xf32, #tpu.memory_space<vmem>>, vector<16x16x4xf32>,
    %c0_12 = arith.constant 0 : index
    %c0_13 = arith.constant 0 : index
    %c0_14 = arith.constant 0 : index
    %c0_15 = arith.constant 0 : index
    %7 = vector.load %arg2[%c0_12, %c0_13, %c0_14, %c0_15] : memref<1x16x16x4xf32, #tpu.memory_space<vmem>>, vector<1x16x16x4xf32>
    %8 = vector.shape_cast %7 : vector<1x16x16x4xf32> to vector<16x16x4xf32>
    %c1_16 = arith.constant 1 : index
    %c1_17 = arith.constant 1 : index
    %c0_18 = arith.constant 0 : index
    %9 = vector.load %arg7[%c1_16, %c1_17, %c0_18] : memref<18x18x4xf32, #tpu.memory_space<vmem>>, vector<16x16x4xf32>
    tpu.vector_store %arg7[%c1_16, %c1_17, %c0_18], %8 {strides = array<i32>} : memref<18x18x4xf32, #tpu.memory_space<vmem>>, vector<16x16x4xf32>,
    %c0_19 = arith.constant 0 : index
    %c0_20 = arith.constant 0 : index
    %c0_21 = arith.constant 0 : index
    %10 = vector.load %arg6[%c0_19, %c0_20, %c0_21] : memref<18x18x4xf32, #tpu.memory_space<vmem>>, vector<16x16x4xf32>
    %11 = vector.shape_cast %10 : vector<16x16x4xf32> to vector<256x4xf32>
    %c0_22 = arith.constant 0 : index
    %c0_23 = arith.constant 0 : index
    %12 = vector.load %arg8[%c0_22, %c0_23] : memref<256x72xf32, #tpu.memory_space<vmem>>, vector<256x4xf32>
    tpu.vector_store %arg8[%c0_22, %c0_23], %11 {strides = array<i32>} : memref<256x72xf32, #tpu.memory_space<vmem>>, vector<256x4xf32>,
    %c0_24 = arith.constant 0 : index
    %c0_25 = arith.constant 0 : index
    %c0_26 = arith.constant 0 : index
    %13 = vector.load %arg7[%c0_24, %c0_25, %c0_26] : memref<18x18x4xf32, #tpu.memory_space<vmem>>, vector<16x16x4xf32>
    %14 = vector.shape_cast %13 : vector<16x16x4xf32> to vector<256x4xf32>
    %c0_27 = arith.constant 0 : index
    %c36 = arith.constant 36 : index
    %15 = vector.load %arg8[%c0_27, %c36] : memref<256x72xf32, #tpu.memory_space<vmem>>, vector<256x4xf32>
    tpu.vector_store %arg8[%c0_27, %c36], %14 {strides = array<i32>} : memref<256x72xf32, #tpu.memory_space<vmem>>, vector<256x4xf32>,
    %c0_28 = arith.constant 0 : index
    %c1_29 = arith.constant 1 : index
    %c0_30 = arith.constant 0 : index
    %16 = vector.load %arg6[%c0_28, %c1_29, %c0_30] : memref<18x18x4xf32, #tpu.memory_space<vmem>>, vector<16x16x4xf32>
    %17 = vector.shape_cast %16 : vector<16x16x4xf32> to vector<256x4xf32>
    %c0_31 = arith.constant 0 : index
    %c4 = arith.constant 4 : index
    %18 = vector.load %arg8[%c0_31, %c4] : memref<256x72xf32, #tpu.memory_space<vmem>>, vector<256x4xf32>
    tpu.vector_store %arg8[%c0_31, %c4], %17 {strides = array<i32>} : memref<256x72xf32, #tpu.memory_space<vmem>>, vector<256x4xf32>,
    %c0_32 = arith.constant 0 : index
    %c1_33 = arith.constant 1 : index
    %c0_34 = arith.constant 0 : index
    %19 = vector.load %arg7[%c0_32, %c1_33, %c0_34] : memref<18x18x4xf32, #tpu.memory_space<vmem>>, vector<16x16x4xf32>
    %20 = vector.shape_cast %19 : vector<16x16x4xf32> to vector<256x4xf32>
    %c0_35 = arith.constant 0 : index
    %c40 = arith.constant 40 : index
    %21 = vector.load %arg8[%c0_35, %c40] : memref<256x72xf32, #tpu.memory_space<vmem>>, vector<256x4xf32>
    tpu.vector_store %arg8[%c0_35, %c40], %20 {strides = array<i32>} : memref<256x72xf32, #tpu.memory_space<vmem>>, vector<256x4xf32>,
    %c0_36 = arith.constant 0 : index
    %c2 = arith.constant 2 : index
    %c0_37 = arith.constant 0 : index
    %22 = vector.load %arg6[%c0_36, %c2, %c0_37] : memref<18x18x4xf32, #tpu.memory_space<vmem>>, vector<16x16x4xf32>
    %23 = vector.shape_cast %22 : vector<16x16x4xf32> to vector<256x4xf32>
    %c0_38 = arith.constant 0 : index
    %c8 = arith.constant 8 : index
    %24 = vector.load %arg8[%c0_38, %c8] : memref<256x72xf32, #tpu.memory_space<vmem>>, vector<256x4xf32>
    tpu.vector_store %arg8[%c0_38, %c8], %23 {strides = array<i32>} : memref<256x72xf32, #tpu.memory_space<vmem>>, vector<256x4xf32>,
    %c0_39 = arith.constant 0 : index
    %c2_40 = arith.constant 2 : index
    %c0_41 = arith.constant 0 : index
    %25 = vector.load %arg7[%c0_39, %c2_40, %c0_41] : memref<18x18x4xf32, #tpu.memory_space<vmem>>, vector<16x16x4xf32>
    %26 = vector.shape_cast %25 : vector<16x16x4xf32> to vector<256x4xf32>
    %c0_42 = arith.constant 0 : index
    %c44 = arith.constant 44 : index
    %27 = vector.load %arg8[%c0_42, %c44] : memref<256x72xf32, #tpu.memory_space<vmem>>, vector<256x4xf32>
    tpu.vector_store %arg8[%c0_42, %c44], %26 {strides = array<i32>} : memref<256x72xf32, #tpu.memory_space<vmem>>, vector<256x4xf32>,
    %c1_43 = arith.constant 1 : index
    %c0_44 = arith.constant 0 : index
    %c0_45 = arith.constant 0 : index
    %28 = vector.load %arg6[%c1_43, %c0_44, %c0_45] : memref<18x18x4xf32, #tpu.memory_space<vmem>>, vector<16x16x4xf32>
    %29 = vector.shape_cast %28 : vector<16x16x4xf32> to vector<256x4xf32>
    %c0_46 = arith.constant 0 : index
    %c12 = arith.constant 12 : index
    %30 = vector.load %arg8[%c0_46, %c12] : memref<256x72xf32, #tpu.memory_space<vmem>>, vector<256x4xf32>
    tpu.vector_store %arg8[%c0_46, %c12], %29 {strides = array<i32>} : memref<256x72xf32, #tpu.memory_space<vmem>>, vector<256x4xf32>,
    %c1_47 = arith.constant 1 : index
    %c0_48 = arith.constant 0 : index
    %c0_49 = arith.constant 0 : index
    %31 = vector.load %arg7[%c1_47, %c0_48, %c0_49] : memref<18x18x4xf32, #tpu.memory_space<vmem>>, vector<16x16x4xf32>
    %32 = vector.shape_cast %31 : vector<16x16x4xf32> to vector<256x4xf32>
    %c0_50 = arith.constant 0 : index
    %c48 = arith.constant 48 : index
    %33 = vector.load %arg8[%c0_50, %c48] : memref<256x72xf32, #tpu.memory_space<vmem>>, vector<256x4xf32>
    tpu.vector_store %arg8[%c0_50, %c48], %32 {strides = array<i32>} : memref<256x72xf32, #tpu.memory_space<vmem>>, vector<256x4xf32>,
    %c1_51 = arith.constant 1 : index
    %c1_52 = arith.constant 1 : index
    %c0_53 = arith.constant 0 : index
    %34 = vector.load %arg6[%c1_51, %c1_52, %c0_53] : memref<18x18x4xf32, #tpu.memory_space<vmem>>, vector<16x16x4xf32>
    %35 = vector.shape_cast %34 : vector<16x16x4xf32> to vector<256x4xf32>
    %c0_54 = arith.constant 0 : index
    %c16 = arith.constant 16 : index
    %36 = vector.load %arg8[%c0_54, %c16] : memref<256x72xf32, #tpu.memory_space<vmem>>, vector<256x4xf32>
    tpu.vector_store %arg8[%c0_54, %c16], %35 {strides = array<i32>} : memref<256x72xf32, #tpu.memory_space<vmem>>, vector<256x4xf32>,
    %c1_55 = arith.constant 1 : index
    %c1_56 = arith.constant 1 : index
    %c0_57 = arith.constant 0 : index
    %37 = vector.load %arg7[%c1_55, %c1_56, %c0_57] : memref<18x18x4xf32, #tpu.memory_space<vmem>>, vector<16x16x4xf32>
    %38 = vector.shape_cast %37 : vector<16x16x4xf32> to vector<256x4xf32>
    %c0_58 = arith.constant 0 : index
    %c52 = arith.constant 52 : index
    %39 = vector.load %arg8[%c0_58, %c52] : memref<256x72xf32, #tpu.memory_space<vmem>>, vector<256x4xf32>
    tpu.vector_store %arg8[%c0_58, %c52], %38 {strides = array<i32>} : memref<256x72xf32, #tpu.memory_space<vmem>>, vector<256x4xf32>,
    %c1_59 = arith.constant 1 : index
    %c2_60 = arith.constant 2 : index
    %c0_61 = arith.constant 0 : index
    %40 = vector.load %arg6[%c1_59, %c2_60, %c0_61] : memref<18x18x4xf32, #tpu.memory_space<vmem>>, vector<16x16x4xf32>
    %41 = vector.shape_cast %40 : vector<16x16x4xf32> to vector<256x4xf32>
    %c0_62 = arith.constant 0 : index
    %c20 = arith.constant 20 : index
    %42 = vector.load %arg8[%c0_62, %c20] : memref<256x72xf32, #tpu.memory_space<vmem>>, vector<256x4xf32>
    tpu.vector_store %arg8[%c0_62, %c20], %41 {strides = array<i32>} : memref<256x72xf32, #tpu.memory_space<vmem>>, vector<256x4xf32>,
    %c1_63 = arith.constant 1 : index
    %c2_64 = arith.constant 2 : index
    %c0_65 = arith.constant 0 : index
    %43 = vector.load %arg7[%c1_63, %c2_64, %c0_65] : memref<18x18x4xf32, #tpu.memory_space<vmem>>, vector<16x16x4xf32>
    %44 = vector.shape_cast %43 : vector<16x16x4xf32> to vector<256x4xf32>
    %c0_66 = arith.constant 0 : index
    %c56 = arith.constant 56 : index
    %45 = vector.load %arg8[%c0_66, %c56] : memref<256x72xf32, #tpu.memory_space<vmem>>, vector<256x4xf32>
    tpu.vector_store %arg8[%c0_66, %c56], %44 {strides = array<i32>} : memref<256x72xf32, #tpu.memory_space<vmem>>, vector<256x4xf32>,
    %c2_67 = arith.constant 2 : index
    %c0_68 = arith.constant 0 : index
    %c0_69 = arith.constant 0 : index
    %46 = vector.load %arg6[%c2_67, %c0_68, %c0_69] : memref<18x18x4xf32, #tpu.memory_space<vmem>>, vector<16x16x4xf32>
    %47 = vector.shape_cast %46 : vector<16x16x4xf32> to vector<256x4xf32>
    %c0_70 = arith.constant 0 : index
    %c24 = arith.constant 24 : index
    %48 = vector.load %arg8[%c0_70, %c24] : memref<256x72xf32, #tpu.memory_space<vmem>>, vector<256x4xf32>
    tpu.vector_store %arg8[%c0_70, %c24], %47 {strides = array<i32>} : memref<256x72xf32, #tpu.memory_space<vmem>>, vector<256x4xf32>,
    %c2_71 = arith.constant 2 : index
    %c0_72 = arith.constant 0 : index
    %c0_73 = arith.constant 0 : index
    %49 = vector.load %arg7[%c2_71, %c0_72, %c0_73] : memref<18x18x4xf32, #tpu.memory_space<vmem>>, vector<16x16x4xf32>
    %50 = vector.shape_cast %49 : vector<16x16x4xf32> to vector<256x4xf32>
    %c0_74 = arith.constant 0 : index
    %c60 = arith.constant 60 : index
    %51 = vector.load %arg8[%c0_74, %c60] : memref<256x72xf32, #tpu.memory_space<vmem>>, vector<256x4xf32>
    tpu.vector_store %arg8[%c0_74, %c60], %50 {strides = array<i32>} : memref<256x72xf32, #tpu.memory_space<vmem>>, vector<256x4xf32>,
    %c2_75 = arith.constant 2 : index
    %c1_76 = arith.constant 1 : index
    %c0_77 = arith.constant 0 : index
    %52 = vector.load %arg6[%c2_75, %c1_76, %c0_77] : memref<18x18x4xf32, #tpu.memory_space<vmem>>, vector<16x16x4xf32>
    %53 = vector.shape_cast %52 : vector<16x16x4xf32> to vector<256x4xf32>
    %c0_78 = arith.constant 0 : index
    %c28 = arith.constant 28 : index
    %54 = vector.load %arg8[%c0_78, %c28] : memref<256x72xf32, #tpu.memory_space<vmem>>, vector<256x4xf32>
    tpu.vector_store %arg8[%c0_78, %c28], %53 {strides = array<i32>} : memref<256x72xf32, #tpu.memory_space<vmem>>, vector<256x4xf32>,
    %c2_79 = arith.constant 2 : index
    %c1_80 = arith.constant 1 : index
    %c0_81 = arith.constant 0 : index
    %55 = vector.load %arg7[%c2_79, %c1_80, %c0_81] : memref<18x18x4xf32, #tpu.memory_space<vmem>>, vector<16x16x4xf32>
    %56 = vector.shape_cast %55 : vector<16x16x4xf32> to vector<256x4xf32>
    %c0_82 = arith.constant 0 : index
    %c64 = arith.constant 64 : index
    %57 = vector.load %arg8[%c0_82, %c64] : memref<256x72xf32, #tpu.memory_space<vmem>>, vector<256x4xf32>
    tpu.vector_store %arg8[%c0_82, %c64], %56 {strides = array<i32>} : memref<256x72xf32, #tpu.memory_space<vmem>>, vector<256x4xf32>,
    %c2_83 = arith.constant 2 : index
    %c2_84 = arith.constant 2 : index
    %c0_85 = arith.constant 0 : index
    %58 = vector.load %arg6[%c2_83, %c2_84, %c0_85] : memref<18x18x4xf32, #tpu.memory_space<vmem>>, vector<16x16x4xf32>
    %59 = vector.shape_cast %58 : vector<16x16x4xf32> to vector<256x4xf32>
    %c0_86 = arith.constant 0 : index
    %c32 = arith.constant 32 : index
    %60 = vector.load %arg8[%c0_86, %c32] : memref<256x72xf32, #tpu.memory_space<vmem>>, vector<256x4xf32>
    tpu.vector_store %arg8[%c0_86, %c32], %59 {strides = array<i32>} : memref<256x72xf32, #tpu.memory_space<vmem>>, vector<256x4xf32>,
    %c2_87 = arith.constant 2 : index
    %c2_88 = arith.constant 2 : index
    %c0_89 = arith.constant 0 : index
    %61 = vector.load %arg7[%c2_87, %c2_88, %c0_89] : memref<18x18x4xf32, #tpu.memory_space<vmem>>, vector<16x16x4xf32>
    %62 = vector.shape_cast %61 : vector<16x16x4xf32> to vector<256x4xf32>
    %c0_90 = arith.constant 0 : index
    %c68 = arith.constant 68 : index
    %63 = vector.load %arg8[%c0_90, %c68] : memref<256x72xf32, #tpu.memory_space<vmem>>, vector<256x4xf32>
    tpu.vector_store %arg8[%c0_90, %c68], %62 {strides = array<i32>} : memref<256x72xf32, #tpu.memory_space<vmem>>, vector<256x4xf32>,
    %c0_91 = arith.constant 0 : index
    %c0_92 = arith.constant 0 : index
    %64 = vector.load %arg8[%c0_91, %c0_92] : memref<256x72xf32, #tpu.memory_space<vmem>>, vector<256x72xf32>
    %c0_93 = arith.constant 0 : index
    %c0_94 = arith.constant 0 : index
    %65 = vector.load %arg3[%c0_93, %c0_94] : memref<72x8xf32, #tpu.memory_space<vmem>>, vector<72x8xf32>
    %cst_95 = arith.constant dense<0.000000e+00> : vector<256x8xf32>
    %66 = tpu.matmul %64, %65, %cst_95 {dimension_numbers = #tpu.dot_dimension_numbers<[1], [0], [0], [1], [0, 0, 1, 1], [], []>} : vector<256x72xf32>, vector<72x8xf32>, vector<256x8xf32> -> vector<256x8xf32>
    %67 = vector.shape_cast %66 : vector<256x8xf32> to vector<16x16x8xf32>
    %c0_96 = arith.constant 0 : index
    %c0_97 = arith.constant 0 : index
    %c0_98 = arith.constant 0 : index
    %c0_99 = arith.constant 0 : index
    %68 = vector.load %arg4[%c0_96, %c0_97, %c0_98, %c0_99] : memref<1x16x16x8xf32, #tpu.memory_space<vmem>>, vector<1x16x16x8xf32>
    %69 = vector.shape_cast %68 : vector<1x16x16x8xf32> to vector<16x16x8xf32>
    %70 = vector.shape_cast %67 : vector<16x16x8xf32> to vector<1x16x16x8xf32>
    tpu.vector_store %arg4[%c0_96, %c0_97, %c0_98, %c0_99], %70 {strides = array<i32>} : memref<1x16x16x8xf32, #tpu.memory_space<vmem>>, vector<1x16x16x8xf32>,
    %cst_100 = arith.constant dense<0.000000e+00> : vector<8xf32>
    %71 = vector.multi_reduction <add>, %66, %cst_100 [0] : vector<256x8xf32> to vector<8xf32>
    %72 = vector.shape_cast %71 : vector<8xf32> to vector<1x8xf32>
    %c0_101 = arith.constant 0 : index
    %c0_102 = arith.constant 0 : index
    %c0_103 = arith.constant 0 : index
    %73 = vector.load %arg5[%c0_101, %c0_102, %c0_103] : memref<1x2x8xf32, #tpu.memory_space<vmem>>, vector<1x1x8xf32>
    %74 = vector.shape_cast %73 : vector<1x1x8xf32> to vector<1x8xf32>
    %75 = vector.shape_cast %72 : vector<1x8xf32> to vector<1x1x8xf32>
    tpu.vector_store %arg5[%c0_101, %c0_102, %c0_103], %75 {strides = array<i32>} : memref<1x2x8xf32, #tpu.memory_space<vmem>>, vector<1x1x8xf32>,
    %76 = arith.mulf %66, %66 : vector<256x8xf32>
    %cst_104 = arith.constant dense<0.000000e+00> : vector<8xf32>
    %77 = vector.multi_reduction <add>, %76, %cst_104 [0] : vector<256x8xf32> to vector<8xf32>
    %78 = vector.shape_cast %77 : vector<8xf32> to vector<1x8xf32>
    %c0_105 = arith.constant 0 : index
    %c1_106 = arith.constant 1 : index
    %c0_107 = arith.constant 0 : index
    %79 = vector.load %arg5[%c0_105, %c1_106, %c0_107] : memref<1x2x8xf32, #tpu.memory_space<vmem>>, vector<1x1x8xf32>
    %80 = vector.shape_cast %79 : vector<1x1x8xf32> to vector<1x8xf32>
    %81 = vector.shape_cast %78 : vector<1x8xf32> to vector<1x1x8xf32>
    tpu.vector_store %arg5[%c0_105, %c1_106, %c0_107], %81 {strides = array<i32>} : memref<1x2x8xf32, #tpu.memory_space<vmem>>, vector<1x1x8xf32>,
    return
  }
  func.func @transform_0(%arg0: i32) -> (i32, i32, i32, i32) {
    %c0_i32 = arith.constant 0 : i32
    %c0_i32_0 = arith.constant 0 : i32
    %c0_i32_1 = arith.constant 0 : i32
    %c0_i32_2 = arith.constant 0 : i32
    return %arg0, %c0_i32, %c0_i32_0, %c0_i32_1 : i32, i32, i32, i32
  }
  func.func @transform_1(%arg0: i32) -> (i32, i32, i32, i32) {
    %c0_i32 = arith.constant 0 : i32
    %c0_i32_0 = arith.constant 0 : i32
    %c0_i32_1 = arith.constant 0 : i32
    %c0_i32_2 = arith.constant 0 : i32
    return %arg0, %c0_i32, %c0_i32_0, %c0_i32_1 : i32, i32, i32, i32
  }
  func.func @transform_2(%arg0: i32) -> (i32, i32) {
    %c0_i32 = arith.constant 0 : i32
    %c0_i32_0 = arith.constant 0 : i32
    %c0_i32_1 = arith.constant 0 : i32
    return %c0_i32, %c0_i32_0 : i32, i32
  }
  func.func @transform_3(%arg0: i32) -> (i32, i32, i32, i32) {
    %c0_i32 = arith.constant 0 : i32
    %c0_i32_0 = arith.constant 0 : i32
    %c0_i32_1 = arith.constant 0 : i32
    %c0_i32_2 = arith.constant 0 : i32
    return %arg0, %c0_i32, %c0_i32_0, %c0_i32_1 : i32, i32, i32, i32
  }
  func.func @transform_4(%arg0: i32) -> (i32, i32, i32) {
    %c0_i32 = arith.constant 0 : i32
    %c0_i32_0 = arith.constant 0 : i32
    %c0_i32_1 = arith.constant 0 : i32
    return %arg0, %c0_i32, %c0_i32_0 : i32, i32, i32
  }
}

module attributes {stable_mosaic.version = 11 : i64} {
  func.func @bn_relu_kernel(%arg0: i32, %arg1: memref<32x128xf32, #tpu.memory_space<vmem>>, %arg2: memref<1x128xf32, #tpu.memory_space<vmem>>, %arg3: memref<1x128xf32, #tpu.memory_space<vmem>>, %arg4: memref<32x128xf32, #tpu.memory_space<vmem>>) attributes {dimension_semantics = [#tpu.dimension_semantics<parallel>], iteration_bounds = array<i64: 1>, scalar_prefetch = 0 : i64, scratch_operands = 0 : i64, tpu.core_type = #tpu.core_type<tc>, window_params = [{transform_indices = @transform_0, window_bounds = array<i64: 32, 128>}, {pipeline_mode = #tpu.pipeline_mode<synchronous>, transform_indices = @transform_1, window_bounds = array<i64: 1, 128>}, {pipeline_mode = #tpu.pipeline_mode<synchronous>, transform_indices = @transform_2, window_bounds = array<i64: 1, 128>}, {transform_indices = @transform_3, window_bounds = array<i64: 32, 128>}]} {
    %c0 = arith.constant 0 : index
    %c0_0 = arith.constant 0 : index
    %0 = vector.load %arg1[%c0, %c0_0] : memref<32x128xf32, #tpu.memory_space<vmem>>, vector<32x128xf32>
    %c0_1 = arith.constant 0 : index
    %c0_2 = arith.constant 0 : index
    %1 = vector.load %arg2[%c0_1, %c0_2] : memref<1x128xf32, #tpu.memory_space<vmem>>, vector<1x128xf32>
    %2 = vector.broadcast %1 : vector<1x128xf32> to vector<32x128xf32>
    %3 = arith.mulf %0, %2 : vector<32x128xf32>
    %c0_3 = arith.constant 0 : index
    %c0_4 = arith.constant 0 : index
    %4 = vector.load %arg3[%c0_3, %c0_4] : memref<1x128xf32, #tpu.memory_space<vmem>>, vector<1x128xf32>
    %5 = vector.broadcast %4 : vector<1x128xf32> to vector<32x128xf32>
    %6 = arith.addf %3, %5 : vector<32x128xf32>
    %cst = arith.constant 0.000000e+00 : f32
    %7 = vector.broadcast %cst : f32 to vector<32x128xf32>
    %8 = arith.maximumf %6, %7 : vector<32x128xf32>
    %c0_5 = arith.constant 0 : index
    %c0_6 = arith.constant 0 : index
    %9 = vector.load %arg4[%c0_5, %c0_6] : memref<32x128xf32, #tpu.memory_space<vmem>>, vector<32x128xf32>
    tpu.vector_store %arg4[%c0_5, %c0_6], %8 {strides = array<i32>} : memref<32x128xf32, #tpu.memory_space<vmem>>, vector<32x128xf32>,
    return
  }
  func.func @transform_0(%arg0: i32) -> (i32, i32) {
    %c0_i32 = arith.constant 0 : i32
    %c0_i32_0 = arith.constant 0 : i32
    return %arg0, %c0_i32 : i32, i32
  }
  func.func @transform_1(%arg0: i32) -> (i32, i32) {
    %c0_i32 = arith.constant 0 : i32
    %c0_i32_0 = arith.constant 0 : i32
    %c0_i32_1 = arith.constant 0 : i32
    return %c0_i32, %c0_i32_0 : i32, i32
  }
  func.func @transform_2(%arg0: i32) -> (i32, i32) {
    %c0_i32 = arith.constant 0 : i32
    %c0_i32_0 = arith.constant 0 : i32
    %c0_i32_1 = arith.constant 0 : i32
    return %c0_i32, %c0_i32_0 : i32, i32
  }
  func.func @transform_3(%arg0: i32) -> (i32, i32) {
    %c0_i32 = arith.constant 0 : i32
    %c0_i32_0 = arith.constant 0 : i32
    return %arg0, %c0_i32 : i32, i32
  }
}

</mosaic_0001>

<bundles_post_ra>
// kernel: tile.17
= control target key start
LH: loop header
LB: loop body
LE: loop exit
PB: predicated region body
PF: predicated region fallthrough
CT: control target
= control target key end

     0   :  { %vm8_vm0 = vcmask 31744   ;;  %vm14_vm1 = vcmask 64544   ;;  %s42_s0 = inlined_call_operand.vmem [shape: f32[2,4], index: 0, kind: input, shape index: {}]   ;;  %s43_s1 = inlined_call_operand.vmem [shape: f32[1,8], index: 1, kind: output, shape index: {}]  }
   0x1   :  { %v5_v0 = vld [vmem:[%s42_s0] sm:$0x3]  ;;  %s25_s0 = smov 4  }
   0x2   :  { %6 = vst [vmem:[#allocation1] sm:$0x3] %v5_v0 }
   0x9   :  { %v11_v1 = vld [vmem:[#allocation1 + $0x1] sm:$0x1]   ;;  %v7_v2 = vld [vmem:[#allocation1] sm:$0x1]  }
   0xa   :  { %12 = vrot.lane.b32.xlu0 %v11_v1, %s25_s0  ;;  %9 = vst.msk [vmem:[#allocation0] sm:$0x1] %vm8_vm0, %v7_v2  }
  0x7c   :  { %v13_v3 = vpop.permute.xlu0 %12  }
  0x7d   :  { %15 = vst.msk [vmem:[#allocation0] sm:$0x1] %vm14_vm1, %v13_v3  }
  0x84   :  { %v20_v4 = vld [vmem:[#allocation0] sm:$0x1] }
  0x85   :  { %23 = vst [vmem:[%s43_s1] sm:$0x1] %v20_v4 }

// kernel: tile.16
= control target key start
LH: loop header
LB: loop body
LE: loop exit
PB: predicated region body
PF: predicated region fallthrough
CT: control target
= control target key end

     0   :  { %2 = vsyncpa [#allocation1], 0  ;;  %s42_s6 = smov [#allocation0]   ;;  %s59_s0 = inlined_call_operand.hbm [shape: f32[4], index: 0, kind: input, shape index: {}]   ;;  %s60_s1 = inlined_call_operand.vmem [shape: f32[2,4], index: 1, kind: output, shape index: {}]  }
   0x1   :  { %s9_s7 = sshll.u32 %s42_s6, 4  ;;  %s10_s7 = int_to_ptr.vmem [resolvable:$true] %s9_s7 }
   0x2   :  { %s28_s8 = scalar_lea.vmem %s10_s7, 16  ;;  %s32_s9 = scalar_lea.vmem %s10_s7, 32 }
   0x3   :  { %p29_p0 = scmp.ne.s32.totalorder %s10_s7, %s28_s8  ;;  %p33_p1 = scmp.lt.s32.totalorder %s10_s7, %s10_s7 }
   0x4   :  { %p34_p2 = scmp.lt.s32.totalorder %s32_s9, %s28_s8 }
   0x6   :  { %p35_p3 = por %p34_p2, %p33_p1 }
   0x8   :  { %p36_p4 = pnand %p35_p3, %p29_p0 }
   0xa   :  { %39 = shalt.err (!%p36_p4)
}
   0xb   :  { %12 = dma.hbm_to_vmem [thread:$0]  %s59_s0, 16, %s10_s7, [#allocation1]  }
   0xc   :  { %40 = dma.done.wait [#allocation1], 16  }
   0xd   :  { %41 = vsyncadd [#allocation1], 4294967280  ;;  %v16_v0 = vld [vmem:[#allocation0] ss:$0 sm:$0xff] }
   0xe   :  { %17 = vst [vmem:[%s60_s1] sm:$0x3] %v16_v0 }
   0xf   :  { %18 = vsyncpa [#allocation1], 1 }

// kernel: normal_up_forward.4
= control target key start
LH: loop header
LB: loop body
LE: loop exit
PB: predicated region body
PF: predicated region fallthrough
CT: control target
= control target key end

     0   :  { %s626_s15 = smov 0   ;;  %s628_s16 = smov 0   ;;  %s695_s0 = inlined_call_operand.vmem [shape: f32[2,8,8,8], index: 0, kind: input, shape index: {}]   ;;  %s696_s1 = inlined_call_operand.vmem [shape: f32[8,8], index: 1, kind: input, shape index: {}]   ;;  %s697_s2 = inlined_call_operand.vmem [shape: f32[8,8], index: 2, kind: input, shape index: {}]   ;;  %s698_s3 = inlined_call_operand.vmem [shape: f32[1,8], index: 3, kind: input, shape index: {}]   ;;  %s699_s4 = inlined_call_operand.vmem [shape: f32[2,16,8,8], index: 4, kind: output, shape index: {}]  }
   0x1   :  { %s630_s17 = smov 0   ;;  %s632_s18 = smov 0  }
   0x2   :  { %s634_s19 = smov 0  }
   0x3 LB: > { %s23_s20 = sadd.s32 1, %s589_s17  ;;  %s26_s21 = sadd.s32 1, %s593_s18  ;;  %s597_s19 = sphi %s634_s19, %s14_s19   ;;  %s593_s18 = sphi %s632_s18, %s703_s18   ;;  %s589_s17 = sphi %s630_s17, %s702_s17   ;;  %s585_s16 = sphi %s628_s16, %s701_s16   ;;  %s581_s15 = sphi %s626_s15, %s700_s15  }
   0x4   : > { %p24_p0 = scmp.ge.s32.totalorder %s23_s20, 8  ;;  %p490_p1 = scmp.ge.s32.totalorder %s597_s19, 1 }
   0x5   : > { %p181_p2 = scmp.lt.s32.totalorder %s597_s19, 17 }
   0x6   : > { %s705_s20 = smov (%p24_p0, %s23_s20), 0  ;;  %s707_s21 = smov (!%p24_p0, %s26_s21), %s593_s18 }
   0x7   : > { %p182_p3 = pnand %p490_p1, %p181_p2  ;;  %p28_p4 = scmp.ge.s32.totalorder %s707_s21, 2 }
   0x8   : > { %p214_p5 = scmp.lt.s32.totalorder (!%p182_p3), %s585_s16, 1  ;;  %p216_p6 = scmp.lt.s32.totalorder (!%p182_p3), %s581_s15, 7 }
   0x9   : > { %s709_s21 = smov (%p28_p4, %s707_s21), 0  ;;  %185 = sbr.rel (%p182_p3) target bundleno = 217 (0xd9), region = 36 }
   0xa   : > { %s493_s7 = sshll.u32 (!%p182_p3), %s581_s15, 1 }
   0xb   : > { %p225_p7 = scmp.lt.s32.totalorder (!%p182_p3), %s493_s7, 15 }
   0xe   : > { %v233_v0 = vld [vmem:[%s696_s1] sm:$0xff]  ;;  %v599_v2 = vmov 0.0   ;;  %vm600_vm0 = vmmov 0   ;;  %s711_s16 = smov (!%p214_p5, %s585_s16), 1  ;;  %vm241_vm1 = vcmask 64512   ;;  %s713_s7 = smov (!%p225_p7, %s493_s7), 15 }
   0xf   : > { %v316_v1 = vld [vmem:[%s697_s2] sm:$0xff]  ;;  %507 = vmatprep.subr.mxu0 %v599_v2  ;;  %512 = vmatprep.subr.mxu1 %v599_v2  ;;  %s217_s26 = scalar_select %p216_p6, %s581_s15, 7 }
  0x10   : > { %508 = vmatpush3.msra.mxu0 %v233_v0  ;;  %509 = vmatprep.mubr.msk.f32.mxu0 %vm600_vm0, %v599_v2  ;;  %s491_s27 = sshll.u32 %s711_s16, 3  ;;  %s494_s8 = sshll.u32 %s711_s16, 4  ;;  %v496_v4 = vld [vmem:[%s698_s3] ss:$0 sm:$0xff] }
  0x11   : > { %513 = vmatpush3.msra.mxu1 %v316_v1  ;;  %514 = vmatprep.mubr.msk.f32.mxu1 %vm600_vm0, %v599_v2  ;;  %s219_s28 = sadd.s32 %s491_s27, %s217_s26  ;;  %s228_s9 = sadd.s32 %s494_s8, %s713_s7 }
  0x12   : > { %s492_s29 = sshll.u32 %s219_s28, 3  ;;  %s495_s10 = sshll.u32 %s228_s9, 3 }
  0x13   : > { %s221_s6 = scalar_lea.vmem %s695_s0, %s492_s29  ;;  %s230_s22 = scalar_lea.vmem %s699_s4, %s495_s10 }
  0x14   : > { %v232_v3 = vld [vmem:[%s221_s6] sm:$0xff] }
  0x15   : > { %510 = vmatmul.mubr.msk.f32.vlgmr.msra.gmra.mxu0 %vm241_vm1, %v232_v3  ;;  %515 = vmatmul.mubr.msk.f32.vlgmr.msra.gmra.mxu1 %vm241_vm1, %v232_v3 }
  0xd5   : > { %v311_v5 = vpop.f32.mrf.mxu0  ;;  %v390_v6 = vpop.f32.mrf.mxu1 }
  0xd6   : > { %v312_v7 = vadd.f32 %v496_v4, %v311_v5  ;;  %v391_v8 = vadd.f32 %v496_v4, %v390_v6 }
  0xd7   : > { %v511_v9 = vpop.f32.mrf.mxu0  ;;  %v516_v10 = vpop.f32.mrf.mxu1 }
  0xd8   : > { %315 = vst.msk [vmem:[%s230_s22] sm:$0xff] %vm241_vm1, %v312_v7  ;;  %500 = vst.msk [vmem:[%s230_s22 + $0x8] sm:$0xff] %vm241_vm1, %v391_v8 }
  0xd9 PF: > { %s14_s19 = sadd.s32 1, %s597_s19   ;;  %s700_s15 = smov %s589_s17 }
  0xda   : > { %p11_p8 = scmp.ge.s32.totalorder %s14_s19, 18   ;;  %s701_s16 = smov %s593_s18 }
  0xdb   : > { %s702_s17 = smov %s705_s20  ;;  %s703_s18 = smov %s709_s21 }
  0xdc   :  { %13 = sbr.rel (!%p11_p8) target bundleno = 3 (0x3), region = 67 }

// kernel: normal_up_forward.7
= control target key start
LH: loop header
LB: loop body
LE: loop exit
PB: predicated region body
PF: predicated region fallthrough
CT: control target
= control target key end

     0   :  { %s104_s0 = inlined_call_operand.vmem [shape: f32[32,128], index: 0, kind: input, shape index: {}]   ;;  %s105_s1 = inlined_call_operand.vmem [shape: f32[1,128], index: 1, kind: input, shape index: {}]   ;;  %s106_s2 = inlined_call_operand.vmem [shape: f32[1,128], index: 2, kind: input, shape index: {}]   ;;  %s107_s3 = inlined_call_operand.vmem [shape: f32[32,128], index: 3, kind: output, shape index: {}]  }
   0x1   :  { %v14_v0 = vld [vmem:[%s104_s0] sm:$0xff]  ;;  %v15_v4 = vld [vmem:[%s104_s0 + $0x8] sm:$0xff]  ;;  %v16_v5 = vld [vmem:[%s104_s0 + $0x10] sm:$0xff] }
   0x2   :  { %v52_v1 = vld [vmem:[%s105_s1] ss:$0 sm:$0xff]  ;;  %v17_v6 = vld [vmem:[%s104_s0 + $0x18] sm:$0xff] }
   0x3   :  { %v53_v2 = vld [vmem:[%s106_s2] ss:$0 sm:$0xff]  ;;  %v25_v3 = vmul.f32 %v52_v1, %v14_v0  ;;  %v26_v7 = vmul.f32 %v52_v1, %v15_v4  ;;  %v27_v8 = vmul.f32 %v52_v1, %v16_v5  ;;  %v28_v9 = vmul.f32 %v52_v1, %v17_v6 }
   0x5   :  { %v36_v10 = vadd.f32 %v53_v2, %v25_v3  ;;  %v37_v11 = vadd.f32 %v53_v2, %v26_v7  ;;  %v38_v12 = vadd.f32 %v53_v2, %v27_v8  ;;  %v39_v13 = vadd.f32 %v53_v2, %v28_v9 }
   0x7   :  { %v40_v14 = vmax.f32 %v36_v10, 0.0  ;;  %v41_v15 = vmax.f32 %v37_v11, 0.0  ;;  %v42_v16 = vmax.f32 %v38_v12, 0.0  ;;  %v43_v17 = vmax.f32 %v39_v13, 0.0 }
   0x9   :  { %44 = vst [vmem:[%s107_s3] sm:$0xff] %v40_v14  ;;  %45 = vst [vmem:[%s107_s3 + $0x8] sm:$0xff] %v41_v15 }
   0xa   :  { %46 = vst [vmem:[%s107_s3 + $0x10] sm:$0xff] %v42_v16  ;;  %47 = vst [vmem:[%s107_s3 + $0x18] sm:$0xff] %v43_v17 }

// kernel: normal_up_forward.6
= control target key start
LH: loop header
LB: loop body
LE: loop exit
PB: predicated region body
PF: predicated region fallthrough
CT: control target
= control target key end

     0   :  { %s2969_s18 = smov 0   ;;  %s4166_s0 = inlined_call_operand.vmem [shape: f32[2,16,16,8], index: 0, kind: input, shape index: {}]   ;;  %s4167_s1 = inlined_call_operand.vmem [shape: f32[1,1,8], index: 1, kind: input, shape index: {}]   ;;  %s4168_s2 = inlined_call_operand.vmem [shape: f32[1,1,8], index: 2, kind: input, shape index: {}]   ;;  %s4169_s3 = inlined_call_operand.vmem [shape: f32[72,8], index: 3, kind: input, shape index: {}]   ;;  %s4170_s4 = inlined_call_operand.vmem [shape: f32[2,16,16,8], index: 4, kind: output, shape index: {0}]   ;;  %s4171_s5 = inlined_call_operand.vmem [shape: f32[2,2,8], index: 5, kind: output, shape index: {1}]  }
   0x1 LB: > { %s2730_s19 = sadd.s32 4294967295, %s2928_s18   ;;  %p2734_p0 = scmp.ge.s32.totalorder %s2928_s18, 1  ;;  %s2928_s18 = sphi %s2969_s18, %s16_s18  }
   0x2   : > { %p190_p1 = scmp.lt.s32.totalorder %s2928_s18, 3 }
   0x4   : > { %p191_p2 = pnand %p2734_p0, %p190_p1 }
   0x5   : > { %p2979_p3 = scmp.lt.s32.totalorder (!%p191_p2), %s2730_s19, 1  ;;  %s2931_s29 = smov (!%p191_p2), 8  }
   0x6   : > { %194 = sbr.rel (%p191_p2) target bundleno = 893 (0x37d), region = 36  ;;  %s2932_s30 = smov (!%p191_p2), 16  }
   0x7   : > { %s2933_s6 = smov (!%p191_p2), 24   ;;  %s2934_s7 = smov (!%p191_p2), 32  }
   0x8   : > { %s2935_s8 = smov (!%p191_p2), 40   ;;  %s2936_s13 = smov (!%p191_p2), 48  }
   0x9   : > { %s2937_s20 = smov (!%p191_p2), 56   ;;  %s2938_s9 = smov (!%p191_p2), 64  }
   0xb   : > { %vm236_vm0 = vcmask 64512   ;;  %vm239_vm1 = vcmask 58368   ;;  %v2930_v0 = vmov 0.0   ;;  %s4174_s19 = smov (!%p2979_p3, %s2730_s19), 1  ;;  %v3047_v1 = vld [vmem:[%s4167_s1] ss:$0 sm:$0xff] }
   0xc   : > { %237 = vst.msk [vmem:[#allocation2] sm:$0xff] %vm236_vm0, %v2930_v0  ;;  %238 = vst.msk [vmem:[#allocation2 + $0x8] sm:$0xff] %vm236_vm0, %v2930_v0  ;;  %s2776_s21 = sshll.u32 %s4174_s19, 8  ;;  %v3059_v2 = vld [vmem:[%s4168_s2] ss:$0 sm:$0xff]  ;;  %vm691_vm2 = vcmask 130112  }
   0xd   : > { %241 = vst.msk [vmem:[#allocation2 + $0x18] sm:$0xff] %vm236_vm0, %v2930_v0  ;;  %242 = vst.msk [vmem:[#allocation2 + $0x20] sm:$0xff] %vm236_vm0, %v2930_v0  ;;  %s3054_s26 = scalar_lea.vmem %s4166_s0, %s2776_s21  ;;  %vm884_vm3 = vcmask 195712   ;;  %vm1077_vm4 = vcmask 261312   ;;  %vm1270_vm5 = vcmask 326912   ;;  %vm1463_vm6 = vcmask 392512  }
   0xe   : > { %244 = vst.msk [vmem:[#allocation2 + $0x30] sm:$0xff] %vm236_vm0, %v2930_v0  ;;  %245 = vst.msk [vmem:[#allocation2 + $0x38] sm:$0xff] %vm236_vm0, %v2930_v0  ;;  %v292_v3 = vld [vmem:[%s3054_s26] sm:$0xff]  ;;  %v294_v4 = vld [vmem:[%s3054_s26 + $0x10] sm:$0xff]  ;;  %vm1657_vm7 = vcmask 458112   ;;  %vm1850_vm8 = vcmask 523712  }
   0xf   : > { %247 = vst.msk [vmem:[#allocation2 + $0x48] sm:$0xff] %vm236_vm0, %v2930_v0  ;;  %248 = vst.msk [vmem:[#allocation2 + $0x50] sm:$0xff] %vm236_vm0, %v2930_v0  ;;  %v293_v5 = vld [vmem:[%s3054_s26 + $0x8] sm:$0xff]  ;;  %v331_v6 = vmul.f32 %v3047_v1, %v292_v3  ;;  %v333_v7 = vmul.f32 %v3047_v1, %v294_v4  ;;  %v296_v9 = vld [vmem:[%s3054_s26 + $0x20] sm:$0xff]  ;;  %vm2043_vm9 = vcmask 589312   ;;  %vm2117_vm10 = vcmask 588800  }
  0x10   : > { %250 = vst.msk [vmem:[#allocation2 + $0x60] sm:$0xff] %vm236_vm0, %v2930_v0  ;;  %251 = vst.msk [vmem:[#allocation2 + $0x68] sm:$0xff] %vm236_vm0, %v2930_v0  ;;  %v332_v8 = vmul.f32 %v3047_v1, %v293_v5  ;;  %v295_v10 = vld [vmem:[%s3054_s26 + $0x18] sm:$0xff]  ;;  %v298_v11 = vld [vmem:[%s3054_s26 + $0x30] sm:$0xff]  ;;  %v335_v13 = vmul.f32 %v3047_v1, %v296_v9  ;;  %vm2540_vm11 = vcmask 57344  }
  0x11   : > { %253 = vst.msk [vmem:[#allocation2 + $0x78] sm:$0xff] %vm236_vm0, %v2930_v0  ;;  %254 = vst.msk [vmem:[#allocation2 + $0x80] sm:$0xff] %vm236_vm0, %v2930_v0  ;;  %v334_v14 = vmul.f32 %v3047_v1, %v295_v10  ;;  %v337_v15 = vmul.f32 %v3047_v1, %v298_v11  ;;  %v297_v16 = vld [vmem:[%s3054_s26 + $0x28] sm:$0xff]  ;;  %v370_v18 = vadd.f32 %v3059_v2, %v331_v6  ;;  %v300_v22 = vld [vmem:[%s3054_s26 + $0x40] sm:$0xff] }
  0x12   : > { %256 = vst.msk [vmem:[#allocation2 + $0x90] sm:$0xff] %vm236_vm0, %v2930_v0  ;;  %257 = vst.msk [vmem:[#allocation2 + $0x98] sm:$0xff] %vm236_vm0, %v2930_v0  ;;  %v372_v19 = vadd.f32 %v3059_v2, %v333_v7  ;;  %v371_v20 = vadd.f32 %v3059_v2, %v332_v8  ;;  %v336_v21 = vmul.f32 %v3047_v1, %v297_v16  ;;  %v299_v27 = vld [vmem:[%s3054_s26 + $0x38] sm:$0xff]  ;;  %v302_v28 = vld [vmem:[%s3054_s26 + $0x50] sm:$0xff] }
  0x13   : > { %259 = vst.msk [vmem:[#allocation2 + $0xa8] sm:$0xff] %vm236_vm0, %v2930_v0  ;;  %260 = vst.msk [vmem:[#allocation2 + $0xb0] sm:$0xff] %vm236_vm0, %v2930_v0  ;;  %v531_v12 = vld [vmem:[#allocation2 + $0x1] sm:$0xff]  ;;  %v374_v23 = vadd.f32 %v3059_v2, %v335_v13  ;;  %v373_v24 = vadd.f32 %v3059_v2, %v334_v14  ;;  %v376_v25 = vadd.f32 %v3059_v2, %v337_v15  ;;  %v402_v30 = vmax.f32 %v370_v18, 0.0  ;;  %v303_v35 = vld [vmem:[%s3054_s26 + $0x58] sm:$0xff] }
  0x14   : > { %262 = vst.msk [vmem:[#allocation2 + $0xc0] sm:$0xff] %vm236_vm0, %v2930_v0  ;;  %263 = vst.msk [vmem:[#allocation2 + $0xc8] sm:$0xff] %vm236_vm0, %v2930_v0  ;;  %595 = vrot.lane.b32.xlu0 %v531_v12, %s2931_s29  ;;  %v339_v26 = vmul.f32 %v3047_v1, %v300_v22  ;;  %v301_v29 = vld [vmem:[%s3054_s26 + $0x48] sm:$0xff]  ;;  %v404_v31 = vmax.f32 %v372_v19, 0.0  ;;  %v403_v32 = vmax.f32 %v371_v20, 0.0  ;;  %v375_v33 = vadd.f32 %v3059_v2, %v336_v21  ;;  %v304_v34 = vld [vmem:[%s3054_s26 + $0x60] sm:$0xff] }
  0x15   : > { %265 = vst.msk [vmem:[#allocation2 + $0xd8] sm:$0xff] %vm236_vm0, %v2930_v0  ;;  %266 = vst.msk [vmem:[#allocation2 + $0xe0] sm:$0xff] %vm236_vm0, %v2930_v0  ;;  %v306_v36 = vld [vmem:[%s3054_s26 + $0x70] sm:$0xff]  ;;  %v406_v37 = vmax.f32 %v374_v23, 0.0  ;;  %v405_v38 = vmax.f32 %v373_v24, 0.0  ;;  %v408_v39 = vmax.f32 %v376_v25, 0.0  ;;  %v338_v43 = vmul.f32 %v3047_v1, %v299_v27 }
  0x16   : > { %268 = vst.msk [vmem:[#allocation2 + $0xf0] sm:$0xff] %vm236_vm0, %v2930_v0  ;;  %269 = vst.msk [vmem:[#allocation2 + $0xf8] sm:$0xff] %vm236_vm0, %v2930_v0  ;;  %v378_v40 = vadd.f32 %v3059_v2, %v339_v26  ;;  %v305_v41 = vld [vmem:[%s3054_s26 + $0x68] sm:$0xff]  ;;  %v407_v42 = vmax.f32 %v375_v33, 0.0  ;;  %v341_v44 = vmul.f32 %v3047_v1, %v302_v28  ;;  %v340_v45 = vmul.f32 %v3047_v1, %v301_v29  ;;  %v308_v46 = vld [vmem:[%s3054_s26 + $0x80] sm:$0xff] }
  0x17   : > { %271 = vst.msk [vmem:[#allocation2 + $0x108] sm:$0xff] %vm236_vm0, %v2930_v0  ;;  %272 = vst.msk [vmem:[#allocation2 + $0x110] sm:$0xff] %vm236_vm0, %v2930_v0  ;;  %v343_v48 = vmul.f32 %v3047_v1, %v304_v34  ;;  %v342_v49 = vmul.f32 %v3047_v1, %v303_v35  ;;  %v345_v50 = vmul.f32 %v3047_v1, %v306_v36  ;;  %v307_v55 = vld [vmem:[%s3054_s26 + $0x78] sm:$0xff]  ;;  %v310_v56 = vld [vmem:[%s3054_s26 + $0x90] sm:$0xff] }
  0x18   : > { %274 = vst.msk [vmem:[#allocation2 + $0x120] sm:$0xff] %vm236_vm0, %v2930_v0  ;;  %275 = vst.msk [vmem:[#allocation2 + $0x128] sm:$0xff] %vm236_vm0, %v2930_v0  ;;  %v410_v47 = vmax.f32 %v378_v40, 0.0  ;;  %v377_v51 = vadd.f32 %v3059_v2, %v338_v43  ;;  %v380_v52 = vadd.f32 %v3059_v2, %v341_v44  ;;  %v379_v53 = vadd.f32 %v3059_v2, %v340_v45  ;;  %v309_v61 = vld [vmem:[%s3054_s26 + $0x88] sm:$0xff]  ;;  %v312_v62 = vld [vmem:[%s3054_s26 + $0xa0] sm:$0xff] }
  0x19   : > { %277 = vst.msk [vmem:[#allocation2 + $0x138] sm:$0xff] %vm236_vm0, %v2930_v0  ;;  %278 = vst.msk [vmem:[#allocation2 + $0x140] sm:$0xff] %vm236_vm0, %v2930_v0  ;;  %v344_v54 = vmul.f32 %v3047_v1, %v305_v41  ;;  %v382_v57 = vadd.f32 %v3059_v2, %v343_v48  ;;  %v381_v58 = vadd.f32 %v3059_v2, %v342_v49  ;;  %v311_v63 = vld [vmem:[%s3054_s26 + $0x98] sm:$0xff]  ;;  %v314_v6 = vld [vmem:[%s3054_s26 + $0xb0] sm:$0xff] }
  0x1a   : > { %280 = vst.msk [vmem:[#allocation2 + $0x150] sm:$0xff] %vm236_vm0, %v2930_v0  ;;  %281 = vst.msk [vmem:[#allocation2 + $0x158] sm:$0xff] %vm236_vm0, %v2930_v0  ;;  %v384_v59 = vadd.f32 %v3059_v2, %v345_v50  ;;  %v347_v60 = vmul.f32 %v3047_v1, %v308_v46  ;;  %v412_v3 = vmax.f32 %v380_v52, 0.0  ;;  %v411_v4 = vmax.f32 %v379_v53, 0.0  ;;  %v467_v7 = vld [vmem:[#allocation2] sm:$0xff]  ;;  %v468_v8 = vld [vmem:[#allocation2 + $0x8] sm:$0xff] }
  0x1b   : > { %283 = vst.msk [vmem:[#allocation2 + $0x168] sm:$0xff] %vm236_vm0, %v2930_v0  ;;  %284 = vst.msk [vmem:[#allocation2 + $0x170] sm:$0xff] %vm236_vm0, %v2930_v0  ;;  %v383_v5 = vadd.f32 %v3059_v2, %v344_v54  ;;  %v414_v9 = vmax.f32 %v382_v57, 0.0  ;;  %v413_v10 = vmax.f32 %v381_v58, 0.0  ;;  %v346_v14 = vmul.f32 %v3047_v1, %v307_v55  ;;  %v316_v24 = vld [vmem:[%s3054_s26 + $0xc0] sm:$0xff]  ;;  %v315_v28 = vld [vmem:[%s3054_s26 + $0xb8] sm:$0xff] }
  0x1c   : > { %286 = vst.msk [vmem:[#allocation2 + $0x180] sm:$0xff] %vm236_vm0, %v2930_v0  ;;  %287 = vst.msk [vmem:[#allocation2 + $0x188] sm:$0xff] %vm236_vm0, %v2930_v0  ;;  %v416_v11 = vmax.f32 %v384_v59, 0.0  ;;  %v386_v12 = vadd.f32 %v3059_v2, %v347_v60  ;;  %v349_v15 = vmul.f32 %v3047_v1, %v310_v56  ;;  %v348_v16 = vmul.f32 %v3047_v1, %v309_v61  ;;  %v318_v35 = vld [vmem:[%s3054_s26 + $0xd0] sm:$0xff]  ;;  %v317_v40 = vld [vmem:[%s3054_s26 + $0xc8] sm:$0xff] }
  0x1d   : > { %289 = vst.msk [vmem:[#allocation2 + $0x198] sm:$0xff] %vm236_vm0, %v2930_v0  ;;  %290 = vst.msk [vmem:[#allocation2 + $0x1a0] sm:$0xff] %vm236_vm0, %v2930_v0  ;;  %v415_v13 = vmax.f32 %v383_v5, 0.0  ;;  %v351_v21 = vmul.f32 %v3047_v1, %v312_v62  ;;  %v350_v22 = vmul.f32 %v3047_v1, %v311_v63  ;;  %v353_v23 = vmul.f32 %v3047_v1, %v314_v6  ;;  %v320_v41 = vld [vmem:[%s3054_s26 + $0xe0] sm:$0xff] }
  0x1e   : > { %240 = vst.msk [vmem:[#allocation2 + $0x10] sm:$0x3] %vm239_vm1, %v2930_v0  ;;  %243 = vst.msk [vmem:[#allocation2 + $0x28] sm:$0x3] %vm239_vm1, %v2930_v0  ;;  %v418_v20 = vmax.f32 %v386_v12, 0.0  ;;  %v385_v25 = vadd.f32 %v3059_v2, %v346_v14  ;;  %v388_v26 = vadd.f32 %v3059_v2, %v349_v15  ;;  %v387_v27 = vadd.f32 %v3059_v2, %v348_v16 }
  0x1f   : > { %246 = vst.msk [vmem:[#allocation2 + $0x40] sm:$0x3] %vm239_vm1, %v2930_v0  ;;  %249 = vst.msk [vmem:[#allocation2 + $0x58] sm:$0x3] %vm239_vm1, %v2930_v0  ;;  %v392_v33 = vadd.f32 %v3059_v2, %v353_v23  ;;  %v354_v50 = vmul.f32 %v3047_v1, %v315_v28  ;;  %v356_v58 = vmul.f32 %v3047_v1, %v317_v40 }
  0x20   : > { %252 = vst.msk [vmem:[#allocation2 + $0x70] sm:$0x3] %vm239_vm1, %v2930_v0  ;;  %255 = vst.msk [vmem:[#allocation2 + $0x88] sm:$0x3] %vm239_vm1, %v2930_v0  ;;  %v417_v36 = vmax.f32 %v385_v25, 0.0  ;;  %v359_v59 = vmul.f32 %v3047_v1, %v320_v41 }
  0x21   : > { %258 = vst.msk [vmem:[#allocation2 + $0xa0] sm:$0x3] %vm239_vm1, %v2930_v0  ;;  %261 = vst.msk [vmem:[#allocation2 + $0xb8] sm:$0x3] %vm239_vm1, %v2930_v0  ;;  %v424_v45 = vmax.f32 %v392_v33, 0.0  ;;  %v393_v62 = vadd.f32 %v3059_v2, %v354_v50 }
  0x22   : > { %264 = vst.msk [vmem:[#allocation2 + $0xd0] sm:$0x3] %vm239_vm1, %v2930_v0  ;;  %267 = vst.msk [vmem:[#allocation2 + $0xe8] sm:$0x3] %vm239_vm1, %v2930_v0 }
  0x23   : > { %270 = vst.msk [vmem:[#allocation2 + $0x100] sm:$0x3] %vm239_vm1, %v2930_v0  ;;  %273 = vst.msk [vmem:[#allocation2 + $0x118] sm:$0x3] %vm239_vm1, %v2930_v0  ;;  %v425_v6 = vmax.f32 %v393_v62, 0.0 }
  0x24   : > { %276 = vst.msk [vmem:[#allocation2 + $0x130] sm:$0x3] %vm239_vm1, %v2930_v0  ;;  %279 = vst.msk [vmem:[#allocation2 + $0x148] sm:$0x3] %vm239_vm1, %v2930_v0 }
  0x25   : > { %282 = vst.msk [vmem:[#allocation2 + $0x160] sm:$0x3] %vm239_vm1, %v2930_v0  ;;  %285 = vst.msk [vmem:[#allocation2 + $0x178] sm:$0x3] %vm239_vm1, %v2930_v0  ;;  %v532_v17 = vld [vmem:[#allocation2 + $0x9] sm:$0xff] }
  0x26   : > { %288 = vst.msk [vmem:[#allocation2 + $0x190] sm:$0x3] %vm239_vm1, %v2930_v0  ;;  %291 = vst.msk [vmem:[#allocation2 + $0x1a8] sm:$0x3] %vm239_vm1, %v2930_v0  ;;  %597 = vrot.lane.b32.xlu0 %v532_v17, %s2931_s29  ;;  %v409_v0 = vmax.f32 %v377_v51, 0.0  ;;  %v313_v17 = vld [vmem:[%s3054_s26 + $0xa8] sm:$0xff]  ;;  %v357_v51 = vmul.f32 %v3047_v1, %v318_v35 }
  0x27   : > { %435 = vst.msk [vmem:[#allocation2 + $0x19] sm:$0xff] %vm236_vm0, %v402_v30  ;;  %437 = vst.msk [vmem:[#allocation2 + $0x31] sm:$0xff] %vm236_vm0, %v404_v31  ;;  %v390_v31 = vadd.f32 %v3059_v2, %v351_v21  ;;  %v352_v34 = vmul.f32 %v3047_v1, %v313_v17 }
  0x28   : > { %436 = vst.msk [vmem:[#allocation2 + $0x21] sm:$0xff] %vm236_vm0, %v403_v32  ;;  %439 = vst.msk [vmem:[#allocation2 + $0x49] sm:$0xff] %vm236_vm0, %v406_v37  ;;  %v389_v32 = vadd.f32 %v3059_v2, %v350_v22  ;;  %v420_v37 = vmax.f32 %v388_v26, 0.0  ;;  %v396_v63 = vadd.f32 %v3059_v2, %v357_v51 }
  0x29   : > { %438 = vst.msk [vmem:[#allocation2 + $0x39] sm:$0xff] %vm236_vm0, %v405_v38  ;;  %441 = vst.msk [vmem:[#allocation2 + $0x61] sm:$0xff] %vm236_vm0, %v408_v39  ;;  %v419_v38 = vmax.f32 %v387_v27, 0.0  ;;  %v355_v39 = vmul.f32 %v3047_v1, %v316_v24  ;;  %v422_v43 = vmax.f32 %v390_v31, 0.0  ;;  %v391_v46 = vadd.f32 %v3059_v2, %v352_v34 }
  0x2a   : > { %440 = vst.msk [vmem:[#allocation2 + $0x51] sm:$0xff] %vm236_vm0, %v407_v42  ;;  %443 = vst.msk [vmem:[#allocation2 + $0x79] sm:$0xff] %vm236_vm0, %v410_v47  ;;  %v319_v42 = vld [vmem:[%s3054_s26 + $0xd8] sm:$0xff]  ;;  %v421_v44 = vmax.f32 %v389_v32, 0.0  ;;  %v321_v47 = vld [vmem:[%s3054_s26 + $0xe8] sm:$0xff] }
  0x2b   : > { %499 = vst.msk [vmem:[#allocation3] sm:$0xff] %vm236_vm0, %v467_v7  ;;  %500 = vst.msk [vmem:[#allocation3 + $0x8] sm:$0xff] %vm236_vm0, %v468_v8  ;;  %v394_v49 = vadd.f32 %v3059_v2, %v355_v39  ;;  %v423_v57 = vmax.f32 %v391_v46, 0.0  ;;  %v358_v60 = vmul.f32 %v3047_v1, %v319_v42  ;;  %v428_v7 = vmax.f32 %v396_v63, 0.0 }
  0x2c   : > { %442 = vst.msk [vmem:[#allocation2 + $0x69] sm:$0xff] %vm236_vm0, %v409_v0  ;;  %445 = vst.msk [vmem:[#allocation2 + $0x91] sm:$0xff] %vm236_vm0, %v412_v3  ;;  %v360_v0 = vmul.f32 %v3047_v1, %v321_v47  ;;  %v395_v3 = vadd.f32 %v3059_v2, %v356_v58 }
  0x2d   : > { %444 = vst.msk [vmem:[#allocation2 + $0x81] sm:$0xff] %vm236_vm0, %v411_v4  ;;  %447 = vst.msk [vmem:[#allocation2 + $0xa9] sm:$0xff] %vm236_vm0, %v414_v9  ;;  %v426_v61 = vmax.f32 %v394_v49, 0.0  ;;  %v398_v4 = vadd.f32 %v3059_v2, %v359_v59  ;;  %v397_v5 = vadd.f32 %v3059_v2, %v358_v60 }
  0x2e   : > { %v3134_v18 = vld [vmem:[#allocation2 + $0x19] sm:$0xff]  ;;  %v3136_v19 = vld [vmem:[#allocation2 + $0x31] sm:$0xff]  ;;  %446 = vst.msk [vmem:[#allocation2 + $0x99] sm:$0xff] %vm236_vm0, %v413_v10  ;;  %449 = vst.msk [vmem:[#allocation2 + $0xc1] sm:$0xff] %vm236_vm0, %v416_v11  ;;  %v399_v1 = vadd.f32 %v3059_v2, %v360_v0  ;;  %v427_v10 = vmax.f32 %v395_v3, 0.0 }
  0x2f   : > { %599 = vrot.lane.b32.xlu1 %v3134_v18, %s2931_s29  ;;  %603 = vrot.lane.b32.xlu0 %v3136_v19, %s2931_s29  ;;  %448 = vst.msk [vmem:[#allocation2 + $0xb1] sm:$0xff] %vm236_vm0, %v415_v13  ;;  %v3154_v29 = vld [vmem:[#allocation2 + $0x21] sm:$0xff]  ;;  %v3156_v30 = vld [vmem:[#allocation2 + $0x49] sm:$0xff]  ;;  %451 = vst.msk [vmem:[#allocation2 + $0xd9] sm:$0xff] %vm236_vm0, %v418_v20  ;;  %v430_v11 = vmax.f32 %v398_v4, 0.0  ;;  %v429_v12 = vmax.f32 %v397_v5, 0.0 }
  0x30   : > { %v3170_v48 = vld [vmem:[#allocation2 + $0x18] sm:$0xff]  ;;  %450 = vst.msk [vmem:[#allocation2 + $0xc9] sm:$0xff] %vm236_vm0, %v417_v36  ;;  %453 = vst.msk [vmem:[#allocation2 + $0xf1] sm:$0xff] %vm236_vm0, %v420_v37  ;;  %v3184_v52 = vld [vmem:[#allocation2 + $0x30] sm:$0xff]  ;;  %v431_v13 = vmax.f32 %v399_v1, 0.0 }
  0x31   : > { %452 = vst.msk [vmem:[#allocation2 + $0xe1] sm:$0xff] %vm236_vm0, %v419_v38  ;;  %501 = vst.msk [vmem:[#allocation3 + $0x10] sm:$0xff] %vm236_vm0, %v3170_v48  ;;  %v3186_v53 = vld [vmem:[#allocation2 + $0x20] sm:$0xff]  ;;  %v3188_v54 = vld [vmem:[#allocation2 + $0x48] sm:$0xff] }
  0x32   : > { %v3190_v55 = vld [vmem:[#allocation2 + $0x39] sm:$0xff]  ;;  %v3192_v56 = vld [vmem:[#allocation2 + $0x61] sm:$0xff]  ;;  %455 = vst.msk [vmem:[#allocation2 + $0x109] sm:$0xff] %vm236_vm0, %v422_v43  ;;  %454 = vst.msk [vmem:[#allocation2 + $0xf9] sm:$0xff] %vm236_vm0, %v421_v44 }
  0x33   : > { %601 = vrot.lane.b32.xlu1 %v3154_v29, %s2931_s29  ;;  %607 = vrot.lane.b32.xlu0 %v3156_v30, %s2931_s29  ;;  %457 = vst.msk [vmem:[#allocation2 + $0x121] sm:$0xff] %vm236_vm0, %v424_v45  ;;  %503 = vst.msk [vmem:[#allocation3 + $0x20] sm:$0xff] %vm236_vm0, %v3184_v52  ;;  %v3219_v8 = vld [vmem:[#allocation2 + $0x51] sm:$0xff]  ;;  %v541_v9 = vld [vmem:[#allocation2 + $0x79] sm:$0xff] }
  0x34   : > { %502 = vst.msk [vmem:[#allocation3 + $0x18] sm:$0xff] %vm236_vm0, %v3186_v53  ;;  %505 = vst.msk [vmem:[#allocation3 + $0x30] sm:$0xff] %vm236_vm0, %v3188_v54  ;;  %v3223_v14 = vld [vmem:[#allocation2 + $0x38] sm:$0xff]  ;;  %v3225_v15 = vld [vmem:[#allocation2 + $0x60] sm:$0xff] }
  0x35   : > { %456 = vst.msk [vmem:[#allocation2 + $0x111] sm:$0xff] %vm236_vm0, %v423_v57  ;;  %459 = vst.msk [vmem:[#allocation2 + $0x139] sm:$0xff] %vm236_vm0, %v426_v61  ;;  %v3238_v2 = vld [vmem:[#allocation2 + $0x69] sm:$0xff]  ;;  %v543_v16 = vld [vmem:[#allocation2 + $0x91] sm:$0xff] }
  0x36   : > { %458 = vst.msk [vmem:[#allocation2 + $0x129] sm:$0xff] %vm236_vm0, %v425_v6  ;;  %461 = vst.msk [vmem:[#allocation2 + $0x151] sm:$0xff] %vm236_vm0, %v428_v7  ;;  %v3243_v17 = vld [vmem:[#allocation2 + $0x50] sm:$0xff]  ;;  %v3245_v20 = vld [vmem:[#allocation2 + $0x78] sm:$0xff] }
  0x37   : > { %605 = vrot.lane.b32.xlu1 %v3190_v55, %s2931_s29  ;;  %611 = vrot.lane.b32.xlu0 %v3192_v56, %s2931_s29  ;;  %460 = vst.msk [vmem:[#allocation2 + $0x141] sm:$0xff] %vm236_vm0, %v427_v10  ;;  %463 = vst.msk [vmem:[#allocation2 + $0x169] sm:$0xff] %vm236_vm0, %v430_v11  ;;  %v542_v21 = vld [vmem:[#allocation2 + $0x81] sm:$0xff]  ;;  %v545_v22 = vld [vmem:[#allocation2 + $0xa9] sm:$0xff] }
  0x38   : > { %462 = vst.msk [vmem:[#allocation2 + $0x159] sm:$0xff] %vm236_vm0, %v429_v12  ;;  %504 = vst.msk [vmem:[#allocation3 + $0x28] sm:$0xff] %vm236_vm0, %v3223_v14  ;;  %v544_v23 = vld [vmem:[#allocation2 + $0x99] sm:$0xff]  ;;  %v547_v24 = vld [vmem:[#allocation2 + $0xc1] sm:$0xff] }
  0x39   : > { %507 = vst.msk [vmem:[#allocation3 + $0x40] sm:$0xff] %vm236_vm0, %v3225_v15  ;;  %464 = vst.msk [vmem:[#allocation2 + $0x171] sm:$0xff] %vm236_vm0, %v431_v13  ;;  %v3253_v25 = vld [vmem:[#allocation2 + $0x68] sm:$0xff]  ;;  %v3257_v26 = vld [vmem:[#allocation2 + $0x90] sm:$0xff] }
  0x3a   : > { %506 = vst.msk [vmem:[#allocation3 + $0x38] sm:$0xff] %vm236_vm0, %v3243_v17  ;;  %509 = vst.msk [vmem:[#allocation3 + $0x50] sm:$0xff] %vm236_vm0, %v3245_v20  ;;  %v3259_v27 = vld [vmem:[#allocation2 + $0x80] sm:$0xff]  ;;  %v3261_v28 = vld [vmem:[#allocation2 + $0xa8] sm:$0xff] }
  0x3b   : > { %609 = vrot.lane.b32.xlu1 %v3219_v8, %s2931_s29  ;;  %615 = vrot.lane.b32.xlu0 %v541_v9, %s2931_s29  ;;  %508 = vst.msk [vmem:[#allocation3 + $0x48] sm:$0xff] %vm236_vm0, %v3253_v25  ;;  %v546_v31 = vld [vmem:[#allocation2 + $0xb1] sm:$0xff]  ;;  %v549_v32 = vld [vmem:[#allocation2 + $0xd9] sm:$0xff]  ;;  %511 = vst.msk [vmem:[#allocation3 + $0x60] sm:$0xff] %vm236_vm0, %v3257_v26 }
  0x3c   : > { %510 = vst.msk [vmem:[#allocation3 + $0x58] sm:$0xff] %vm236_vm0, %v3259_v27  ;;  %513 = vst.msk [vmem:[#allocation3 + $0x70] sm:$0xff] %vm236_vm0, %v3261_v28  ;;  %v3269_v33 = vld [vmem:[#allocation2 + $0x98] sm:$0xff]  ;;  %v3271_v34 = vld [vmem:[#allocation2 + $0xc0] sm:$0xff] }
  0x3d   : > { %v3273_v35 = vld [vmem:[#allocation2 + $0xb0] sm:$0xff]  ;;  %512 = vst.msk [vmem:[#allocation3 + $0x68] sm:$0xff] %vm236_vm0, %v3269_v33  ;;  %515 = vst.msk [vmem:[#allocation3 + $0x80] sm:$0xff] %vm236_vm0, %v3271_v34  ;;  %v3283_v36 = vld [vmem:[#allocation2 + $0xd8] sm:$0xff] }
  0x3e   : > { %514 = vst.msk [vmem:[#allocation3 + $0x78] sm:$0xff] %vm236_vm0, %v3273_v35  ;;  %v3285_v37 = vld [vmem:[#allocation2 + $0xc8] sm:$0xff]  ;;  %v3287_v38 = vld [vmem:[#allocation2 + $0xf0] sm:$0xff]  ;;  %517 = vst.msk [vmem:[#allocation3 + $0x90] sm:$0xff] %vm236_vm0, %v3283_v36 }
  0x3f   : > { %613 = vrot.lane.b32.xlu1 %v3238_v2, %s2931_s29  ;;  %619 = vrot.lane.b32.xlu0 %v543_v16, %s2931_s29  ;;  %516 = vst.msk [vmem:[#allocation3 + $0x88] sm:$0xff] %vm236_vm0, %v3285_v37  ;;  %519 = vst.msk [vmem:[#allocation3 + $0xa0] sm:$0xff] %vm236_vm0, %v3287_v38  ;;  %v3295_v39 = vld [vmem:[#allocation2 + $0xe0] sm:$0xff]  ;;  %v3297_v40 = vld [vmem:[#allocation2 + $0x108] sm:$0xff] }
  0x40   : > { %v3299_v41 = vld [vmem:[#allocation2 + $0xf8] sm:$0xff]  ;;  %518 = vst.msk [vmem:[#allocation3 + $0x98] sm:$0xff] %vm236_vm0, %v3295_v39  ;;  %521 = vst.msk [vmem:[#allocation3 + $0xb0] sm:$0xff] %vm236_vm0, %v3297_v40  ;;  %v3307_v42 = vld [vmem:[#allocation2 + $0x120] sm:$0xff] }
  0x41   : > { %520 = vst.msk [vmem:[#allocation3 + $0xa8] sm:$0xff] %vm236_vm0, %v3299_v41  ;;  %523 = vst.msk [vmem:[#allocation3 + $0xc0] sm:$0xff] %vm236_vm0, %v3307_v42  ;;  %v3313_v43 = vld [vmem:[#allocation2 + $0x110] sm:$0xff]  ;;  %v493_v46 = vld [vmem:[#allocation2 + $0x138] sm:$0xff] }
  0x42   : > { %v548_v44 = vld [vmem:[#allocation2 + $0xc9] sm:$0xff]  ;;  %v551_v45 = vld [vmem:[#allocation2 + $0xf1] sm:$0xff]  ;;  %522 = vst.msk [vmem:[#allocation3 + $0xb8] sm:$0xff] %vm236_vm0, %v3313_v43  ;;  %525 = vst.msk [vmem:[#allocation3 + $0xd0] sm:$0xff] %vm236_vm0, %v493_v46 }
  0x43   : > { %617 = vrot.lane.b32.xlu1 %v542_v21, %s2931_s29  ;;  %623 = vrot.lane.b32.xlu0 %v545_v22, %s2931_s29  ;;  %v3320_v47 = vld [vmem:[#allocation2 + $0x128] sm:$0xff]  ;;  %v495_v51 = vld [vmem:[#allocation2 + $0x150] sm:$0xff]  ;;  %v494_v57 = vld [vmem:[#allocation2 + $0x140] sm:$0xff] }
  0x44   : > { %v550_v49 = vld [vmem:[#allocation2 + $0xe1] sm:$0xff]  ;;  %v553_v50 = vld [vmem:[#allocation2 + $0x109] sm:$0xff]  ;;  %524 = vst.msk [vmem:[#allocation3 + $0xc8] sm:$0xff] %vm236_vm0, %v3320_v47  ;;  %527 = vst.msk [vmem:[#allocation3 + $0xe0] sm:$0xff] %vm236_vm0, %v495_v51 }
  0x45   : > { %v552_v58 = vld [vmem:[#allocation2 + $0xf9] sm:$0xff]  ;;  %v555_v59 = vld [vmem:[#allocation2 + $0x121] sm:$0xff]  ;;  %526 = vst.msk [vmem:[#allocation3 + $0xd8] sm:$0xff] %vm236_vm0, %v494_v57  ;;  %v554_v62 = vld [vmem:[#allocation2 + $0x111] sm:$0xff] }
  0x46   : > { %v497_v60 = vld [vmem:[#allocation2 + $0x168] sm:$0xff]  ;;  %v496_v61 = vld [vmem:[#allocation2 + $0x158] sm:$0xff]  ;;  %v498_v0 = vld [vmem:[#allocation2 + $0x170] sm:$0xff] }
  0x47   : > { %621 = vrot.lane.b32.xlu1 %v544_v23, %s2931_s29  ;;  %627 = vrot.lane.b32.xlu0 %v547_v24, %s2931_s29  ;;  %529 = vst.msk [vmem:[#allocation3 + $0xf0] sm:$0xff] %vm236_vm0, %v497_v60  ;;  %v557_v63 = vld [vmem:[#allocation2 + $0x139] sm:$0xff]  ;;  %528 = vst.msk [vmem:[#allocation3 + $0xe8] sm:$0xff] %vm236_vm0, %v496_v61  ;;  %v556_v3 = vld [vmem:[#allocation2 + $0x129] sm:$0xff] }
  0x48   : > { %v559_v4 = vld [vmem:[#allocation2 + $0x151] sm:$0xff]  ;;  %530 = vst.msk [vmem:[#allocation3 + $0xf8] sm:$0xff] %vm236_vm0, %v498_v0  ;;  %v558_v5 = vld [vmem:[#allocation2 + $0x141] sm:$0xff]  ;;  %v561_v6 = vld [vmem:[#allocation2 + $0x169] sm:$0xff] }
  0x49   : > { %v560_v7 = vld [vmem:[#allocation2 + $0x159] sm:$0xff]  ;;  %v724_v1 = vld [vmem:[#allocation2 + $0x2] sm:$0xff]  ;;  %v562_v9 = vld [vmem:[#allocation2 + $0x171] sm:$0xff] }
  0x4a   : > { %v3341_v10 = vld [vmem:[#allocation2 + $0x1a] sm:$0xff]  ;;  %v725_v11 = vld [vmem:[#allocation2 + $0xa] sm:$0xff]  ;;  %v3346_v12 = vld [vmem:[#allocation2 + $0x32] sm:$0xff] }
  0x4b   : > { %625 = vrot.lane.b32.xlu1 %v546_v31, %s2931_s29  ;;  %631 = vrot.lane.b32.xlu0 %v549_v32, %s2931_s29  ;;  %v3351_v13 = vld [vmem:[#allocation2 + $0x22] sm:$0xff]  ;;  %v3353_v16 = vld [vmem:[#allocation2 + $0x4a] sm:$0xff]  ;;  %v3359_v21 = vld [vmem:[#allocation2 + $0x3a] sm:$0xff] }
  0x4c   : > { %v3361_v22 = vld [vmem:[#allocation2 + $0x62] sm:$0xff]  ;;  %v3367_v23 = vld [vmem:[#allocation2 + $0x52] sm:$0xff]  ;;  %v3369_v24 = vld [vmem:[#allocation2 + $0x7a] sm:$0xff] }
  0x4d   : > { %v3375_v31 = vld [vmem:[#allocation2 + $0x6a] sm:$0xff]  ;;  %v3377_v32 = vld [vmem:[#allocation2 + $0x92] sm:$0xff]  ;;  %v3391_v46 = vld [vmem:[#allocation2 + $0x9a] sm:$0xff] }
  0x4e   : > { %v742_v51 = vld [vmem:[#allocation2 + $0xda] sm:$0xff]  ;;  %v3404_v57 = vld [vmem:[#allocation2 + $0xca] sm:$0xff]  ;;  %v747_v0 = vld [vmem:[#allocation2 + $0x112] sm:$0xff] }
  0x4f   : > { %629 = vrot.lane.b32.xlu1 %v548_v44, %s2931_s29  ;;  %635 = vrot.lane.b32.xlu0 %v551_v45, %s2931_s29  ;;  %v3383_v44 = vld [vmem:[#allocation2 + $0x82] sm:$0xff]  ;;  %v3385_v45 = vld [vmem:[#allocation2 + $0xaa] sm:$0xff]  ;;  %v745_v61 = vld [vmem:[#allocation2 + $0xfa] sm:$0xff] }
  0x50   : > { %v746_v60 = vld [vmem:[#allocation2 + $0x10a] sm:$0xff] }
  0x53   : > { %633 = vrot.lane.b32.xlu1 %v550_v49, %s2931_s29  ;;  %639 = vrot.lane.b32.xlu0 %v553_v50, %s2931_s29  ;;  %v3393_v49 = vld [vmem:[#allocation2 + $0xc2] sm:$0xff]  ;;  %v3399_v50 = vld [vmem:[#allocation2 + $0xb2] sm:$0xff] }
  0x57   : > { %637 = vrot.lane.b32.xlu1 %v552_v58, %s2931_s29  ;;  %643 = vrot.lane.b32.xlu0 %v555_v59, %s2931_s29  ;;  %v744_v58 = vld [vmem:[#allocation2 + $0xf2] sm:$0xff]  ;;  %v743_v59 = vld [vmem:[#allocation2 + $0xe2] sm:$0xff] }
  0x5b   : > { %641 = vrot.lane.b32.xlu1 %v554_v62, %s2931_s29  ;;  %647 = vrot.lane.b32.xlu0 %v557_v63, %s2931_s29  ;;  %v748_v62 = vld [vmem:[#allocation2 + $0x122] sm:$0xff] }
  0x5f   : > { %645 = vrot.lane.b32.xlu1 %v556_v3, %s2931_s29  ;;  %651 = vrot.lane.b32.xlu0 %v559_v4, %s2931_s29  ;;  %v750_v3 = vld [vmem:[#allocation2 + $0x13a] sm:$0xff] }
  0x63   : > { %649 = vrot.lane.b32.xlu1 %v558_v5, %s2931_s29  ;;  %655 = vrot.lane.b32.xlu0 %v561_v6, %s2931_s29  ;;  %v749_v5 = vld [vmem:[#allocation2 + $0x12a] sm:$0xff]  ;;  %v752_v6 = vld [vmem:[#allocation2 + $0x152] sm:$0xff] }
  0x67   : > { %653 = vrot.lane.b32.xlu1 %v560_v7, %s2931_s29  ;;  %788 = vrot.lane.b32.xlu0 %v724_v1, %s2932_s30  ;;  %v751_v7 = vld [vmem:[#allocation2 + $0x142] sm:$0xff]  ;;  %v754_v1 = vld [vmem:[#allocation2 + $0x16a] sm:$0xff] }
  0x6b   : > { %657 = vrot.lane.b32.xlu1 %v562_v9, %s2931_s29  ;;  %792 = vrot.lane.b32.xlu0 %v3341_v10, %s2932_s30 }
  0x6f   : > { %790 = vrot.lane.b32.xlu1 %v725_v11, %s2932_s30  ;;  %796 = vrot.lane.b32.xlu0 %v3346_v12, %s2932_s30 }
  0x73   : > { %794 = vrot.lane.b32.xlu1 %v3351_v13, %s2932_s30  ;;  %800 = vrot.lane.b32.xlu0 %v3353_v16, %s2932_s30 }
  0x77   : > { %798 = vrot.lane.b32.xlu1 %v3359_v21, %s2932_s30  ;;  %804 = vrot.lane.b32.xlu0 %v3361_v22, %s2932_s30 }
  0x7b   : > { %802 = vrot.lane.b32.xlu1 %v3367_v23, %s2932_s30  ;;  %808 = vrot.lane.b32.xlu0 %v3369_v24, %s2932_s30 }
  0x7f   : > { %806 = vrot.lane.b32.xlu1 %v3375_v31, %s2932_s30  ;;  %812 = vrot.lane.b32.xlu0 %v3377_v32, %s2932_s30 }
  0x83   : > { %810 = vrot.lane.b32.xlu1 %v3383_v44, %s2932_s30  ;;  %816 = vrot.lane.b32.xlu0 %v3385_v45, %s2932_s30 }
  0x86   : > { %v596_v63 = vpop.permute.xlu0 %595 }
  0x87   : > { %814 = vrot.lane.b32.xlu1 %v3391_v46, %s2932_s30  ;;  %820 = vrot.lane.b32.xlu0 %v3393_v49, %s2932_s30  ;;  %692 = vst.msk [vmem:[#allocation3] sm:$0xff] %vm691_vm2, %v596_v63 }
  0x8b   : > { %818 = vrot.lane.b32.xlu1 %v3399_v50, %s2932_s30  ;;  %824 = vrot.lane.b32.xlu0 %v742_v51, %s2932_s30  ;;  %v753_v51 = vld [vmem:[#allocation2 + $0x15a] sm:$0xff] }
  0x8f   : > { %822 = vrot.lane.b32.xlu1 %v3404_v57, %s2932_s30  ;;  %828 = vrot.lane.b32.xlu0 %v744_v58, %s2932_s30 }
  0x93   : > { %826 = vrot.lane.b32.xlu1 %v743_v59, %s2932_s30  ;;  %832 = vrot.lane.b32.xlu0 %v746_v60, %s2932_s30  ;;  %v755_v60 = vld [vmem:[#allocation2 + $0x172] sm:$0xff] }
  0x97   : > { %830 = vrot.lane.b32.xlu1 %v745_v61, %s2932_s30  ;;  %836 = vrot.lane.b32.xlu0 %v748_v62, %s2932_s30 }
  0x98   : > { %v598_v4 = vpop.permute.xlu0 %597 }
  0x99   : > { %693 = vst.msk [vmem:[#allocation3 + $0x8] sm:$0xff] %vm691_vm2, %v598_v4 }
  0x9b   : > { %834 = vrot.lane.b32.xlu1 %v747_v0, %s2932_s30  ;;  %840 = vrot.lane.b32.xlu0 %v750_v3, %s2932_s30 }
  0x9f   : > { %838 = vrot.lane.b32.xlu1 %v749_v5, %s2932_s30  ;;  %844 = vrot.lane.b32.xlu0 %v752_v6, %s2932_s30 }
  0xa1   : > { %v600_v9 = vpop.permute.xlu1 %599  ;;  %v604_v11 = vpop.permute.xlu0 %603 }
  0xa2   : > { %694 = vst.msk [vmem:[#allocation3 + $0x10] sm:$0xff] %vm691_vm2, %v600_v9  ;;  %696 = vst.msk [vmem:[#allocation3 + $0x20] sm:$0xff] %vm691_vm2, %v604_v11 }
  0xa3   : > { %842 = vrot.lane.b32.xlu1 %v751_v7, %s2932_s30  ;;  %848 = vrot.lane.b32.xlu0 %v754_v1, %s2932_s30 }
  0xa5   : > { %v602_v58 = vpop.permute.xlu1 %601  ;;  %v608_v59 = vpop.permute.xlu0 %607 }
  0xa6   : > { %695 = vst.msk [vmem:[#allocation3 + $0x18] sm:$0xff] %vm691_vm2, %v602_v58  ;;  %698 = vst.msk [vmem:[#allocation3 + $0x30] sm:$0xff] %vm691_vm2, %v608_v59 }
  0xa7   : > { %846 = vrot.lane.b32.xlu1 %v753_v51, %s2932_s30  ;;  %981 = vrot.lane.b32.xlu0 %v3170_v48, %s2933_s6 }
  0xa9   : > { %v606_v61 = vpop.permute.xlu1 %605  ;;  %v612_v62 = vpop.permute.xlu0 %611 }
  0xaa   : > { %697 = vst.msk [vmem:[#allocation3 + $0x28] sm:$0xff] %vm691_vm2, %v606_v61  ;;  %700 = vst.msk [vmem:[#allocation3 + $0x40] sm:$0xff] %vm691_vm2, %v612_v62 }
  0xab   : > { %850 = vrot.lane.b32.xlu1 %v755_v60, %s2932_s30  ;;  %985 = vrot.lane.b32.xlu0 %v3184_v52, %s2933_s6 }
  0xad   : > { %v610_v63 = vpop.permute.xlu1 %609  ;;  %v616_v0 = vpop.permute.xlu0 %615 }
  0xae   : > { %699 = vst.msk [vmem:[#allocation3 + $0x38] sm:$0xff] %vm691_vm2, %v610_v63  ;;  %702 = vst.msk [vmem:[#allocation3 + $0x50] sm:$0xff] %vm691_vm2, %v616_v0 }
  0xaf   : > { %983 = vrot.lane.b32.xlu1 %v3186_v53, %s2933_s6  ;;  %989 = vrot.lane.b32.xlu0 %v3188_v54, %s2933_s6 }
  0xb1   : > { %v614_v48 = vpop.permute.xlu1 %613  ;;  %v620_v3 = vpop.permute.xlu0 %619 }
  0xb2   : > { %701 = vst.msk [vmem:[#allocation3 + $0x48] sm:$0xff] %vm691_vm2, %v614_v48  ;;  %704 = vst.msk [vmem:[#allocation3 + $0x60] sm:$0xff] %vm691_vm2, %v620_v3  ;;  %v2116_v48 = vld [vmem:[%s4169_s3 + $0x40] sm:$0xff] }
  0xb3   : > { %987 = vrot.lane.b32.xlu1 %v3223_v14, %s2933_s6  ;;  %993 = vrot.lane.b32.xlu0 %v3225_v15, %s2933_s6 }
  0xb4   : > { %2819 = vmatprep.subr.mxu0 %v2116_v48  ;;  %2885 = vmatprep.subr.mxu1 %v2116_v48 }
  0xb5   : > { %v618_v4 = vpop.permute.xlu1 %617  ;;  %v624_v5 = vpop.permute.xlu0 %623  ;;  %2820 = vmatpush3.msra.mxu0 %v2116_v48  ;;  %2894 = vmatpush3.msra.mxu1 %v2116_v48 }
  0xb6   : > { %703 = vst.msk [vmem:[#allocation3 + $0x58] sm:$0xff] %vm691_vm2, %v618_v4  ;;  %706 = vst.msk [vmem:[#allocation3 + $0x70] sm:$0xff] %vm691_vm2, %v624_v5  ;;  %v2115_v4 = vld [vmem:[%s4169_s3 + $0x38] sm:$0xff] }
  0xb7   : > { %991 = vrot.lane.b32.xlu1 %v3243_v17, %s2933_s6  ;;  %997 = vrot.lane.b32.xlu0 %v3245_v20, %s2933_s6 }
  0xb8   : > { %2821 = vmatprep.subr.mxu0 %v2115_v4  ;;  %2886 = vmatprep.subr.mxu1 %v2115_v4 }
  0xb9   : > { %v622_v53 = vpop.permute.xlu1 %621  ;;  %v628_v6 = vpop.permute.xlu0 %627  ;;  %2822 = vmatpush3.msra.mxu0 %v2115_v4  ;;  %2895 = vmatpush3.msra.mxu1 %v2115_v4 }
  0xba   : > { %705 = vst.msk [vmem:[#allocation3 + $0x68] sm:$0xff] %vm691_vm2, %v622_v53  ;;  %708 = vst.msk [vmem:[#allocation3 + $0x80] sm:$0xff] %vm691_vm2, %v628_v6 }
  0xbb   : > { %995 = vrot.lane.b32.xlu1 %v3253_v25, %s2933_s6  ;;  %1001 = vrot.lane.b32.xlu0 %v3257_v26, %s2933_s6 }
  0xbd   : > { %v626_v7 = vpop.permute.xlu1 %625  ;;  %v632_v1 = vpop.permute.xlu0 %631 }
  0xbe   : > { %707 = vst.msk [vmem:[#allocation3 + $0x78] sm:$0xff] %vm691_vm2, %v626_v7  ;;  %710 = vst.msk [vmem:[#allocation3 + $0x90] sm:$0xff] %vm691_vm2, %v632_v1  ;;  %v2112_v7 = vld [vmem:[%s4169_s3 + $0x20] sm:$0xff] }
  0xbf   : > { %999 = vrot.lane.b32.xlu1 %v3259_v27, %s2933_s6  ;;  %1005 = vrot.lane.b32.xlu0 %v3261_v28, %s2933_s6 }
  0xc1   : > { %v630_v9 = vpop.permute.xlu1 %629  ;;  %v636_v11 = vpop.permute.xlu0 %635 }
  0xc2   : > { %709 = vst.msk [vmem:[#allocation3 + $0x88] sm:$0xff] %vm691_vm2, %v630_v9  ;;  %712 = vst.msk [vmem:[#allocation3 + $0xa0] sm:$0xff] %vm691_vm2, %v636_v11 }
  0xc3   : > { %1003 = vrot.lane.b32.xlu1 %v3269_v33, %s2933_s6  ;;  %1009 = vrot.lane.b32.xlu0 %v3271_v34, %s2933_s6 }
  0xc5   : > { %v634_v51 = vpop.permute.xlu1 %633  ;;  %v640_v58 = vpop.permute.xlu0 %639 }
  0xc6   : > { %711 = vst.msk [vmem:[#allocation3 + $0x98] sm:$0xff] %vm691_vm2, %v634_v51  ;;  %714 = vst.msk [vmem:[#allocation3 + $0xb0] sm:$0xff] %vm691_vm2, %v640_v58  ;;  %v2109_v58 = vld [vmem:[%s4169_s3 + $0x8] sm:$0xff] }
  0xc7   : > { %1007 = vrot.lane.b32.xlu1 %v3273_v35, %s2933_s6  ;;  %1013 = vrot.lane.b32.xlu0 %v3283_v36, %s2933_s6 }
  0xc9   : > { %v638_v59 = vpop.permute.xlu1 %637  ;;  %v644_v60 = vpop.permute.xlu0 %643 }
  0xca   : > { %713 = vst.msk [vmem:[#allocation3 + $0xa8] sm:$0xff] %vm691_vm2, %v638_v59  ;;  %716 = vst.msk [vmem:[#allocation3 + $0xc0] sm:$0xff] %vm691_vm2, %v644_v60 }
  0xcb   : > { %1011 = vrot.lane.b32.xlu1 %v3285_v37, %s2933_s6  ;;  %1017 = vrot.lane.b32.xlu0 %v3287_v38, %s2933_s6 }
  0xcd   : > { %v642_v61 = vpop.permute.xlu1 %641  ;;  %v648_v62 = vpop.permute.xlu0 %647 }
  0xce   : > { %715 = vst.msk [vmem:[#allocation3 + $0xb8] sm:$0xff] %vm691_vm2, %v642_v61  ;;  %718 = vst.msk [vmem:[#allocation3 + $0xd0] sm:$0xff] %vm691_vm2, %v648_v62 }
  0xcf   : > { %1015 = vrot.lane.b32.xlu1 %v3295_v39, %s2933_s6  ;;  %1174 = vrot.lane.b32.xlu0 %v3134_v18, %s2934_s7 }
  0xd1   : > { %v646_v63 = vpop.permute.xlu1 %645  ;;  %v652_v0 = vpop.permute.xlu0 %651 }
  0xd2   : > { %717 = vst.msk [vmem:[#allocation3 + $0xc8] sm:$0xff] %vm691_vm2, %v646_v63  ;;  %720 = vst.msk [vmem:[#allocation3 + $0xe0] sm:$0xff] %vm691_vm2, %v652_v0 }
  0xd3   : > { %1019 = vrot.lane.b32.xlu1 %v3299_v41, %s2933_s6  ;;  %1367 = vrot.lane.b32.xlu0 %v3341_v10, %s2935_s8  ;;  %v2114_v10 = vld [vmem:[%s4169_s3 + $0x30] sm:$0xff] }
  0xd4   : > { %2823 = vmatprep.subr.mxu0 %v2114_v10  ;;  %2887 = vmatprep.subr.mxu1 %v2114_v10 }
  0xd5   : > { %v650_v18 = vpop.permute.xlu1 %649  ;;  %v656_v3 = vpop.permute.xlu0 %655  ;;  %2824 = vmatpush3.msra.mxu0 %v2114_v10  ;;  %2896 = vmatpush3.msra.mxu1 %v2114_v10 }
  0xd6   : > { %719 = vst.msk [vmem:[#allocation3 + $0xd8] sm:$0xff] %vm691_vm2, %v650_v18  ;;  %722 = vst.msk [vmem:[#allocation3 + $0xf0] sm:$0xff] %vm691_vm2, %v656_v3 }
  0xd7   : > { %1176 = vrot.lane.b32.xlu1 %v3154_v29, %s2934_s7  ;;  %1561 = vrot.lane.b32.xlu0 %v3184_v52, %s2936_s13  ;;  %v2113_v29 = vld [vmem:[%s4169_s3 + $0x28] sm:$0xff] }
  0xd8   : > { %2825 = vmatprep.subr.mxu0 %v2113_v29  ;;  %2888 = vmatprep.subr.mxu1 %v2113_v29 }
  0xd9   : > { %v654_v5 = vpop.permute.xlu1 %653  ;;  %v789_v53 = vpop.permute.xlu0 %788  ;;  %2826 = vmatpush3.msra.mxu0 %v2113_v29  ;;  %2897 = vmatpush3.msra.mxu1 %v2113_v29  ;;  %v1697_v29 = vld [vmem:[#allocation2 + $0x81] sm:$0xff] }
  0xda   : > { %721 = vst.msk [vmem:[#allocation3 + $0xe8] sm:$0xff] %vm691_vm2, %v654_v5  ;;  %2827 = vmatprep.subr.mxu0 %v2112_v7  ;;  %2889 = vmatprep.subr.mxu1 %v2112_v7 }
  0xdb   : > { %885 = vst.msk [vmem:[#allocation3] sm:$0xff] %vm884_vm3, %v789_v53  ;;  %1369 = vrot.lane.b32.xlu1 %v3351_v13, %s2935_s8  ;;  %1754 = vrot.lane.b32.xlu0 %v3136_v19, %s2937_s20  ;;  %v2111_v13 = vld [vmem:[%s4169_s3 + $0x18] sm:$0xff] }
  0xdc   : > { %2828 = vmatpush3.msra.mxu0 %v2112_v7  ;;  %2898 = vmatpush3.msra.mxu1 %v2112_v7 }
  0xdd   : > { %v658_v52 = vpop.permute.xlu1 %657  ;;  %v793_v6 = vpop.permute.xlu0 %792  ;;  %2829 = vmatprep.subr.mxu0 %v2111_v13  ;;  %2890 = vmatprep.subr.mxu1 %v2111_v13 }
  0xde   : > { %723 = vst.msk [vmem:[#allocation3 + $0xf8] sm:$0xff] %vm691_vm2, %v658_v52  ;;  %2830 = vmatpush3.msra.mxu0 %v2111_v13  ;;  %2899 = vmatpush3.msra.mxu1 %v2111_v13 }
  0xdf   : > { %887 = vst.msk [vmem:[#allocation3 + $0x10] sm:$0xff] %vm884_vm3, %v793_v6  ;;  %1563 = vrot.lane.b32.xlu1 %v3223_v14, %s2936_s13  ;;  %1756 = vrot.lane.b32.xlu0 %v3190_v55, %s2937_s20  ;;  %v2110_v14 = vld [vmem:[%s4169_s3 + $0x10] sm:$0xff] }
  0xe0   : > { %2831 = vmatprep.subr.mxu0 %v2110_v14  ;;  %2891 = vmatprep.subr.mxu1 %v2110_v14 }
  0xe1   : > { %v791_v1 = vpop.permute.xlu1 %790  ;;  %v797_v9 = vpop.permute.xlu0 %796  ;;  %2832 = vmatpush3.msra.mxu0 %v2110_v14  ;;  %2900 = vmatpush3.msra.mxu1 %v2110_v14 }
  0xe2   : > { %886 = vst.msk [vmem:[#allocation3 + $0x8] sm:$0xff] %vm884_vm3, %v791_v1  ;;  %889 = vst.msk [vmem:[#allocation3 + $0x20] sm:$0xff] %vm884_vm3, %v797_v9  ;;  %2833 = vmatprep.subr.mxu0 %v2109_v58  ;;  %2892 = vmatprep.subr.mxu1 %v2109_v58  ;;  %v1698_v1 = vld [vmem:[#allocation2 + $0x91] sm:$0xff] }
  0xe3   : > { %1178 = vrot.lane.b32.xlu1 %v3136_v19, %s2934_s7  ;;  %1180 = vrot.lane.b32.xlu0 %v3190_v55, %s2934_s7  ;;  %v2108_v19 = vld [vmem:[%s4169_s3] sm:$0xff] }
  0xe4   : > { %2834 = vmatpush3.msra.mxu0 %v2109_v58  ;;  %2901 = vmatpush3.msra.mxu1 %v2109_v58 }
  0xe5   : > { %v795_v11 = vpop.permute.xlu1 %794  ;;  %v801_v51 = vpop.permute.xlu0 %800  ;;  %2835 = vmatprep.subr.mxu0 %v2108_v19  ;;  %2893 = vmatprep.subr.mxu1 %v2108_v19 }
  0xe6   : > { %888 = vst.msk [vmem:[#allocation3 + $0x18] sm:$0xff] %vm884_vm3, %v795_v11  ;;  %891 = vst.msk [vmem:[#allocation3 + $0x30] sm:$0xff] %vm884_vm3, %v801_v51  ;;  %2836 = vmatpush3.msra.mxu0 %v2108_v19  ;;  %2902 = vmatpush3.msra.mxu1 %v2108_v19  ;;  %v1699_v11 = vld [vmem:[#allocation2 + $0x99] sm:$0xff] }
  0xe7   : > { %1947 = vrot.lane.b32.xlu1 %v3346_v12, %s2938_s9  ;;  %1949 = vrot.lane.b32.xlu0 %v3359_v21, %s2938_s9 }
  0xe9   : > { %v799_v55 = vpop.permute.xlu1 %798  ;;  %v805_v59 = vpop.permute.xlu0 %804 }
  0xea   : > { %890 = vst.msk [vmem:[#allocation3 + $0x28] sm:$0xff] %vm884_vm3, %v799_v55  ;;  %893 = vst.msk [vmem:[#allocation3 + $0x40] sm:$0xff] %vm884_vm3, %v805_v59  ;;  %v1700_v59 = vld [vmem:[#allocation2 + $0xa9] sm:$0xff] }
  0xeb   : > { %1371 = vrot.lane.b32.xlu1 %v3346_v12, %s2935_s8  ;;  %1565 = vrot.lane.b32.xlu0 %v3188_v54, %s2936_s13 }
  0xed   : > { %v803_v60 = vpop.permute.xlu1 %802  ;;  %v809_v61 = vpop.permute.xlu0 %808 }
  0xee   : > { %892 = vst.msk [vmem:[#allocation3 + $0x38] sm:$0xff] %vm884_vm3, %v803_v60  ;;  %895 = vst.msk [vmem:[#allocation3 + $0x50] sm:$0xff] %vm884_vm3, %v809_v61 }
  0xef   : > { %1373 = vrot.lane.b32.xlu1 %v3359_v21, %s2935_s8  ;;  %1758 = vrot.lane.b32.xlu0 %v3156_v30, %s2937_s20 }
  0xf1   : > { %v807_v62 = vpop.permute.xlu1 %806  ;;  %v813_v63 = vpop.permute.xlu0 %812 }
  0xf2   : > { %894 = vst.msk [vmem:[#allocation3 + $0x48] sm:$0xff] %vm884_vm3, %v807_v62  ;;  %897 = vst.msk [vmem:[#allocation3 + $0x60] sm:$0xff] %vm884_vm3, %v813_v63  ;;  %v1701_v62 = vld [vmem:[#allocation2 + $0xb1] sm:$0xff] }
  0xf3   : > { %1567 = vrot.lane.b32.xlu1 %v3243_v17, %s2936_s13  ;;  %1760 = vrot.lane.b32.xlu0 %v3219_v8, %s2937_s20 }
  0xf5   : > { %v811_v54 = vpop.permute.xlu1 %810  ;;  %v817_v12 = vpop.permute.xlu0 %816 }
  0xf6   : > { %896 = vst.msk [vmem:[#allocation3 + $0x58] sm:$0xff] %vm884_vm3, %v811_v54  ;;  %899 = vst.msk [vmem:[#allocation3 + $0x70] sm:$0xff] %vm884_vm3, %v817_v12 }
  0xf7   : > { %1182 = vrot.lane.b32.xlu1 %v3156_v30, %s2934_s7  ;;  %1184 = vrot.lane.b32.xlu0 %v3219_v8, %s2934_s7 }
  0xf9   : > { %v815_v21 = vpop.permute.xlu1 %814  ;;  %v821_v0 = vpop.permute.xlu0 %820 }
  0xfa   : > { %898 = vst.msk [vmem:[#allocation3 + $0x68] sm:$0xff] %vm884_vm3, %v815_v21  ;;  %901 = vst.msk [vmem:[#allocation3 + $0x80] sm:$0xff] %vm884_vm3, %v821_v0  ;;  %v1702_v0 = vld [vmem:[#allocation2 + $0xc1] sm:$0xff] }
  0xfb   : > { %1951 = vrot.lane.b32.xlu1 %v3353_v16, %s2938_s9  ;;  %1953 = vrot.lane.b32.xlu0 %v3367_v23, %s2938_s9 }
  0xfd   : > { %v819_v17 = vpop.permute.xlu1 %818  ;;  %v825_v48 = vpop.permute.xlu0 %824 }
  0xfe   : > { %900 = vst.msk [vmem:[#allocation3 + $0x78] sm:$0xff] %vm884_vm3, %v819_v17  ;;  %903 = vst.msk [vmem:[#allocation3 + $0x90] sm:$0xff] %vm884_vm3, %v825_v48 }
  0xff   : > { %1375 = vrot.lane.b32.xlu1 %v3353_v16, %s2935_s8  ;;  %1569 = vrot.lane.b32.xlu0 %v3225_v15, %s2936_s13  ;;  %v1116_v15 = vld [vmem:[#allocation2 + $0x61] sm:$0xff] }
 0x101   : > { %v823_v30 = vpop.permute.xlu1 %822  ;;  %v829_v8 = vpop.permute.xlu0 %828 }
 0x102   : > { %902 = vst.msk [vmem:[#allocation3 + $0x88] sm:$0xff] %vm884_vm3, %v823_v30  ;;  %905 = vst.msk [vmem:[#allocation3 + $0xa0] sm:$0xff] %vm884_vm3, %v829_v8  ;;  %v1703_v30 = vld [vmem:[#allocation2 + $0xc9] sm:$0xff] }
 0x103   : > { %1377 = vrot.lane.b32.xlu1 %v3367_v23, %s2935_s8  ;;  %1762 = vrot.lane.b32.xlu0 %v3192_v56, %s2937_s20 }
 0x105   : > { %v827_v18 = vpop.permute.xlu1 %826  ;;  %v833_v3 = vpop.permute.xlu0 %832 }
 0x106   : > { %904 = vst.msk [vmem:[#allocation3 + $0x98] sm:$0xff] %vm884_vm3, %v827_v18  ;;  %907 = vst.msk [vmem:[#allocation3 + $0xb0] sm:$0xff] %vm884_vm3, %v833_v3 }
 0x107   : > { %1571 = vrot.lane.b32.xlu1 %v3253_v25, %s2936_s13  ;;  %1764 = vrot.lane.b32.xlu0 %v3238_v2, %s2937_s20 }
 0x109   : > { %v831_v16 = vpop.permute.xlu1 %830  ;;  %v837_v4 = vpop.permute.xlu0 %836 }
 0x10a   : > { %906 = vst.msk [vmem:[#allocation3 + $0xa8] sm:$0xff] %vm884_vm3, %v831_v16  ;;  %909 = vst.msk [vmem:[#allocation3 + $0xc0] sm:$0xff] %vm884_vm3, %v837_v4 }
 0x10b   : > { %1186 = vrot.lane.b32.xlu1 %v1116_v15, %s2934_s7  ;;  %1188 = vrot.lane.b32.xlu0 %v3238_v2, %s2934_s7  ;;  %v1696_v2 = vld [vmem:[#allocation2 + $0x79] sm:$0xff] }
 0x10d   : > { %v835_v56 = vpop.permute.xlu1 %834  ;;  %v841_v23 = vpop.permute.xlu0 %840 }
 0x10e   : > { %908 = vst.msk [vmem:[#allocation3 + $0xb8] sm:$0xff] %vm884_vm3, %v835_v56  ;;  %911 = vst.msk [vmem:[#allocation3 + $0xd0] sm:$0xff] %vm884_vm3, %v841_v23 }
 0x10f   : > { %1955 = vrot.lane.b32.xlu1 %v3361_v22, %s2938_s9  ;;  %1957 = vrot.lane.b32.xlu0 %v3375_v31, %s2938_s9 }
 0x111   : > { %v839_v25 = vpop.permute.xlu1 %838  ;;  %v845_v10 = vpop.permute.xlu0 %844 }
 0x112   : > { %910 = vst.msk [vmem:[#allocation3 + $0xc8] sm:$0xff] %vm884_vm3, %v839_v25  ;;  %913 = vst.msk [vmem:[#allocation3 + $0xe0] sm:$0xff] %vm884_vm3, %v845_v10  ;;  %v1705_v10 = vld [vmem:[#allocation2 + $0xe1] sm:$0xff] }
 0x113   : > { %1379 = vrot.lane.b32.xlu1 %v3361_v22, %s2935_s8  ;;  %1573 = vrot.lane.b32.xlu0 %v3245_v20, %s2936_s13 }
 0x115   : > { %v843_v5 = vpop.permute.xlu1 %842  ;;  %v849_v53 = vpop.permute.xlu0 %848 }
 0x116   : > { %912 = vst.msk [vmem:[#allocation3 + $0xd8] sm:$0xff] %vm884_vm3, %v843_v5  ;;  %915 = vst.msk [vmem:[#allocation3 + $0xf0] sm:$0xff] %vm884_vm3, %v849_v53 }
 0x117   : > { %1381 = vrot.lane.b32.xlu1 %v3375_v31, %s2935_s8  ;;  %1766 = vrot.lane.b32.xlu0 %v1696_v2, %s2937_s20 }
 0x119   : > { %v847_v52 = vpop.permute.xlu1 %846  ;;  %v982_v6 = vpop.permute.xlu0 %981 }
 0x11a   : > { %914 = vst.msk [vmem:[#allocation3 + $0xe8] sm:$0xff] %vm884_vm3, %v847_v52  ;;  %v1898_v52 = vld [vmem:[#allocation2 + $0xe2] sm:$0xff] }
 0x11b   : > { %1078 = vst.msk [vmem:[#allocation3] sm:$0xff] %vm1077_vm4, %v982_v6  ;;  %1575 = vrot.lane.b32.xlu1 %v3259_v27, %s2936_s13  ;;  %1768 = vrot.lane.b32.xlu0 %v1697_v29, %s2937_s20 }
 0x11d   : > { %v851_v20 = vpop.permute.xlu1 %850  ;;  %v986_v22 = vpop.permute.xlu0 %985 }
 0x11e   : > { %916 = vst.msk [vmem:[#allocation3 + $0xf8] sm:$0xff] %vm884_vm3, %v851_v20 }
 0x11f   : > { %1080 = vst.msk [vmem:[#allocation3 + $0x10] sm:$0xff] %vm1077_vm4, %v986_v22  ;;  %1190 = vrot.lane.b32.xlu1 %v1696_v2, %s2934_s7  ;;  %1192 = vrot.lane.b32.xlu0 %v1697_v29, %s2934_s7  ;;  %v1897_v29 = vld [vmem:[#allocation2 + $0xda] sm:$0xff] }
 0x121   : > { %v984_v31 = vpop.permute.xlu1 %983  ;;  %v990_v7 = vpop.permute.xlu0 %989 }
 0x122   : > { %1079 = vst.msk [vmem:[#allocation3 + $0x8] sm:$0xff] %vm1077_vm4, %v984_v31  ;;  %1082 = vst.msk [vmem:[#allocation3 + $0x20] sm:$0xff] %vm1077_vm4, %v990_v7 }
 0x123   : > { %1959 = vrot.lane.b32.xlu1 %v3369_v24, %s2938_s9  ;;  %1961 = vrot.lane.b32.xlu0 %v3383_v44, %s2938_s9 }
 0x125   : > { %v988_v27 = vpop.permute.xlu1 %987  ;;  %v994_v13 = vpop.permute.xlu0 %993 }
 0x126   : > { %1081 = vst.msk [vmem:[#allocation3 + $0x18] sm:$0xff] %vm1077_vm4, %v988_v27  ;;  %1084 = vst.msk [vmem:[#allocation3 + $0x30] sm:$0xff] %vm1077_vm4, %v994_v13  ;;  %v322_v27 = vld [vmem:[%s3054_s26 + $0xf0] sm:$0xff]  ;;  %v2920_v13 = vld [vmem:[%s4167_s1] ss:$0 sm:$0xff] }
 0x127   : > { %1383 = vrot.lane.b32.xlu1 %v3369_v24, %s2935_s8  ;;  %1577 = vrot.lane.b32.xlu0 %v3257_v26, %s2936_s13 }
 0x129   : > { %v992_v9 = vpop.permute.xlu1 %991  ;;  %v998_v14 = vpop.permute.xlu0 %997 }
 0x12a   : > { %1083 = vst.msk [vmem:[#allocation3 + $0x28] sm:$0xff] %vm1077_vm4, %v992_v9  ;;  %1086 = vst.msk [vmem:[#allocation3 + $0x40] sm:$0xff] %vm1077_vm4, %v998_v14  ;;  %v2921_v9 = vld [vmem:[%s4168_s2] ss:$0 sm:$0xff] }
 0x12b   : > { %1385 = vrot.lane.b32.xlu1 %v3383_v44, %s2935_s8  ;;  %1770 = vrot.lane.b32.xlu0 %v1698_v1, %s2937_s20 }
 0x12d   : > { %v996_v51 = vpop.permute.xlu1 %995  ;;  %v1002_v58 = vpop.permute.xlu0 %1001 }
 0x12e   : > { %1085 = vst.msk [vmem:[#allocation3 + $0x38] sm:$0xff] %vm1077_vm4, %v996_v51  ;;  %1088 = vst.msk [vmem:[#allocation3 + $0x50] sm:$0xff] %vm1077_vm4, %v1002_v58  ;;  %v1706_v58 = vld [vmem:[#allocation2 + $0xf1] sm:$0xff] }
 0x12f   : > { %1579 = vrot.lane.b32.xlu1 %v3269_v33, %s2936_s13  ;;  %1772 = vrot.lane.b32.xlu0 %v1699_v11, %s2937_s20 }
 0x131   : > { %v1000_v26 = vpop.permute.xlu1 %999  ;;  %v1006_v24 = vpop.permute.xlu0 %1005 }
 0x132   : > { %1087 = vst.msk [vmem:[#allocation3 + $0x48] sm:$0xff] %vm1077_vm4, %v1000_v26  ;;  %1090 = vst.msk [vmem:[#allocation3 + $0x60] sm:$0xff] %vm1077_vm4, %v1006_v24  ;;  %v323_v26 = vld [vmem:[%s3054_s26 + $0xf8] sm:$0xff] }
 0x133   : > { %1194 = vrot.lane.b32.xlu1 %v1698_v1, %s2934_s7  ;;  %1196 = vrot.lane.b32.xlu0 %v1699_v11, %s2934_s7  ;;  %v361_v1 = vmul.f32 %v2920_v13, %v322_v27 }
 0x135   : > { %v1004_v44 = vpop.permute.xlu1 %1003  ;;  %v1010_v19 = vpop.permute.xlu0 %1009  ;;  %v400_v14 = vadd.f32 %v2921_v9, %v361_v1  ;;  %v1520_v1 = vld [vmem:[#allocation2 + $0x140] sm:$0xff] }
 0x136   : > { %1089 = vst.msk [vmem:[#allocation3 + $0x58] sm:$0xff] %vm1077_vm4, %v1004_v44  ;;  %1092 = vst.msk [vmem:[#allocation3 + $0x70] sm:$0xff] %vm1077_vm4, %v1010_v19  ;;  %v362_v44 = vmul.f32 %v2920_v13, %v323_v26 }
 0x137   : > { %1963 = vrot.lane.b32.xlu1 %v3377_v32, %s2938_s9  ;;  %1965 = vrot.lane.b32.xlu0 %v3391_v46, %s2938_s9  ;;  %v432_v24 = vmax.f32 %v400_v14, 0.0 }
 0x139   : > { %v1008_v33 = vpop.permute.xlu1 %1007  ;;  %v1014_v55 = vpop.permute.xlu0 %1013  ;;  %465 = vst.msk [vmem:[#allocation2 + $0x181] sm:$0xff] %vm236_vm0, %v432_v24 }
 0x13a   : > { %1091 = vst.msk [vmem:[#allocation3 + $0x68] sm:$0xff] %vm1077_vm4, %v1008_v33  ;;  %1094 = vst.msk [vmem:[#allocation3 + $0x80] sm:$0xff] %vm1077_vm4, %v1014_v55  ;;  %v1707_v55 = vld [vmem:[#allocation2 + $0xf9] sm:$0xff] }
 0x13b   : > { %1387 = vrot.lane.b32.xlu1 %v3377_v32, %s2935_s8  ;;  %1581 = vrot.lane.b32.xlu0 %v3261_v28, %s2936_s13 }
 0x13d   : > { %v1012_v60 = vpop.permute.xlu1 %1011  ;;  %v1018_v61 = vpop.permute.xlu0 %1017 }
 0x13e   : > { %1093 = vst.msk [vmem:[#allocation3 + $0x78] sm:$0xff] %vm1077_vm4, %v1012_v60  ;;  %1096 = vst.msk [vmem:[#allocation3 + $0x90] sm:$0xff] %vm1077_vm4, %v1018_v61 }
 0x13f   : > { %1389 = vrot.lane.b32.xlu1 %v3391_v46, %s2935_s8  ;;  %1774 = vrot.lane.b32.xlu0 %v1700_v59, %s2937_s20 }
 0x141   : > { %v1016_v63 = vpop.permute.xlu1 %1015  ;;  %v1175_v54 = vpop.permute.xlu0 %1174 }
 0x142   : > { %1095 = vst.msk [vmem:[#allocation3 + $0x88] sm:$0xff] %vm1077_vm4, %v1016_v63 }
 0x143   : > { %1271 = vst.msk [vmem:[#allocation3] sm:$0xff] %vm1270_vm5, %v1175_v54  ;;  %1583 = vrot.lane.b32.xlu1 %v3273_v35, %s2936_s13  ;;  %1776 = vrot.lane.b32.xlu0 %v1701_v62, %s2937_s20 }
 0x145   : > { %v1020_v28 = vpop.permute.xlu1 %1019  ;;  %v1368_v32 = vpop.permute.xlu0 %1367 }
 0x146   : > { %1097 = vst.msk [vmem:[#allocation3 + $0x98] sm:$0xff] %vm1077_vm4, %v1020_v28  ;;  %v1900_v28 = vld [vmem:[#allocation2 + $0xfa] sm:$0xff] }
 0x147   : > { %1464 = vst.msk [vmem:[#allocation3] sm:$0xff] %vm1463_vm6, %v1368_v32  ;;  %1198 = vrot.lane.b32.xlu1 %v1700_v59, %s2934_s7  ;;  %1200 = vrot.lane.b32.xlu0 %v1701_v62, %s2934_s7  ;;  %v1899_v62 = vld [vmem:[#allocation2 + $0xf2] sm:$0xff] }
 0x149   : > { %v1177_v46 = vpop.permute.xlu1 %1176  ;;  %v1562_v12 = vpop.permute.xlu0 %1561 }
 0x14a   : > { %1272 = vst.msk [vmem:[#allocation3 + $0x8] sm:$0xff] %vm1270_vm5, %v1177_v46 }
 0x14b   : > { %1658 = vst.msk [vmem:[#allocation3] sm:$0xff] %vm1657_vm7, %v1562_v12  ;;  %1967 = vrot.lane.b32.xlu1 %v3385_v45, %s2938_s9  ;;  %1969 = vrot.lane.b32.xlu0 %v3399_v50, %s2938_s9 }
 0x14d   : > { %v1370_v35 = vpop.permute.xlu1 %1369  ;;  %v1755_v21 = vpop.permute.xlu0 %1754 }
 0x14e   : > { %1465 = vst.msk [vmem:[#allocation3 + $0x8] sm:$0xff] %vm1463_vm6, %v1370_v35 }
 0x14f   : > { %1851 = vst.msk [vmem:[#allocation3] sm:$0xff] %vm1850_vm8, %v1755_v21  ;;  %1391 = vrot.lane.b32.xlu1 %v3385_v45, %s2935_s8  ;;  %1585 = vrot.lane.b32.xlu0 %v3271_v34, %s2936_s13 }
 0x151   : > { %v1564_v17 = vpop.permute.xlu1 %1563  ;;  %v1757_v48 = vpop.permute.xlu0 %1756 }
 0x152   : > { %1659 = vst.msk [vmem:[#allocation3 + $0x8] sm:$0xff] %vm1657_vm7, %v1564_v17 }
 0x153   : > { %1852 = vst.msk [vmem:[#allocation3 + $0x8] sm:$0xff] %vm1850_vm8, %v1757_v48  ;;  %1393 = vrot.lane.b32.xlu1 %v3399_v50, %s2935_s8  ;;  %1778 = vrot.lane.b32.xlu0 %v1702_v0, %s2937_s20  ;;  %v1708_v48 = vld [vmem:[#allocation2 + $0x109] sm:$0xff] }
 0x155   : > { %v1179_v8 = vpop.permute.xlu1 %1178  ;;  %v1181_v18 = vpop.permute.xlu0 %1180 }
 0x156   : > { %1273 = vst.msk [vmem:[#allocation3 + $0x10] sm:$0xff] %vm1270_vm5, %v1179_v8  ;;  %1274 = vst.msk [vmem:[#allocation3 + $0x18] sm:$0xff] %vm1270_vm5, %v1181_v18  ;;  %v1709_v18 = vld [vmem:[#allocation2 + $0x111] sm:$0xff] }
 0x157   : > { %1587 = vrot.lane.b32.xlu1 %v3285_v37, %s2936_s13  ;;  %1780 = vrot.lane.b32.xlu0 %v1703_v30, %s2937_s20  ;;  %v1317_v37 = vld [vmem:[#allocation2 + $0xc2] sm:$0xff] }
 0x159   : > { %v1948_v34 = vpop.permute.xlu1 %1947  ;;  %v1950_v45 = vpop.permute.xlu0 %1949 }
 0x15a   : > { %2044 = vst.msk [vmem:[#allocation3] sm:$0xff] %vm2043_vm9, %v1948_v34  ;;  %2045 = vst.msk [vmem:[#allocation3 + $0x8] sm:$0xff] %vm2043_vm9, %v1950_v45 }
 0x15b   : > { %1202 = vrot.lane.b32.xlu1 %v1702_v0, %s2934_s7  ;;  %1204 = vrot.lane.b32.xlu0 %v1703_v30, %s2934_s7 }
 0x15d   : > { %v1372_v50 = vpop.permute.xlu1 %1371  ;;  %v1566_v3 = vpop.permute.xlu0 %1565 }
 0x15e   : > { %1466 = vst.msk [vmem:[#allocation3 + $0x10] sm:$0xff] %vm1463_vm6, %v1372_v50 }
 0x15f   : > { %1660 = vst.msk [vmem:[#allocation3 + $0x10] sm:$0xff] %vm1657_vm7, %v1566_v3  ;;  %1971 = vrot.lane.b32.xlu1 %v3393_v49, %s2938_s9  ;;  %1973 = vrot.lane.b32.xlu0 %v3404_v57, %s2938_s9  ;;  %v1318_v49 = vld [vmem:[#allocation2 + $0xca] sm:$0xff]  ;;  %v1704_v57 = vld [vmem:[#allocation2 + $0xd9] sm:$0xff] }
 0x161   : > { %v1374_v15 = vpop.permute.xlu1 %1373  ;;  %v1759_v16 = vpop.permute.xlu0 %1758  ;;  %v2076_v4 = vld [vmem:[#allocation3] sm:$0xff]  ;;  %v2077_v56 = vld [vmem:[#allocation3 + $0x8] sm:$0xff] }
 0x162   : > { %1467 = vst.msk [vmem:[#allocation3 + $0x18] sm:$0xff] %vm1463_vm6, %v1374_v15  ;;  %2837 = vmatprep.mubr.msk.f32.mxu0 %vm2117_vm10, %v2076_v4  ;;  %v1902_v15 = vld [vmem:[#allocation2 + $0x112] sm:$0xff] }
 0x163   : > { %1853 = vst.msk [vmem:[#allocation3 + $0x10] sm:$0xff] %vm1850_vm8, %v1759_v16  ;;  %1395 = vrot.lane.b32.xlu1 %v1317_v37, %s2935_s8  ;;  %1589 = vrot.lane.b32.xlu0 %v3283_v36, %s2936_s13 }
 0x164   : > { %2838 = vmatmul.mubr.msk.f32.vlgmr.msra.gmra.mxu0 %vm2117_vm10, %v2077_v56 }
 0x165   : > { %v1568_v23 = vpop.permute.xlu1 %1567  ;;  %v1761_v25 = vpop.permute.xlu0 %1760 }
 0x166   : > { %1661 = vst.msk [vmem:[#allocation3 + $0x18] sm:$0xff] %vm1657_vm7, %v1568_v23 }
 0x167   : > { %1854 = vst.msk [vmem:[#allocation3 + $0x18] sm:$0xff] %vm1850_vm8, %v1761_v25  ;;  %1397 = vrot.lane.b32.xlu1 %v1318_v49, %s2935_s8  ;;  %1782 = vrot.lane.b32.xlu0 %v1704_v57, %s2937_s20 }
 0x169   : > { %v1183_v2 = vpop.permute.xlu1 %1182  ;;  %v1185_v5 = vpop.permute.xlu0 %1184 }
 0x16a   : > { %1275 = vst.msk [vmem:[#allocation3 + $0x20] sm:$0xff] %vm1270_vm5, %v1183_v2  ;;  %1276 = vst.msk [vmem:[#allocation3 + $0x28] sm:$0xff] %vm1270_vm5, %v1185_v5  ;;  %v1711_v5 = vld [vmem:[#allocation2 + $0x129] sm:$0xff] }
 0x16b   : > { %1591 = vrot.lane.b32.xlu1 %v3295_v39, %s2936_s13  ;;  %1784 = vrot.lane.b32.xlu0 %v1705_v10, %s2937_s20 }
 0x16d   : > { %v1952_v36 = vpop.permute.xlu1 %1951  ;;  %v1954_v53 = vpop.permute.xlu0 %1953 }
 0x16e   : > { %2046 = vst.msk [vmem:[#allocation3 + $0x10] sm:$0xff] %vm2043_vm9, %v1952_v36  ;;  %2047 = vst.msk [vmem:[#allocation3 + $0x18] sm:$0xff] %vm2043_vm9, %v1954_v53 }
 0x16f   : > { %1206 = vrot.lane.b32.xlu1 %v1704_v57, %s2934_s7  ;;  %1208 = vrot.lane.b32.xlu0 %v1705_v10, %s2934_s7  ;;  %v939_v57 = vld [vmem:[#allocation2 + $0x120] sm:$0xff] }
 0x171   : > { %v1376_v6 = vpop.permute.xlu1 %1375  ;;  %v1570_v20 = vpop.permute.xlu0 %1569 }
 0x172   : > { %1468 = vst.msk [vmem:[#allocation3 + $0x20] sm:$0xff] %vm1463_vm6, %v1376_v6 }
 0x173   : > { %1662 = vst.msk [vmem:[#allocation3 + $0x20] sm:$0xff] %vm1657_vm7, %v1570_v20  ;;  %1975 = vrot.lane.b32.xlu1 %v1897_v29, %s2938_s9  ;;  %1977 = vrot.lane.b32.xlu0 %v1898_v52, %s2938_s9 }
 0x175   : > { %v1378_v39 = vpop.permute.xlu1 %1377  ;;  %v1763_v22 = vpop.permute.xlu0 %1762  ;;  %v2078_v31 = vld [vmem:[#allocation3 + $0x10] sm:$0xff]  ;;  %v2079_v7 = vld [vmem:[#allocation3 + $0x18] sm:$0xff] }
 0x176   : > { %1469 = vst.msk [vmem:[#allocation3 + $0x28] sm:$0xff] %vm1463_vm6, %v1378_v39  ;;  %2840 = vmatprep.mubr.msk.f32.mxu0 %vm2117_vm10, %v2078_v31  ;;  %v1904_v39 = vld [vmem:[#allocation2 + $0x12a] sm:$0xff] }
 0x177   : > { %1855 = vst.msk [vmem:[#allocation3 + $0x20] sm:$0xff] %vm1850_vm8, %v1763_v22  ;;  %1399 = vrot.lane.b32.xlu1 %v1897_v29, %s2935_s8  ;;  %2841 = vmatmul.mubr.msk.f32.gmra.mxu0 %vm2117_vm10, %v2079_v7  ;;  %v1519_v7 = vld [vmem:[#allocation2 + $0x138] sm:$0xff] }
 0x178   : > { %1593 = vrot.lane.b32.xlu0 %v3287_v38, %s2936_s13  ;;  %v401_v38 = vadd.f32 %v2921_v9, %v362_v44  ;;  %v1713_v44 = vld [vmem:[#allocation2 + $0x141] sm:$0xff] }
 0x179   : > { %v1572_v11 = vpop.permute.xlu1 %1571  ;;  %v1765_v51 = vpop.permute.xlu0 %1764 }
 0x17a   : > { %1663 = vst.msk [vmem:[#allocation3 + $0x28] sm:$0xff] %vm1657_vm7, %v1572_v11  ;;  %v433_v59 = vmax.f32 %v401_v38, 0.0  ;;  %v1712_v11 = vld [vmem:[#allocation2 + $0x139] sm:$0xff] }
 0x17b   : > { %1856 = vst.msk [vmem:[#allocation3 + $0x28] sm:$0xff] %vm1850_vm8, %v1765_v51  ;;  %1401 = vrot.lane.b32.xlu1 %v1898_v52, %s2935_s8 }
 0x17c   : > { %1786 = vrot.lane.b32.xlu0 %v1706_v58, %s2937_s20  ;;  %466 = vst.msk [vmem:[#allocation2 + $0x189] sm:$0xff] %vm236_vm0, %v433_v59 }
 0x17d   : > { %v1187_v19 = vpop.permute.xlu1 %1186  ;;  %v1189_v33 = vpop.permute.xlu0 %1188 }
 0x17e   : > { %1277 = vst.msk [vmem:[#allocation3 + $0x30] sm:$0xff] %vm1270_vm5, %v1187_v19  ;;  %1278 = vst.msk [vmem:[#allocation3 + $0x38] sm:$0xff] %vm1270_vm5, %v1189_v33  ;;  %v1905_v33 = vld [vmem:[#allocation2 + $0x13a] sm:$0xff] }
 0x17f   : > { %1595 = vrot.lane.b32.xlu1 %v3299_v41, %s2936_s13 }
 0x180   : > { %1788 = vrot.lane.b32.xlu0 %v1707_v55, %s2937_s20 }
 0x181   : > { %v1956_v60 = vpop.permute.xlu1 %1955  ;;  %v1958_v61 = vpop.permute.xlu0 %1957 }
 0x182   : > { %2048 = vst.msk [vmem:[#allocation3 + $0x20] sm:$0xff] %vm2043_vm9, %v1956_v60  ;;  %2049 = vst.msk [vmem:[#allocation3 + $0x28] sm:$0xff] %vm2043_vm9, %v1958_v61  ;;  %v1906_v60 = vld [vmem:[#allocation2 + $0x142] sm:$0xff] }
 0x183   : > { %1210 = vrot.lane.b32.xlu1 %v1706_v58, %s2934_s7 }
 0x184   : > { %1212 = vrot.lane.b32.xlu0 %v1707_v55, %s2934_s7 }
 0x185   : > { %v1380_v63 = vpop.permute.xlu1 %1379  ;;  %v1574_v54 = vpop.permute.xlu0 %1573 }
 0x186   : > { %1470 = vst.msk [vmem:[#allocation3 + $0x30] sm:$0xff] %vm1463_vm6, %v1380_v63  ;;  %v1521_v63 = vld [vmem:[#allocation2 + $0x150] sm:$0xff] }
 0x187   : > { %1664 = vst.msk [vmem:[#allocation3 + $0x30] sm:$0xff] %vm1657_vm7, %v1574_v54  ;;  %1979 = vrot.lane.b32.xlu1 %v1899_v62, %s2938_s9 }
 0x188   : > { %1981 = vrot.lane.b32.xlu0 %v1900_v28, %s2938_s9 }
 0x189   : > { %v1382_v41 = vpop.permute.xlu1 %1381  ;;  %v1767_v32 = vpop.permute.xlu0 %1766  ;;  %v2080_v46 = vld [vmem:[#allocation3 + $0x20] sm:$0xff]  ;;  %v2081_v12 = vld [vmem:[#allocation3 + $0x28] sm:$0xff] }
 0x18a   : > { %1471 = vst.msk [vmem:[#allocation3 + $0x38] sm:$0xff] %vm1463_vm6, %v1382_v41  ;;  %2843 = vmatprep.mubr.msk.f32.mxu0 %vm2117_vm10, %v2080_v46  ;;  %v1522_v41 = vld [vmem:[#allocation2 + $0x158] sm:$0xff] }
 0x18b   : > { %1857 = vst.msk [vmem:[#allocation3 + $0x30] sm:$0xff] %vm1850_vm8, %v1767_v32  ;;  %1403 = vrot.lane.b32.xlu1 %v1899_v62, %s2935_s8  ;;  %2844 = vmatmul.mubr.msk.f32.gmra.mxu0 %vm2117_vm10, %v2081_v12 }
 0x18c   : > { %1597 = vrot.lane.b32.xlu0 %v3297_v40, %s2936_s13 }
 0x18d   : > { %v1576_v35 = vpop.permute.xlu1 %1575  ;;  %v1769_v21 = vpop.permute.xlu0 %1768 }
 0x18e   : > { %1665 = vst.msk [vmem:[#allocation3 + $0x38] sm:$0xff] %vm1657_vm7, %v1576_v35 }
 0x18f   : > { %1858 = vst.msk [vmem:[#allocation3 + $0x38] sm:$0xff] %vm1850_vm8, %v1769_v21  ;;  %1405 = vrot.lane.b32.xlu1 %v1900_v28, %s2935_s8  ;;  %v1714_v21 = vld [vmem:[#allocation2 + $0x151] sm:$0xff] }
 0x190   : > { %1599 = vrot.lane.b32.xlu0 %v3313_v43, %s2936_s13 }
 0x191   : > { %v1191_v0 = vpop.permute.xlu1 %1190  ;;  %v1193_v17 = vpop.permute.xlu0 %1192 }
 0x192   : > { %1279 = vst.msk [vmem:[#allocation3 + $0x40] sm:$0xff] %vm1270_vm5, %v1191_v0  ;;  %1280 = vst.msk [vmem:[#allocation3 + $0x48] sm:$0xff] %vm1270_vm5, %v1193_v17 }
 0x193   : > { %1021 = vrot.lane.b32.xlu1 %v3297_v40, %s2933_s6  ;;  %v1901_v40 = vld [vmem:[#allocation2 + $0x10a] sm:$0xff] }
 0x194   : > { %1023 = vrot.lane.b32.xlu0 %v3313_v43, %s2933_s6 }
 0x195   : > { %v1960_v30 = vpop.permute.xlu1 %1959  ;;  %v1962_v8 = vpop.permute.xlu0 %1961 }
 0x196   : > { %2050 = vst.msk [vmem:[#allocation3 + $0x30] sm:$0xff] %vm2043_vm9, %v1960_v30  ;;  %2051 = vst.msk [vmem:[#allocation3 + $0x38] sm:$0xff] %vm2043_vm9, %v1962_v8 }
 0x197   : > { %1790 = vrot.lane.b32.xlu1 %v1708_v48, %s2937_s20 }
 0x198   : > { %1792 = vrot.lane.b32.xlu0 %v1709_v18, %s2937_s20 }
 0x199   : > { %v1384_v34 = vpop.permute.xlu1 %1383  ;;  %v1578_v45 = vpop.permute.xlu0 %1577 }
 0x19a   : > { %1472 = vst.msk [vmem:[#allocation3 + $0x40] sm:$0xff] %vm1463_vm6, %v1384_v34 }
 0x19b   : > { %1666 = vst.msk [vmem:[#allocation3 + $0x40] sm:$0xff] %vm1657_vm7, %v1578_v45  ;;  %1214 = vrot.lane.b32.xlu1 %v1708_v48, %s2934_s7  ;;  %v1715_v48 = vld [vmem:[#allocation2 + $0x159] sm:$0xff] }
 0x19c   : > { %1216 = vrot.lane.b32.xlu0 %v1709_v18, %s2934_s7  ;;  %v1907_v18 = vld [vmem:[#allocation2 + $0x152] sm:$0xff] }
 0x19d   : > { %v1386_v43 = vpop.permute.xlu1 %1385  ;;  %v1771_v50 = vpop.permute.xlu0 %1770  ;;  %v2082_v3 = vld [vmem:[#allocation3 + $0x30] sm:$0xff]  ;;  %v2083_v37 = vld [vmem:[#allocation3 + $0x38] sm:$0xff] }
 0x19e   : > { %1473 = vst.msk [vmem:[#allocation3 + $0x48] sm:$0xff] %vm1463_vm6, %v1386_v43  ;;  %2846 = vmatprep.mubr.msk.f32.mxu0 %vm2117_vm10, %v2082_v3 }
 0x19f   : > { %1859 = vst.msk [vmem:[#allocation3 + $0x40] sm:$0xff] %vm1850_vm8, %v1771_v50  ;;  %1983 = vrot.lane.b32.xlu1 %v1901_v40, %s2938_s9  ;;  %2847 = vmatmul.mubr.msk.f32.gmra.mxu0 %vm2117_vm10, %v2083_v37  ;;  %v1523_v50 = vld [vmem:[#allocation2 + $0x168] sm:$0xff] }
 0x1a0   : > { %1985 = vrot.lane.b32.xlu0 %v1902_v15, %s2938_s9 }
 0x1a1   : > { %v1580_v16 = vpop.permute.xlu1 %1579  ;;  %v1773_v4 = vpop.permute.xlu0 %1772 }
 0x1a2   : > { %1667 = vst.msk [vmem:[#allocation3 + $0x48] sm:$0xff] %vm1657_vm7, %v1580_v16 }
 0x1a3   : > { %1860 = vst.msk [vmem:[#allocation3 + $0x48] sm:$0xff] %vm1850_vm8, %v1773_v4  ;;  %1407 = vrot.lane.b32.xlu1 %v1901_v40, %s2935_s8  ;;  %v1908_v40 = vld [vmem:[#allocation2 + $0x15a] sm:$0xff]  ;;  %v1524_v4 = vld [vmem:[#allocation2 + $0x170] sm:$0xff] }
 0x1a4   : > { %1601 = vrot.lane.b32.xlu0 %v3307_v42, %s2936_s13  ;;  %v1710_v42 = vld [vmem:[#allocation2 + $0x121] sm:$0xff] }
 0x1a5   : > { %v1195_v56 = vpop.permute.xlu1 %1194  ;;  %v1197_v49 = vpop.permute.xlu0 %1196 }
 0x1a6   : > { %1281 = vst.msk [vmem:[#allocation3 + $0x50] sm:$0xff] %vm1270_vm5, %v1195_v56  ;;  %1282 = vst.msk [vmem:[#allocation3 + $0x58] sm:$0xff] %vm1270_vm5, %v1197_v49 }
 0x1a7   : > { %1409 = vrot.lane.b32.xlu1 %v1902_v15, %s2935_s8 }
 0x1a8   : > { %1603 = vrot.lane.b32.xlu0 %v3320_v47, %s2936_s13 }
 0x1a9   : > { %v1964_v23 = vpop.permute.xlu1 %1963  ;;  %v1966_v25 = vpop.permute.xlu0 %1965 }
 0x1aa   : > { %2052 = vst.msk [vmem:[#allocation3 + $0x40] sm:$0xff] %vm2043_vm9, %v1964_v23  ;;  %2053 = vst.msk [vmem:[#allocation3 + $0x48] sm:$0xff] %vm2043_vm9, %v1966_v25  ;;  %v1716_v23 = vld [vmem:[#allocation2 + $0x169] sm:$0xff] }
 0x1ab   : > { %1025 = vrot.lane.b32.xlu1 %v939_v57, %s2933_s6 }
 0x1ac   : > { %1027 = vrot.lane.b32.xlu0 %v3320_v47, %s2933_s6  ;;  %v1903_v47 = vld [vmem:[#allocation2 + $0x122] sm:$0xff] }
 0x1ad   : > { %v1388_v10 = vpop.permute.xlu1 %1387  ;;  %v1582_v2 = vpop.permute.xlu0 %1581 }
 0x1ae   : > { %1474 = vst.msk [vmem:[#allocation3 + $0x50] sm:$0xff] %vm1463_vm6, %v1388_v10 }
 0x1af   : > { %1668 = vst.msk [vmem:[#allocation3 + $0x50] sm:$0xff] %vm1657_vm7, %v1582_v2  ;;  %1794 = vrot.lane.b32.xlu1 %v1710_v42, %s2937_s20 }
 0x1b0   : > { %1796 = vrot.lane.b32.xlu0 %v1711_v5, %s2937_s20 }
 0x1b1   : > { %v1390_v36 = vpop.permute.xlu1 %1389  ;;  %v1775_v53 = vpop.permute.xlu0 %1774  ;;  %v2084_v29 = vld [vmem:[#allocation3 + $0x40] sm:$0xff]  ;;  %v2085_v52 = vld [vmem:[#allocation3 + $0x48] sm:$0xff] }
 0x1b2   : > { %1475 = vst.msk [vmem:[#allocation3 + $0x58] sm:$0xff] %vm1463_vm6, %v1390_v36  ;;  %2849 = vmatprep.mubr.msk.f32.mxu0 %vm2117_vm10, %v2084_v29  ;;  %v1909_v36 = vld [vmem:[#allocation2 + $0x16a] sm:$0xff]  ;;  %v1910_v29 = vld [vmem:[#allocation2 + $0x172] sm:$0xff] }
 0x1b3   : > { %1861 = vst.msk [vmem:[#allocation3 + $0x50] sm:$0xff] %vm1850_vm8, %v1775_v53  ;;  %1218 = vrot.lane.b32.xlu1 %v1710_v42, %s2934_s7  ;;  %2850 = vmatmul.mubr.msk.f32.gmra.mxu0 %vm2117_vm10, %v2085_v52  ;;  %v1717_v42 = vld [vmem:[#allocation2 + $0x171] sm:$0xff] }
 0x1b4   : > { %1220 = vrot.lane.b32.xlu0 %v1711_v5, %s2934_s7 }
 0x1b5   : > { %v1584_v6 = vpop.permute.xlu1 %1583  ;;  %v1777_v20 = vpop.permute.xlu0 %1776 }
 0x1b6   : > { %1669 = vst.msk [vmem:[#allocation3 + $0x58] sm:$0xff] %vm1657_vm7, %v1584_v6 }
 0x1b7   : > { %1862 = vst.msk [vmem:[#allocation3 + $0x58] sm:$0xff] %vm1850_vm8, %v1777_v20  ;;  %1987 = vrot.lane.b32.xlu1 %v1903_v47, %s2938_s9  ;;  %v1525_v20 = vld [vmem:[#allocation2 + $0x180] sm:$0xff] }
 0x1b8   : > { %1989 = vrot.lane.b32.xlu0 %v1904_v39, %s2938_s9 }
 0x1b9   : > { %v1199_v22 = vpop.permute.xlu1 %1198  ;;  %v1201_v31 = vpop.permute.xlu0 %1200 }
 0x1ba   : > { %1283 = vst.msk [vmem:[#allocation3 + $0x60] sm:$0xff] %vm1270_vm5, %v1199_v22  ;;  %1284 = vst.msk [vmem:[#allocation3 + $0x68] sm:$0xff] %vm1270_vm5, %v1201_v31 }
 0x1bb   : > { %1411 = vrot.lane.b32.xlu1 %v1903_v47, %s2935_s8 }
 0x1bc   : > { %1605 = vrot.lane.b32.xlu0 %v1519_v7, %s2936_s13 }
 0x1bd   : > { %v1968_v27 = vpop.permute.xlu1 %1967  ;;  %v1970_v13 = vpop.permute.xlu0 %1969 }
 0x1be   : > { %2054 = vst.msk [vmem:[#allocation3 + $0x50] sm:$0xff] %vm2043_vm9, %v1968_v27  ;;  %2055 = vst.msk [vmem:[#allocation3 + $0x58] sm:$0xff] %vm2043_vm9, %v1970_v13 }
 0x1bf   : > { %1413 = vrot.lane.b32.xlu1 %v1904_v39, %s2935_s8 }
 0x1c0   : > { %1607 = vrot.lane.b32.xlu0 %v1520_v1, %s2936_s13 }
 0x1c1   : > { %v1392_v9 = vpop.permute.xlu1 %1391  ;;  %v1586_v14 = vpop.permute.xlu0 %1585 }
 0x1c2   : > { %1476 = vst.msk [vmem:[#allocation3 + $0x60] sm:$0xff] %vm1463_vm6, %v1392_v9  ;;  %v1718_v9 = vld [vmem:[#allocation2 + $0x181] sm:$0xff] }
 0x1c3   : > { %1670 = vst.msk [vmem:[#allocation3 + $0x60] sm:$0xff] %vm1657_vm7, %v1586_v14  ;;  %1029 = vrot.lane.b32.xlu1 %v1519_v7, %s2933_s6  ;;  %v1526_v7 = vld [vmem:[#allocation2 + $0x188] sm:$0xff] }
 0x1c4   : > { %1031 = vrot.lane.b32.xlu0 %v1520_v1, %s2933_s6 }
 0x1c5   : > { %v1394_v51 = vpop.permute.xlu1 %1393  ;;  %v1779_v58 = vpop.permute.xlu0 %1778  ;;  %v2086_v26 = vld [vmem:[#allocation3 + $0x50] sm:$0xff]  ;;  %v2087_v24 = vld [vmem:[#allocation3 + $0x58] sm:$0xff] }
 0x1c6   : > { %1477 = vst.msk [vmem:[#allocation3 + $0x68] sm:$0xff] %vm1463_vm6, %v1394_v51  ;;  %2852 = vmatprep.mubr.msk.f32.mxu0 %vm2117_vm10, %v2086_v26 }
 0x1c7   : > { %1863 = vst.msk [vmem:[#allocation3 + $0x60] sm:$0xff] %vm1850_vm8, %v1779_v58  ;;  %1798 = vrot.lane.b32.xlu1 %v1712_v11, %s2937_s20  ;;  %2853 = vmatmul.mubr.msk.f32.gmra.mxu0 %vm2117_vm10, %v2087_v24  ;;  %v1911_v24 = vld [vmem:[#allocation2 + $0x182] sm:$0xff] }
 0x1c8   : > { %1800 = vrot.lane.b32.xlu0 %v1713_v44, %s2937_s20 }
 0x1c9   : > { %v1588_v38 = vpop.permute.xlu1 %1587  ;;  %v1781_v19 = vpop.permute.xlu0 %1780 }
 0x1ca   : > { %1671 = vst.msk [vmem:[#allocation3 + $0x68] sm:$0xff] %vm1657_vm7, %v1588_v38  ;;  %v1912_v38 = vld [vmem:[#allocation2 + $0x18a] sm:$0xff] }
 0x1cb   : > { %1864 = vst.msk [vmem:[#allocation3 + $0x68] sm:$0xff] %vm1850_vm8, %v1781_v19  ;;  %1222 = vrot.lane.b32.xlu1 %v1712_v11, %s2934_s7  ;;  %v1719_v11 = vld [vmem:[#allocation2 + $0x189] sm:$0xff] }
 0x1cc   : > { %1224 = vrot.lane.b32.xlu0 %v1713_v44, %s2934_s7 }
 0x1cd   : > { %v1203_v55 = vpop.permute.xlu1 %1202  ;;  %v1205_v59 = vpop.permute.xlu0 %1204 }
 0x1ce   : > { %1285 = vst.msk [vmem:[#allocation3 + $0x70] sm:$0xff] %vm1270_vm5, %v1203_v55  ;;  %1286 = vst.msk [vmem:[#allocation3 + $0x78] sm:$0xff] %vm1270_vm5, %v1205_v59  ;;  %v1527_v59 = vld [vmem:[#allocation2 + $0x198] sm:$0xff] }
 0x1cf   : > { %1991 = vrot.lane.b32.xlu1 %v1905_v33, %s2938_s9 }
 0x1d0   : > { %1993 = vrot.lane.b32.xlu0 %v1906_v60, %s2938_s9 }
 0x1d1   : > { %v1972_v61 = vpop.permute.xlu1 %1971  ;;  %v1974_v62 = vpop.permute.xlu0 %1973 }
 0x1d2   : > { %2056 = vst.msk [vmem:[#allocation3 + $0x60] sm:$0xff] %vm2043_vm9, %v1972_v61  ;;  %2057 = vst.msk [vmem:[#allocation3 + $0x68] sm:$0xff] %vm2043_vm9, %v1974_v62 }
 0x1d3   : > { %1415 = vrot.lane.b32.xlu1 %v1905_v33, %s2935_s8 }
 0x1d4   : > { %1609 = vrot.lane.b32.xlu0 %v1521_v63, %s2936_s13 }
 0x1d5   : > { %v1396_v54 = vpop.permute.xlu1 %1395  ;;  %v1590_v28 = vpop.permute.xlu0 %1589 }
 0x1d6   : > { %1478 = vst.msk [vmem:[#allocation3 + $0x70] sm:$0xff] %vm1463_vm6, %v1396_v54 }
 0x1d7   : > { %1672 = vst.msk [vmem:[#allocation3 + $0x70] sm:$0xff] %vm1657_vm7, %v1590_v28  ;;  %1417 = vrot.lane.b32.xlu1 %v1906_v60, %s2935_s8  ;;  %v1528_v28 = vld [vmem:[#allocation2 + $0x1a0] sm:$0xff] }
 0x1d8   : > { %1611 = vrot.lane.b32.xlu0 %v1522_v41, %s2936_s13 }
 0x1d9   : > { %v1398_v32 = vpop.permute.xlu1 %1397  ;;  %v1783_v46 = vpop.permute.xlu0 %1782  ;;  %v2088_v12 = vld [vmem:[#allocation3 + $0x60] sm:$0xff]  ;;  %v2089_v35 = vld [vmem:[#allocation3 + $0x68] sm:$0xff] }
 0x1da   : > { %1479 = vst.msk [vmem:[#allocation3 + $0x78] sm:$0xff] %vm1463_vm6, %v1398_v32  ;;  %2855 = vmatprep.mubr.msk.f32.mxu0 %vm2117_vm10, %v2088_v12  ;;  %v1913_v32 = vld [vmem:[#allocation2 + $0x19a] sm:$0xff] }
 0x1db   : > { %1865 = vst.msk [vmem:[#allocation3 + $0x70] sm:$0xff] %vm1850_vm8, %v1783_v46  ;;  %1033 = vrot.lane.b32.xlu1 %v1521_v63, %s2933_s6  ;;  %2856 = vmatmul.mubr.msk.f32.gmra.mxu0 %vm2117_vm10, %v2089_v35  ;;  %v1720_v63 = vld [vmem:[#allocation2 + $0x199] sm:$0xff]  ;;  %v1721_v35 = vld [vmem:[#allocation2 + $0x1a1] sm:$0xff] }
 0x1dc   : > { %1035 = vrot.lane.b32.xlu0 %v1522_v41, %s2933_s6 }
 0x1dd   : > { %v1592_v0 = vpop.permute.xlu1 %1591  ;;  %v1785_v17 = vpop.permute.xlu0 %1784 }
 0x1de   : > { %1673 = vst.msk [vmem:[#allocation3 + $0x78] sm:$0xff] %vm1657_vm7, %v1592_v0 }
 0x1df   : > { %1866 = vst.msk [vmem:[#allocation3 + $0x78] sm:$0xff] %vm1850_vm8, %v1785_v17  ;;  %1802 = vrot.lane.b32.xlu1 %v1714_v21, %s2937_s20 }
 0x1e0   : > { %1804 = vrot.lane.b32.xlu0 %v1715_v48, %s2937_s20 }
 0x1e1   : > { %v1207_v30 = vpop.permute.xlu1 %1206  ;;  %v1209_v8 = vpop.permute.xlu0 %1208 }
 0x1e2   : > { %1287 = vst.msk [vmem:[#allocation3 + $0x80] sm:$0xff] %vm1270_vm5, %v1207_v30  ;;  %1288 = vst.msk [vmem:[#allocation3 + $0x88] sm:$0xff] %vm1270_vm5, %v1209_v8 }
 0x1e3   : > { %1226 = vrot.lane.b32.xlu1 %v1714_v21, %s2934_s7 }
 0x1e4   : > { %1228 = vrot.lane.b32.xlu0 %v1715_v48, %s2934_s7 }
 0x1e5   : > { %v1976_v34 = vpop.permute.xlu1 %1975  ;;  %v1978_v45 = vpop.permute.xlu0 %1977 }
 0x1e6   : > { %2058 = vst.msk [vmem:[#allocation3 + $0x70] sm:$0xff] %vm2043_vm9, %v1976_v34  ;;  %2059 = vst.msk [vmem:[#allocation3 + $0x78] sm:$0xff] %vm2043_vm9, %v1978_v45 }
 0x1e7   : > { %1995 = vrot.lane.b32.xlu1 %v1907_v18, %s2938_s9 }
 0x1e8   : > { %1997 = vrot.lane.b32.xlu0 %v1908_v40, %s2938_s9 }
 0x1e9   : > { %v1400_v43 = vpop.permute.xlu1 %1399 }
 0x1ea   : > { %1480 = vst.msk [vmem:[#allocation3 + $0x80] sm:$0xff] %vm1463_vm6, %v1400_v43  ;;  %v1594_v3 = vpop.permute.xlu0 %1593 }
 0x1eb   : > { %1674 = vst.msk [vmem:[#allocation3 + $0x80] sm:$0xff] %vm1657_vm7, %v1594_v3  ;;  %1419 = vrot.lane.b32.xlu1 %v1907_v18, %s2935_s8 }
 0x1ec   : > { %1613 = vrot.lane.b32.xlu0 %v1523_v50, %s2936_s13 }
 0x1ed   : > { %v1402_v37 = vpop.permute.xlu1 %1401  ;;  %v2090_v15 = vld [vmem:[#allocation3 + $0x70] sm:$0xff]  ;;  %v2091_v16 = vld [vmem:[#allocation3 + $0x78] sm:$0xff] }
 0x1ee   : > { %1481 = vst.msk [vmem:[#allocation3 + $0x88] sm:$0xff] %vm1463_vm6, %v1402_v37  ;;  %v1787_v56 = vpop.permute.xlu0 %1786  ;;  %2858 = vmatprep.mubr.msk.f32.mxu0 %vm2117_vm10, %v2090_v15 }
 0x1ef   : > { %1867 = vst.msk [vmem:[#allocation3 + $0x80] sm:$0xff] %vm1850_vm8, %v1787_v56  ;;  %1421 = vrot.lane.b32.xlu1 %v1908_v40, %s2935_s8  ;;  %2859 = vmatmul.mubr.msk.f32.gmra.mxu0 %vm2117_vm10, %v2091_v16  ;;  %v1914_v40 = vld [vmem:[#allocation2 + $0x1a2] sm:$0xff] }
 0x1f0   : > { %1615 = vrot.lane.b32.xlu0 %v1524_v4, %s2936_s13 }
 0x1f1   : > { %v1596_v49 = vpop.permute.xlu1 %1595 }
 0x1f2   : > { %1675 = vst.msk [vmem:[#allocation3 + $0x88] sm:$0xff] %vm1657_vm7, %v1596_v49  ;;  %v1789_v57 = vpop.permute.xlu0 %1788 }
 0x1f3   : > { %1868 = vst.msk [vmem:[#allocation3 + $0x88] sm:$0xff] %vm1850_vm8, %v1789_v57  ;;  %1037 = vrot.lane.b32.xlu1 %v1523_v50, %s2933_s6 }
 0x1f4   : > { %1039 = vrot.lane.b32.xlu0 %v1524_v4, %s2933_s6 }
 0x1f5   : > { %v1211_v25 = vpop.permute.xlu1 %1210 }
 0x1f6   : > { %1289 = vst.msk [vmem:[#allocation3 + $0x90] sm:$0xff] %vm1270_vm5, %v1211_v25  ;;  %v1213_v10 = vpop.permute.xlu0 %1212 }
 0x1f7   : > { %1290 = vst.msk [vmem:[#allocation3 + $0x98] sm:$0xff] %vm1270_vm5, %v1213_v10  ;;  %1806 = vrot.lane.b32.xlu1 %v1716_v23, %s2937_s20 }
 0x1f8   : > { %1808 = vrot.lane.b32.xlu0 %v1717_v42, %s2937_s20 }
 0x1f9   : > { %v1980_v2 = vpop.permute.xlu1 %1979 }
 0x1fa   : > { %2060 = vst.msk [vmem:[#allocation3 + $0x80] sm:$0xff] %vm2043_vm9, %v1980_v2  ;;  %v1982_v5 = vpop.permute.xlu0 %1981 }
 0x1fb   : > { %2061 = vst.msk [vmem:[#allocation3 + $0x88] sm:$0xff] %vm2043_vm9, %v1982_v5  ;;  %1230 = vrot.lane.b32.xlu1 %v1716_v23, %s2934_s7 }
 0x1fc   : > { %1232 = vrot.lane.b32.xlu0 %v1717_v42, %s2934_s7 }
 0x1fd   : > { %v1404_v53 = vpop.permute.xlu1 %1403 }
 0x1fe   : > { %1482 = vst.msk [vmem:[#allocation3 + $0x90] sm:$0xff] %vm1463_vm6, %v1404_v53  ;;  %v1598_v52 = vpop.permute.xlu0 %1597 }
 0x1ff   : > { %1676 = vst.msk [vmem:[#allocation3 + $0x90] sm:$0xff] %vm1657_vm7, %v1598_v52  ;;  %1999 = vrot.lane.b32.xlu1 %v1909_v36, %s2938_s9 }
 0x200   : > { %2001 = vrot.lane.b32.xlu0 %v1910_v29, %s2938_s9 }
 0x201   : > { %v1406_v47 = vpop.permute.xlu1 %1405  ;;  %v2092_v6 = vld [vmem:[#allocation3 + $0x80] sm:$0xff] }
 0x202   : > { %1483 = vst.msk [vmem:[#allocation3 + $0x98] sm:$0xff] %vm1463_vm6, %v1406_v47  ;;  %v1600_v39 = vpop.permute.xlu0 %1599  ;;  %2861 = vmatprep.mubr.msk.f32.mxu1 %vm2117_vm10, %v2092_v6  ;;  %v2093_v22 = vld [vmem:[#allocation3 + $0x88] sm:$0xff] }
 0x203   : > { %1677 = vst.msk [vmem:[#allocation3 + $0x98] sm:$0xff] %vm1657_vm7, %v1600_v39  ;;  %1423 = vrot.lane.b32.xlu1 %v1909_v36, %s2935_s8  ;;  %2862 = vmatmul.mubr.msk.f32.vlgmr.msra.gmra.mxu1 %vm2117_vm10, %v2093_v22 }
 0x204   : > { %1617 = vrot.lane.b32.xlu0 %v1525_v20, %s2936_s13 }
 0x205   : > { %v1022_v31 = vpop.permute.xlu1 %1021 }
 0x206   : > { %1098 = vst.msk [vmem:[#allocation3 + $0xa0] sm:$0xff] %vm1077_vm4, %v1022_v31  ;;  %v1024_v27 = vpop.permute.xlu0 %1023 }
 0x207   : > { %1099 = vst.msk [vmem:[#allocation3 + $0xa8] sm:$0xff] %vm1077_vm4, %v1024_v27  ;;  %1425 = vrot.lane.b32.xlu1 %v1910_v29, %s2935_s8 }
 0x208   : > { %1619 = vrot.lane.b32.xlu0 %v1526_v7, %s2936_s13 }
 0x209   : > { %v1791_v13 = vpop.permute.xlu1 %1790 }
 0x20a   : > { %1869 = vst.msk [vmem:[#allocation3 + $0x90] sm:$0xff] %vm1850_vm8, %v1791_v13  ;;  %v1793_v1 = vpop.permute.xlu0 %1792 }
 0x20b   : > { %1870 = vst.msk [vmem:[#allocation3 + $0x98] sm:$0xff] %vm1850_vm8, %v1793_v1  ;;  %1041 = vrot.lane.b32.xlu1 %v1525_v20, %s2933_s6 }
 0x20c   : > { %1043 = vrot.lane.b32.xlu0 %v1526_v7, %s2933_s6 }
 0x20d   : > { %v1215_v14 = vpop.permute.xlu1 %1214 }
 0x20e   : > { %1291 = vst.msk [vmem:[#allocation3 + $0xa0] sm:$0xff] %vm1270_vm5, %v1215_v14  ;;  %v1217_v51 = vpop.permute.xlu0 %1216 }
 0x20f   : > { %1292 = vst.msk [vmem:[#allocation3 + $0xa8] sm:$0xff] %vm1270_vm5, %v1217_v51  ;;  %1810 = vrot.lane.b32.xlu1 %v1718_v9, %s2937_s20 }
 0x210   : > { %1812 = vrot.lane.b32.xlu0 %v1719_v11, %s2937_s20 }
 0x211   : > { %v1984_v58 = vpop.permute.xlu1 %1983 }
 0x212   : > { %2062 = vst.msk [vmem:[#allocation3 + $0x90] sm:$0xff] %vm2043_vm9, %v1984_v58  ;;  %v1986_v26 = vpop.permute.xlu0 %1985 }
 0x213   : > { %2063 = vst.msk [vmem:[#allocation3 + $0x98] sm:$0xff] %vm2043_vm9, %v1986_v26  ;;  %1234 = vrot.lane.b32.xlu1 %v1718_v9, %s2934_s7 }
 0x214   : > { %1236 = vrot.lane.b32.xlu0 %v1719_v11, %s2934_s7  ;;  %s3952_s7 = scalar_lea.vmem %s4170_s4, %s2776_s21  ;;  %s2739_s21 = sshll.u32 %s4174_s19, 1 }
 0x215   : > { %v1408_v44 = vpop.permute.xlu1 %1407  ;;  %s235_s17 = scalar_lea.vmem %s4171_s5, %s2739_s21 }
 0x216   : > { %1484 = vst.msk [vmem:[#allocation3 + $0xa0] sm:$0xff] %vm1463_vm6, %v1408_v44  ;;  %v1602_v19 = vpop.permute.xlu0 %1601 }
 0x217   : > { %1678 = vst.msk [vmem:[#allocation3 + $0xa0] sm:$0xff] %vm1657_vm7, %v1602_v19  ;;  %2003 = vrot.lane.b32.xlu1 %v1911_v24, %s2938_s9 }
 0x218   : > { %2005 = vrot.lane.b32.xlu0 %v1912_v38, %s2938_s9 }
 0x219   : > { %v1410_v33 = vpop.permute.xlu1 %1409  ;;  %v2094_v55 = vld [vmem:[#allocation3 + $0x90] sm:$0xff] }
 0x21a   : > { %1485 = vst.msk [vmem:[#allocation3 + $0xa8] sm:$0xff] %vm1463_vm6, %v1410_v33  ;;  %v1604_v60 = vpop.permute.xlu0 %1603  ;;  %2864 = vmatprep.mubr.msk.f32.mxu1 %vm2117_vm10, %v2094_v55  ;;  %v2095_v61 = vld [vmem:[#allocation3 + $0x98] sm:$0xff] }
 0x21b   : > { %1679 = vst.msk [vmem:[#allocation3 + $0xa8] sm:$0xff] %vm1657_vm7, %v1604_v60  ;;  %1427 = vrot.lane.b32.xlu1 %v1911_v24, %s2935_s8  ;;  %2865 = vmatmul.mubr.msk.f32.gmra.mxu1 %vm2117_vm10, %v2095_v61 }
 0x21c   : > { %1621 = vrot.lane.b32.xlu0 %v1527_v59, %s2936_s13 }
 0x21d   : > { %v1026_v62 = vpop.permute.xlu1 %1025 }
 0x21e   : > { %1100 = vst.msk [vmem:[#allocation3 + $0xb0] sm:$0xff] %vm1077_vm4, %v1026_v62  ;;  %v1028_v54 = vpop.permute.xlu0 %1027 }
 0x21f   : > { %1101 = vst.msk [vmem:[#allocation3 + $0xb8] sm:$0xff] %vm1077_vm4, %v1028_v54  ;;  %1429 = vrot.lane.b32.xlu1 %v1912_v38, %s2935_s8 }
 0x220   : > { %1814 = vrot.lane.b32.xlu0 %v1720_v63, %s2937_s20 }
 0x221   : > { %v1795_v41 = vpop.permute.xlu1 %1794 }
 0x222   : > { %1871 = vst.msk [vmem:[#allocation3 + $0xa0] sm:$0xff] %vm1850_vm8, %v1795_v41  ;;  %v1797_v46 = vpop.permute.xlu0 %1796 }
 0x223   : > { %1872 = vst.msk [vmem:[#allocation3 + $0xa8] sm:$0xff] %vm1850_vm8, %v1797_v46  ;;  %1623 = vrot.lane.b32.xlu1 %v1528_v28, %s2936_s13 }
 0x224   : > { %v2839_v12 = vpop.f32.mrf.mxu0  ;;  %2007 = vrot.lane.b32.xlu0 %v1913_v32, %s2938_s9 }
 0x225   : > { %v1219_v21 = vpop.permute.xlu1 %1218  ;;  %2440 = vst.msk [vmem:[%s3952_s7 + $0x8] sm:$0xff] %vm236_vm0, %v2839_v12  ;;  %v2472_v0 = vsel %vm236_vm0, %v2839_v12, 0.0  ;;  %v2543_v17 = vmul.f32 %v2839_v12, %v2839_v12 }
 0x226   : > { %1293 = vst.msk [vmem:[#allocation3 + $0xb0] sm:$0xff] %vm1270_vm5, %v1219_v21  ;;  %v1221_v48 = vpop.permute.xlu0 %1220  ;;  %v2280_v30 = vpop.f32.mrf.mxu0 }
 0x227   : > { %1294 = vst.msk [vmem:[#allocation3 + $0xb8] sm:$0xff] %vm1270_vm5, %v1221_v48  ;;  %v2575_v8 = vsel %vm236_vm0, %v2543_v17, 0.0  ;;  %1816 = vrot.lane.b32.xlu1 %v1721_v35, %s2937_s20  ;;  %v2471_v18 = vsel %vm236_vm0, %v2280_v30, 0.0  ;;  %v2542_v34 = vmul.f32 %v2280_v30, %v2280_v30 }
 0x228   : > { %2439 = vst.msk [vmem:[%s3952_s7] sm:$0xff] %vm236_vm0, %v2280_v30  ;;  %v2473_v45 = vadd.f32 %v2472_v0, %v2471_v18 }
 0x229   : > { %v2574_v43 = vsel %vm236_vm0, %v2542_v34, 0.0  ;;  %v1988_v50 = vpop.permute.xlu1 %1987 }
 0x22a   : > { %v2576_v3 = vadd.f32 %v2575_v8, %v2574_v43  ;;  %2064 = vst.msk [vmem:[#allocation3 + $0xa0] sm:$0xff] %vm2043_vm9, %v1988_v50  ;;  %v1990_v37 = vpop.permute.xlu0 %1989 }
 0x22b   : > { %2065 = vst.msk [vmem:[#allocation3 + $0xa8] sm:$0xff] %vm2043_vm9, %v1990_v37  ;;  %2009 = vrot.lane.b32.xlu1 %v1914_v40, %s2938_s9 }
 0x22d   : > { %v1412_v15 = vpop.permute.xlu1 %1411 }
 0x22e   : > { %1486 = vst.msk [vmem:[#allocation3 + $0xb0] sm:$0xff] %vm1463_vm6, %v1412_v15  ;;  %v1606_v16 = vpop.permute.xlu0 %1605 }
 0x22f   : > { %1680 = vst.msk [vmem:[#allocation3 + $0xb0] sm:$0xff] %vm1657_vm7, %v1606_v16 }
 0x231   : > { %v1414_v4 = vpop.permute.xlu1 %1413  ;;  %v2096_v56 = vld [vmem:[#allocation3 + $0xa0] sm:$0xff] }
 0x232   : > { %1487 = vst.msk [vmem:[#allocation3 + $0xb8] sm:$0xff] %vm1463_vm6, %v1414_v4  ;;  %v1608_v49 = vpop.permute.xlu0 %1607  ;;  %2867 = vmatprep.mubr.msk.f32.mxu1 %vm2117_vm10, %v2096_v56  ;;  %v2097_v57 = vld [vmem:[#allocation3 + $0xa8] sm:$0xff] }
 0x233   : > { %1681 = vst.msk [vmem:[#allocation3 + $0xb8] sm:$0xff] %vm1657_vm7, %v1608_v49  ;;  %2868 = vmatmul.mubr.msk.f32.gmra.mxu1 %vm2117_vm10, %v2097_v57 }
 0x235   : > { %v1030_v23 = vpop.permute.xlu1 %1029 }
 0x236   : > { %1102 = vst.msk [vmem:[#allocation3 + $0xc0] sm:$0xff] %vm1077_vm4, %v1030_v23  ;;  %v1032_v25 = vpop.permute.xlu0 %1031 }
 0x237   : > { %1103 = vst.msk [vmem:[#allocation3 + $0xc8] sm:$0xff] %vm1077_vm4, %v1032_v25  ;;  %v2842_v42 = vpop.f32.mrf.mxu0 }
 0x238   : > { %2442 = vst.msk [vmem:[%s3952_s7 + $0x18] sm:$0xff] %vm236_vm0, %v2842_v42  ;;  %v2545_v10 = vmul.f32 %v2842_v42, %v2842_v42  ;;  %v2476_v36 = vsel %vm236_vm0, %v2842_v42, 0.0 }
 0x239   : > { %v1799_v2 = vpop.permute.xlu1 %1798  ;;  %v2290_v5 = vpop.f32.mrf.mxu0 }
 0x23a   : > { %1873 = vst.msk [vmem:[#allocation3 + $0xb0] sm:$0xff] %vm1850_vm8, %v1799_v2  ;;  %v2474_v53 = vsel %vm236_vm0, %v2290_v5, 0.0  ;;  %v2544_v29 = vmul.f32 %v2290_v5, %v2290_v5  ;;  %v1801_v52 = vpop.permute.xlu0 %1800  ;;  %v2579_v6 = vsel %vm236_vm0, %v2545_v10, 0.0 }
 0x23b   : > { %2441 = vst.msk [vmem:[%s3952_s7 + $0x10] sm:$0xff] %vm236_vm0, %v2290_v5  ;;  %v2475_v47 = vadd.f32 %v2474_v53, %v2473_v45 }
 0x23c   : > { %1874 = vst.msk [vmem:[#allocation3 + $0xb8] sm:$0xff] %vm1850_vm8, %v1801_v52  ;;  %v2577_v20 = vsel %vm236_vm0, %v2544_v29, 0.0 }
 0x23d   : > { %v2578_v39 = vadd.f32 %v2577_v20, %v2576_v3  ;;  %v1223_v22 = vpop.permute.xlu1 %1222  ;;  %v2477_v31 = vadd.f32 %v2476_v36, %v2475_v47 }
 0x23e   : > { %1295 = vst.msk [vmem:[#allocation3 + $0xc0] sm:$0xff] %vm1270_vm5, %v1223_v22  ;;  %v1225_v7 = vpop.permute.xlu0 %1224 }
 0x23f   : > { %1296 = vst.msk [vmem:[#allocation3 + $0xc8] sm:$0xff] %vm1270_vm5, %v1225_v7  ;;  %v2580_v27 = vadd.f32 %v2579_v6, %v2578_v39 }
 0x241   : > { %v1992_v13 = vpop.permute.xlu1 %1991 }
 0x242   : > { %2066 = vst.msk [vmem:[#allocation3 + $0xb0] sm:$0xff] %vm2043_vm9, %v1992_v13  ;;  %v1994_v1 = vpop.permute.xlu0 %1993 }
 0x243   : > { %2067 = vst.msk [vmem:[#allocation3 + $0xb8] sm:$0xff] %vm2043_vm9, %v1994_v1 }
 0x245   : > { %v1416_v9 = vpop.permute.xlu1 %1415 }
 0x246   : > { %1488 = vst.msk [vmem:[#allocation3 + $0xc0] sm:$0xff] %vm1463_vm6, %v1416_v9  ;;  %v1610_v14 = vpop.permute.xlu0 %1609 }
 0x247   : > { %1682 = vst.msk [vmem:[#allocation3 + $0xc0] sm:$0xff] %vm1657_vm7, %v1610_v14 }
 0x249   : > { %v1418_v11 = vpop.permute.xlu1 %1417  ;;  %v2098_v51 = vld [vmem:[#allocation3 + $0xb0] sm:$0xff] }
 0x24a   : > { %1489 = vst.msk [vmem:[#allocation3 + $0xc8] sm:$0xff] %vm1463_vm6, %v1418_v11  ;;  %v1612_v58 = vpop.permute.xlu0 %1611  ;;  %2870 = vmatprep.mubr.msk.f32.mxu1 %vm2117_vm10, %v2098_v51  ;;  %v2099_v26 = vld [vmem:[#allocation3 + $0xb8] sm:$0xff] }
 0x24b   : > { %1683 = vst.msk [vmem:[#allocation3 + $0xc8] sm:$0xff] %vm1657_vm7, %v1612_v58  ;;  %v2845_v24 = vpop.f32.mrf.mxu0  ;;  %2871 = vmatmul.mubr.msk.f32.gmra.mxu1 %vm2117_vm10, %v2099_v26 }
 0x24c   : > { %2444 = vst.msk [vmem:[%s3952_s7 + $0x28] sm:$0xff] %vm236_vm0, %v2845_v24  ;;  %v2547_v44 = vmul.f32 %v2845_v24, %v2845_v24  ;;  %v2480_v33 = vsel %vm236_vm0, %v2845_v24, 0.0 }
 0x24d   : > { %v1034_v38 = vpop.permute.xlu1 %1033  ;;  %v2300_v19 = vpop.f32.mrf.mxu0 }
 0x24e   : > { %1104 = vst.msk [vmem:[#allocation3 + $0xd0] sm:$0xff] %vm1077_vm4, %v1034_v38  ;;  %v2478_v55 = vsel %vm236_vm0, %v2300_v19, 0.0  ;;  %v2546_v59 = vmul.f32 %v2300_v19, %v2300_v19  ;;  %v1036_v60 = vpop.permute.xlu0 %1035  ;;  %v2583_v62 = vsel %vm236_vm0, %v2547_v44, 0.0 }
 0x24f   : > { %2443 = vst.msk [vmem:[%s3952_s7 + $0x20] sm:$0xff] %vm236_vm0, %v2300_v19  ;;  %v2479_v61 = vadd.f32 %v2478_v55, %v2477_v31 }
 0x250   : > { %1105 = vst.msk [vmem:[#allocation3 + $0xd8] sm:$0xff] %vm1077_vm4, %v1036_v60  ;;  %v2581_v63 = vsel %vm236_vm0, %v2546_v59, 0.0 }
 0x251   : > { %v2582_v54 = vadd.f32 %v2581_v63, %v2580_v27  ;;  %v1803_v28 = vpop.permute.xlu1 %1802  ;;  %v2481_v41 = vadd.f32 %v2480_v33, %v2479_v61 }
 0x252   : > { %1875 = vst.msk [vmem:[#allocation3 + $0xc0] sm:$0xff] %vm1850_vm8, %v1803_v28  ;;  %v1805_v32 = vpop.permute.xlu0 %1804 }
 0x253   : > { %1876 = vst.msk [vmem:[#allocation3 + $0xc8] sm:$0xff] %vm1850_vm8, %v1805_v32  ;;  %v2584_v46 = vadd.f32 %v2583_v62, %v2582_v54 }
 0x255   : > { %v1227_v12 = vpop.permute.xlu1 %1226 }
 0x256   : > { %1297 = vst.msk [vmem:[#allocation3 + $0xd0] sm:$0xff] %vm1270_vm5, %v1227_v12  ;;  %v1229_v35 = vpop.permute.xlu0 %1228 }
 0x257   : > { %1298 = vst.msk [vmem:[#allocation3 + $0xd8] sm:$0xff] %vm1270_vm5, %v1229_v35 }
 0x259   : > { %v1996_v21 = vpop.permute.xlu1 %1995 }
 0x25a   : > { %2068 = vst.msk [vmem:[#allocation3 + $0xc0] sm:$0xff] %vm2043_vm9, %v1996_v21  ;;  %v1998_v0 = vpop.permute.xlu0 %1997 }
 0x25b   : > { %2069 = vst.msk [vmem:[#allocation3 + $0xc8] sm:$0xff] %vm2043_vm9, %v1998_v0 }
 0x25d   : > { %v1420_v17 = vpop.permute.xlu1 %1419 }
 0x25e   : > { %1490 = vst.msk [vmem:[#allocation3 + $0xd0] sm:$0xff] %vm1463_vm6, %v1420_v17  ;;  %v1614_v48 = vpop.permute.xlu0 %1613 }
 0x25f   : > { %1684 = vst.msk [vmem:[#allocation3 + $0xd0] sm:$0xff] %vm1657_vm7, %v1614_v48  ;;  %v2848_v30 = vpop.f32.mrf.mxu0 }
 0x260   : > { %2446 = vst.msk [vmem:[%s3952_s7 + $0x38] sm:$0xff] %vm236_vm0, %v2848_v30  ;;  %v2549_v8 = vmul.f32 %v2848_v30, %v2848_v30  ;;  %v2484_v40 = vsel %vm236_vm0, %v2848_v30, 0.0 }
 0x261   : > { %v1422_v18 = vpop.permute.xlu1 %1421  ;;  %v2310_v34 = vpop.f32.mrf.mxu0  ;;  %v2100_v45 = vld [vmem:[#allocation3 + $0xc0] sm:$0xff] }
 0x262   : > { %1491 = vst.msk [vmem:[#allocation3 + $0xd8] sm:$0xff] %vm1463_vm6, %v1422_v18  ;;  %v2482_v43 = vsel %vm236_vm0, %v2310_v34, 0.0  ;;  %v2548_v50 = vmul.f32 %v2310_v34, %v2310_v34  ;;  %v1616_v3 = vpop.permute.xlu0 %1615  ;;  %2873 = vmatprep.mubr.msk.f32.mxu1 %vm2117_vm10, %v2100_v45  ;;  %v2101_v37 = vld [vmem:[#allocation3 + $0xc8] sm:$0xff]  ;;  %v2587_v16 = vsel %vm236_vm0, %v2549_v8, 0.0 }
 0x263   : > { %2445 = vst.msk [vmem:[%s3952_s7 + $0x30] sm:$0xff] %vm236_vm0, %v2310_v34  ;;  %v2483_v15 = vadd.f32 %v2482_v43, %v2481_v41  ;;  %2874 = vmatmul.mubr.msk.f32.gmra.mxu1 %vm2117_vm10, %v2101_v37 }
 0x264   : > { %1685 = vst.msk [vmem:[#allocation3 + $0xd8] sm:$0xff] %vm1657_vm7, %v1616_v3  ;;  %v2585_v4 = vsel %vm236_vm0, %v2548_v50, 0.0 }
 0x265   : > { %v2586_v56 = vadd.f32 %v2585_v4, %v2584_v46  ;;  %v1038_v49 = vpop.permute.xlu1 %1037  ;;  %v2485_v57 = vadd.f32 %v2484_v40, %v2483_v15 }
 0x266   : > { %1106 = vst.msk [vmem:[#allocation3 + $0xe0] sm:$0xff] %vm1077_vm4, %v1038_v49  ;;  %v1040_v23 = vpop.permute.xlu0 %1039 }
 0x267   : > { %1107 = vst.msk [vmem:[#allocation3 + $0xe8] sm:$0xff] %vm1077_vm4, %v1040_v23  ;;  %v2588_v25 = vadd.f32 %v2587_v16, %v2586_v56 }
 0x269   : > { %v1807_v42 = vpop.permute.xlu1 %1806 }
 0x26a   : > { %1877 = vst.msk [vmem:[#allocation3 + $0xd0] sm:$0xff] %vm1850_vm8, %v1807_v42  ;;  %v1809_v10 = vpop.permute.xlu0 %1808 }
 0x26b   : > { %1878 = vst.msk [vmem:[#allocation3 + $0xd8] sm:$0xff] %vm1850_vm8, %v1809_v10 }
 0x26d   : > { %v1231_v2 = vpop.permute.xlu1 %1230 }
 0x26e   : > { %1299 = vst.msk [vmem:[#allocation3 + $0xe0] sm:$0xff] %vm1270_vm5, %v1231_v2  ;;  %v1233_v5 = vpop.permute.xlu0 %1232 }
 0x26f   : > { %1300 = vst.msk [vmem:[#allocation3 + $0xe8] sm:$0xff] %vm1270_vm5, %v1233_v5 }
 0x271   : > { %v2000_v36 = vpop.permute.xlu1 %1999 }
 0x272   : > { %2070 = vst.msk [vmem:[#allocation3 + $0xd0] sm:$0xff] %vm2043_vm9, %v2000_v36  ;;  %v2002_v53 = vpop.permute.xlu0 %2001 }
 0x273   : > { %2071 = vst.msk [vmem:[#allocation3 + $0xd8] sm:$0xff] %vm2043_vm9, %v2002_v53  ;;  %v2851_v29 = vpop.f32.mrf.mxu0 }
 0x274   : > { %2448 = vst.msk [vmem:[%s3952_s7 + $0x48] sm:$0xff] %vm236_vm0, %v2851_v29  ;;  %v2551_v52 = vmul.f32 %v2851_v29, %v2851_v29  ;;  %v2488_v20 = vsel %vm236_vm0, %v2851_v29, 0.0 }
 0x275   : > { %v1424_v47 = vpop.permute.xlu1 %1423  ;;  %v2320_v6 = vpop.f32.mrf.mxu0 }
 0x276   : > { %1492 = vst.msk [vmem:[#allocation3 + $0xe0] sm:$0xff] %vm1463_vm6, %v1424_v47  ;;  %v2486_v39 = vsel %vm236_vm0, %v2320_v6, 0.0  ;;  %v2550_v22 = vmul.f32 %v2320_v6, %v2320_v6  ;;  %v1618_v31 = vpop.permute.xlu0 %1617  ;;  %v2591_v27 = vsel %vm236_vm0, %v2551_v52, 0.0 }
 0x277   : > { %2447 = vst.msk [vmem:[%s3952_s7 + $0x40] sm:$0xff] %vm236_vm0, %v2320_v6  ;;  %v2487_v7 = vadd.f32 %v2486_v39, %v2485_v57 }
 0x278   : > { %1686 = vst.msk [vmem:[#allocation3 + $0xe0] sm:$0xff] %vm1657_vm7, %v1618_v31  ;;  %v2589_v13 = vsel %vm236_vm0, %v2550_v22, 0.0 }
 0x279   : > { %v2590_v1 = vadd.f32 %v2589_v13, %v2588_v25  ;;  %v1426_v9 = vpop.permute.xlu1 %1425  ;;  %v2102_v14 = vld [vmem:[#allocation3 + $0xd0] sm:$0xff]  ;;  %v2489_v11 = vadd.f32 %v2488_v20, %v2487_v7 }
 0x27a   : > { %1493 = vst.msk [vmem:[#allocation3 + $0xe8] sm:$0xff] %vm1463_vm6, %v1426_v9  ;;  %v1620_v51 = vpop.permute.xlu0 %1619  ;;  %2876 = vmatprep.mubr.msk.f32.mxu1 %vm2117_vm10, %v2102_v14  ;;  %v2103_v58 = vld [vmem:[#allocation3 + $0xd8] sm:$0xff] }
 0x27b   : > { %1687 = vst.msk [vmem:[#allocation3 + $0xe8] sm:$0xff] %vm1657_vm7, %v1620_v51  ;;  %2877 = vmatmul.mubr.msk.f32.gmra.mxu1 %vm2117_vm10, %v2103_v58  ;;  %v2592_v26 = vadd.f32 %v2591_v27, %v2590_v1 }
 0x27d   : > { %v1042_v24 = vpop.permute.xlu1 %1041 }
 0x27e   : > { %1108 = vst.msk [vmem:[#allocation3 + $0xf0] sm:$0xff] %vm1077_vm4, %v1042_v24  ;;  %v1044_v44 = vpop.permute.xlu0 %1043 }
 0x27f   : > { %1109 = vst.msk [vmem:[#allocation3 + $0xf8] sm:$0xff] %vm1077_vm4, %v1044_v44 }
 0x281   : > { %v1811_v38 = vpop.permute.xlu1 %1810 }
 0x282   : > { %1879 = vst.msk [vmem:[#allocation3 + $0xe0] sm:$0xff] %vm1850_vm8, %v1811_v38  ;;  %v1813_v19 = vpop.permute.xlu0 %1812 }
 0x283   : > { %1880 = vst.msk [vmem:[#allocation3 + $0xe8] sm:$0xff] %vm1850_vm8, %v1813_v19 }
 0x285   : > { %v1235_v33 = vpop.permute.xlu1 %1234 }
 0x286   : > { %1301 = vst.msk [vmem:[#allocation3 + $0xf0] sm:$0xff] %vm1270_vm5, %v1235_v33  ;;  %v1237_v55 = vpop.permute.xlu0 %1236 }
 0x287   : > { %1302 = vst.msk [vmem:[#allocation3 + $0xf8] sm:$0xff] %vm1270_vm5, %v1237_v55  ;;  %v2854_v59 = vpop.f32.mrf.mxu0 }
 0x288   : > { %2450 = vst.msk [vmem:[%s3952_s7 + $0x58] sm:$0xff] %vm236_vm0, %v2854_v59  ;;  %v2553_v60 = vmul.f32 %v2854_v59, %v2854_v59  ;;  %v2492_v63 = vsel %vm236_vm0, %v2854_v59, 0.0 }
 0x289   : > { %v2004_v61 = vpop.permute.xlu1 %2003  ;;  %v2330_v62 = vpop.f32.mrf.mxu0 }
 0x28a   : > { %2072 = vst.msk [vmem:[#allocation3 + $0xe0] sm:$0xff] %vm2043_vm9, %v2004_v61  ;;  %v2490_v54 = vsel %vm236_vm0, %v2330_v62, 0.0  ;;  %v2552_v28 = vmul.f32 %v2330_v62, %v2330_v62  ;;  %v2006_v41 = vpop.permute.xlu0 %2005  ;;  %v2595_v46 = vsel %vm236_vm0, %v2553_v60, 0.0 }
 0x28b   : > { %2449 = vst.msk [vmem:[%s3952_s7 + $0x50] sm:$0xff] %vm236_vm0, %v2330_v62  ;;  %v2491_v32 = vadd.f32 %v2490_v54, %v2489_v11 }
 0x28c   : > { %2073 = vst.msk [vmem:[#allocation3 + $0xe8] sm:$0xff] %vm2043_vm9, %v2006_v41  ;;  %v2593_v12 = vsel %vm236_vm0, %v2552_v28, 0.0 }
 0x28d   : > { %v2594_v35 = vadd.f32 %v2593_v12, %v2592_v26  ;;  %v1428_v21 = vpop.permute.xlu1 %1427  ;;  %v2493_v0 = vadd.f32 %v2492_v63, %v2491_v32 }
 0x28e   : > { %1494 = vst.msk [vmem:[#allocation3 + $0xf0] sm:$0xff] %vm1463_vm6, %v1428_v21  ;;  %v1622_v17 = vpop.permute.xlu0 %1621 }
 0x28f   : > { %1688 = vst.msk [vmem:[#allocation3 + $0xf0] sm:$0xff] %vm1657_vm7, %v1622_v17  ;;  %v2596_v48 = vadd.f32 %v2595_v46, %v2594_v35 }
 0x291   : > { %v1430_v30 = vpop.permute.xlu1 %1429  ;;  %v2104_v8 = vld [vmem:[#allocation3 + $0xe0] sm:$0xff] }
 0x292   : > { %1495 = vst.msk [vmem:[#allocation3 + $0xf8] sm:$0xff] %vm1463_vm6, %v1430_v30  ;;  %2879 = vmatprep.mubr.msk.f32.mxu1 %vm2117_vm10, %v2104_v8  ;;  %v1815_v34 = vpop.permute.xlu0 %1814 }
 0x293   : > { %v2105_v18 = vld [vmem:[#allocation3 + $0xe8] sm:$0xff]  ;;  %1881 = vst.msk [vmem:[#allocation3 + $0xf0] sm:$0xff] %vm1850_vm8, %v1815_v34 }
 0x294   : > { %2880 = vmatmul.mubr.msk.f32.gmra.mxu1 %vm2117_vm10, %v2105_v18 }
 0x295   : > { %v1624_v45 = vpop.permute.xlu1 %1623 }
 0x296   : > { %1689 = vst.msk [vmem:[#allocation3 + $0xf8] sm:$0xff] %vm1657_vm7, %v1624_v45  ;;  %v2008_v40 = vpop.permute.xlu0 %2007 }
 0x297   : > { %2074 = vst.msk [vmem:[#allocation3 + $0xf0] sm:$0xff] %vm2043_vm9, %v2008_v40 }
 0x299   : > { %v1817_v43 = vpop.permute.xlu1 %1816 }
 0x29a   : > { %1882 = vst.msk [vmem:[#allocation3 + $0xf8] sm:$0xff] %vm1850_vm8, %v1817_v43 }
 0x29b   : > { %v2857_v50 = vpop.f32.mrf.mxu0 }
 0x29c   : > { %2452 = vst.msk [vmem:[%s3952_s7 + $0x68] sm:$0xff] %vm236_vm0, %v2857_v50  ;;  %v2555_v3 = vmul.f32 %v2857_v50, %v2857_v50  ;;  %v2496_v16 = vsel %vm236_vm0, %v2857_v50, 0.0 }
 0x29d   : > { %v2010_v37 = vpop.permute.xlu1 %2009  ;;  %v2340_v15 = vpop.f32.mrf.mxu0 }
 0x29e   : > { %2075 = vst.msk [vmem:[#allocation3 + $0xf8] sm:$0xff] %vm2043_vm9, %v2010_v37  ;;  %v2494_v4 = vsel %vm236_vm0, %v2340_v15, 0.0  ;;  %v2554_v56 = vmul.f32 %v2340_v15, %v2340_v15  ;;  %v2106_v49 = vld [vmem:[#allocation3 + $0xf0] sm:$0xff]  ;;  %v2599_v23 = vsel %vm236_vm0, %v2555_v3, 0.0 }
 0x29f   : > { %2451 = vst.msk [vmem:[%s3952_s7 + $0x60] sm:$0xff] %vm236_vm0, %v2340_v15  ;;  %v2495_v57 = vadd.f32 %v2494_v4, %v2493_v0  ;;  %2882 = vmatprep.mubr.msk.f32.mxu1 %vm2117_vm10, %v2106_v49 }
 0x2a0   : > { %v2597_v25 = vsel %vm236_vm0, %v2554_v56, 0.0 }
 0x2a1   : > { %v2598_v42 = vadd.f32 %v2597_v25, %v2596_v48  ;;  %v2497_v10 = vadd.f32 %v2496_v16, %v2495_v57 }
 0x2a3   : > { %v2600_v2 = vadd.f32 %v2599_v23, %v2598_v42 }
 0x2a5   : > { %v2107_v5 = vld [vmem:[#allocation3 + $0xf8] sm:$0xff] }
 0x2a6   : > { %2883 = vmatmul.mubr.msk.f32.gmra.mxu1 %vm2117_vm10, %v2107_v5 }
 0x2af   : > { %v2860_v36 = vpop.f32.mrf.mxu0 }
 0x2b0   : > { %2454 = vst.msk [vmem:[%s3952_s7 + $0x78] sm:$0xff] %vm236_vm0, %v2860_v36  ;;  %v2557_v53 = vmul.f32 %v2860_v36, %v2860_v36  ;;  %v2500_v52 = vsel %vm236_vm0, %v2860_v36, 0.0 }
 0x2b1   : > { %v2350_v29 = vpop.f32.mrf.mxu0 }
 0x2b2   : > { %2453 = vst.msk [vmem:[%s3952_s7 + $0x70] sm:$0xff] %vm236_vm0, %v2350_v29  ;;  %v2498_v47 = vsel %vm236_vm0, %v2350_v29, 0.0  ;;  %v2556_v6 = vmul.f32 %v2350_v29, %v2350_v29  ;;  %v2603_v39 = vsel %vm236_vm0, %v2557_v53, 0.0 }
 0x2b3   : > { %v2499_v20 = vadd.f32 %v2498_v47, %v2497_v10 }
 0x2b4   : > { %v2601_v22 = vsel %vm236_vm0, %v2556_v6, 0.0 }
 0x2b5   : > { %v2501_v31 = vadd.f32 %v2500_v52, %v2499_v20  ;;  %v2602_v7 = vadd.f32 %v2601_v22, %v2600_v2 }
 0x2b7   : > { %v2604_v27 = vadd.f32 %v2603_v39, %v2602_v7 }
 0x2c3   : > { %v2863_v13 = vpop.f32.mrf.mxu1 }
 0x2c4   : > { %2456 = vst.msk [vmem:[%s3952_s7 + $0x88] sm:$0xff] %vm236_vm0, %v2863_v13  ;;  %v2559_v1 = vmul.f32 %v2863_v13, %v2863_v13  ;;  %v2504_v14 = vsel %vm236_vm0, %v2863_v13, 0.0 }
 0x2c5   : > { %v2360_v9 = vpop.f32.mrf.mxu1 }
 0x2c6   : > { %2455 = vst.msk [vmem:[%s3952_s7 + $0x80] sm:$0xff] %vm236_vm0, %v2360_v9  ;;  %v2502_v11 = vsel %vm236_vm0, %v2360_v9, 0.0  ;;  %v2558_v51 = vmul.f32 %v2360_v9, %v2360_v9  ;;  %v2607_v26 = vsel %vm236_vm0, %v2559_v1, 0.0 }
 0x2c7   : > { %v2503_v58 = vadd.f32 %v2502_v11, %v2501_v31 }
 0x2c8   : > { %v2605_v24 = vsel %vm236_vm0, %v2558_v51, 0.0 }
 0x2c9   : > { %v2606_v44 = vadd.f32 %v2605_v24, %v2604_v27  ;;  %v2505_v38 = vadd.f32 %v2504_v14, %v2503_v58 }
 0x2cb   : > { %v2608_v19 = vadd.f32 %v2607_v26, %v2606_v44 }
 0x2db   : > { %v2866_v33 = vpop.f32.mrf.mxu1 }
 0x2dc   : > { %2458 = vst.msk [vmem:[%s3952_s7 + $0x98] sm:$0xff] %vm236_vm0, %v2866_v33  ;;  %v2561_v55 = vmul.f32 %v2866_v33, %v2866_v33  ;;  %v2508_v60 = vsel %vm236_vm0, %v2866_v33, 0.0 }
 0x2dd   : > { %v2370_v59 = vpop.f32.mrf.mxu1 }
 0x2de   : > { %2457 = vst.msk [vmem:[%s3952_s7 + $0x90] sm:$0xff] %vm236_vm0, %v2370_v59  ;;  %v2506_v61 = vsel %vm236_vm0, %v2370_v59, 0.0  ;;  %v2560_v62 = vmul.f32 %v2370_v59, %v2370_v59  ;;  %v2611_v54 = vsel %vm236_vm0, %v2561_v55, 0.0 }
 0x2df   : > { %v2507_v63 = vadd.f32 %v2506_v61, %v2505_v38 }
 0x2e0   : > { %v2609_v28 = vsel %vm236_vm0, %v2560_v62, 0.0 }
 0x2e1   : > { %v2610_v41 = vadd.f32 %v2609_v28, %v2608_v19  ;;  %v2509_v32 = vadd.f32 %v2508_v60, %v2507_v63 }
 0x2e3   : > { %v2612_v46 = vadd.f32 %v2611_v54, %v2610_v41 }
 0x2f3   : > { %v2869_v12 = vpop.f32.mrf.mxu1 }
 0x2f4   : > { %2460 = vst.msk [vmem:[%s3952_s7 + $0xa8] sm:$0xff] %vm236_vm0, %v2869_v12  ;;  %v2563_v35 = vmul.f32 %v2869_v12, %v2869_v12  ;;  %v2512_v0 = vsel %vm236_vm0, %v2869_v12, 0.0 }
 0x2f5   : > { %v2380_v21 = vpop.f32.mrf.mxu1 }
 0x2f6   : > { %2459 = vst.msk [vmem:[%s3952_s7 + $0xa0] sm:$0xff] %vm236_vm0, %v2380_v21  ;;  %v2510_v17 = vsel %vm236_vm0, %v2380_v21, 0.0  ;;  %v2562_v48 = vmul.f32 %v2380_v21, %v2380_v21  ;;  %v2615_v8 = vsel %vm236_vm0, %v2563_v35, 0.0 }
 0x2f7   : > { %v2511_v30 = vadd.f32 %v2510_v17, %v2509_v32 }
 0x2f8   : > { %v2613_v18 = vsel %vm236_vm0, %v2562_v48, 0.0 }
 0x2f9   : > { %v2614_v34 = vadd.f32 %v2613_v18, %v2612_v46  ;;  %v2513_v45 = vadd.f32 %v2512_v0, %v2511_v30 }
 0x2fb   : > { %v2616_v40 = vadd.f32 %v2615_v8, %v2614_v34 }
 0x30b   : > { %v2872_v43 = vpop.f32.mrf.mxu1 }
 0x30c   : > { %2462 = vst.msk [vmem:[%s3952_s7 + $0xb8] sm:$0xff] %vm236_vm0, %v2872_v43  ;;  %v2565_v50 = vmul.f32 %v2872_v43, %v2872_v43  ;;  %v2516_v37 = vsel %vm236_vm0, %v2872_v43, 0.0 }
 0x30d   : > { %v2390_v3 = vpop.f32.mrf.mxu1 }
 0x30e   : > { %2461 = vst.msk [vmem:[%s3952_s7 + $0xb0] sm:$0xff] %vm236_vm0, %v2390_v3  ;;  %v2514_v15 = vsel %vm236_vm0, %v2390_v3, 0.0  ;;  %v2564_v16 = vmul.f32 %v2390_v3, %v2390_v3  ;;  %v2619_v56 = vsel %vm236_vm0, %v2565_v50, 0.0 }
 0x30f   : > { %v2515_v4 = vadd.f32 %v2514_v15, %v2513_v45 }
 0x310   : > { %v2617_v49 = vsel %vm236_vm0, %v2564_v16, 0.0 }
 0x311   : > { %v2618_v57 = vadd.f32 %v2617_v49, %v2616_v40  ;;  %v2517_v23 = vadd.f32 %v2516_v37, %v2515_v4 }
 0x313   : > { %v2620_v25 = vadd.f32 %v2619_v56, %v2618_v57 }
 0x323   : > { %v2875_v42 = vpop.f32.mrf.mxu1 }
 0x324   : > { %2464 = vst.msk [vmem:[%s3952_s7 + $0xc8] sm:$0xff] %vm236_vm0, %v2875_v42  ;;  %v2567_v47 = vmul.f32 %v2875_v42, %v2875_v42  ;;  %v2520_v39 = vsel %vm236_vm0, %v2875_v42, 0.0 }
 0x325   : > { %v2400_v10 = vpop.f32.mrf.mxu1 }
 0x326   : > { %2463 = vst.msk [vmem:[%s3952_s7 + $0xc0] sm:$0xff] %vm236_vm0, %v2400_v10  ;;  %v2566_v36 = vmul.f32 %v2400_v10, %v2400_v10  ;;  %v2518_v29 = vsel %vm236_vm0, %v2400_v10, 0.0  ;;  %v2623_v7 = vsel %vm236_vm0, %v2567_v47, 0.0 }
 0x327   : > { %v2519_v20 = vadd.f32 %v2518_v29, %v2517_v23 }
 0x328   : > { %v2621_v6 = vsel %vm236_vm0, %v2566_v36, 0.0 }
 0x329   : > { %v2622_v31 = vadd.f32 %v2621_v6, %v2620_v25  ;;  %v2521_v13 = vadd.f32 %v2520_v39, %v2519_v20 }
 0x32b   : > { %v2624_v11 = vadd.f32 %v2623_v7, %v2622_v31 }
 0x33b   : > { %v2878_v2 = vpop.f32.mrf.mxu1 }
 0x33c   : > { %2466 = vst.msk [vmem:[%s3952_s7 + $0xd8] sm:$0xff] %vm236_vm0, %v2878_v2  ;;  %v2569_v1 = vmul.f32 %v2878_v2, %v2878_v2  ;;  %v2524_v51 = vsel %vm236_vm0, %v2878_v2, 0.0 }
 0x33d   : > { %v2410_v5 = vpop.f32.mrf.mxu1 }
 0x33e   : > { %2465 = vst.msk [vmem:[%s3952_s7 + $0xd0] sm:$0xff] %vm236_vm0, %v2410_v5  ;;  %v2568_v22 = vmul.f32 %v2410_v5, %v2410_v5  ;;  %v2522_v27 = vsel %vm236_vm0, %v2410_v5, 0.0  ;;  %v2627_v24 = vsel %vm236_vm0, %v2569_v1, 0.0 }
 0x33f   : > { %v2523_v14 = vadd.f32 %v2522_v27, %v2521_v13 }
 0x340   : > { %v2625_v9 = vsel %vm236_vm0, %v2568_v22, 0.0 }
 0x341   : > { %v2626_v26 = vadd.f32 %v2625_v9, %v2624_v11  ;;  %v2525_v38 = vadd.f32 %v2524_v51, %v2523_v14 }
 0x343   : > { %v2628_v59 = vadd.f32 %v2627_v24, %v2626_v26 }
 0x354   : > { %v2881_v53 = vpop.f32.mrf.mxu1 }
 0x355   : > { %2468 = vst.msk [vmem:[%s3952_s7 + $0xe8] sm:$0xff] %vm236_vm0, %v2881_v53  ;;  %v2571_v19 = vmul.f32 %v2881_v53, %v2881_v53  ;;  %v2528_v60 = vsel %vm236_vm0, %v2881_v53, 0.0 }
 0x356   : > { %v2420_v52 = vpop.f32.mrf.mxu1 }
 0x357   : > { %2467 = vst.msk [vmem:[%s3952_s7 + $0xe0] sm:$0xff] %vm236_vm0, %v2420_v52  ;;  %v2570_v58 = vmul.f32 %v2420_v52, %v2420_v52  ;;  %v2526_v44 = vsel %vm236_vm0, %v2420_v52, 0.0  ;;  %v2631_v63 = vsel %vm236_vm0, %v2571_v19, 0.0 }
 0x358   : > { %v2527_v55 = vadd.f32 %v2526_v44, %v2525_v38 }
 0x359   : > { %v2629_v33 = vsel %vm236_vm0, %v2570_v58, 0.0 }
 0x35a   : > { %v2630_v61 = vadd.f32 %v2629_v33, %v2628_v59  ;;  %v2529_v28 = vadd.f32 %v2528_v60, %v2527_v55 }
 0x35c   : > { %v2632_v35 = vadd.f32 %v2631_v63, %v2630_v61 }
 0x366   : > { %v2884_v62 = vpop.f32.mrf.mxu1 }
 0x367   : > { %2470 = vst.msk [vmem:[%s3952_s7 + $0xf8] sm:$0xff] %vm236_vm0, %v2884_v62  ;;  %v2573_v41 = vmul.f32 %v2884_v62, %v2884_v62  ;;  %v2532_v21 = vsel %vm236_vm0, %v2884_v62, 0.0 }
 0x368   : > { %v2430_v54 = vpop.f32.mrf.mxu1 }
 0x369   : > { %2469 = vst.msk [vmem:[%s3952_s7 + $0xf0] sm:$0xff] %vm236_vm0, %v2430_v54  ;;  %v2530_v32 = vsel %vm236_vm0, %v2430_v54, 0.0  ;;  %v2572_v46 = vmul.f32 %v2430_v54, %v2430_v54  ;;  %v2635_v30 = vsel %vm236_vm0, %v2573_v41, 0.0 }
 0x36a   : > { %v2531_v12 = vadd.f32 %v2530_v32, %v2529_v28 }
 0x36b   : > { %v2633_v0 = vsel %vm236_vm0, %v2572_v46, 0.0 }
 0x36c   : > { %v2533_v17 = vadd.f32 %v2532_v21, %v2531_v12  ;;  %v2634_v48 = vadd.f32 %v2633_v0, %v2632_v35 }
 0x36e   : > { %v2534_v8 = vrot.slane %v2533_v17, 4  ;;  %v2636_v18 = vadd.f32 %v2635_v30, %v2634_v48 }
 0x370   : > { %v2535_v34 = vadd.f32 %v2534_v8, %v2533_v17  ;;  %v2637_v45 = vrot.slane %v2636_v18, 4 }
 0x372   : > { %v2536_v40 = vrot.slane %v2535_v34, 2  ;;  %v2638_v43 = vadd.f32 %v2637_v45, %v2636_v18 }
 0x374   : > { %v2537_v50 = vadd.f32 %v2536_v40, %v2535_v34  ;;  %v2639_v3 = vrot.slane %v2638_v43, 2 }
 0x376   : > { %v2538_v37 = vrot.slane %v2537_v50, 1  ;;  %v2640_v15 = vadd.f32 %v2639_v3, %v2638_v43 }
 0x378   : > { %v2539_v16 = vadd.f32 %v2538_v37, %v2537_v50  ;;  %v2641_v4 = vrot.slane %v2640_v15, 1 }
 0x37a   : > { %2541 = vst.msk [vmem:[%s235_s17] sm:$0x1] %vm2540_vm11, %v2539_v16  ;;  %v2642_v56 = vadd.f32 %v2641_v4, %v2640_v15 }
 0x37c   : > { %2643 = vst.msk [vmem:[%s235_s17 + $0x1] sm:$0x1] %vm2540_vm11, %v2642_v56 }
 0x37d PF: > { %s16_s18 = sadd.s32 1, %s2928_s18  }
 0x37e   : > { %p13_p4 = scmp.ge.s32.totalorder %s16_s18, 4  }
 0x380   :  { %15 = sbr.rel (!%p13_p4) target bundleno = 1 (0x1), region = 80 }

// kernel: normal_up_forward.5
= control target key start
LH: loop header
LB: loop body
LE: loop exit
PB: predicated region body
PF: predicated region fallthrough
CT: control target
= control target key end

     0   :  { %s4736_s15 = smov 0   ;;  %s6659_s0 = inlined_call_operand.vmem [shape: f32[2,16,16,4], index: 0, kind: input, shape index: {}]   ;;  %s6660_s1 = inlined_call_operand.vmem [shape: f32[2,16,16,4], index: 1, kind: input, shape index: {}]   ;;  %s6661_s2 = inlined_call_operand.vmem [shape: f32[72,8], index: 2, kind: input, shape index: {}]   ;;  %s6662_s3 = inlined_call_operand.vmem [shape: f32[2,16,16,8], index: 3, kind: output, shape index: {0}]   ;;  %s6663_s4 = inlined_call_operand.vmem [shape: f32[2,2,8], index: 4, kind: output, shape index: {1}]  }
   0x1 LB: > { %s4483_s16 = sadd.s32 4294967295, %s4691_s15   ;;  %p4487_p0 = scmp.ge.s32.totalorder %s4691_s15, 1  ;;  %s4691_s15 = sphi %s4736_s15, %s15_s15  }
   0x2   : > { %p175_p1 = scmp.lt.s32.totalorder %s4691_s15, 3 }
   0x4   : > { %p176_p2 = pnand %p4487_p0, %p175_p1 }
   0x5   : > { %p4746_p3 = scmp.lt.s32.totalorder (!%p176_p2), %s4483_s16, 1  ;;  %s4694_s22 = smov (!%p176_p2), 36  }
   0x6   : > { %179 = sbr.rel (%p176_p2) target bundleno = 1496 (0x5d8), region = 32  ;;  %s4695_s26 = smov (!%p176_p2), 4  }
   0x7   : > { %s4696_s27 = smov (!%p176_p2), 40   ;;  %s4697_s28 = smov (!%p176_p2), 8  }
   0x8   : > { %s4698_s29 = smov (!%p176_p2), 44   ;;  %s4699_s30 = smov (!%p176_p2), 12  }
   0x9   : > { %s4700_s5 = smov (!%p176_p2), 48   ;;  %s4701_s6 = smov (!%p176_p2), 16  }
   0xa   : > { %s4702_s7 = smov (!%p176_p2), 52   ;;  %s4703_s8 = smov (!%p176_p2), 20  }
   0xb   : > { %vm229_vm0 = vcmask 31744   ;;  %vm232_vm1 = vcmask 25600   ;;  %v4693_v0 = vmov 0.0   ;;  %s6666_s16 = smov (!%p4746_p3, %s4483_s16), 1  ;;  %vm693_vm2 = vcmask 326944   ;;  %s4704_s9 = smov 56  }
   0xc   : > { %285 = vst.msk [vmem:[#allocation3] sm:$0xff] %vm229_vm0, %v4693_v0  ;;  %230 = vst.msk [vmem:[#allocation2] sm:$0xff] %vm229_vm0, %v4693_v0  ;;  %s4973_s18 = sshll.u32 %s6666_s16, 8  ;;  %vm886_vm3 = vcmask 64544   ;;  %vm1079_vm4 = vcmask 359744   ;;  %vm1272_vm5 = vcmask 97344  }
   0xd   : > { %231 = vst.msk [vmem:[#allocation2 + $0x8] sm:$0xff] %vm229_vm0, %v4693_v0  ;;  %234 = vst.msk [vmem:[#allocation2 + $0x18] sm:$0xff] %vm229_vm0, %v4693_v0  ;;  %s4979_s21 = scalar_lea.vmem %s6660_s1, %s4973_s18  ;;  %s5042_s25 = scalar_lea.vmem %s6659_s0, %s4973_s18  ;;  %vm1465_vm6 = vcmask 392544   ;;  %vm1658_vm7 = vcmask 130144   ;;  %vm1851_vm8 = vcmask 425344   ;;  %vm2044_vm9 = vcmask 162944  }
   0xe   : > { %235 = vst.msk [vmem:[#allocation2 + $0x20] sm:$0xff] %vm229_vm0, %v4693_v0  ;;  %237 = vst.msk [vmem:[#allocation2 + $0x30] sm:$0xff] %vm229_vm0, %v4693_v0  ;;  %v404_v1 = vld [vmem:[%s4979_s21] sm:$0xff]  ;;  %v406_v2 = vld [vmem:[%s4979_s21 + $0x10] sm:$0xff]  ;;  %vm2237_vm10 = vcmask 458144   ;;  %vm2430_vm11 = vcmask 195744   ;;  %s6445_s13 = scalar_lea.vmem %s6662_s3, %s4973_s18 }
   0xf   : > { %238 = vst.msk [vmem:[#allocation2 + $0x38] sm:$0xff] %vm229_vm0, %v4693_v0  ;;  %240 = vst.msk [vmem:[#allocation2 + $0x48] sm:$0xff] %vm229_vm0, %v4693_v0  ;;  %v405_v3 = vld [vmem:[%s4979_s21 + $0x8] sm:$0xff]  ;;  %v408_v4 = vld [vmem:[%s4979_s21 + $0x20] sm:$0xff]  ;;  %s4705_s10 = smov 24   ;;  %s4706_s11 = smov 60  }
  0x10   : > { %241 = vst.msk [vmem:[#allocation2 + $0x50] sm:$0xff] %vm229_vm0, %v4693_v0  ;;  %243 = vst.msk [vmem:[#allocation2 + $0x60] sm:$0xff] %vm229_vm0, %v4693_v0  ;;  %v407_v5 = vld [vmem:[%s4979_s21 + $0x18] sm:$0xff]  ;;  %v410_v6 = vld [vmem:[%s4979_s21 + $0x30] sm:$0xff]  ;;  %s4707_s14 = smov 28   ;;  %vm2623_vm12 = vcmask 490944  }
  0x11   : > { %244 = vst.msk [vmem:[#allocation2 + $0x68] sm:$0xff] %vm229_vm0, %v4693_v0  ;;  %246 = vst.msk [vmem:[#allocation2 + $0x78] sm:$0xff] %vm229_vm0, %v4693_v0  ;;  %v409_v9 = vld [vmem:[%s4979_s21 + $0x28] sm:$0xff]  ;;  %v412_v10 = vld [vmem:[%s4979_s21 + $0x40] sm:$0xff]  ;;  %s4710_s12 = smov 68   ;;  %vm2817_vm13 = vcmask 228544  }
  0x12   : > { %247 = vst.msk [vmem:[#allocation2 + $0x80] sm:$0xff] %vm229_vm0, %v4693_v0  ;;  %249 = vst.msk [vmem:[#allocation2 + $0x90] sm:$0xff] %vm229_vm0, %v4693_v0  ;;  %v411_v11 = vld [vmem:[%s4979_s21 + $0x38] sm:$0xff]  ;;  %v414_v12 = vld [vmem:[%s4979_s21 + $0x50] sm:$0xff]  ;;  %vm3011_vm14 = vcmask 523744   ;;  %vm3204_vm15 = vcmask 261344  }
  0x13   : > { %250 = vst.msk [vmem:[#allocation2 + $0x98] sm:$0xff] %vm229_vm0, %v4693_v0  ;;  %252 = vst.msk [vmem:[#allocation2 + $0xa8] sm:$0xff] %vm229_vm0, %v4693_v0  ;;  %v533_v7 = vld [vmem:[#allocation3] sm:$0xff]  ;;  %v413_v13 = vld [vmem:[%s4979_s21 + $0x48] sm:$0xff]  ;;  %s4494_s18 = sshll.u32 %s6666_s16, 1 }
  0x14   : > { %253 = vst.msk [vmem:[#allocation2 + $0xb0] sm:$0xff] %vm229_vm0, %v4693_v0  ;;  %255 = vst.msk [vmem:[#allocation2 + $0xc0] sm:$0xff] %vm229_vm0, %v4693_v0  ;;  %597 = vrot.lane.b32.xlu0 %v533_v7, %s4694_s22  ;;  %v416_v14 = vld [vmem:[%s4979_s21 + $0x60] sm:$0xff]  ;;  %v415_v15 = vld [vmem:[%s4979_s21 + $0x58] sm:$0xff]  ;;  %s228_s19 = scalar_lea.vmem %s6663_s4, %s4494_s18 }
  0x15   : > { %256 = vst.msk [vmem:[#allocation2 + $0xc8] sm:$0xff] %vm229_vm0, %v4693_v0  ;;  %258 = vst.msk [vmem:[#allocation2 + $0xd8] sm:$0xff] %vm229_vm0, %v4693_v0  ;;  %v418_v16 = vld [vmem:[%s4979_s21 + $0x70] sm:$0xff]  ;;  %v417_v17 = vld [vmem:[%s4979_s21 + $0x68] sm:$0xff] }
  0x16   : > { %259 = vst.msk [vmem:[#allocation2 + $0xe0] sm:$0xff] %vm229_vm0, %v4693_v0  ;;  %261 = vst.msk [vmem:[#allocation2 + $0xf0] sm:$0xff] %vm229_vm0, %v4693_v0  ;;  %v420_v18 = vld [vmem:[%s4979_s21 + $0x80] sm:$0xff]  ;;  %v419_v19 = vld [vmem:[%s4979_s21 + $0x78] sm:$0xff] }
  0x17   : > { %262 = vst.msk [vmem:[#allocation2 + $0xf8] sm:$0xff] %vm229_vm0, %v4693_v0  ;;  %264 = vst.msk [vmem:[#allocation2 + $0x108] sm:$0xff] %vm229_vm0, %v4693_v0  ;;  %v422_v20 = vld [vmem:[%s4979_s21 + $0x90] sm:$0xff]  ;;  %v421_v21 = vld [vmem:[%s4979_s21 + $0x88] sm:$0xff] }
  0x18   : > { %265 = vst.msk [vmem:[#allocation2 + $0x110] sm:$0xff] %vm229_vm0, %v4693_v0  ;;  %267 = vst.msk [vmem:[#allocation2 + $0x120] sm:$0xff] %vm229_vm0, %v4693_v0  ;;  %v424_v22 = vld [vmem:[%s4979_s21 + $0xa0] sm:$0xff]  ;;  %v423_v23 = vld [vmem:[%s4979_s21 + $0x98] sm:$0xff] }
  0x19   : > { %268 = vst.msk [vmem:[#allocation2 + $0x128] sm:$0xff] %vm229_vm0, %v4693_v0  ;;  %270 = vst.msk [vmem:[#allocation2 + $0x138] sm:$0xff] %vm229_vm0, %v4693_v0  ;;  %v426_v24 = vld [vmem:[%s4979_s21 + $0xb0] sm:$0xff]  ;;  %v425_v28 = vld [vmem:[%s4979_s21 + $0xa8] sm:$0xff] }
  0x1a   : > { %271 = vst.msk [vmem:[#allocation2 + $0x140] sm:$0xff] %vm229_vm0, %v4693_v0  ;;  %273 = vst.msk [vmem:[#allocation2 + $0x150] sm:$0xff] %vm229_vm0, %v4693_v0  ;;  %v428_v29 = vld [vmem:[%s4979_s21 + $0xc0] sm:$0xff]  ;;  %v427_v33 = vld [vmem:[%s4979_s21 + $0xb8] sm:$0xff] }
  0x1b   : > { %274 = vst.msk [vmem:[#allocation2 + $0x158] sm:$0xff] %vm229_vm0, %v4693_v0  ;;  %276 = vst.msk [vmem:[#allocation2 + $0x168] sm:$0xff] %vm229_vm0, %v4693_v0  ;;  %v430_v34 = vld [vmem:[%s4979_s21 + $0xd0] sm:$0xff]  ;;  %v429_v35 = vld [vmem:[%s4979_s21 + $0xc8] sm:$0xff] }
  0x1c   : > { %277 = vst.msk [vmem:[#allocation2 + $0x170] sm:$0xff] %vm229_vm0, %v4693_v0  ;;  %279 = vst.msk [vmem:[#allocation2 + $0x180] sm:$0xff] %vm229_vm0, %v4693_v0  ;;  %v432_v36 = vld [vmem:[%s4979_s21 + $0xe0] sm:$0xff]  ;;  %v431_v37 = vld [vmem:[%s4979_s21 + $0xd8] sm:$0xff] }
  0x1d   : > { %280 = vst.msk [vmem:[#allocation2 + $0x188] sm:$0xff] %vm229_vm0, %v4693_v0  ;;  %282 = vst.msk [vmem:[#allocation2 + $0x198] sm:$0xff] %vm229_vm0, %v4693_v0  ;;  %v433_v39 = vld [vmem:[%s4979_s21 + $0xe8] sm:$0xff]  ;;  %v339_v41 = vld [vmem:[%s5042_s25] sm:$0xff] }
  0x1e   : > { %283 = vst.msk [vmem:[#allocation2 + $0x1a0] sm:$0xff] %vm229_vm0, %v4693_v0  ;;  %286 = vst.msk [vmem:[#allocation3 + $0x8] sm:$0xff] %vm229_vm0, %v4693_v0  ;;  %v341_v42 = vld [vmem:[%s5042_s25 + $0x10] sm:$0xff]  ;;  %v340_v44 = vld [vmem:[%s5042_s25 + $0x8] sm:$0xff] }
  0x1f   : > { %288 = vst.msk [vmem:[#allocation3 + $0x18] sm:$0xff] %vm229_vm0, %v4693_v0  ;;  %289 = vst.msk [vmem:[#allocation3 + $0x20] sm:$0xff] %vm229_vm0, %v4693_v0  ;;  %v343_v45 = vld [vmem:[%s5042_s25 + $0x20] sm:$0xff]  ;;  %v342_v46 = vld [vmem:[%s5042_s25 + $0x18] sm:$0xff] }
  0x20   : > { %291 = vst.msk [vmem:[#allocation3 + $0x30] sm:$0xff] %vm229_vm0, %v4693_v0  ;;  %292 = vst.msk [vmem:[#allocation3 + $0x38] sm:$0xff] %vm229_vm0, %v4693_v0  ;;  %v345_v47 = vld [vmem:[%s5042_s25 + $0x30] sm:$0xff]  ;;  %v344_v48 = vld [vmem:[%s5042_s25 + $0x28] sm:$0xff] }
  0x21   : > { %294 = vst.msk [vmem:[#allocation3 + $0x48] sm:$0xff] %vm229_vm0, %v4693_v0  ;;  %295 = vst.msk [vmem:[#allocation3 + $0x50] sm:$0xff] %vm229_vm0, %v4693_v0  ;;  %v347_v49 = vld [vmem:[%s5042_s25 + $0x40] sm:$0xff]  ;;  %v346_v50 = vld [vmem:[%s5042_s25 + $0x38] sm:$0xff] }
  0x22   : > { %297 = vst.msk [vmem:[#allocation3 + $0x60] sm:$0xff] %vm229_vm0, %v4693_v0  ;;  %298 = vst.msk [vmem:[#allocation3 + $0x68] sm:$0xff] %vm229_vm0, %v4693_v0  ;;  %v349_v51 = vld [vmem:[%s5042_s25 + $0x50] sm:$0xff]  ;;  %v348_v52 = vld [vmem:[%s5042_s25 + $0x48] sm:$0xff] }
  0x23   : > { %300 = vst.msk [vmem:[#allocation3 + $0x78] sm:$0xff] %vm229_vm0, %v4693_v0  ;;  %301 = vst.msk [vmem:[#allocation3 + $0x80] sm:$0xff] %vm229_vm0, %v4693_v0  ;;  %v351_v53 = vld [vmem:[%s5042_s25 + $0x60] sm:$0xff]  ;;  %v350_v54 = vld [vmem:[%s5042_s25 + $0x58] sm:$0xff] }
  0x24   : > { %303 = vst.msk [vmem:[#allocation3 + $0x90] sm:$0xff] %vm229_vm0, %v4693_v0  ;;  %304 = vst.msk [vmem:[#allocation3 + $0x98] sm:$0xff] %vm229_vm0, %v4693_v0  ;;  %v353_v55 = vld [vmem:[%s5042_s25 + $0x70] sm:$0xff]  ;;  %v352_v57 = vld [vmem:[%s5042_s25 + $0x68] sm:$0xff] }
  0x25   : > { %306 = vst.msk [vmem:[#allocation3 + $0xa8] sm:$0xff] %vm229_vm0, %v4693_v0  ;;  %307 = vst.msk [vmem:[#allocation3 + $0xb0] sm:$0xff] %vm229_vm0, %v4693_v0  ;;  %v534_v8 = vld [vmem:[#allocation3 + $0x8] sm:$0xff]  ;;  %v355_v59 = vld [vmem:[%s5042_s25 + $0x80] sm:$0xff] }
  0x26   : > { %309 = vst.msk [vmem:[#allocation3 + $0xc0] sm:$0xff] %vm229_vm0, %v4693_v0  ;;  %310 = vst.msk [vmem:[#allocation3 + $0xc8] sm:$0xff] %vm229_vm0, %v4693_v0  ;;  %599 = vrot.lane.b32.xlu0 %v534_v8, %s4694_s22  ;;  %v354_v60 = vld [vmem:[%s5042_s25 + $0x78] sm:$0xff]  ;;  %v357_v61 = vld [vmem:[%s5042_s25 + $0x90] sm:$0xff] }
  0x27   : > { %312 = vst.msk [vmem:[#allocation3 + $0xd8] sm:$0xff] %vm229_vm0, %v4693_v0  ;;  %313 = vst.msk [vmem:[#allocation3 + $0xe0] sm:$0xff] %vm229_vm0, %v4693_v0  ;;  %v360_v7 = vld [vmem:[%s5042_s25 + $0xa8] sm:$0xff] }
  0x28   : > { %315 = vst.msk [vmem:[#allocation3 + $0xf0] sm:$0xff] %vm229_vm0, %v4693_v0  ;;  %316 = vst.msk [vmem:[#allocation3 + $0xf8] sm:$0xff] %vm229_vm0, %v4693_v0 }
  0x29   : > { %318 = vst.msk [vmem:[#allocation3 + $0x108] sm:$0xff] %vm229_vm0, %v4693_v0  ;;  %319 = vst.msk [vmem:[#allocation3 + $0x110] sm:$0xff] %vm229_vm0, %v4693_v0 }
  0x2a   : > { %321 = vst.msk [vmem:[#allocation3 + $0x120] sm:$0xff] %vm229_vm0, %v4693_v0  ;;  %322 = vst.msk [vmem:[#allocation3 + $0x128] sm:$0xff] %vm229_vm0, %v4693_v0 }
  0x2b   : > { %324 = vst.msk [vmem:[#allocation3 + $0x138] sm:$0xff] %vm229_vm0, %v4693_v0  ;;  %325 = vst.msk [vmem:[#allocation3 + $0x140] sm:$0xff] %vm229_vm0, %v4693_v0 }
  0x2c   : > { %327 = vst.msk [vmem:[#allocation3 + $0x150] sm:$0xff] %vm229_vm0, %v4693_v0  ;;  %328 = vst.msk [vmem:[#allocation3 + $0x158] sm:$0xff] %vm229_vm0, %v4693_v0 }
  0x2d   : > { %330 = vst.msk [vmem:[#allocation3 + $0x168] sm:$0xff] %vm229_vm0, %v4693_v0  ;;  %331 = vst.msk [vmem:[#allocation3 + $0x170] sm:$0xff] %vm229_vm0, %v4693_v0 }
  0x2e   : > { %333 = vst.msk [vmem:[#allocation3 + $0x180] sm:$0xff] %vm229_vm0, %v4693_v0  ;;  %334 = vst.msk [vmem:[#allocation3 + $0x188] sm:$0xff] %vm229_vm0, %v4693_v0 }
  0x2f   : > { %336 = vst.msk [vmem:[#allocation3 + $0x198] sm:$0xff] %vm229_vm0, %v4693_v0  ;;  %337 = vst.msk [vmem:[#allocation3 + $0x1a0] sm:$0xff] %vm229_vm0, %v4693_v0 }
  0x30   : > { %290 = vst.msk [vmem:[#allocation3 + $0x28] sm:$0x3] %vm232_vm1, %v4693_v0  ;;  %233 = vst.msk [vmem:[#allocation2 + $0x10] sm:$0x3] %vm232_vm1, %v4693_v0 }
  0x31   : > { %236 = vst.msk [vmem:[#allocation2 + $0x28] sm:$0x3] %vm232_vm1, %v4693_v0  ;;  %239 = vst.msk [vmem:[#allocation2 + $0x40] sm:$0x3] %vm232_vm1, %v4693_v0 }
  0x32   : > { %242 = vst.msk [vmem:[#allocation2 + $0x58] sm:$0x3] %vm232_vm1, %v4693_v0  ;;  %245 = vst.msk [vmem:[#allocation2 + $0x70] sm:$0x3] %vm232_vm1, %v4693_v0 }
  0x33   : > { %248 = vst.msk [vmem:[#allocation2 + $0x88] sm:$0x3] %vm232_vm1, %v4693_v0  ;;  %251 = vst.msk [vmem:[#allocation2 + $0xa0] sm:$0x3] %vm232_vm1, %v4693_v0 }
  0x34   : > { %254 = vst.msk [vmem:[#allocation2 + $0xb8] sm:$0x3] %vm232_vm1, %v4693_v0  ;;  %257 = vst.msk [vmem:[#allocation2 + $0xd0] sm:$0x3] %vm232_vm1, %v4693_v0 }
  0x35   : > { %260 = vst.msk [vmem:[#allocation2 + $0xe8] sm:$0x3] %vm232_vm1, %v4693_v0  ;;  %263 = vst.msk [vmem:[#allocation2 + $0x100] sm:$0x3] %vm232_vm1, %v4693_v0 }
  0x36   : > { %266 = vst.msk [vmem:[#allocation2 + $0x118] sm:$0x3] %vm232_vm1, %v4693_v0  ;;  %269 = vst.msk [vmem:[#allocation2 + $0x130] sm:$0x3] %vm232_vm1, %v4693_v0 }
  0x37   : > { %272 = vst.msk [vmem:[#allocation2 + $0x148] sm:$0x3] %vm232_vm1, %v4693_v0  ;;  %275 = vst.msk [vmem:[#allocation2 + $0x160] sm:$0x3] %vm232_vm1, %v4693_v0 }
  0x38   : > { %278 = vst.msk [vmem:[#allocation2 + $0x178] sm:$0x3] %vm232_vm1, %v4693_v0  ;;  %281 = vst.msk [vmem:[#allocation2 + $0x190] sm:$0x3] %vm232_vm1, %v4693_v0 }
  0x39   : > { %284 = vst.msk [vmem:[#allocation2 + $0x1a8] sm:$0x3] %vm232_vm1, %v4693_v0  ;;  %287 = vst.msk [vmem:[#allocation3 + $0x10] sm:$0x3] %vm232_vm1, %v4693_v0 }
  0x3a   : > { %293 = vst.msk [vmem:[#allocation3 + $0x40] sm:$0x3] %vm232_vm1, %v4693_v0  ;;  %296 = vst.msk [vmem:[#allocation3 + $0x58] sm:$0x3] %vm232_vm1, %v4693_v0 }
  0x3b   : > { %299 = vst.msk [vmem:[#allocation3 + $0x70] sm:$0x3] %vm232_vm1, %v4693_v0  ;;  %302 = vst.msk [vmem:[#allocation3 + $0x88] sm:$0x3] %vm232_vm1, %v4693_v0 }
  0x3c   : > { %305 = vst.msk [vmem:[#allocation3 + $0xa0] sm:$0x3] %vm232_vm1, %v4693_v0  ;;  %308 = vst.msk [vmem:[#allocation3 + $0xb8] sm:$0x3] %vm232_vm1, %v4693_v0 }
  0x3d   : > { %311 = vst.msk [vmem:[#allocation3 + $0xd0] sm:$0x3] %vm232_vm1, %v4693_v0  ;;  %314 = vst.msk [vmem:[#allocation3 + $0xe8] sm:$0x3] %vm232_vm1, %v4693_v0 }
  0x3e   : > { %317 = vst.msk [vmem:[#allocation3 + $0x100] sm:$0x3] %vm232_vm1, %v4693_v0  ;;  %320 = vst.msk [vmem:[#allocation3 + $0x118] sm:$0x3] %vm232_vm1, %v4693_v0 }
  0x3f   : > { %323 = vst.msk [vmem:[#allocation3 + $0x130] sm:$0x3] %vm232_vm1, %v4693_v0  ;;  %326 = vst.msk [vmem:[#allocation3 + $0x148] sm:$0x3] %vm232_vm1, %v4693_v0 }
  0x40   : > { %329 = vst.msk [vmem:[#allocation3 + $0x160] sm:$0x3] %vm232_vm1, %v4693_v0  ;;  %332 = vst.msk [vmem:[#allocation3 + $0x178] sm:$0x3] %vm232_vm1, %v4693_v0 }
  0x41   : > { %335 = vst.msk [vmem:[#allocation3 + $0x190] sm:$0x3] %vm232_vm1, %v4693_v0  ;;  %338 = vst.msk [vmem:[#allocation3 + $0x1a8] sm:$0x3] %vm232_vm1, %v4693_v0  ;;  %vm3590_vm1 = vcmask 294144  }
  0x42   : > { %437 = vst.msk [vmem:[#allocation3 + $0x19] sm:$0xff] %vm229_vm0, %v404_v1  ;;  %439 = vst.msk [vmem:[#allocation3 + $0x31] sm:$0xff] %vm229_vm0, %v406_v2  ;;  %v356_v1 = vld [vmem:[%s5042_s25 + $0x88] sm:$0xff]  ;;  %v359_v2 = vld [vmem:[%s5042_s25 + $0xa0] sm:$0xff] }
  0x43   : > { %438 = vst.msk [vmem:[#allocation3 + $0x21] sm:$0xff] %vm229_vm0, %v405_v3  ;;  %441 = vst.msk [vmem:[#allocation3 + $0x49] sm:$0xff] %vm229_vm0, %v408_v4  ;;  %v358_v3 = vld [vmem:[%s5042_s25 + $0x98] sm:$0xff]  ;;  %v361_v4 = vld [vmem:[%s5042_s25 + $0xb0] sm:$0xff] }
  0x44   : > { %440 = vst.msk [vmem:[#allocation3 + $0x39] sm:$0xff] %vm229_vm0, %v407_v5  ;;  %443 = vst.msk [vmem:[#allocation3 + $0x61] sm:$0xff] %vm229_vm0, %v410_v6  ;;  %v469_v5 = vld [vmem:[#allocation2] sm:$0xff] }
  0x45   : > { %442 = vst.msk [vmem:[#allocation3 + $0x51] sm:$0xff] %vm229_vm0, %v409_v9  ;;  %445 = vst.msk [vmem:[#allocation3 + $0x79] sm:$0xff] %vm229_vm0, %v412_v10  ;;  %v363_v9 = vld [vmem:[%s5042_s25 + $0xc0] sm:$0xff]  ;;  %v470_v10 = vld [vmem:[#allocation2 + $0x8] sm:$0xff] }
  0x46   : > { %444 = vst.msk [vmem:[#allocation3 + $0x69] sm:$0xff] %vm229_vm0, %v411_v11  ;;  %447 = vst.msk [vmem:[#allocation3 + $0x91] sm:$0xff] %vm229_vm0, %v414_v12  ;;  %v362_v12 = vld [vmem:[%s5042_s25 + $0xb8] sm:$0xff] }
  0x47   : > { %446 = vst.msk [vmem:[#allocation3 + $0x81] sm:$0xff] %vm229_vm0, %v413_v13  ;;  %449 = vst.msk [vmem:[#allocation3 + $0xa9] sm:$0xff] %vm229_vm0, %v416_v14  ;;  %v365_v14 = vld [vmem:[%s5042_s25 + $0xd0] sm:$0xff] }
  0x48   : > { %448 = vst.msk [vmem:[#allocation3 + $0x99] sm:$0xff] %vm229_vm0, %v415_v15  ;;  %451 = vst.msk [vmem:[#allocation3 + $0xc1] sm:$0xff] %vm229_vm0, %v418_v16  ;;  %v364_v16 = vld [vmem:[%s5042_s25 + $0xc8] sm:$0xff] }
  0x49   : > { %450 = vst.msk [vmem:[#allocation3 + $0xb1] sm:$0xff] %vm229_vm0, %v417_v17  ;;  %453 = vst.msk [vmem:[#allocation3 + $0xd9] sm:$0xff] %vm229_vm0, %v420_v18  ;;  %v535_v25 = vld [vmem:[#allocation3 + $0x18] sm:$0xff]  ;;  %v537_v26 = vld [vmem:[#allocation3 + $0x30] sm:$0xff] }
  0x4a   : > { %452 = vst.msk [vmem:[#allocation3 + $0xc9] sm:$0xff] %vm229_vm0, %v419_v19  ;;  %455 = vst.msk [vmem:[#allocation3 + $0xf1] sm:$0xff] %vm229_vm0, %v422_v20  ;;  %601 = vrot.lane.b32.xlu1 %v535_v25, %s4694_s22  ;;  %v536_v27 = vld [vmem:[#allocation3 + $0x20] sm:$0xff]  ;;  %605 = vrot.lane.b32.xlu0 %v537_v26, %s4694_s22  ;;  %v539_v30 = vld [vmem:[#allocation3 + $0x48] sm:$0xff] }
  0x4b   : > { %454 = vst.msk [vmem:[#allocation3 + $0xe1] sm:$0xff] %vm229_vm0, %v421_v21  ;;  %457 = vst.msk [vmem:[#allocation3 + $0x109] sm:$0xff] %vm229_vm0, %v424_v22  ;;  %v538_v31 = vld [vmem:[#allocation3 + $0x38] sm:$0xff]  ;;  %v541_v32 = vld [vmem:[#allocation3 + $0x60] sm:$0xff] }
  0x4c   : > { %456 = vst.msk [vmem:[#allocation3 + $0xf9] sm:$0xff] %vm229_vm0, %v423_v23  ;;  %459 = vst.msk [vmem:[#allocation3 + $0x121] sm:$0xff] %vm229_vm0, %v426_v24  ;;  %v540_v38 = vld [vmem:[#allocation3 + $0x50] sm:$0xff]  ;;  %v543_v40 = vld [vmem:[#allocation3 + $0x78] sm:$0xff] }
  0x4d   : > { %458 = vst.msk [vmem:[#allocation3 + $0x111] sm:$0xff] %vm229_vm0, %v425_v28  ;;  %461 = vst.msk [vmem:[#allocation3 + $0x139] sm:$0xff] %vm229_vm0, %v428_v29  ;;  %v542_v43 = vld [vmem:[#allocation3 + $0x68] sm:$0xff]  ;;  %v545_v56 = vld [vmem:[#allocation3 + $0x90] sm:$0xff] }
  0x4e   : > { %603 = vrot.lane.b32.xlu1 %v536_v27, %s4694_s22  ;;  %609 = vrot.lane.b32.xlu0 %v539_v30, %s4694_s22  ;;  %460 = vst.msk [vmem:[#allocation3 + $0x129] sm:$0xff] %vm229_vm0, %v427_v33  ;;  %463 = vst.msk [vmem:[#allocation3 + $0x151] sm:$0xff] %vm229_vm0, %v430_v34  ;;  %v544_v58 = vld [vmem:[#allocation3 + $0x80] sm:$0xff]  ;;  %v547_v62 = vld [vmem:[#allocation3 + $0xa8] sm:$0xff] }
  0x4f   : > { %462 = vst.msk [vmem:[#allocation3 + $0x141] sm:$0xff] %vm229_vm0, %v429_v35  ;;  %465 = vst.msk [vmem:[#allocation3 + $0x169] sm:$0xff] %vm229_vm0, %v432_v36  ;;  %v546_v63 = vld [vmem:[#allocation3 + $0x98] sm:$0xff]  ;;  %v549_v0 = vld [vmem:[#allocation3 + $0xc0] sm:$0xff] }
  0x50   : > { %464 = vst.msk [vmem:[#allocation3 + $0x159] sm:$0xff] %vm229_vm0, %v431_v37  ;;  %466 = vst.msk [vmem:[#allocation3 + $0x171] sm:$0xff] %vm229_vm0, %v433_v39  ;;  %v548_v6 = vld [vmem:[#allocation3 + $0xb0] sm:$0xff]  ;;  %v551_v8 = vld [vmem:[#allocation3 + $0xd8] sm:$0xff] }
  0x51   : > { %372 = vst.msk [vmem:[#allocation2 + $0x19] sm:$0xff] %vm229_vm0, %v339_v41  ;;  %374 = vst.msk [vmem:[#allocation2 + $0x31] sm:$0xff] %vm229_vm0, %v341_v42  ;;  %v550_v11 = vld [vmem:[#allocation3 + $0xc8] sm:$0xff]  ;;  %v367_v18 = vld [vmem:[%s5042_s25 + $0xe0] sm:$0xff] }
  0x52   : > { %607 = vrot.lane.b32.xlu1 %v538_v31, %s4694_s22  ;;  %613 = vrot.lane.b32.xlu0 %v541_v32, %s4694_s22  ;;  %373 = vst.msk [vmem:[#allocation2 + $0x21] sm:$0xff] %vm229_vm0, %v340_v44  ;;  %376 = vst.msk [vmem:[#allocation2 + $0x49] sm:$0xff] %vm229_vm0, %v343_v45  ;;  %v366_v20 = vld [vmem:[%s5042_s25 + $0xd8] sm:$0xff]  ;;  %v553_v23 = vld [vmem:[#allocation3 + $0xf0] sm:$0xff] }
  0x53   : > { %375 = vst.msk [vmem:[#allocation2 + $0x39] sm:$0xff] %vm229_vm0, %v342_v46  ;;  %378 = vst.msk [vmem:[#allocation2 + $0x61] sm:$0xff] %vm229_vm0, %v345_v47  ;;  %v368_v24 = vld [vmem:[%s5042_s25 + $0xe8] sm:$0xff]  ;;  %v552_v26 = vld [vmem:[#allocation3 + $0xe0] sm:$0xff] }
  0x54   : > { %377 = vst.msk [vmem:[#allocation2 + $0x51] sm:$0xff] %vm229_vm0, %v344_v48  ;;  %380 = vst.msk [vmem:[#allocation2 + $0x79] sm:$0xff] %vm229_vm0, %v347_v49  ;;  %v555_v29 = vld [vmem:[#allocation3 + $0x108] sm:$0xff]  ;;  %v554_v31 = vld [vmem:[#allocation3 + $0xf8] sm:$0xff] }
  0x55   : > { %379 = vst.msk [vmem:[#allocation2 + $0x69] sm:$0xff] %vm229_vm0, %v346_v50  ;;  %382 = vst.msk [vmem:[#allocation2 + $0x91] sm:$0xff] %vm229_vm0, %v349_v51  ;;  %v557_v34 = vld [vmem:[#allocation3 + $0x120] sm:$0xff]  ;;  %v559_v42 = vld [vmem:[#allocation3 + $0x138] sm:$0xff] }
  0x56   : > { %611 = vrot.lane.b32.xlu1 %v540_v38, %s4694_s22  ;;  %617 = vrot.lane.b32.xlu0 %v543_v40, %s4694_s22  ;;  %381 = vst.msk [vmem:[#allocation2 + $0x81] sm:$0xff] %vm229_vm0, %v348_v52  ;;  %384 = vst.msk [vmem:[#allocation2 + $0xa9] sm:$0xff] %vm229_vm0, %v351_v53  ;;  %v556_v38 = vld [vmem:[#allocation3 + $0x110] sm:$0xff]  ;;  %v558_v46 = vld [vmem:[#allocation3 + $0x128] sm:$0xff] }
  0x57   : > { %383 = vst.msk [vmem:[#allocation2 + $0x99] sm:$0xff] %vm229_vm0, %v350_v54  ;;  %386 = vst.msk [vmem:[#allocation2 + $0xc1] sm:$0xff] %vm229_vm0, %v353_v55  ;;  %v561_v50 = vld [vmem:[#allocation3 + $0x150] sm:$0xff]  ;;  %v560_v54 = vld [vmem:[#allocation3 + $0x140] sm:$0xff] }
  0x58   : > { %385 = vst.msk [vmem:[#allocation2 + $0xb1] sm:$0xff] %vm229_vm0, %v352_v57  ;;  %388 = vst.msk [vmem:[#allocation2 + $0xd9] sm:$0xff] %vm229_vm0, %v355_v59  ;;  %v5114_v13 = vld [vmem:[#allocation2 + $0x18] sm:$0xff]  ;;  %v5122_v15 = vld [vmem:[#allocation2 + $0x30] sm:$0xff] }
  0x59   : > { %387 = vst.msk [vmem:[#allocation2 + $0xc9] sm:$0xff] %vm229_vm0, %v354_v60  ;;  %390 = vst.msk [vmem:[#allocation2 + $0xf1] sm:$0xff] %vm229_vm0, %v357_v61  ;;  %v5125_v17 = vld [vmem:[#allocation2 + $0x20] sm:$0xff]  ;;  %v5133_v19 = vld [vmem:[#allocation2 + $0x48] sm:$0xff] }
  0x5a   : > { %615 = vrot.lane.b32.xlu1 %v542_v43, %s4694_s22  ;;  %621 = vrot.lane.b32.xlu0 %v545_v56, %s4694_s22  ;;  %389 = vst.msk [vmem:[#allocation2 + $0xe1] sm:$0xff] %vm229_vm0, %v356_v1  ;;  %392 = vst.msk [vmem:[#allocation2 + $0x109] sm:$0xff] %vm229_vm0, %v359_v2  ;;  %v5141_v21 = vld [vmem:[#allocation2 + $0x38] sm:$0xff]  ;;  %v5143_v22 = vld [vmem:[#allocation2 + $0x60] sm:$0xff] }
  0x5b   : > { %391 = vst.msk [vmem:[#allocation2 + $0xf9] sm:$0xff] %vm229_vm0, %v358_v3  ;;  %394 = vst.msk [vmem:[#allocation2 + $0x121] sm:$0xff] %vm229_vm0, %v361_v4  ;;  %v5151_v25 = vld [vmem:[#allocation2 + $0x50] sm:$0xff]  ;;  %v5156_v27 = vld [vmem:[#allocation2 + $0x78] sm:$0xff] }
  0x5c   : > { %501 = vst.msk [vmem:[#allocation4] sm:$0xff] %vm229_vm0, %v469_v5  ;;  %393 = vst.msk [vmem:[#allocation2 + $0x111] sm:$0xff] %vm229_vm0, %v360_v7  ;;  %v5161_v28 = vld [vmem:[#allocation2 + $0x68] sm:$0xff]  ;;  %v5166_v30 = vld [vmem:[#allocation2 + $0x90] sm:$0xff] }
  0x5d   : > { %396 = vst.msk [vmem:[#allocation2 + $0x139] sm:$0xff] %vm229_vm0, %v363_v9  ;;  %502 = vst.msk [vmem:[#allocation4 + $0x8] sm:$0xff] %vm229_vm0, %v470_v10  ;;  %v5170_v32 = vld [vmem:[#allocation2 + $0x80] sm:$0xff]  ;;  %v5175_v33 = vld [vmem:[#allocation2 + $0xa8] sm:$0xff] }
  0x5e   : > { %619 = vrot.lane.b32.xlu1 %v544_v58, %s4694_s22  ;;  %625 = vrot.lane.b32.xlu0 %v547_v62, %s4694_s22  ;;  %395 = vst.msk [vmem:[#allocation2 + $0x129] sm:$0xff] %vm229_vm0, %v362_v12  ;;  %503 = vst.msk [vmem:[#allocation4 + $0x10] sm:$0xff] %vm229_vm0, %v5114_v13  ;;  %v5179_v35 = vld [vmem:[#allocation2 + $0x98] sm:$0xff]  ;;  %v5181_v36 = vld [vmem:[#allocation2 + $0xc0] sm:$0xff] }
  0x5f   : > { %398 = vst.msk [vmem:[#allocation2 + $0x151] sm:$0xff] %vm229_vm0, %v365_v14  ;;  %505 = vst.msk [vmem:[#allocation4 + $0x20] sm:$0xff] %vm229_vm0, %v5122_v15  ;;  %v5188_v37 = vld [vmem:[#allocation2 + $0xb0] sm:$0xff]  ;;  %v5192_v39 = vld [vmem:[#allocation2 + $0xd8] sm:$0xff] }
  0x60   : > { %397 = vst.msk [vmem:[#allocation2 + $0x141] sm:$0xff] %vm229_vm0, %v364_v16  ;;  %504 = vst.msk [vmem:[#allocation4 + $0x18] sm:$0xff] %vm229_vm0, %v5125_v17  ;;  %v5197_v40 = vld [vmem:[#allocation2 + $0xc8] sm:$0xff]  ;;  %v5199_v41 = vld [vmem:[#allocation2 + $0xf0] sm:$0xff] }
  0x61   : > { %400 = vst.msk [vmem:[#allocation2 + $0x169] sm:$0xff] %vm229_vm0, %v367_v18  ;;  %507 = vst.msk [vmem:[#allocation4 + $0x30] sm:$0xff] %vm229_vm0, %v5133_v19  ;;  %v5205_v43 = vld [vmem:[#allocation2 + $0xe0] sm:$0xff]  ;;  %v5210_v44 = vld [vmem:[#allocation2 + $0x108] sm:$0xff] }
  0x62   : > { %623 = vrot.lane.b32.xlu1 %v546_v63, %s4694_s22  ;;  %629 = vrot.lane.b32.xlu0 %v549_v0, %s4694_s22  ;;  %399 = vst.msk [vmem:[#allocation2 + $0x159] sm:$0xff] %vm229_vm0, %v366_v20  ;;  %506 = vst.msk [vmem:[#allocation4 + $0x28] sm:$0xff] %vm229_vm0, %v5141_v21  ;;  %v5212_v45 = vld [vmem:[#allocation2 + $0xf8] sm:$0xff]  ;;  %v5218_v47 = vld [vmem:[#allocation2 + $0x120] sm:$0xff] }
  0x63   : > { %509 = vst.msk [vmem:[#allocation4 + $0x40] sm:$0xff] %vm229_vm0, %v5143_v22  ;;  %401 = vst.msk [vmem:[#allocation2 + $0x171] sm:$0xff] %vm229_vm0, %v368_v24  ;;  %v5223_v48 = vld [vmem:[#allocation2 + $0x110] sm:$0xff]  ;;  %v563_v57 = vld [vmem:[#allocation3 + $0x168] sm:$0xff] }
  0x64   : > { %508 = vst.msk [vmem:[#allocation4 + $0x38] sm:$0xff] %vm229_vm0, %v5151_v25  ;;  %511 = vst.msk [vmem:[#allocation4 + $0x50] sm:$0xff] %vm229_vm0, %v5156_v27  ;;  %v5225_v49 = vld [vmem:[#allocation2 + $0x138] sm:$0xff]  ;;  %v562_v59 = vld [vmem:[#allocation3 + $0x158] sm:$0xff] }
  0x65   : > { %510 = vst.msk [vmem:[#allocation4 + $0x48] sm:$0xff] %vm229_vm0, %v5161_v28  ;;  %513 = vst.msk [vmem:[#allocation4 + $0x60] sm:$0xff] %vm229_vm0, %v5166_v30  ;;  %v5231_v51 = vld [vmem:[#allocation2 + $0x128] sm:$0xff]  ;;  %v564_v61 = vld [vmem:[#allocation3 + $0x170] sm:$0xff] }
  0x66   : > { %627 = vrot.lane.b32.xlu1 %v548_v6, %s4694_s22  ;;  %633 = vrot.lane.b32.xlu0 %v551_v8, %s4694_s22  ;;  %512 = vst.msk [vmem:[#allocation4 + $0x58] sm:$0xff] %vm229_vm0, %v5170_v32  ;;  %515 = vst.msk [vmem:[#allocation4 + $0x70] sm:$0xff] %vm229_vm0, %v5175_v33  ;;  %v5236_v52 = vld [vmem:[#allocation2 + $0x150] sm:$0xff]  ;;  %v726_v60 = vld [vmem:[#allocation2 + $0x1] sm:$0xff] }
  0x67   : > { %514 = vst.msk [vmem:[#allocation4 + $0x68] sm:$0xff] %vm229_vm0, %v5179_v35  ;;  %517 = vst.msk [vmem:[#allocation4 + $0x80] sm:$0xff] %vm229_vm0, %v5181_v36  ;;  %v5238_v53 = vld [vmem:[#allocation2 + $0x140] sm:$0xff]  ;;  %v727_v63 = vld [vmem:[#allocation2 + $0x9] sm:$0xff] }
  0x68   : > { %516 = vst.msk [vmem:[#allocation4 + $0x78] sm:$0xff] %vm229_vm0, %v5188_v37  ;;  %519 = vst.msk [vmem:[#allocation4 + $0x90] sm:$0xff] %vm229_vm0, %v5192_v39  ;;  %v5244_v55 = vld [vmem:[#allocation2 + $0x168] sm:$0xff]  ;;  %v728_v62 = vld [vmem:[#allocation2 + $0x19] sm:$0xff] }
  0x69   : > { %518 = vst.msk [vmem:[#allocation4 + $0x88] sm:$0xff] %vm229_vm0, %v5197_v40  ;;  %521 = vst.msk [vmem:[#allocation4 + $0xa0] sm:$0xff] %vm229_vm0, %v5199_v41  ;;  %v5249_v56 = vld [vmem:[#allocation2 + $0x158] sm:$0xff]  ;;  %v729_v1 = vld [vmem:[#allocation2 + $0x21] sm:$0xff] }
  0x6a   : > { %631 = vrot.lane.b32.xlu1 %v550_v11, %s4694_s22  ;;  %637 = vrot.lane.b32.xlu0 %v553_v23, %s4694_s22  ;;  %520 = vst.msk [vmem:[#allocation4 + $0x98] sm:$0xff] %vm229_vm0, %v5205_v43  ;;  %523 = vst.msk [vmem:[#allocation4 + $0xb0] sm:$0xff] %vm229_vm0, %v5210_v44  ;;  %v5253_v58 = vld [vmem:[#allocation2 + $0x170] sm:$0xff]  ;;  %v731_v3 = vld [vmem:[#allocation2 + $0x39] sm:$0xff] }
  0x6b   : > { %522 = vst.msk [vmem:[#allocation4 + $0xa8] sm:$0xff] %vm229_vm0, %v5212_v45  ;;  %525 = vst.msk [vmem:[#allocation4 + $0xc0] sm:$0xff] %vm229_vm0, %v5218_v47  ;;  %v730_v0 = vld [vmem:[#allocation2 + $0x31] sm:$0xff]  ;;  %v732_v2 = vld [vmem:[#allocation2 + $0x49] sm:$0xff] }
  0x6c   : > { %524 = vst.msk [vmem:[#allocation4 + $0xb8] sm:$0xff] %vm229_vm0, %v5223_v48  ;;  %527 = vst.msk [vmem:[#allocation4 + $0xd0] sm:$0xff] %vm229_vm0, %v5225_v49  ;;  %v734_v4 = vld [vmem:[#allocation2 + $0x61] sm:$0xff]  ;;  %v733_v5 = vld [vmem:[#allocation2 + $0x51] sm:$0xff] }
  0x6d   : > { %526 = vst.msk [vmem:[#allocation4 + $0xc8] sm:$0xff] %vm229_vm0, %v5231_v51  ;;  %529 = vst.msk [vmem:[#allocation4 + $0xe0] sm:$0xff] %vm229_vm0, %v5236_v52  ;;  %v736_v6 = vld [vmem:[#allocation2 + $0x79] sm:$0xff]  ;;  %v735_v7 = vld [vmem:[#allocation2 + $0x69] sm:$0xff] }
  0x6e   : > { %635 = vrot.lane.b32.xlu1 %v552_v26, %s4694_s22  ;;  %641 = vrot.lane.b32.xlu0 %v555_v29, %s4694_s22  ;;  %528 = vst.msk [vmem:[#allocation4 + $0xd8] sm:$0xff] %vm229_vm0, %v5238_v53  ;;  %531 = vst.msk [vmem:[#allocation4 + $0xf0] sm:$0xff] %vm229_vm0, %v5244_v55  ;;  %v738_v8 = vld [vmem:[#allocation2 + $0x91] sm:$0xff]  ;;  %v737_v9 = vld [vmem:[#allocation2 + $0x81] sm:$0xff] }
  0x6f   : > { %530 = vst.msk [vmem:[#allocation4 + $0xe8] sm:$0xff] %vm229_vm0, %v5249_v56  ;;  %532 = vst.msk [vmem:[#allocation4 + $0xf8] sm:$0xff] %vm229_vm0, %v5253_v58  ;;  %v740_v10 = vld [vmem:[#allocation2 + $0xa9] sm:$0xff]  ;;  %v739_v11 = vld [vmem:[#allocation2 + $0x99] sm:$0xff] }
  0x70   : > { %v742_v12 = vld [vmem:[#allocation2 + $0xc1] sm:$0xff]  ;;  %v741_v14 = vld [vmem:[#allocation2 + $0xb1] sm:$0xff]  ;;  %v744_v16 = vld [vmem:[#allocation2 + $0xd9] sm:$0xff] }
  0x71   : > { %v743_v18 = vld [vmem:[#allocation2 + $0xc9] sm:$0xff]  ;;  %v746_v20 = vld [vmem:[#allocation2 + $0xf1] sm:$0xff]  ;;  %v745_v23 = vld [vmem:[#allocation2 + $0xe1] sm:$0xff] }
  0x72   : > { %639 = vrot.lane.b32.xlu1 %v554_v31, %s4694_s22  ;;  %645 = vrot.lane.b32.xlu0 %v557_v34, %s4694_s22  ;;  %v748_v24 = vld [vmem:[#allocation2 + $0x109] sm:$0xff]  ;;  %v747_v26 = vld [vmem:[#allocation2 + $0xf9] sm:$0xff]  ;;  %v750_v29 = vld [vmem:[#allocation2 + $0x121] sm:$0xff] }
  0x73   : > { %v749_v31 = vld [vmem:[#allocation2 + $0x111] sm:$0xff]  ;;  %v752_v34 = vld [vmem:[#allocation2 + $0x139] sm:$0xff] }
  0x76   : > { %643 = vrot.lane.b32.xlu1 %v556_v38, %s4694_s22  ;;  %649 = vrot.lane.b32.xlu0 %v559_v42, %s4694_s22  ;;  %v751_v42 = vld [vmem:[#allocation2 + $0x129] sm:$0xff] }
  0x7a   : > { %647 = vrot.lane.b32.xlu1 %v558_v46, %s4694_s22  ;;  %653 = vrot.lane.b32.xlu0 %v561_v50, %s4694_s22  ;;  %v754_v46 = vld [vmem:[#allocation2 + $0x151] sm:$0xff] }
  0x7e   : > { %651 = vrot.lane.b32.xlu1 %v560_v54, %s4694_s22  ;;  %657 = vrot.lane.b32.xlu0 %v563_v57, %s4694_s22  ;;  %v753_v54 = vld [vmem:[#allocation2 + $0x141] sm:$0xff] }
  0x82   : > { %655 = vrot.lane.b32.xlu1 %v562_v59, %s4694_s22  ;;  %790 = vrot.lane.b32.xlu0 %v726_v60, %s4695_s26  ;;  %v756_v59 = vld [vmem:[#allocation2 + $0x169] sm:$0xff] }
  0x86   : > { %659 = vrot.lane.b32.xlu1 %v564_v61, %s4694_s22  ;;  %794 = vrot.lane.b32.xlu0 %v728_v62, %s4695_s26  ;;  %v598_v38 = vpop.permute.xlu0 %597  ;;  %v755_v61 = vld [vmem:[#allocation2 + $0x159] sm:$0xff]  ;;  %s4708_s22 = smov 64  }
  0x87   : > { %694 = vst.msk [vmem:[#allocation4] sm:$0xff] %vm693_vm2, %v598_v38  ;;  %v931_v38 = vld [vmem:[#allocation3 + $0x91] sm:$0xff] }
  0x8a   : > { %792 = vrot.lane.b32.xlu1 %v727_v63, %s4695_s26  ;;  %798 = vrot.lane.b32.xlu0 %v730_v0, %s4695_s26  ;;  %v919_v63 = vld [vmem:[#allocation3 + $0x1] sm:$0xff] }
  0x8e   : > { %796 = vrot.lane.b32.xlu1 %v729_v1, %s4695_s26  ;;  %802 = vrot.lane.b32.xlu0 %v732_v2, %s4695_s26  ;;  %v757_v1 = vld [vmem:[#allocation2 + $0x171] sm:$0xff] }
  0x92   : > { %800 = vrot.lane.b32.xlu1 %v731_v3, %s4695_s26  ;;  %806 = vrot.lane.b32.xlu0 %v734_v4, %s4695_s26  ;;  %v921_v3 = vld [vmem:[#allocation3 + $0x19] sm:$0xff] }
  0x96   : > { %804 = vrot.lane.b32.xlu1 %v733_v5, %s4695_s26  ;;  %810 = vrot.lane.b32.xlu0 %v736_v6, %s4695_s26  ;;  %v920_v5 = vld [vmem:[#allocation3 + $0x9] sm:$0xff] }
  0x98   : > { %v600_v50 = vpop.permute.xlu0 %599 }
  0x99   : > { %695 = vst.msk [vmem:[#allocation4 + $0x8] sm:$0xff] %vm693_vm2, %v600_v50 }
  0x9a   : > { %808 = vrot.lane.b32.xlu1 %v735_v7, %s4695_s26  ;;  %814 = vrot.lane.b32.xlu0 %v738_v8, %s4695_s26  ;;  %v923_v7 = vld [vmem:[#allocation3 + $0x31] sm:$0xff] }
  0x9e   : > { %812 = vrot.lane.b32.xlu1 %v737_v9, %s4695_s26  ;;  %818 = vrot.lane.b32.xlu0 %v740_v10, %s4695_s26  ;;  %v922_v9 = vld [vmem:[#allocation3 + $0x21] sm:$0xff] }
  0xa2   : > { %816 = vrot.lane.b32.xlu1 %v739_v11, %s4695_s26  ;;  %822 = vrot.lane.b32.xlu0 %v742_v12, %s4695_s26  ;;  %v925_v11 = vld [vmem:[#allocation3 + $0x49] sm:$0xff] }
  0xa6   : > { %820 = vrot.lane.b32.xlu1 %v741_v14, %s4695_s26  ;;  %826 = vrot.lane.b32.xlu0 %v744_v16, %s4695_s26  ;;  %v924_v14 = vld [vmem:[#allocation3 + $0x39] sm:$0xff] }
  0xaa   : > { %824 = vrot.lane.b32.xlu1 %v743_v18, %s4695_s26  ;;  %830 = vrot.lane.b32.xlu0 %v746_v20, %s4695_s26  ;;  %v927_v18 = vld [vmem:[#allocation3 + $0x61] sm:$0xff] }
  0xae   : > { %828 = vrot.lane.b32.xlu1 %v745_v23, %s4695_s26  ;;  %834 = vrot.lane.b32.xlu0 %v748_v24, %s4695_s26  ;;  %v926_v23 = vld [vmem:[#allocation3 + $0x51] sm:$0xff] }
  0xb2   : > { %832 = vrot.lane.b32.xlu1 %v747_v26, %s4695_s26  ;;  %838 = vrot.lane.b32.xlu0 %v750_v29, %s4695_s26  ;;  %v929_v26 = vld [vmem:[#allocation3 + $0x79] sm:$0xff] }
  0xb6   : > { %836 = vrot.lane.b32.xlu1 %v749_v31, %s4695_s26  ;;  %842 = vrot.lane.b32.xlu0 %v752_v34, %s4695_s26  ;;  %v928_v31 = vld [vmem:[#allocation3 + $0x69] sm:$0xff] }
  0xba   : > { %840 = vrot.lane.b32.xlu1 %v751_v42, %s4695_s26  ;;  %846 = vrot.lane.b32.xlu0 %v754_v46, %s4695_s26  ;;  %v930_v46 = vld [vmem:[#allocation3 + $0x81] sm:$0xff] }
  0xbc   : > { %v602_v57 = vpop.permute.xlu1 %601  ;;  %v606_v60 = vpop.permute.xlu0 %605 }
  0xbd   : > { %696 = vst.msk [vmem:[#allocation4 + $0x10] sm:$0xff] %vm693_vm2, %v602_v57  ;;  %698 = vst.msk [vmem:[#allocation4 + $0x20] sm:$0xff] %vm693_vm2, %v606_v60 }
  0xbe   : > { %844 = vrot.lane.b32.xlu1 %v753_v54, %s4695_s26  ;;  %850 = vrot.lane.b32.xlu0 %v756_v59, %s4695_s26  ;;  %v933_v54 = vld [vmem:[#allocation3 + $0xa9] sm:$0xff]  ;;  %v932_v59 = vld [vmem:[#allocation3 + $0x99] sm:$0xff] }
  0xc0   : > { %v604_v62 = vpop.permute.xlu1 %603  ;;  %v610_v0 = vpop.permute.xlu0 %609 }
  0xc1   : > { %697 = vst.msk [vmem:[#allocation4 + $0x18] sm:$0xff] %vm693_vm2, %v604_v62  ;;  %700 = vst.msk [vmem:[#allocation4 + $0x30] sm:$0xff] %vm693_vm2, %v610_v0 }
  0xc2   : > { %848 = vrot.lane.b32.xlu1 %v755_v61, %s4695_s26  ;;  %983 = vrot.lane.b32.xlu0 %v919_v63, %s4696_s27  ;;  %v935_v61 = vld [vmem:[#allocation3 + $0xc1] sm:$0xff]  ;;  %v934_v63 = vld [vmem:[#allocation3 + $0xb1] sm:$0xff] }
  0xc4   : > { %v608_v2 = vpop.permute.xlu1 %607  ;;  %v614_v4 = vpop.permute.xlu0 %613 }
  0xc5   : > { %699 = vst.msk [vmem:[#allocation4 + $0x28] sm:$0xff] %vm693_vm2, %v608_v2  ;;  %702 = vst.msk [vmem:[#allocation4 + $0x40] sm:$0xff] %vm693_vm2, %v614_v4 }
  0xc6   : > { %852 = vrot.lane.b32.xlu1 %v757_v1, %s4695_s26  ;;  %987 = vrot.lane.b32.xlu0 %v921_v3, %s4696_s27  ;;  %v937_v1 = vld [vmem:[#allocation3 + $0xd9] sm:$0xff]  ;;  %v936_v3 = vld [vmem:[#allocation3 + $0xc9] sm:$0xff] }
  0xc8   : > { %v612_v6 = vpop.permute.xlu1 %611  ;;  %v618_v8 = vpop.permute.xlu0 %617 }
  0xc9   : > { %701 = vst.msk [vmem:[#allocation4 + $0x38] sm:$0xff] %vm693_vm2, %v612_v6  ;;  %704 = vst.msk [vmem:[#allocation4 + $0x50] sm:$0xff] %vm693_vm2, %v618_v8 }
  0xca   : > { %985 = vrot.lane.b32.xlu1 %v920_v5, %s4696_s27  ;;  %991 = vrot.lane.b32.xlu0 %v923_v7, %s4696_s27  ;;  %v939_v5 = vld [vmem:[#allocation3 + $0xf1] sm:$0xff]  ;;  %v938_v7 = vld [vmem:[#allocation3 + $0xe1] sm:$0xff] }
  0xcc   : > { %v616_v10 = vpop.permute.xlu1 %615  ;;  %v622_v12 = vpop.permute.xlu0 %621 }
  0xcd   : > { %703 = vst.msk [vmem:[#allocation4 + $0x48] sm:$0xff] %vm693_vm2, %v616_v10  ;;  %706 = vst.msk [vmem:[#allocation4 + $0x60] sm:$0xff] %vm693_vm2, %v622_v12 }
  0xce   : > { %989 = vrot.lane.b32.xlu1 %v922_v9, %s4696_s27  ;;  %995 = vrot.lane.b32.xlu0 %v925_v11, %s4696_s27  ;;  %v941_v9 = vld [vmem:[#allocation3 + $0x109] sm:$0xff]  ;;  %v940_v11 = vld [vmem:[#allocation3 + $0xf9] sm:$0xff] }
  0xd0   : > { %v620_v16 = vpop.permute.xlu1 %619  ;;  %v626_v20 = vpop.permute.xlu0 %625 }
  0xd1   : > { %705 = vst.msk [vmem:[#allocation4 + $0x58] sm:$0xff] %vm693_vm2, %v620_v16  ;;  %708 = vst.msk [vmem:[#allocation4 + $0x70] sm:$0xff] %vm693_vm2, %v626_v20 }
  0xd2   : > { %993 = vrot.lane.b32.xlu1 %v924_v14, %s4696_s27  ;;  %999 = vrot.lane.b32.xlu0 %v927_v18, %s4696_s27  ;;  %v943_v14 = vld [vmem:[#allocation3 + $0x121] sm:$0xff]  ;;  %v942_v18 = vld [vmem:[#allocation3 + $0x111] sm:$0xff] }
  0xd4   : > { %v624_v24 = vpop.permute.xlu1 %623  ;;  %v630_v29 = vpop.permute.xlu0 %629 }
  0xd5   : > { %707 = vst.msk [vmem:[#allocation4 + $0x68] sm:$0xff] %vm693_vm2, %v624_v24  ;;  %710 = vst.msk [vmem:[#allocation4 + $0x80] sm:$0xff] %vm693_vm2, %v630_v29 }
  0xd6   : > { %997 = vrot.lane.b32.xlu1 %v926_v23, %s4696_s27  ;;  %1003 = vrot.lane.b32.xlu0 %v929_v26, %s4696_s27  ;;  %v945_v23 = vld [vmem:[#allocation3 + $0x139] sm:$0xff]  ;;  %v944_v26 = vld [vmem:[#allocation3 + $0x129] sm:$0xff] }
  0xd8   : > { %v628_v34 = vpop.permute.xlu1 %627  ;;  %v634_v42 = vpop.permute.xlu0 %633 }
  0xd9   : > { %709 = vst.msk [vmem:[#allocation4 + $0x78] sm:$0xff] %vm693_vm2, %v628_v34  ;;  %712 = vst.msk [vmem:[#allocation4 + $0x90] sm:$0xff] %vm693_vm2, %v634_v42 }
  0xda   : > { %1001 = vrot.lane.b32.xlu1 %v928_v31, %s4696_s27  ;;  %1007 = vrot.lane.b32.xlu0 %v931_v38, %s4696_s27  ;;  %v947_v31 = vld [vmem:[#allocation3 + $0x151] sm:$0xff]  ;;  %v946_v38 = vld [vmem:[#allocation3 + $0x141] sm:$0xff] }
  0xdc   : > { %v632_v50 = vpop.permute.xlu1 %631  ;;  %v638_v57 = vpop.permute.xlu0 %637 }
  0xdd   : > { %711 = vst.msk [vmem:[#allocation4 + $0x88] sm:$0xff] %vm693_vm2, %v632_v50  ;;  %714 = vst.msk [vmem:[#allocation4 + $0xa0] sm:$0xff] %vm693_vm2, %v638_v57 }
  0xde   : > { %1005 = vrot.lane.b32.xlu1 %v930_v46, %s4696_s27  ;;  %1011 = vrot.lane.b32.xlu0 %v933_v54, %s4696_s27  ;;  %v949_v46 = vld [vmem:[#allocation3 + $0x169] sm:$0xff]  ;;  %v948_v54 = vld [vmem:[#allocation3 + $0x159] sm:$0xff] }
  0xe0   : > { %v636_v60 = vpop.permute.xlu1 %635  ;;  %v642_v62 = vpop.permute.xlu0 %641 }
  0xe1   : > { %713 = vst.msk [vmem:[#allocation4 + $0x98] sm:$0xff] %vm693_vm2, %v636_v60  ;;  %716 = vst.msk [vmem:[#allocation4 + $0xb0] sm:$0xff] %vm693_vm2, %v642_v62 }
  0xe2   : > { %1009 = vrot.lane.b32.xlu1 %v932_v59, %s4696_s27  ;;  %1015 = vrot.lane.b32.xlu0 %v935_v61, %s4696_s27  ;;  %v1112_v59 = vld [vmem:[#allocation2 + $0x2] sm:$0xff] }
  0xe3   : > { %v950_v61 = vld [vmem:[#allocation3 + $0x171] sm:$0xff] }
  0xe4   : > { %v640_v0 = vpop.permute.xlu1 %639  ;;  %v646_v2 = vpop.permute.xlu0 %645 }
  0xe5   : > { %715 = vst.msk [vmem:[#allocation4 + $0xa8] sm:$0xff] %vm693_vm2, %v640_v0  ;;  %718 = vst.msk [vmem:[#allocation4 + $0xc0] sm:$0xff] %vm693_vm2, %v646_v2 }
  0xe6   : > { %1013 = vrot.lane.b32.xlu1 %v934_v63, %s4696_s27  ;;  %1019 = vrot.lane.b32.xlu0 %v937_v1, %s4696_s27  ;;  %v1114_v63 = vld [vmem:[#allocation2 + $0x1a] sm:$0xff]  ;;  %v1113_v1 = vld [vmem:[#allocation2 + $0xa] sm:$0xff] }
  0xe8   : > { %v644_v4 = vpop.permute.xlu1 %643  ;;  %v650_v6 = vpop.permute.xlu0 %649 }
  0xe9   : > { %717 = vst.msk [vmem:[#allocation4 + $0xb8] sm:$0xff] %vm693_vm2, %v644_v4  ;;  %720 = vst.msk [vmem:[#allocation4 + $0xd0] sm:$0xff] %vm693_vm2, %v650_v6 }
  0xea   : > { %1017 = vrot.lane.b32.xlu1 %v936_v3, %s4696_s27  ;;  %1023 = vrot.lane.b32.xlu0 %v939_v5, %s4696_s27  ;;  %v1116_v3 = vld [vmem:[#allocation2 + $0x32] sm:$0xff]  ;;  %v1115_v5 = vld [vmem:[#allocation2 + $0x22] sm:$0xff] }
  0xec   : > { %v648_v8 = vpop.permute.xlu1 %647  ;;  %v654_v10 = vpop.permute.xlu0 %653 }
  0xed   : > { %719 = vst.msk [vmem:[#allocation4 + $0xc8] sm:$0xff] %vm693_vm2, %v648_v8  ;;  %722 = vst.msk [vmem:[#allocation4 + $0xe0] sm:$0xff] %vm693_vm2, %v654_v10 }
  0xee   : > { %1021 = vrot.lane.b32.xlu1 %v938_v7, %s4696_s27  ;;  %1027 = vrot.lane.b32.xlu0 %v941_v9, %s4696_s27  ;;  %v1118_v7 = vld [vmem:[#allocation2 + $0x4a] sm:$0xff]  ;;  %v1117_v9 = vld [vmem:[#allocation2 + $0x3a] sm:$0xff] }
  0xf0   : > { %v652_v12 = vpop.permute.xlu1 %651  ;;  %v658_v16 = vpop.permute.xlu0 %657 }
  0xf1   : > { %721 = vst.msk [vmem:[#allocation4 + $0xd8] sm:$0xff] %vm693_vm2, %v652_v12  ;;  %724 = vst.msk [vmem:[#allocation4 + $0xf0] sm:$0xff] %vm693_vm2, %v658_v16 }
  0xf2   : > { %1025 = vrot.lane.b32.xlu1 %v940_v11, %s4696_s27  ;;  %1031 = vrot.lane.b32.xlu0 %v943_v14, %s4696_s27  ;;  %v1120_v11 = vld [vmem:[#allocation2 + $0x62] sm:$0xff]  ;;  %v1119_v14 = vld [vmem:[#allocation2 + $0x52] sm:$0xff] }
  0xf4   : > { %v656_v20 = vpop.permute.xlu1 %655  ;;  %v791_v24 = vpop.permute.xlu0 %790 }
  0xf5   : > { %723 = vst.msk [vmem:[#allocation4 + $0xe8] sm:$0xff] %vm693_vm2, %v656_v20 }
  0xf6   : > { %1029 = vrot.lane.b32.xlu1 %v942_v18, %s4696_s27  ;;  %887 = vst.msk [vmem:[#allocation4] sm:$0xff] %vm886_vm3, %v791_v24  ;;  %1035 = vrot.lane.b32.xlu0 %v945_v23, %s4696_s27  ;;  %v1122_v18 = vld [vmem:[#allocation2 + $0x7a] sm:$0xff]  ;;  %v1121_v23 = vld [vmem:[#allocation2 + $0x6a] sm:$0xff] }
  0xf8   : > { %v660_v29 = vpop.permute.xlu1 %659  ;;  %v795_v34 = vpop.permute.xlu0 %794 }
  0xf9   : > { %725 = vst.msk [vmem:[#allocation4 + $0xf8] sm:$0xff] %vm693_vm2, %v660_v29  ;;  %vm3783_vm2 = vcmask 589344  }
  0xfa   : > { %1033 = vrot.lane.b32.xlu1 %v944_v26, %s4696_s27  ;;  %889 = vst.msk [vmem:[#allocation4 + $0x10] sm:$0xff] %vm886_vm3, %v795_v34  ;;  %1039 = vrot.lane.b32.xlu0 %v947_v31, %s4696_s27  ;;  %v1124_v26 = vld [vmem:[#allocation2 + $0x92] sm:$0xff]  ;;  %v1123_v31 = vld [vmem:[#allocation2 + $0x82] sm:$0xff] }
  0xfc   : > { %v793_v42 = vpop.permute.xlu1 %792  ;;  %v799_v50 = vpop.permute.xlu0 %798 }
  0xfd   : > { %888 = vst.msk [vmem:[#allocation4 + $0x8] sm:$0xff] %vm886_vm3, %v793_v42  ;;  %891 = vst.msk [vmem:[#allocation4 + $0x20] sm:$0xff] %vm886_vm3, %v799_v50 }
  0xfe   : > { %1037 = vrot.lane.b32.xlu1 %v946_v38, %s4696_s27  ;;  %1043 = vrot.lane.b32.xlu0 %v949_v46, %s4696_s27  ;;  %v1126_v38 = vld [vmem:[#allocation2 + $0xaa] sm:$0xff]  ;;  %v1125_v46 = vld [vmem:[#allocation2 + $0x9a] sm:$0xff] }
 0x100   : > { %v797_v57 = vpop.permute.xlu1 %796  ;;  %v803_v60 = vpop.permute.xlu0 %802 }
 0x101   : > { %890 = vst.msk [vmem:[#allocation4 + $0x18] sm:$0xff] %vm886_vm3, %v797_v57  ;;  %893 = vst.msk [vmem:[#allocation4 + $0x30] sm:$0xff] %vm886_vm3, %v803_v60 }
 0x102   : > { %1041 = vrot.lane.b32.xlu1 %v948_v54, %s4696_s27  ;;  %1176 = vrot.lane.b32.xlu0 %v1112_v59, %s4697_s28  ;;  %v1128_v54 = vld [vmem:[#allocation2 + $0xc2] sm:$0xff]  ;;  %v1127_v59 = vld [vmem:[#allocation2 + $0xb2] sm:$0xff] }
 0x104   : > { %v801_v62 = vpop.permute.xlu1 %800  ;;  %v807_v0 = vpop.permute.xlu0 %806 }
 0x105   : > { %892 = vst.msk [vmem:[#allocation4 + $0x28] sm:$0xff] %vm886_vm3, %v801_v62  ;;  %895 = vst.msk [vmem:[#allocation4 + $0x40] sm:$0xff] %vm886_vm3, %v807_v0 }
 0x106   : > { %1045 = vrot.lane.b32.xlu1 %v950_v61, %s4696_s27  ;;  %1180 = vrot.lane.b32.xlu0 %v1114_v63, %s4697_s28  ;;  %v1130_v61 = vld [vmem:[#allocation2 + $0xda] sm:$0xff]  ;;  %v1129_v63 = vld [vmem:[#allocation2 + $0xca] sm:$0xff]  ;;  %s4709_s27 = smov 32  }
 0x108   : > { %v805_v2 = vpop.permute.xlu1 %804  ;;  %v811_v4 = vpop.permute.xlu0 %810 }
 0x109   : > { %894 = vst.msk [vmem:[#allocation4 + $0x38] sm:$0xff] %vm886_vm3, %v805_v2  ;;  %897 = vst.msk [vmem:[#allocation4 + $0x50] sm:$0xff] %vm886_vm3, %v811_v4 }
 0x10a   : > { %1178 = vrot.lane.b32.xlu1 %v1113_v1, %s4697_s28  ;;  %1184 = vrot.lane.b32.xlu0 %v1116_v3, %s4697_s28  ;;  %v1132_v1 = vld [vmem:[#allocation2 + $0xf2] sm:$0xff]  ;;  %v1131_v3 = vld [vmem:[#allocation2 + $0xe2] sm:$0xff] }
 0x10c   : > { %v809_v6 = vpop.permute.xlu1 %808  ;;  %v815_v8 = vpop.permute.xlu0 %814 }
 0x10d   : > { %896 = vst.msk [vmem:[#allocation4 + $0x48] sm:$0xff] %vm886_vm3, %v809_v6  ;;  %899 = vst.msk [vmem:[#allocation4 + $0x60] sm:$0xff] %vm886_vm3, %v815_v8 }
 0x10e   : > { %1182 = vrot.lane.b32.xlu1 %v1115_v5, %s4697_s28  ;;  %1188 = vrot.lane.b32.xlu0 %v1118_v7, %s4697_s28  ;;  %v1134_v5 = vld [vmem:[#allocation2 + $0x10a] sm:$0xff]  ;;  %v1133_v7 = vld [vmem:[#allocation2 + $0xfa] sm:$0xff] }
 0x110   : > { %v813_v10 = vpop.permute.xlu1 %812  ;;  %v819_v12 = vpop.permute.xlu0 %818 }
 0x111   : > { %898 = vst.msk [vmem:[#allocation4 + $0x58] sm:$0xff] %vm886_vm3, %v813_v10  ;;  %901 = vst.msk [vmem:[#allocation4 + $0x70] sm:$0xff] %vm886_vm3, %v819_v12 }
 0x112   : > { %1186 = vrot.lane.b32.xlu1 %v1117_v9, %s4697_s28  ;;  %1192 = vrot.lane.b32.xlu0 %v1120_v11, %s4697_s28  ;;  %v1136_v9 = vld [vmem:[#allocation2 + $0x122] sm:$0xff]  ;;  %v1135_v11 = vld [vmem:[#allocation2 + $0x112] sm:$0xff] }
 0x114   : > { %v817_v16 = vpop.permute.xlu1 %816  ;;  %v823_v20 = vpop.permute.xlu0 %822 }
 0x115   : > { %900 = vst.msk [vmem:[#allocation4 + $0x68] sm:$0xff] %vm886_vm3, %v817_v16  ;;  %903 = vst.msk [vmem:[#allocation4 + $0x80] sm:$0xff] %vm886_vm3, %v823_v20  ;;  %v369_v20 = vld [vmem:[%s5042_s25 + $0xf0] sm:$0xff] }
 0x116   : > { %1190 = vrot.lane.b32.xlu1 %v1119_v14, %s4697_s28  ;;  %1196 = vrot.lane.b32.xlu0 %v1122_v18, %s4697_s28  ;;  %v1138_v14 = vld [vmem:[#allocation2 + $0x13a] sm:$0xff]  ;;  %v1137_v18 = vld [vmem:[#allocation2 + $0x12a] sm:$0xff]  ;;  %402 = vst.msk [vmem:[#allocation2 + $0x181] sm:$0xff] %vm229_vm0, %v369_v20 }
 0x118   : > { %v821_v24 = vpop.permute.xlu1 %820  ;;  %v827_v29 = vpop.permute.xlu0 %826 }
 0x119   : > { %902 = vst.msk [vmem:[#allocation4 + $0x78] sm:$0xff] %vm886_vm3, %v821_v24  ;;  %905 = vst.msk [vmem:[#allocation4 + $0x90] sm:$0xff] %vm886_vm3, %v827_v29  ;;  %v1140_v24 = vld [vmem:[#allocation2 + $0x152] sm:$0xff]  ;;  %v1139_v29 = vld [vmem:[#allocation2 + $0x142] sm:$0xff] }
 0x11a   : > { %1194 = vrot.lane.b32.xlu1 %v1121_v23, %s4697_s28  ;;  %1200 = vrot.lane.b32.xlu0 %v1124_v26, %s4697_s28 }
 0x11c   : > { %v825_v34 = vpop.permute.xlu1 %824  ;;  %v831_v42 = vpop.permute.xlu0 %830 }
 0x11d   : > { %904 = vst.msk [vmem:[#allocation4 + $0x88] sm:$0xff] %vm886_vm3, %v825_v34  ;;  %907 = vst.msk [vmem:[#allocation4 + $0xa0] sm:$0xff] %vm886_vm3, %v831_v42  ;;  %v1142_v34 = vld [vmem:[#allocation2 + $0x16a] sm:$0xff] }
 0x11e   : > { %1198 = vrot.lane.b32.xlu1 %v1123_v31, %s4697_s28  ;;  %1204 = vrot.lane.b32.xlu0 %v1126_v38, %s4697_s28  ;;  %v370_v38 = vld [vmem:[%s5042_s25 + $0xf8] sm:$0xff] }
 0x11f   : > { %403 = vst.msk [vmem:[#allocation2 + $0x189] sm:$0xff] %vm229_vm0, %v370_v38  ;;  %v1318_v38 = vld [vmem:[#allocation3 + $0x9a] sm:$0xff] }
 0x120   : > { %v829_v50 = vpop.permute.xlu1 %828  ;;  %v835_v57 = vpop.permute.xlu0 %834 }
 0x121   : > { %906 = vst.msk [vmem:[#allocation4 + $0x98] sm:$0xff] %vm886_vm3, %v829_v50  ;;  %909 = vst.msk [vmem:[#allocation4 + $0xb0] sm:$0xff] %vm886_vm3, %v835_v57 }
 0x122   : > { %1202 = vrot.lane.b32.xlu1 %v1125_v46, %s4697_s28  ;;  %1208 = vrot.lane.b32.xlu0 %v1128_v54, %s4697_s28  ;;  %v1141_v46 = vld [vmem:[#allocation2 + $0x15a] sm:$0xff]  ;;  %v1305_v54 = vld [vmem:[#allocation3 + $0x2] sm:$0xff] }
 0x124   : > { %v833_v60 = vpop.permute.xlu1 %832  ;;  %v839_v62 = vpop.permute.xlu0 %838 }
 0x125   : > { %908 = vst.msk [vmem:[#allocation4 + $0xa8] sm:$0xff] %vm886_vm3, %v833_v60  ;;  %911 = vst.msk [vmem:[#allocation4 + $0xc0] sm:$0xff] %vm886_vm3, %v839_v62 }
 0x126   : > { %1206 = vrot.lane.b32.xlu1 %v1127_v59, %s4697_s28  ;;  %1212 = vrot.lane.b32.xlu0 %v1130_v61, %s4697_s28  ;;  %v1143_v59 = vld [vmem:[#allocation2 + $0x172] sm:$0xff]  ;;  %v1307_v61 = vld [vmem:[#allocation3 + $0x1a] sm:$0xff] }
 0x128   : > { %v837_v0 = vpop.permute.xlu1 %836  ;;  %v843_v2 = vpop.permute.xlu0 %842 }
 0x129   : > { %910 = vst.msk [vmem:[#allocation4 + $0xb8] sm:$0xff] %vm886_vm3, %v837_v0  ;;  %913 = vst.msk [vmem:[#allocation4 + $0xd0] sm:$0xff] %vm886_vm3, %v843_v2 }
 0x12a   : > { %1210 = vrot.lane.b32.xlu1 %v1129_v63, %s4697_s28  ;;  %1216 = vrot.lane.b32.xlu0 %v1132_v1, %s4697_s28  ;;  %v1306_v63 = vld [vmem:[#allocation3 + $0xa] sm:$0xff]  ;;  %v1309_v1 = vld [vmem:[#allocation3 + $0x32] sm:$0xff] }
 0x12c   : > { %v841_v4 = vpop.permute.xlu1 %840  ;;  %v847_v6 = vpop.permute.xlu0 %846 }
 0x12d   : > { %912 = vst.msk [vmem:[#allocation4 + $0xc8] sm:$0xff] %vm886_vm3, %v841_v4  ;;  %915 = vst.msk [vmem:[#allocation4 + $0xe0] sm:$0xff] %vm886_vm3, %v847_v6 }
 0x12e   : > { %1214 = vrot.lane.b32.xlu1 %v1131_v3, %s4697_s28  ;;  %1220 = vrot.lane.b32.xlu0 %v1134_v5, %s4697_s28  ;;  %v1308_v3 = vld [vmem:[#allocation3 + $0x22] sm:$0xff]  ;;  %v1311_v5 = vld [vmem:[#allocation3 + $0x4a] sm:$0xff] }
 0x130   : > { %v845_v8 = vpop.permute.xlu1 %844  ;;  %v851_v10 = vpop.permute.xlu0 %850 }
 0x131   : > { %914 = vst.msk [vmem:[#allocation4 + $0xd8] sm:$0xff] %vm886_vm3, %v845_v8  ;;  %917 = vst.msk [vmem:[#allocation4 + $0xf0] sm:$0xff] %vm886_vm3, %v851_v10 }
 0x132   : > { %1218 = vrot.lane.b32.xlu1 %v1133_v7, %s4697_s28  ;;  %1224 = vrot.lane.b32.xlu0 %v1136_v9, %s4697_s28  ;;  %v1310_v7 = vld [vmem:[#allocation3 + $0x3a] sm:$0xff]  ;;  %v1313_v9 = vld [vmem:[#allocation3 + $0x62] sm:$0xff] }
 0x134   : > { %v849_v12 = vpop.permute.xlu1 %848  ;;  %v984_v16 = vpop.permute.xlu0 %983 }
 0x135   : > { %916 = vst.msk [vmem:[#allocation4 + $0xe8] sm:$0xff] %vm886_vm3, %v849_v12 }
 0x136   : > { %1222 = vrot.lane.b32.xlu1 %v1135_v11, %s4697_s28  ;;  %1080 = vst.msk [vmem:[#allocation4] sm:$0xff] %vm1079_vm4, %v984_v16  ;;  %1228 = vrot.lane.b32.xlu0 %v1138_v14, %s4697_s28  ;;  %v1312_v11 = vld [vmem:[#allocation3 + $0x52] sm:$0xff]  ;;  %v1315_v14 = vld [vmem:[#allocation3 + $0x7a] sm:$0xff] }
 0x138   : > { %v853_v23 = vpop.permute.xlu1 %852  ;;  %v988_v26 = vpop.permute.xlu0 %987 }
 0x139   : > { %918 = vst.msk [vmem:[#allocation4 + $0xf8] sm:$0xff] %vm886_vm3, %v853_v23  ;;  %v1317_v23 = vld [vmem:[#allocation3 + $0x92] sm:$0xff]  ;;  %vm3857_vm3 = vcmask 588800  }
 0x13a   : > { %1226 = vrot.lane.b32.xlu1 %v1137_v18, %s4697_s28  ;;  %1082 = vst.msk [vmem:[#allocation4 + $0x10] sm:$0xff] %vm1079_vm4, %v988_v26  ;;  %1232 = vrot.lane.b32.xlu0 %v1140_v24, %s4697_s28  ;;  %v1314_v18 = vld [vmem:[#allocation3 + $0x6a] sm:$0xff]  ;;  %v1316_v26 = vld [vmem:[#allocation3 + $0x82] sm:$0xff] }
 0x13c   : > { %v986_v31 = vpop.permute.xlu1 %985  ;;  %v992_v42 = vpop.permute.xlu0 %991 }
 0x13d   : > { %1081 = vst.msk [vmem:[#allocation4 + $0x8] sm:$0xff] %vm1079_vm4, %v986_v31  ;;  %1084 = vst.msk [vmem:[#allocation4 + $0x20] sm:$0xff] %vm1079_vm4, %v992_v42  ;;  %v1319_v31 = vld [vmem:[#allocation3 + $0xaa] sm:$0xff] }
 0x13e   : > { %1230 = vrot.lane.b32.xlu1 %v1139_v29, %s4697_s28  ;;  %1236 = vrot.lane.b32.xlu0 %v1142_v34, %s4697_s28 }
 0x140   : > { %v990_v50 = vpop.permute.xlu1 %989  ;;  %v996_v57 = vpop.permute.xlu0 %995 }
 0x141   : > { %1083 = vst.msk [vmem:[#allocation4 + $0x18] sm:$0xff] %vm1079_vm4, %v990_v50  ;;  %1086 = vst.msk [vmem:[#allocation4 + $0x30] sm:$0xff] %vm1079_vm4, %v996_v57 }
 0x142   : > { %1234 = vrot.lane.b32.xlu1 %v1141_v46, %s4697_s28  ;;  %1369 = vrot.lane.b32.xlu0 %v1305_v54, %s4698_s29  ;;  %v1321_v46 = vld [vmem:[#allocation3 + $0xc2] sm:$0xff]  ;;  %v1320_v54 = vld [vmem:[#allocation3 + $0xb2] sm:$0xff] }
 0x144   : > { %v994_v60 = vpop.permute.xlu1 %993  ;;  %v1000_v62 = vpop.permute.xlu0 %999 }
 0x145   : > { %1085 = vst.msk [vmem:[#allocation4 + $0x28] sm:$0xff] %vm1079_vm4, %v994_v60  ;;  %1088 = vst.msk [vmem:[#allocation4 + $0x40] sm:$0xff] %vm1079_vm4, %v1000_v62 }
 0x146   : > { %1238 = vrot.lane.b32.xlu1 %v1143_v59, %s4697_s28  ;;  %1373 = vrot.lane.b32.xlu0 %v1307_v61, %s4698_s29  ;;  %v1323_v59 = vld [vmem:[#allocation3 + $0xda] sm:$0xff]  ;;  %v1322_v61 = vld [vmem:[#allocation3 + $0xca] sm:$0xff] }
 0x148   : > { %v998_v0 = vpop.permute.xlu1 %997  ;;  %v1004_v2 = vpop.permute.xlu0 %1003 }
 0x149   : > { %1087 = vst.msk [vmem:[#allocation4 + $0x38] sm:$0xff] %vm1079_vm4, %v998_v0  ;;  %1090 = vst.msk [vmem:[#allocation4 + $0x50] sm:$0xff] %vm1079_vm4, %v1004_v2 }
 0x14a   : > { %1371 = vrot.lane.b32.xlu1 %v1306_v63, %s4698_s29  ;;  %1377 = vrot.lane.b32.xlu0 %v1309_v1, %s4698_s29  ;;  %v1325_v63 = vld [vmem:[#allocation3 + $0xf2] sm:$0xff]  ;;  %v1324_v1 = vld [vmem:[#allocation3 + $0xe2] sm:$0xff] }
 0x14c   : > { %v1002_v4 = vpop.permute.xlu1 %1001  ;;  %v1008_v6 = vpop.permute.xlu0 %1007 }
 0x14d   : > { %1089 = vst.msk [vmem:[#allocation4 + $0x48] sm:$0xff] %vm1079_vm4, %v1002_v4  ;;  %1092 = vst.msk [vmem:[#allocation4 + $0x60] sm:$0xff] %vm1079_vm4, %v1008_v6 }
 0x14e   : > { %1375 = vrot.lane.b32.xlu1 %v1308_v3, %s4698_s29  ;;  %1381 = vrot.lane.b32.xlu0 %v1311_v5, %s4698_s29  ;;  %v1327_v3 = vld [vmem:[#allocation3 + $0x10a] sm:$0xff]  ;;  %v1326_v5 = vld [vmem:[#allocation3 + $0xfa] sm:$0xff] }
 0x150   : > { %v1006_v8 = vpop.permute.xlu1 %1005  ;;  %v1012_v10 = vpop.permute.xlu0 %1011 }
 0x151   : > { %1091 = vst.msk [vmem:[#allocation4 + $0x58] sm:$0xff] %vm1079_vm4, %v1006_v8  ;;  %1094 = vst.msk [vmem:[#allocation4 + $0x70] sm:$0xff] %vm1079_vm4, %v1012_v10 }
 0x152   : > { %1379 = vrot.lane.b32.xlu1 %v1310_v7, %s4698_s29  ;;  %1385 = vrot.lane.b32.xlu0 %v1313_v9, %s4698_s29  ;;  %v1329_v7 = vld [vmem:[#allocation3 + $0x122] sm:$0xff]  ;;  %v1328_v9 = vld [vmem:[#allocation3 + $0x112] sm:$0xff] }
 0x154   : > { %v1010_v12 = vpop.permute.xlu1 %1009  ;;  %v1016_v16 = vpop.permute.xlu0 %1015 }
 0x155   : > { %1093 = vst.msk [vmem:[#allocation4 + $0x68] sm:$0xff] %vm1079_vm4, %v1010_v12  ;;  %1096 = vst.msk [vmem:[#allocation4 + $0x80] sm:$0xff] %vm1079_vm4, %v1016_v16  ;;  %v434_v16 = vld [vmem:[%s4979_s21 + $0xf0] sm:$0xff] }
 0x156   : > { %1383 = vrot.lane.b32.xlu1 %v1312_v11, %s4698_s29  ;;  %1389 = vrot.lane.b32.xlu0 %v1315_v14, %s4698_s29  ;;  %v1331_v11 = vld [vmem:[#allocation3 + $0x13a] sm:$0xff]  ;;  %v1330_v14 = vld [vmem:[#allocation3 + $0x12a] sm:$0xff]  ;;  %467 = vst.msk [vmem:[#allocation3 + $0x181] sm:$0xff] %vm229_vm0, %v434_v16 }
 0x158   : > { %v1014_v20 = vpop.permute.xlu1 %1013  ;;  %v1020_v24 = vpop.permute.xlu0 %1019 }
 0x159   : > { %1095 = vst.msk [vmem:[#allocation4 + $0x78] sm:$0xff] %vm1079_vm4, %v1014_v20  ;;  %1098 = vst.msk [vmem:[#allocation4 + $0x90] sm:$0xff] %vm1079_vm4, %v1020_v24  ;;  %v1333_v20 = vld [vmem:[#allocation3 + $0x152] sm:$0xff]  ;;  %v1332_v24 = vld [vmem:[#allocation3 + $0x142] sm:$0xff] }
 0x15a   : > { %1387 = vrot.lane.b32.xlu1 %v1314_v18, %s4698_s29  ;;  %1393 = vrot.lane.b32.xlu0 %v1317_v23, %s4698_s29 }
 0x15c   : > { %v1018_v29 = vpop.permute.xlu1 %1017  ;;  %v1024_v34 = vpop.permute.xlu0 %1023 }
 0x15d   : > { %1097 = vst.msk [vmem:[#allocation4 + $0x88] sm:$0xff] %vm1079_vm4, %v1018_v29  ;;  %1100 = vst.msk [vmem:[#allocation4 + $0xa0] sm:$0xff] %vm1079_vm4, %v1024_v34  ;;  %v1335_v29 = vld [vmem:[#allocation3 + $0x16a] sm:$0xff] }
 0x15e   : > { %1391 = vrot.lane.b32.xlu1 %v1316_v26, %s4698_s29  ;;  %1397 = vrot.lane.b32.xlu0 %v1319_v31, %s4698_s29  ;;  %v435_v31 = vld [vmem:[%s4979_s21 + $0xf8] sm:$0xff] }
 0x15f   : > { %468 = vst.msk [vmem:[#allocation3 + $0x189] sm:$0xff] %vm229_vm0, %v435_v31  ;;  %v1702_v31 = vld [vmem:[#allocation3 + $0x98] sm:$0xff]  ;;  %vm3397_vm0 = vcmask 556544  }
 0x160   : > { %v1022_v42 = vpop.permute.xlu1 %1021  ;;  %v1028_v50 = vpop.permute.xlu0 %1027 }
 0x161   : > { %1099 = vst.msk [vmem:[#allocation4 + $0x98] sm:$0xff] %vm1079_vm4, %v1022_v42  ;;  %1102 = vst.msk [vmem:[#allocation4 + $0xb0] sm:$0xff] %vm1079_vm4, %v1028_v50  ;;  %v1336_v50 = vld [vmem:[#allocation3 + $0x172] sm:$0xff] }
 0x162   : > { %1395 = vrot.lane.b32.xlu1 %v1318_v38, %s4698_s29  ;;  %1401 = vrot.lane.b32.xlu0 %v1321_v46, %s4698_s29  ;;  %v1334_v38 = vld [vmem:[#allocation3 + $0x15a] sm:$0xff] }
 0x164   : > { %v1026_v57 = vpop.permute.xlu1 %1025  ;;  %v1032_v60 = vpop.permute.xlu0 %1031 }
 0x165   : > { %1101 = vst.msk [vmem:[#allocation4 + $0xa8] sm:$0xff] %vm1079_vm4, %v1026_v57  ;;  %1104 = vst.msk [vmem:[#allocation4 + $0xc0] sm:$0xff] %vm1079_vm4, %v1032_v60 }
 0x166   : > { %1399 = vrot.lane.b32.xlu1 %v1320_v54, %s4698_s29  ;;  %1405 = vrot.lane.b32.xlu0 %v1323_v59, %s4698_s29 }
 0x168   : > { %v1030_v62 = vpop.permute.xlu1 %1029  ;;  %v1036_v0 = vpop.permute.xlu0 %1035 }
 0x169   : > { %1103 = vst.msk [vmem:[#allocation4 + $0xb8] sm:$0xff] %vm1079_vm4, %v1030_v62  ;;  %1106 = vst.msk [vmem:[#allocation4 + $0xd0] sm:$0xff] %vm1079_vm4, %v1036_v0 }
 0x16a   : > { %1403 = vrot.lane.b32.xlu1 %v1322_v61, %s4698_s29  ;;  %1409 = vrot.lane.b32.xlu0 %v1325_v63, %s4698_s29 }
 0x16c   : > { %v1034_v2 = vpop.permute.xlu1 %1033  ;;  %v1040_v4 = vpop.permute.xlu0 %1039 }
 0x16d   : > { %1105 = vst.msk [vmem:[#allocation4 + $0xc8] sm:$0xff] %vm1079_vm4, %v1034_v2  ;;  %1108 = vst.msk [vmem:[#allocation4 + $0xe0] sm:$0xff] %vm1079_vm4, %v1040_v4  ;;  %v1692_v2 = vld [vmem:[#allocation3 + $0x20] sm:$0xff] }
 0x16e   : > { %1407 = vrot.lane.b32.xlu1 %v1324_v1, %s4698_s29  ;;  %1413 = vrot.lane.b32.xlu0 %v1327_v3, %s4698_s29 }
 0x170   : > { %v1038_v6 = vpop.permute.xlu1 %1037  ;;  %v1044_v8 = vpop.permute.xlu0 %1043 }
 0x171   : > { %1107 = vst.msk [vmem:[#allocation4 + $0xd8] sm:$0xff] %vm1079_vm4, %v1038_v6  ;;  %1110 = vst.msk [vmem:[#allocation4 + $0xf0] sm:$0xff] %vm1079_vm4, %v1044_v8 }
 0x172   : > { %1411 = vrot.lane.b32.xlu1 %v1326_v5, %s4698_s29  ;;  %1417 = vrot.lane.b32.xlu0 %v1329_v7, %s4698_s29  ;;  %v1694_v5 = vld [vmem:[#allocation3 + $0x38] sm:$0xff]  ;;  %v1697_v7 = vld [vmem:[#allocation3 + $0x60] sm:$0xff] }
 0x174   : > { %v1042_v10 = vpop.permute.xlu1 %1041  ;;  %v1177_v12 = vpop.permute.xlu0 %1176 }
 0x175   : > { %1109 = vst.msk [vmem:[#allocation4 + $0xe8] sm:$0xff] %vm1079_vm4, %v1042_v10 }
 0x176   : > { %1415 = vrot.lane.b32.xlu1 %v1328_v9, %s4698_s29  ;;  %1273 = vst.msk [vmem:[#allocation4] sm:$0xff] %vm1272_vm5, %v1177_v12  ;;  %1421 = vrot.lane.b32.xlu0 %v1331_v11, %s4698_s29  ;;  %v1696_v9 = vld [vmem:[#allocation3 + $0x50] sm:$0xff]  ;;  %v1699_v11 = vld [vmem:[#allocation3 + $0x78] sm:$0xff] }
 0x178   : > { %v1046_v18 = vpop.permute.xlu1 %1045  ;;  %v1181_v23 = vpop.permute.xlu0 %1180 }
 0x179   : > { %1111 = vst.msk [vmem:[#allocation4 + $0xf8] sm:$0xff] %vm1079_vm4, %v1046_v18  ;;  %v1701_v18 = vld [vmem:[#allocation3 + $0x90] sm:$0xff]  ;;  %vm4179_vm4 = vcmask 64512  }
 0x17a   : > { %1419 = vrot.lane.b32.xlu1 %v1330_v14, %s4698_s29  ;;  %1275 = vst.msk [vmem:[#allocation4 + $0x10] sm:$0xff] %vm1272_vm5, %v1181_v23  ;;  %1425 = vrot.lane.b32.xlu0 %v1333_v20, %s4698_s29  ;;  %v1698_v14 = vld [vmem:[#allocation3 + $0x68] sm:$0xff]  ;;  %v1700_v23 = vld [vmem:[#allocation3 + $0x80] sm:$0xff] }
 0x17c   : > { %v1179_v26 = vpop.permute.xlu1 %1178  ;;  %v1185_v34 = vpop.permute.xlu0 %1184 }
 0x17d   : > { %1274 = vst.msk [vmem:[#allocation4 + $0x8] sm:$0xff] %vm1272_vm5, %v1179_v26  ;;  %1277 = vst.msk [vmem:[#allocation4 + $0x20] sm:$0xff] %vm1272_vm5, %v1185_v34  ;;  %v1703_v26 = vld [vmem:[#allocation3 + $0xa8] sm:$0xff] }
 0x17e   : > { %1423 = vrot.lane.b32.xlu1 %v1332_v24, %s4698_s29  ;;  %1429 = vrot.lane.b32.xlu0 %v1335_v29, %s4698_s29 }
 0x180   : > { %v1183_v42 = vpop.permute.xlu1 %1182  ;;  %v1189_v46 = vpop.permute.xlu0 %1188 }
 0x181   : > { %1276 = vst.msk [vmem:[#allocation4 + $0x18] sm:$0xff] %vm1272_vm5, %v1183_v42  ;;  %1279 = vst.msk [vmem:[#allocation4 + $0x30] sm:$0xff] %vm1272_vm5, %v1189_v46  ;;  %v1704_v46 = vld [vmem:[#allocation3 + $0xb0] sm:$0xff] }
 0x182   : > { %1427 = vrot.lane.b32.xlu1 %v1334_v38, %s4698_s29  ;;  %1562 = vrot.lane.b32.xlu0 %v5114_v13, %s4699_s30  ;;  %v1705_v38 = vld [vmem:[#allocation3 + $0xc0] sm:$0xff] }
 0x184   : > { %v1187_v54 = vpop.permute.xlu1 %1186  ;;  %v1193_v57 = vpop.permute.xlu0 %1192 }
 0x185   : > { %1278 = vst.msk [vmem:[#allocation4 + $0x28] sm:$0xff] %vm1272_vm5, %v1187_v54  ;;  %1281 = vst.msk [vmem:[#allocation4 + $0x40] sm:$0xff] %vm1272_vm5, %v1193_v57  ;;  %v1707_v54 = vld [vmem:[#allocation3 + $0xd8] sm:$0xff] }
 0x186   : > { %1431 = vrot.lane.b32.xlu1 %v1336_v50, %s4698_s29  ;;  %1566 = vrot.lane.b32.xlu0 %v5122_v15, %s4699_s30 }
 0x188   : > { %v1191_v59 = vpop.permute.xlu1 %1190  ;;  %v1197_v60 = vpop.permute.xlu0 %1196 }
 0x189   : > { %1280 = vst.msk [vmem:[#allocation4 + $0x38] sm:$0xff] %vm1272_vm5, %v1191_v59  ;;  %1283 = vst.msk [vmem:[#allocation4 + $0x50] sm:$0xff] %vm1272_vm5, %v1197_v60  ;;  %v1706_v59 = vld [vmem:[#allocation3 + $0xc8] sm:$0xff] }
 0x18a   : > { %1564 = vrot.lane.b32.xlu1 %v5125_v17, %s4699_s30  ;;  %1570 = vrot.lane.b32.xlu0 %v5133_v19, %s4699_s30 }
 0x18c   : > { %v1195_v13 = vpop.permute.xlu1 %1194  ;;  %v1201_v61 = vpop.permute.xlu0 %1200 }
 0x18d   : > { %1282 = vst.msk [vmem:[#allocation4 + $0x48] sm:$0xff] %vm1272_vm5, %v1195_v13  ;;  %1285 = vst.msk [vmem:[#allocation4 + $0x60] sm:$0xff] %vm1272_vm5, %v1201_v61  ;;  %v1709_v13 = vld [vmem:[#allocation3 + $0xf0] sm:$0xff] }
 0x18e   : > { %1568 = vrot.lane.b32.xlu1 %v5141_v21, %s4699_s30  ;;  %1574 = vrot.lane.b32.xlu0 %v5143_v22, %s4699_s30 }
 0x190   : > { %v1199_v15 = vpop.permute.xlu1 %1198  ;;  %v1205_v17 = vpop.permute.xlu0 %1204 }
 0x191   : > { %1284 = vst.msk [vmem:[#allocation4 + $0x58] sm:$0xff] %vm1272_vm5, %v1199_v15  ;;  %1287 = vst.msk [vmem:[#allocation4 + $0x70] sm:$0xff] %vm1272_vm5, %v1205_v17  ;;  %v1708_v15 = vld [vmem:[#allocation3 + $0xe0] sm:$0xff] }
 0x192   : > { %1572 = vrot.lane.b32.xlu1 %v5151_v25, %s4699_s30  ;;  %1578 = vrot.lane.b32.xlu0 %v5156_v27, %s4699_s30 }
 0x194   : > { %v1203_v19 = vpop.permute.xlu1 %1202  ;;  %v1209_v21 = vpop.permute.xlu0 %1208 }
 0x195   : > { %1286 = vst.msk [vmem:[#allocation4 + $0x68] sm:$0xff] %vm1272_vm5, %v1203_v19  ;;  %1289 = vst.msk [vmem:[#allocation4 + $0x80] sm:$0xff] %vm1272_vm5, %v1209_v21  ;;  %v1711_v19 = vld [vmem:[#allocation3 + $0x108] sm:$0xff] }
 0x196   : > { %1576 = vrot.lane.b32.xlu1 %v5161_v28, %s4699_s30  ;;  %1582 = vrot.lane.b32.xlu0 %v5166_v30, %s4699_s30 }
 0x198   : > { %v1207_v22 = vpop.permute.xlu1 %1206  ;;  %v1213_v25 = vpop.permute.xlu0 %1212 }
 0x199   : > { %1288 = vst.msk [vmem:[#allocation4 + $0x78] sm:$0xff] %vm1272_vm5, %v1207_v22  ;;  %1291 = vst.msk [vmem:[#allocation4 + $0x90] sm:$0xff] %vm1272_vm5, %v1213_v25  ;;  %v1710_v22 = vld [vmem:[#allocation3 + $0xf8] sm:$0xff] }
 0x19a   : > { %1580 = vrot.lane.b32.xlu1 %v5170_v32, %s4699_s30  ;;  %1586 = vrot.lane.b32.xlu0 %v5175_v33, %s4699_s30 }
 0x19c   : > { %v1211_v27 = vpop.permute.xlu1 %1210  ;;  %v1217_v28 = vpop.permute.xlu0 %1216 }
 0x19d   : > { %1290 = vst.msk [vmem:[#allocation4 + $0x88] sm:$0xff] %vm1272_vm5, %v1211_v27  ;;  %1293 = vst.msk [vmem:[#allocation4 + $0xa0] sm:$0xff] %vm1272_vm5, %v1217_v28  ;;  %v1713_v27 = vld [vmem:[#allocation3 + $0x120] sm:$0xff] }
 0x19e   : > { %1584 = vrot.lane.b32.xlu1 %v5179_v35, %s4699_s30  ;;  %1590 = vrot.lane.b32.xlu0 %v5181_v36, %s4699_s30 }
 0x1a0   : > { %v1215_v30 = vpop.permute.xlu1 %1214  ;;  %v1221_v32 = vpop.permute.xlu0 %1220 }
 0x1a1   : > { %1292 = vst.msk [vmem:[#allocation4 + $0x98] sm:$0xff] %vm1272_vm5, %v1215_v30  ;;  %1295 = vst.msk [vmem:[#allocation4 + $0xb0] sm:$0xff] %vm1272_vm5, %v1221_v32  ;;  %v1712_v30 = vld [vmem:[#allocation3 + $0x110] sm:$0xff] }
 0x1a2   : > { %1588 = vrot.lane.b32.xlu1 %v5188_v37, %s4699_s30  ;;  %1594 = vrot.lane.b32.xlu0 %v5192_v39, %s4699_s30 }
 0x1a4   : > { %v1219_v33 = vpop.permute.xlu1 %1218  ;;  %v1225_v35 = vpop.permute.xlu0 %1224 }
 0x1a5   : > { %1294 = vst.msk [vmem:[#allocation4 + $0xa8] sm:$0xff] %vm1272_vm5, %v1219_v33  ;;  %1297 = vst.msk [vmem:[#allocation4 + $0xc0] sm:$0xff] %vm1272_vm5, %v1225_v35  ;;  %v1715_v33 = vld [vmem:[#allocation3 + $0x138] sm:$0xff] }
 0x1a6   : > { %1592 = vrot.lane.b32.xlu1 %v5197_v40, %s4699_s30  ;;  %1598 = vrot.lane.b32.xlu0 %v5199_v41, %s4699_s30 }
 0x1a8   : > { %v1223_v36 = vpop.permute.xlu1 %1222  ;;  %v1229_v37 = vpop.permute.xlu0 %1228 }
 0x1a9   : > { %1296 = vst.msk [vmem:[#allocation4 + $0xb8] sm:$0xff] %vm1272_vm5, %v1223_v36  ;;  %1299 = vst.msk [vmem:[#allocation4 + $0xd0] sm:$0xff] %vm1272_vm5, %v1229_v37  ;;  %v1714_v36 = vld [vmem:[#allocation3 + $0x128] sm:$0xff] }
 0x1aa   : > { %1596 = vrot.lane.b32.xlu1 %v5205_v43, %s4699_s30  ;;  %1602 = vrot.lane.b32.xlu0 %v5210_v44, %s4699_s30 }
 0x1ac   : > { %v1227_v39 = vpop.permute.xlu1 %1226  ;;  %v1233_v40 = vpop.permute.xlu0 %1232 }
 0x1ad   : > { %1298 = vst.msk [vmem:[#allocation4 + $0xc8] sm:$0xff] %vm1272_vm5, %v1227_v39  ;;  %1301 = vst.msk [vmem:[#allocation4 + $0xe0] sm:$0xff] %vm1272_vm5, %v1233_v40  ;;  %v1717_v39 = vld [vmem:[#allocation3 + $0x150] sm:$0xff] }
 0x1ae   : > { %1600 = vrot.lane.b32.xlu1 %v5212_v45, %s4699_s30  ;;  %1606 = vrot.lane.b32.xlu0 %v5218_v47, %s4699_s30 }
 0x1b0   : > { %v1231_v41 = vpop.permute.xlu1 %1230  ;;  %v1237_v43 = vpop.permute.xlu0 %1236 }
 0x1b1   : > { %1300 = vst.msk [vmem:[#allocation4 + $0xd8] sm:$0xff] %vm1272_vm5, %v1231_v41  ;;  %1303 = vst.msk [vmem:[#allocation4 + $0xf0] sm:$0xff] %vm1272_vm5, %v1237_v43  ;;  %v1716_v41 = vld [vmem:[#allocation3 + $0x140] sm:$0xff] }
 0x1b2   : > { %1604 = vrot.lane.b32.xlu1 %v5223_v48, %s4699_s30  ;;  %1610 = vrot.lane.b32.xlu0 %v5225_v49, %s4699_s30 }
 0x1b4   : > { %v1235_v44 = vpop.permute.xlu1 %1234  ;;  %v1370_v45 = vpop.permute.xlu0 %1369 }
 0x1b5   : > { %1302 = vst.msk [vmem:[#allocation4 + $0xe8] sm:$0xff] %vm1272_vm5, %v1235_v44  ;;  %v1719_v44 = vld [vmem:[#allocation3 + $0x168] sm:$0xff] }
 0x1b6   : > { %1608 = vrot.lane.b32.xlu1 %v5231_v51, %s4699_s30  ;;  %1466 = vst.msk [vmem:[#allocation4] sm:$0xff] %vm1465_vm6, %v1370_v45  ;;  %1614 = vrot.lane.b32.xlu0 %v5236_v52, %s4699_s30  ;;  %v1528_v51 = vld [vmem:[#allocation2 + $0x180] sm:$0xff] }
 0x1b8   : > { %v1239_v47 = vpop.permute.xlu1 %1238  ;;  %v1374_v48 = vpop.permute.xlu0 %1373 }
 0x1b9   : > { %1304 = vst.msk [vmem:[#allocation4 + $0xf8] sm:$0xff] %vm1272_vm5, %v1239_v47  ;;  %v1718_v47 = vld [vmem:[#allocation3 + $0x158] sm:$0xff]  ;;  %vm4281_vm5 = vcmask 57344  }
 0x1ba   : > { %1612 = vrot.lane.b32.xlu1 %v5238_v53, %s4699_s30  ;;  %1468 = vst.msk [vmem:[#allocation4 + $0x10] sm:$0xff] %vm1465_vm6, %v1374_v48  ;;  %1618 = vrot.lane.b32.xlu0 %v5244_v55, %s4699_s30  ;;  %v1691_v53 = vld [vmem:[#allocation3 + $0x18] sm:$0xff] }
 0x1bb   : > { %v1529_v55 = vld [vmem:[#allocation2 + $0x188] sm:$0xff] }
 0x1bc   : > { %v1372_v49 = vpop.permute.xlu1 %1371  ;;  %v1378_v62 = vpop.permute.xlu0 %1377 }
 0x1bd   : > { %1467 = vst.msk [vmem:[#allocation4 + $0x8] sm:$0xff] %vm1465_vm6, %v1372_v49  ;;  %1470 = vst.msk [vmem:[#allocation4 + $0x20] sm:$0xff] %vm1465_vm6, %v1378_v62  ;;  %v1721_v49 = vld [vmem:[#allocation3 + $0x180] sm:$0xff]  ;;  %v1720_v62 = vld [vmem:[#allocation3 + $0x170] sm:$0xff] }
 0x1be   : > { %1616 = vrot.lane.b32.xlu1 %v5249_v56, %s4699_s30  ;;  %1622 = vrot.lane.b32.xlu0 %v1528_v51, %s4699_s30  ;;  %v1693_v56 = vld [vmem:[#allocation3 + $0x30] sm:$0xff] }
 0x1c0   : > { %v1376_v52 = vpop.permute.xlu1 %1375  ;;  %v1382_v63 = vpop.permute.xlu0 %1381 }
 0x1c1   : > { %1469 = vst.msk [vmem:[#allocation4 + $0x18] sm:$0xff] %vm1465_vm6, %v1376_v52  ;;  %1472 = vst.msk [vmem:[#allocation4 + $0x30] sm:$0xff] %vm1465_vm6, %v1382_v63 }
 0x1c2   : > { %1620 = vrot.lane.b32.xlu1 %v5253_v58, %s4699_s30  ;;  %1755 = vrot.lane.b32.xlu0 %v1691_v53, %s4700_s5  ;;  %v1695_v58 = vld [vmem:[#allocation3 + $0x48] sm:$0xff] }
 0x1c3   : > { %v1884_v53 = vld [vmem:[#allocation2 + $0x19] sm:$0xff] }
 0x1c4   : > { %v1380_v0 = vpop.permute.xlu1 %1379  ;;  %v1386_v1 = vpop.permute.xlu0 %1385 }
 0x1c5   : > { %1471 = vst.msk [vmem:[#allocation4 + $0x28] sm:$0xff] %vm1465_vm6, %v1380_v0  ;;  %1474 = vst.msk [vmem:[#allocation4 + $0x40] sm:$0xff] %vm1465_vm6, %v1386_v1 }
 0x1c6   : > { %1624 = vrot.lane.b32.xlu1 %v1529_v55, %s4699_s30  ;;  %1759 = vrot.lane.b32.xlu0 %v1693_v56, %s4700_s5  ;;  %v1722_v55 = vld [vmem:[#allocation3 + $0x188] sm:$0xff] }
 0x1c7   : > { %v1886_v56 = vld [vmem:[#allocation2 + $0x31] sm:$0xff] }
 0x1c8   : > { %v1384_v3 = vpop.permute.xlu1 %1383  ;;  %v1390_v4 = vpop.permute.xlu0 %1389 }
 0x1c9   : > { %1473 = vst.msk [vmem:[#allocation4 + $0x38] sm:$0xff] %vm1465_vm6, %v1384_v3  ;;  %1476 = vst.msk [vmem:[#allocation4 + $0x50] sm:$0xff] %vm1465_vm6, %v1390_v4 }
 0x1ca   : > { %1757 = vrot.lane.b32.xlu1 %v1692_v2, %s4700_s5  ;;  %1763 = vrot.lane.b32.xlu0 %v1695_v58, %s4700_s5  ;;  %v1885_v2 = vld [vmem:[#allocation2 + $0x21] sm:$0xff]  ;;  %v1888_v58 = vld [vmem:[#allocation2 + $0x49] sm:$0xff] }
 0x1cc   : > { %v1388_v6 = vpop.permute.xlu1 %1387  ;;  %v1394_v8 = vpop.permute.xlu0 %1393 }
 0x1cd   : > { %1475 = vst.msk [vmem:[#allocation4 + $0x48] sm:$0xff] %vm1465_vm6, %v1388_v6  ;;  %1478 = vst.msk [vmem:[#allocation4 + $0x60] sm:$0xff] %vm1465_vm6, %v1394_v8 }
 0x1ce   : > { %1761 = vrot.lane.b32.xlu1 %v1694_v5, %s4700_s5  ;;  %1767 = vrot.lane.b32.xlu0 %v1697_v7, %s4700_s5  ;;  %v1887_v5 = vld [vmem:[#allocation2 + $0x39] sm:$0xff]  ;;  %v1890_v7 = vld [vmem:[#allocation2 + $0x61] sm:$0xff] }
 0x1d0   : > { %v1392_v10 = vpop.permute.xlu1 %1391  ;;  %v1398_v12 = vpop.permute.xlu0 %1397 }
 0x1d1   : > { %1477 = vst.msk [vmem:[#allocation4 + $0x58] sm:$0xff] %vm1465_vm6, %v1392_v10  ;;  %1480 = vst.msk [vmem:[#allocation4 + $0x70] sm:$0xff] %vm1465_vm6, %v1398_v12 }
 0x1d2   : > { %1765 = vrot.lane.b32.xlu1 %v1696_v9, %s4700_s5  ;;  %1771 = vrot.lane.b32.xlu0 %v1699_v11, %s4700_s5  ;;  %v1889_v9 = vld [vmem:[#allocation2 + $0x51] sm:$0xff]  ;;  %v1892_v11 = vld [vmem:[#allocation2 + $0x79] sm:$0xff] }
 0x1d4   : > { %v1396_v16 = vpop.permute.xlu1 %1395  ;;  %v1402_v20 = vpop.permute.xlu0 %1401 }
 0x1d5   : > { %1479 = vst.msk [vmem:[#allocation4 + $0x68] sm:$0xff] %vm1465_vm6, %v1396_v16  ;;  %1482 = vst.msk [vmem:[#allocation4 + $0x80] sm:$0xff] %vm1465_vm6, %v1402_v20 }
 0x1d6   : > { %1769 = vrot.lane.b32.xlu1 %v1698_v14, %s4700_s5  ;;  %1775 = vrot.lane.b32.xlu0 %v1701_v18, %s4700_s5  ;;  %v1891_v14 = vld [vmem:[#allocation2 + $0x69] sm:$0xff]  ;;  %v1894_v18 = vld [vmem:[#allocation2 + $0x91] sm:$0xff] }
 0x1d8   : > { %v1400_v24 = vpop.permute.xlu1 %1399  ;;  %v1406_v29 = vpop.permute.xlu0 %1405 }
 0x1d9   : > { %1481 = vst.msk [vmem:[#allocation4 + $0x78] sm:$0xff] %vm1465_vm6, %v1400_v24  ;;  %1484 = vst.msk [vmem:[#allocation4 + $0x90] sm:$0xff] %vm1465_vm6, %v1406_v29 }
 0x1da   : > { %1773 = vrot.lane.b32.xlu1 %v1700_v23, %s4700_s5  ;;  %1779 = vrot.lane.b32.xlu0 %v1703_v26, %s4700_s5  ;;  %v1893_v23 = vld [vmem:[#allocation2 + $0x81] sm:$0xff]  ;;  %v1896_v26 = vld [vmem:[#allocation2 + $0xa9] sm:$0xff] }
 0x1dc   : > { %v1404_v34 = vpop.permute.xlu1 %1403  ;;  %v1410_v42 = vpop.permute.xlu0 %1409 }
 0x1dd   : > { %1483 = vst.msk [vmem:[#allocation4 + $0x88] sm:$0xff] %vm1465_vm6, %v1404_v34  ;;  %1486 = vst.msk [vmem:[#allocation4 + $0xa0] sm:$0xff] %vm1465_vm6, %v1410_v42 }
 0x1de   : > { %1777 = vrot.lane.b32.xlu1 %v1702_v31, %s4700_s5  ;;  %1783 = vrot.lane.b32.xlu0 %v1705_v38, %s4700_s5  ;;  %v1895_v31 = vld [vmem:[#allocation2 + $0x99] sm:$0xff]  ;;  %v1898_v38 = vld [vmem:[#allocation2 + $0xc1] sm:$0xff] }
 0x1e0   : > { %v1408_v50 = vpop.permute.xlu1 %1407  ;;  %v1414_v57 = vpop.permute.xlu0 %1413 }
 0x1e1   : > { %1485 = vst.msk [vmem:[#allocation4 + $0x98] sm:$0xff] %vm1465_vm6, %v1408_v50  ;;  %1488 = vst.msk [vmem:[#allocation4 + $0xb0] sm:$0xff] %vm1465_vm6, %v1414_v57 }
 0x1e2   : > { %1781 = vrot.lane.b32.xlu1 %v1704_v46, %s4700_s5  ;;  %1787 = vrot.lane.b32.xlu0 %v1707_v54, %s4700_s5  ;;  %v1897_v46 = vld [vmem:[#allocation2 + $0xb1] sm:$0xff]  ;;  %v1900_v54 = vld [vmem:[#allocation2 + $0xd9] sm:$0xff] }
 0x1e4   : > { %v1412_v60 = vpop.permute.xlu1 %1411  ;;  %v1418_v61 = vpop.permute.xlu0 %1417 }
 0x1e5   : > { %1487 = vst.msk [vmem:[#allocation4 + $0xa8] sm:$0xff] %vm1465_vm6, %v1412_v60  ;;  %1490 = vst.msk [vmem:[#allocation4 + $0xc0] sm:$0xff] %vm1465_vm6, %v1418_v61 }
 0x1e6   : > { %1785 = vrot.lane.b32.xlu1 %v1706_v59, %s4700_s5  ;;  %1791 = vrot.lane.b32.xlu0 %v1709_v13, %s4700_s5  ;;  %v1899_v59 = vld [vmem:[#allocation2 + $0xc9] sm:$0xff]  ;;  %v1902_v13 = vld [vmem:[#allocation2 + $0xf1] sm:$0xff] }
 0x1e8   : > { %v1416_v17 = vpop.permute.xlu1 %1415  ;;  %v1422_v21 = vpop.permute.xlu0 %1421 }
 0x1e9   : > { %1489 = vst.msk [vmem:[#allocation4 + $0xb8] sm:$0xff] %vm1465_vm6, %v1416_v17  ;;  %1492 = vst.msk [vmem:[#allocation4 + $0xd0] sm:$0xff] %vm1465_vm6, %v1422_v21 }
 0x1ea   : > { %1789 = vrot.lane.b32.xlu1 %v1708_v15, %s4700_s5  ;;  %1795 = vrot.lane.b32.xlu0 %v1711_v19, %s4700_s5  ;;  %v1901_v15 = vld [vmem:[#allocation2 + $0xe1] sm:$0xff]  ;;  %v1904_v19 = vld [vmem:[#allocation2 + $0x109] sm:$0xff] }
 0x1ec   : > { %v1420_v25 = vpop.permute.xlu1 %1419  ;;  %v1426_v28 = vpop.permute.xlu0 %1425 }
 0x1ed   : > { %1491 = vst.msk [vmem:[#allocation4 + $0xc8] sm:$0xff] %vm1465_vm6, %v1420_v25  ;;  %1494 = vst.msk [vmem:[#allocation4 + $0xe0] sm:$0xff] %vm1465_vm6, %v1426_v28 }
 0x1ee   : > { %1793 = vrot.lane.b32.xlu1 %v1710_v22, %s4700_s5  ;;  %1799 = vrot.lane.b32.xlu0 %v1713_v27, %s4700_s5  ;;  %v1903_v22 = vld [vmem:[#allocation2 + $0xf9] sm:$0xff]  ;;  %v1906_v27 = vld [vmem:[#allocation2 + $0x121] sm:$0xff] }
 0x1f0   : > { %v1424_v32 = vpop.permute.xlu1 %1423  ;;  %v1430_v35 = vpop.permute.xlu0 %1429 }
 0x1f1   : > { %1493 = vst.msk [vmem:[#allocation4 + $0xd8] sm:$0xff] %vm1465_vm6, %v1424_v32  ;;  %1496 = vst.msk [vmem:[#allocation4 + $0xf0] sm:$0xff] %vm1465_vm6, %v1430_v35 }
 0x1f2   : > { %1797 = vrot.lane.b32.xlu1 %v1712_v30, %s4700_s5  ;;  %1803 = vrot.lane.b32.xlu0 %v1715_v33, %s4700_s5  ;;  %v1905_v30 = vld [vmem:[#allocation2 + $0x111] sm:$0xff]  ;;  %v1908_v33 = vld [vmem:[#allocation2 + $0x139] sm:$0xff] }
 0x1f4   : > { %v1428_v37 = vpop.permute.xlu1 %1427  ;;  %v1563_v40 = vpop.permute.xlu0 %1562 }
 0x1f5   : > { %1495 = vst.msk [vmem:[#allocation4 + $0xe8] sm:$0xff] %vm1465_vm6, %v1428_v37 }
 0x1f6   : > { %1801 = vrot.lane.b32.xlu1 %v1714_v36, %s4700_s5  ;;  %1659 = vst.msk [vmem:[#allocation4] sm:$0xff] %vm1658_vm7, %v1563_v40  ;;  %1807 = vrot.lane.b32.xlu0 %v1717_v39, %s4700_s5  ;;  %v1907_v36 = vld [vmem:[#allocation2 + $0x129] sm:$0xff]  ;;  %v1910_v39 = vld [vmem:[#allocation2 + $0x151] sm:$0xff] }
 0x1f8   : > { %v1432_v43 = vpop.permute.xlu1 %1431  ;;  %v1567_v45 = vpop.permute.xlu0 %1566 }
 0x1f9   : > { %1497 = vst.msk [vmem:[#allocation4 + $0xf8] sm:$0xff] %vm1465_vm6, %v1432_v43 }
 0x1fa   : > { %1805 = vrot.lane.b32.xlu1 %v1716_v41, %s4700_s5  ;;  %1661 = vst.msk [vmem:[#allocation4 + $0x10] sm:$0xff] %vm1658_vm7, %v1567_v45  ;;  %1811 = vrot.lane.b32.xlu0 %v1719_v44, %s4700_s5  ;;  %v1909_v41 = vld [vmem:[#allocation2 + $0x141] sm:$0xff]  ;;  %v1912_v44 = vld [vmem:[#allocation2 + $0x169] sm:$0xff] }
 0x1fc   : > { %v1565_v48 = vpop.permute.xlu1 %1564  ;;  %v1571_v51 = vpop.permute.xlu0 %1570 }
 0x1fd   : > { %1660 = vst.msk [vmem:[#allocation4 + $0x8] sm:$0xff] %vm1658_vm7, %v1565_v48  ;;  %1663 = vst.msk [vmem:[#allocation4 + $0x20] sm:$0xff] %vm1658_vm7, %v1571_v51 }
 0x1fe   : > { %1809 = vrot.lane.b32.xlu1 %v1718_v47, %s4700_s5  ;;  %1815 = vrot.lane.b32.xlu0 %v1721_v49, %s4700_s5  ;;  %v1911_v47 = vld [vmem:[#allocation2 + $0x159] sm:$0xff]  ;;  %v1914_v49 = vld [vmem:[#allocation2 + $0x181] sm:$0xff] }
 0x200   : > { %v1569_v52 = vpop.permute.xlu1 %1568  ;;  %v1575_v63 = vpop.permute.xlu0 %1574 }
 0x201   : > { %1662 = vst.msk [vmem:[#allocation4 + $0x18] sm:$0xff] %vm1658_vm7, %v1569_v52  ;;  %1665 = vst.msk [vmem:[#allocation4 + $0x30] sm:$0xff] %vm1658_vm7, %v1575_v63 }
 0x202   : > { %1813 = vrot.lane.b32.xlu1 %v1720_v62, %s4700_s5  ;;  %1948 = vrot.lane.b32.xlu0 %v1884_v53, %s4701_s6  ;;  %v1913_v62 = vld [vmem:[#allocation2 + $0x171] sm:$0xff]  ;;  %v2077_v53 = vld [vmem:[#allocation3 + $0x19] sm:$0xff] }
 0x204   : > { %v1573_v0 = vpop.permute.xlu1 %1572  ;;  %v1579_v1 = vpop.permute.xlu0 %1578 }
 0x205   : > { %1664 = vst.msk [vmem:[#allocation4 + $0x28] sm:$0xff] %vm1658_vm7, %v1573_v0  ;;  %1667 = vst.msk [vmem:[#allocation4 + $0x40] sm:$0xff] %vm1658_vm7, %v1579_v1 }
 0x206   : > { %1817 = vrot.lane.b32.xlu1 %v1722_v55, %s4700_s5  ;;  %1952 = vrot.lane.b32.xlu0 %v1886_v56, %s4701_s6  ;;  %v1915_v55 = vld [vmem:[#allocation2 + $0x189] sm:$0xff]  ;;  %v5722_v56 = vld [vmem:[#allocation3 + $0x31] sm:$0xff] }
 0x208   : > { %v1577_v3 = vpop.permute.xlu1 %1576  ;;  %v1583_v4 = vpop.permute.xlu0 %1582 }
 0x209   : > { %1666 = vst.msk [vmem:[#allocation4 + $0x38] sm:$0xff] %vm1658_vm7, %v1577_v3  ;;  %1669 = vst.msk [vmem:[#allocation4 + $0x50] sm:$0xff] %vm1658_vm7, %v1583_v4 }
 0x20a   : > { %1950 = vrot.lane.b32.xlu1 %v1885_v2, %s4701_s6  ;;  %1956 = vrot.lane.b32.xlu0 %v1888_v58, %s4701_s6  ;;  %v2078_v2 = vld [vmem:[#allocation3 + $0x21] sm:$0xff]  ;;  %v2081_v58 = vld [vmem:[#allocation3 + $0x49] sm:$0xff] }
 0x20c   : > { %v1581_v6 = vpop.permute.xlu1 %1580  ;;  %v1587_v8 = vpop.permute.xlu0 %1586 }
 0x20d   : > { %1668 = vst.msk [vmem:[#allocation4 + $0x48] sm:$0xff] %vm1658_vm7, %v1581_v6  ;;  %1671 = vst.msk [vmem:[#allocation4 + $0x60] sm:$0xff] %vm1658_vm7, %v1587_v8 }
 0x20e   : > { %1954 = vrot.lane.b32.xlu1 %v1887_v5, %s4701_s6  ;;  %1960 = vrot.lane.b32.xlu0 %v1890_v7, %s4701_s6  ;;  %v5731_v5 = vld [vmem:[#allocation3 + $0x39] sm:$0xff]  ;;  %v2083_v7 = vld [vmem:[#allocation3 + $0x61] sm:$0xff] }
 0x210   : > { %v1585_v10 = vpop.permute.xlu1 %1584  ;;  %v1591_v12 = vpop.permute.xlu0 %1590 }
 0x211   : > { %1670 = vst.msk [vmem:[#allocation4 + $0x58] sm:$0xff] %vm1658_vm7, %v1585_v10  ;;  %1673 = vst.msk [vmem:[#allocation4 + $0x70] sm:$0xff] %vm1658_vm7, %v1591_v12 }
 0x212   : > { %1958 = vrot.lane.b32.xlu1 %v1889_v9, %s4701_s6  ;;  %1964 = vrot.lane.b32.xlu0 %v1892_v11, %s4701_s6  ;;  %v2082_v9 = vld [vmem:[#allocation3 + $0x51] sm:$0xff]  ;;  %v2085_v11 = vld [vmem:[#allocation3 + $0x79] sm:$0xff] }
 0x214   : > { %v1589_v16 = vpop.permute.xlu1 %1588  ;;  %v1595_v20 = vpop.permute.xlu0 %1594 }
 0x215   : > { %1672 = vst.msk [vmem:[#allocation4 + $0x68] sm:$0xff] %vm1658_vm7, %v1589_v16  ;;  %1675 = vst.msk [vmem:[#allocation4 + $0x80] sm:$0xff] %vm1658_vm7, %v1595_v20 }
 0x216   : > { %1962 = vrot.lane.b32.xlu1 %v1891_v14, %s4701_s6  ;;  %1968 = vrot.lane.b32.xlu0 %v1894_v18, %s4701_s6  ;;  %v2084_v14 = vld [vmem:[#allocation3 + $0x69] sm:$0xff]  ;;  %v2087_v18 = vld [vmem:[#allocation3 + $0x91] sm:$0xff] }
 0x218   : > { %v1593_v24 = vpop.permute.xlu1 %1592  ;;  %v1599_v29 = vpop.permute.xlu0 %1598 }
 0x219   : > { %1674 = vst.msk [vmem:[#allocation4 + $0x78] sm:$0xff] %vm1658_vm7, %v1593_v24  ;;  %1677 = vst.msk [vmem:[#allocation4 + $0x90] sm:$0xff] %vm1658_vm7, %v1599_v29 }
 0x21a   : > { %1966 = vrot.lane.b32.xlu1 %v1893_v23, %s4701_s6  ;;  %1972 = vrot.lane.b32.xlu0 %v1896_v26, %s4701_s6  ;;  %v2086_v23 = vld [vmem:[#allocation3 + $0x81] sm:$0xff]  ;;  %v2089_v26 = vld [vmem:[#allocation3 + $0xa9] sm:$0xff] }
 0x21c   : > { %v1597_v34 = vpop.permute.xlu1 %1596  ;;  %v1603_v42 = vpop.permute.xlu0 %1602 }
 0x21d   : > { %1676 = vst.msk [vmem:[#allocation4 + $0x88] sm:$0xff] %vm1658_vm7, %v1597_v34  ;;  %1679 = vst.msk [vmem:[#allocation4 + $0xa0] sm:$0xff] %vm1658_vm7, %v1603_v42 }
 0x21e   : > { %1970 = vrot.lane.b32.xlu1 %v1895_v31, %s4701_s6  ;;  %1976 = vrot.lane.b32.xlu0 %v1898_v38, %s4701_s6  ;;  %v2088_v31 = vld [vmem:[#allocation3 + $0x99] sm:$0xff]  ;;  %v2091_v38 = vld [vmem:[#allocation3 + $0xc1] sm:$0xff] }
 0x220   : > { %v1601_v50 = vpop.permute.xlu1 %1600  ;;  %v1607_v57 = vpop.permute.xlu0 %1606 }
 0x221   : > { %1678 = vst.msk [vmem:[#allocation4 + $0x98] sm:$0xff] %vm1658_vm7, %v1601_v50  ;;  %1681 = vst.msk [vmem:[#allocation4 + $0xb0] sm:$0xff] %vm1658_vm7, %v1607_v57 }
 0x222   : > { %1974 = vrot.lane.b32.xlu1 %v1897_v46, %s4701_s6  ;;  %1980 = vrot.lane.b32.xlu0 %v1900_v54, %s4701_s6  ;;  %v2090_v46 = vld [vmem:[#allocation3 + $0xb1] sm:$0xff]  ;;  %v2093_v54 = vld [vmem:[#allocation3 + $0xd9] sm:$0xff] }
 0x224   : > { %v1605_v60 = vpop.permute.xlu1 %1604  ;;  %v1611_v61 = vpop.permute.xlu0 %1610 }
 0x225   : > { %1680 = vst.msk [vmem:[#allocation4 + $0xa8] sm:$0xff] %vm1658_vm7, %v1605_v60  ;;  %1683 = vst.msk [vmem:[#allocation4 + $0xc0] sm:$0xff] %vm1658_vm7, %v1611_v61 }
 0x226   : > { %1978 = vrot.lane.b32.xlu1 %v1899_v59, %s4701_s6  ;;  %1984 = vrot.lane.b32.xlu0 %v1902_v13, %s4701_s6  ;;  %v2092_v59 = vld [vmem:[#allocation3 + $0xc9] sm:$0xff]  ;;  %v2095_v13 = vld [vmem:[#allocation3 + $0xf1] sm:$0xff] }
 0x228   : > { %v1609_v17 = vpop.permute.xlu1 %1608  ;;  %v1615_v21 = vpop.permute.xlu0 %1614 }
 0x229   : > { %1682 = vst.msk [vmem:[#allocation4 + $0xb8] sm:$0xff] %vm1658_vm7, %v1609_v17  ;;  %1685 = vst.msk [vmem:[#allocation4 + $0xd0] sm:$0xff] %vm1658_vm7, %v1615_v21 }
 0x22a   : > { %1982 = vrot.lane.b32.xlu1 %v1901_v15, %s4701_s6  ;;  %1988 = vrot.lane.b32.xlu0 %v1904_v19, %s4701_s6  ;;  %v2094_v15 = vld [vmem:[#allocation3 + $0xe1] sm:$0xff]  ;;  %v2097_v19 = vld [vmem:[#allocation3 + $0x109] sm:$0xff] }
 0x22c   : > { %v1613_v25 = vpop.permute.xlu1 %1612  ;;  %v1619_v28 = vpop.permute.xlu0 %1618 }
 0x22d   : > { %1684 = vst.msk [vmem:[#allocation4 + $0xc8] sm:$0xff] %vm1658_vm7, %v1613_v25  ;;  %1687 = vst.msk [vmem:[#allocation4 + $0xe0] sm:$0xff] %vm1658_vm7, %v1619_v28 }
 0x22e   : > { %1986 = vrot.lane.b32.xlu1 %v1903_v22, %s4701_s6  ;;  %1992 = vrot.lane.b32.xlu0 %v1906_v27, %s4701_s6  ;;  %v2096_v22 = vld [vmem:[#allocation3 + $0xf9] sm:$0xff]  ;;  %v2099_v27 = vld [vmem:[#allocation3 + $0x121] sm:$0xff] }
 0x230   : > { %v1617_v32 = vpop.permute.xlu1 %1616  ;;  %v1623_v35 = vpop.permute.xlu0 %1622 }
 0x231   : > { %1686 = vst.msk [vmem:[#allocation4 + $0xd8] sm:$0xff] %vm1658_vm7, %v1617_v32  ;;  %1689 = vst.msk [vmem:[#allocation4 + $0xf0] sm:$0xff] %vm1658_vm7, %v1623_v35 }
 0x232   : > { %1990 = vrot.lane.b32.xlu1 %v1905_v30, %s4701_s6  ;;  %1996 = vrot.lane.b32.xlu0 %v1908_v33, %s4701_s6  ;;  %v2098_v30 = vld [vmem:[#allocation3 + $0x111] sm:$0xff]  ;;  %v2101_v33 = vld [vmem:[#allocation3 + $0x139] sm:$0xff] }
 0x234   : > { %v1621_v37 = vpop.permute.xlu1 %1620  ;;  %v1756_v40 = vpop.permute.xlu0 %1755 }
 0x235   : > { %1688 = vst.msk [vmem:[#allocation4 + $0xe8] sm:$0xff] %vm1658_vm7, %v1621_v37 }
 0x236   : > { %1994 = vrot.lane.b32.xlu1 %v1907_v36, %s4701_s6  ;;  %1852 = vst.msk [vmem:[#allocation4] sm:$0xff] %vm1851_vm8, %v1756_v40  ;;  %2000 = vrot.lane.b32.xlu0 %v1910_v39, %s4701_s6  ;;  %v2100_v36 = vld [vmem:[#allocation3 + $0x129] sm:$0xff]  ;;  %v2103_v39 = vld [vmem:[#allocation3 + $0x151] sm:$0xff] }
 0x238   : > { %v1625_v43 = vpop.permute.xlu1 %1624  ;;  %v1760_v45 = vpop.permute.xlu0 %1759 }
 0x239   : > { %1690 = vst.msk [vmem:[#allocation4 + $0xf8] sm:$0xff] %vm1658_vm7, %v1625_v43 }
 0x23a   : > { %1998 = vrot.lane.b32.xlu1 %v1909_v41, %s4701_s6  ;;  %1854 = vst.msk [vmem:[#allocation4 + $0x10] sm:$0xff] %vm1851_vm8, %v1760_v45  ;;  %2004 = vrot.lane.b32.xlu0 %v1912_v44, %s4701_s6  ;;  %v2102_v41 = vld [vmem:[#allocation3 + $0x141] sm:$0xff]  ;;  %v2105_v44 = vld [vmem:[#allocation3 + $0x169] sm:$0xff] }
 0x23c   : > { %v1758_v48 = vpop.permute.xlu1 %1757  ;;  %v1764_v51 = vpop.permute.xlu0 %1763 }
 0x23d   : > { %1853 = vst.msk [vmem:[#allocation4 + $0x8] sm:$0xff] %vm1851_vm8, %v1758_v48  ;;  %1856 = vst.msk [vmem:[#allocation4 + $0x20] sm:$0xff] %vm1851_vm8, %v1764_v51 }
 0x23e   : > { %2002 = vrot.lane.b32.xlu1 %v1911_v47, %s4701_s6  ;;  %2008 = vrot.lane.b32.xlu0 %v1914_v49, %s4701_s6  ;;  %v2104_v47 = vld [vmem:[#allocation3 + $0x159] sm:$0xff]  ;;  %v2107_v49 = vld [vmem:[#allocation3 + $0x181] sm:$0xff] }
 0x240   : > { %v1762_v52 = vpop.permute.xlu1 %1761  ;;  %v1768_v63 = vpop.permute.xlu0 %1767 }
 0x241   : > { %1855 = vst.msk [vmem:[#allocation4 + $0x18] sm:$0xff] %vm1851_vm8, %v1762_v52  ;;  %1858 = vst.msk [vmem:[#allocation4 + $0x30] sm:$0xff] %vm1851_vm8, %v1768_v63 }
 0x242   : > { %2006 = vrot.lane.b32.xlu1 %v1913_v62, %s4701_s6  ;;  %2141 = vrot.lane.b32.xlu0 %v2077_v53, %s4702_s7  ;;  %v2106_v62 = vld [vmem:[#allocation3 + $0x171] sm:$0xff] }
 0x243   : > { %v2270_v53 = vld [vmem:[#allocation2 + $0x1a] sm:$0xff] }
 0x244   : > { %v1766_v0 = vpop.permute.xlu1 %1765  ;;  %v1772_v1 = vpop.permute.xlu0 %1771 }
 0x245   : > { %1857 = vst.msk [vmem:[#allocation4 + $0x28] sm:$0xff] %vm1851_vm8, %v1766_v0  ;;  %1860 = vst.msk [vmem:[#allocation4 + $0x40] sm:$0xff] %vm1851_vm8, %v1772_v1  ;;  %v5792_v1 = vld [vmem:[#allocation2 + $0x32] sm:$0xff] }
 0x246   : > { %2010 = vrot.lane.b32.xlu1 %v1915_v55, %s4701_s6  ;;  %2145 = vrot.lane.b32.xlu0 %v5722_v56, %s4702_s7  ;;  %v2108_v55 = vld [vmem:[#allocation3 + $0x189] sm:$0xff] }
 0x248   : > { %v1770_v3 = vpop.permute.xlu1 %1769  ;;  %v1776_v4 = vpop.permute.xlu0 %1775 }
 0x249   : > { %1859 = vst.msk [vmem:[#allocation4 + $0x38] sm:$0xff] %vm1851_vm8, %v1770_v3  ;;  %1862 = vst.msk [vmem:[#allocation4 + $0x50] sm:$0xff] %vm1851_vm8, %v1776_v4  ;;  %v2271_v3 = vld [vmem:[#allocation2 + $0x22] sm:$0xff]  ;;  %v5799_v4 = vld [vmem:[#allocation2 + $0x4a] sm:$0xff] }
 0x24a   : > { %2143 = vrot.lane.b32.xlu1 %v2078_v2, %s4702_s7  ;;  %2149 = vrot.lane.b32.xlu0 %v2081_v58, %s4702_s7 }
 0x24c   : > { %v1774_v6 = vpop.permute.xlu1 %1773  ;;  %v1780_v8 = vpop.permute.xlu0 %1779 }
 0x24d   : > { %1861 = vst.msk [vmem:[#allocation4 + $0x48] sm:$0xff] %vm1851_vm8, %v1774_v6  ;;  %1864 = vst.msk [vmem:[#allocation4 + $0x60] sm:$0xff] %vm1851_vm8, %v1780_v8 }
 0x24e   : > { %2147 = vrot.lane.b32.xlu1 %v5731_v5, %s4702_s7  ;;  %2153 = vrot.lane.b32.xlu0 %v2083_v7, %s4702_s7  ;;  %v5803_v7 = vld [vmem:[#allocation2 + $0x3a] sm:$0xff] }
 0x250   : > { %v1778_v10 = vpop.permute.xlu1 %1777  ;;  %v1784_v12 = vpop.permute.xlu0 %1783 }
 0x251   : > { %1863 = vst.msk [vmem:[#allocation4 + $0x58] sm:$0xff] %vm1851_vm8, %v1778_v10  ;;  %1866 = vst.msk [vmem:[#allocation4 + $0x70] sm:$0xff] %vm1851_vm8, %v1784_v12 }
 0x252   : > { %2151 = vrot.lane.b32.xlu1 %v2082_v9, %s4702_s7  ;;  %2157 = vrot.lane.b32.xlu0 %v2085_v11, %s4702_s7  ;;  %v5808_v9 = vld [vmem:[#allocation2 + $0x62] sm:$0xff]  ;;  %v5813_v11 = vld [vmem:[#allocation2 + $0x52] sm:$0xff] }
 0x254   : > { %v1782_v16 = vpop.permute.xlu1 %1781  ;;  %v1788_v20 = vpop.permute.xlu0 %1787 }
 0x255   : > { %1865 = vst.msk [vmem:[#allocation4 + $0x68] sm:$0xff] %vm1851_vm8, %v1782_v16  ;;  %1868 = vst.msk [vmem:[#allocation4 + $0x80] sm:$0xff] %vm1851_vm8, %v1788_v20 }
 0x256   : > { %2155 = vrot.lane.b32.xlu1 %v2084_v14, %s4702_s7  ;;  %2161 = vrot.lane.b32.xlu0 %v2087_v18, %s4702_s7  ;;  %v5818_v14 = vld [vmem:[#allocation2 + $0x7a] sm:$0xff]  ;;  %v5823_v18 = vld [vmem:[#allocation2 + $0x6a] sm:$0xff] }
 0x258   : > { %v1786_v24 = vpop.permute.xlu1 %1785  ;;  %v1792_v29 = vpop.permute.xlu0 %1791 }
 0x259   : > { %1867 = vst.msk [vmem:[#allocation4 + $0x78] sm:$0xff] %vm1851_vm8, %v1786_v24  ;;  %1870 = vst.msk [vmem:[#allocation4 + $0x90] sm:$0xff] %vm1851_vm8, %v1792_v29 }
 0x25a   : > { %2159 = vrot.lane.b32.xlu1 %v2086_v23, %s4702_s7  ;;  %2165 = vrot.lane.b32.xlu0 %v2089_v26, %s4702_s7  ;;  %v2280_v23 = vld [vmem:[#allocation2 + $0x92] sm:$0xff]  ;;  %v5831_v26 = vld [vmem:[#allocation2 + $0x82] sm:$0xff] }
 0x25c   : > { %v1790_v34 = vpop.permute.xlu1 %1789  ;;  %v1796_v42 = vpop.permute.xlu0 %1795 }
 0x25d   : > { %1869 = vst.msk [vmem:[#allocation4 + $0x88] sm:$0xff] %vm1851_vm8, %v1790_v34  ;;  %1872 = vst.msk [vmem:[#allocation4 + $0xa0] sm:$0xff] %vm1851_vm8, %v1796_v42 }
 0x25e   : > { %2163 = vrot.lane.b32.xlu1 %v2088_v31, %s4702_s7  ;;  %2169 = vrot.lane.b32.xlu0 %v2091_v38, %s4702_s7  ;;  %v2282_v31 = vld [vmem:[#allocation2 + $0xaa] sm:$0xff]  ;;  %v2281_v38 = vld [vmem:[#allocation2 + $0x9a] sm:$0xff] }
 0x260   : > { %v1794_v50 = vpop.permute.xlu1 %1793  ;;  %v1800_v57 = vpop.permute.xlu0 %1799 }
 0x261   : > { %1871 = vst.msk [vmem:[#allocation4 + $0x98] sm:$0xff] %vm1851_vm8, %v1794_v50  ;;  %1874 = vst.msk [vmem:[#allocation4 + $0xb0] sm:$0xff] %vm1851_vm8, %v1800_v57 }
 0x262   : > { %2167 = vrot.lane.b32.xlu1 %v2090_v46, %s4702_s7  ;;  %2173 = vrot.lane.b32.xlu0 %v2093_v54, %s4702_s7  ;;  %v2284_v46 = vld [vmem:[#allocation2 + $0xc2] sm:$0xff]  ;;  %v2283_v54 = vld [vmem:[#allocation2 + $0xb2] sm:$0xff] }
 0x264   : > { %v1798_v60 = vpop.permute.xlu1 %1797  ;;  %v1804_v61 = vpop.permute.xlu0 %1803 }
 0x265   : > { %1873 = vst.msk [vmem:[#allocation4 + $0xa8] sm:$0xff] %vm1851_vm8, %v1798_v60  ;;  %1876 = vst.msk [vmem:[#allocation4 + $0xc0] sm:$0xff] %vm1851_vm8, %v1804_v61 }
 0x266   : > { %2171 = vrot.lane.b32.xlu1 %v2092_v59, %s4702_s7  ;;  %2177 = vrot.lane.b32.xlu0 %v2095_v13, %s4702_s7  ;;  %v2286_v59 = vld [vmem:[#allocation2 + $0xda] sm:$0xff]  ;;  %v2285_v13 = vld [vmem:[#allocation2 + $0xca] sm:$0xff] }
 0x268   : > { %v1802_v17 = vpop.permute.xlu1 %1801  ;;  %v1808_v21 = vpop.permute.xlu0 %1807 }
 0x269   : > { %1875 = vst.msk [vmem:[#allocation4 + $0xb8] sm:$0xff] %vm1851_vm8, %v1802_v17  ;;  %1878 = vst.msk [vmem:[#allocation4 + $0xd0] sm:$0xff] %vm1851_vm8, %v1808_v21 }
 0x26a   : > { %2175 = vrot.lane.b32.xlu1 %v2094_v15, %s4702_s7  ;;  %2181 = vrot.lane.b32.xlu0 %v2097_v19, %s4702_s7  ;;  %v2288_v15 = vld [vmem:[#allocation2 + $0xf2] sm:$0xff]  ;;  %v2287_v19 = vld [vmem:[#allocation2 + $0xe2] sm:$0xff] }
 0x26c   : > { %v1806_v25 = vpop.permute.xlu1 %1805  ;;  %v1812_v28 = vpop.permute.xlu0 %1811 }
 0x26d   : > { %1877 = vst.msk [vmem:[#allocation4 + $0xc8] sm:$0xff] %vm1851_vm8, %v1806_v25  ;;  %1880 = vst.msk [vmem:[#allocation4 + $0xe0] sm:$0xff] %vm1851_vm8, %v1812_v28 }
 0x26e   : > { %2179 = vrot.lane.b32.xlu1 %v2096_v22, %s4702_s7  ;;  %2185 = vrot.lane.b32.xlu0 %v2099_v27, %s4702_s7  ;;  %v2290_v22 = vld [vmem:[#allocation2 + $0x10a] sm:$0xff]  ;;  %v2289_v27 = vld [vmem:[#allocation2 + $0xfa] sm:$0xff] }
 0x270   : > { %v1810_v32 = vpop.permute.xlu1 %1809  ;;  %v1816_v35 = vpop.permute.xlu0 %1815 }
 0x271   : > { %1879 = vst.msk [vmem:[#allocation4 + $0xd8] sm:$0xff] %vm1851_vm8, %v1810_v32  ;;  %1882 = vst.msk [vmem:[#allocation4 + $0xf0] sm:$0xff] %vm1851_vm8, %v1816_v35 }
 0x272   : > { %2183 = vrot.lane.b32.xlu1 %v2098_v30, %s4702_s7  ;;  %2189 = vrot.lane.b32.xlu0 %v2101_v33, %s4702_s7  ;;  %v2292_v30 = vld [vmem:[#allocation2 + $0x122] sm:$0xff]  ;;  %v2291_v33 = vld [vmem:[#allocation2 + $0x112] sm:$0xff] }
 0x274   : > { %v1814_v37 = vpop.permute.xlu1 %1813  ;;  %v1949_v40 = vpop.permute.xlu0 %1948 }
 0x275   : > { %1881 = vst.msk [vmem:[#allocation4 + $0xe8] sm:$0xff] %vm1851_vm8, %v1814_v37 }
 0x276   : > { %2187 = vrot.lane.b32.xlu1 %v2100_v36, %s4702_s7  ;;  %2045 = vst.msk [vmem:[#allocation4] sm:$0xff] %vm2044_vm9, %v1949_v40  ;;  %2193 = vrot.lane.b32.xlu0 %v2103_v39, %s4702_s7  ;;  %v2294_v36 = vld [vmem:[#allocation2 + $0x13a] sm:$0xff]  ;;  %v2293_v39 = vld [vmem:[#allocation2 + $0x12a] sm:$0xff] }
 0x278   : > { %v1818_v43 = vpop.permute.xlu1 %1817  ;;  %v1953_v45 = vpop.permute.xlu0 %1952 }
 0x279   : > { %1883 = vst.msk [vmem:[#allocation4 + $0xf8] sm:$0xff] %vm1851_vm8, %v1818_v43 }
 0x27a   : > { %2191 = vrot.lane.b32.xlu1 %v2102_v41, %s4702_s7  ;;  %2047 = vst.msk [vmem:[#allocation4 + $0x10] sm:$0xff] %vm2044_vm9, %v1953_v45  ;;  %2197 = vrot.lane.b32.xlu0 %v2105_v44, %s4702_s7  ;;  %v2296_v41 = vld [vmem:[#allocation2 + $0x152] sm:$0xff]  ;;  %v2295_v44 = vld [vmem:[#allocation2 + $0x142] sm:$0xff] }
 0x27c   : > { %v1951_v48 = vpop.permute.xlu1 %1950  ;;  %v1957_v51 = vpop.permute.xlu0 %1956 }
 0x27d   : > { %2046 = vst.msk [vmem:[#allocation4 + $0x8] sm:$0xff] %vm2044_vm9, %v1951_v48  ;;  %2049 = vst.msk [vmem:[#allocation4 + $0x20] sm:$0xff] %vm2044_vm9, %v1957_v51 }
 0x27e   : > { %2195 = vrot.lane.b32.xlu1 %v2104_v47, %s4702_s7  ;;  %2201 = vrot.lane.b32.xlu0 %v2107_v49, %s4702_s7  ;;  %v2298_v47 = vld [vmem:[#allocation2 + $0x16a] sm:$0xff]  ;;  %v2297_v49 = vld [vmem:[#allocation2 + $0x15a] sm:$0xff] }
 0x280   : > { %v1955_v52 = vpop.permute.xlu1 %1954  ;;  %v1961_v63 = vpop.permute.xlu0 %1960 }
 0x281   : > { %2048 = vst.msk [vmem:[#allocation4 + $0x18] sm:$0xff] %vm2044_vm9, %v1955_v52  ;;  %2051 = vst.msk [vmem:[#allocation4 + $0x30] sm:$0xff] %vm2044_vm9, %v1961_v63 }
 0x282   : > { %2199 = vrot.lane.b32.xlu1 %v2106_v62, %s4702_s7  ;;  %2334 = vrot.lane.b32.xlu0 %v2270_v53, %s4703_s8  ;;  %v2300_v62 = vld [vmem:[#allocation2 + $0x182] sm:$0xff]  ;;  %v2299_v53 = vld [vmem:[#allocation2 + $0x172] sm:$0xff] }
 0x284   : > { %v1959_v0 = vpop.permute.xlu1 %1958  ;;  %v1965_v2 = vpop.permute.xlu0 %1964 }
 0x285   : > { %2050 = vst.msk [vmem:[#allocation4 + $0x28] sm:$0xff] %vm2044_vm9, %v1959_v0  ;;  %2053 = vst.msk [vmem:[#allocation4 + $0x40] sm:$0xff] %vm2044_vm9, %v1965_v2  ;;  %v2301_v2 = vld [vmem:[#allocation2 + $0x18a] sm:$0xff] }
 0x286   : > { %2203 = vrot.lane.b32.xlu1 %v2108_v55, %s4702_s7  ;;  %2338 = vrot.lane.b32.xlu0 %v5792_v1, %s4703_s8  ;;  %v2463_v55 = vld [vmem:[#allocation3 + $0x1a] sm:$0xff] }
 0x288   : > { %v1963_v58 = vpop.permute.xlu1 %1962  ;;  %v1969_v6 = vpop.permute.xlu0 %1968 }
 0x289   : > { %2052 = vst.msk [vmem:[#allocation4 + $0x38] sm:$0xff] %vm2044_vm9, %v1963_v58  ;;  %2055 = vst.msk [vmem:[#allocation4 + $0x50] sm:$0xff] %vm2044_vm9, %v1969_v6  ;;  %v5880_v58 = vld [vmem:[#allocation3 + $0x32] sm:$0xff] }
 0x28a   : > { %2336 = vrot.lane.b32.xlu1 %v2271_v3, %s4703_s8  ;;  %2342 = vrot.lane.b32.xlu0 %v5799_v4, %s4703_s8 }
 0x28c   : > { %v1967_v8 = vpop.permute.xlu1 %1966  ;;  %v1973_v10 = vpop.permute.xlu0 %1972 }
 0x28d   : > { %2054 = vst.msk [vmem:[#allocation4 + $0x48] sm:$0xff] %vm2044_vm9, %v1967_v8  ;;  %2057 = vst.msk [vmem:[#allocation4 + $0x60] sm:$0xff] %vm2044_vm9, %v1973_v10  ;;  %v2464_v8 = vld [vmem:[#allocation3 + $0x22] sm:$0xff] }
 0x28e   : > { %2340 = vrot.lane.b32.xlu1 %v5803_v7, %s4703_s8  ;;  %2346 = vrot.lane.b32.xlu0 %v5808_v9, %s4703_s8 }
 0x290   : > { %v1971_v12 = vpop.permute.xlu1 %1970  ;;  %v1977_v16 = vpop.permute.xlu0 %1976 }
 0x291   : > { %2056 = vst.msk [vmem:[#allocation4 + $0x58] sm:$0xff] %vm2044_vm9, %v1971_v12  ;;  %2059 = vst.msk [vmem:[#allocation4 + $0x70] sm:$0xff] %vm2044_vm9, %v1977_v16  ;;  %v5887_v12 = vld [vmem:[#allocation3 + $0x4a] sm:$0xff] }
 0x292   : > { %2344 = vrot.lane.b32.xlu1 %v5813_v11, %s4703_s8  ;;  %2350 = vrot.lane.b32.xlu0 %v5818_v14, %s4703_s8 }
 0x294   : > { %v1975_v20 = vpop.permute.xlu1 %1974  ;;  %v1981_v24 = vpop.permute.xlu0 %1980 }
 0x295   : > { %2058 = vst.msk [vmem:[#allocation4 + $0x68] sm:$0xff] %vm2044_vm9, %v1975_v20  ;;  %2061 = vst.msk [vmem:[#allocation4 + $0x80] sm:$0xff] %vm2044_vm9, %v1981_v24  ;;  %v5891_v20 = vld [vmem:[#allocation3 + $0x3a] sm:$0xff]  ;;  %v5896_v24 = vld [vmem:[#allocation3 + $0x62] sm:$0xff] }
 0x296   : > { %2348 = vrot.lane.b32.xlu1 %v5823_v18, %s4703_s8  ;;  %2354 = vrot.lane.b32.xlu0 %v2280_v23, %s4703_s8 }
 0x298   : > { %v1979_v29 = vpop.permute.xlu1 %1978  ;;  %v1985_v34 = vpop.permute.xlu0 %1984 }
 0x299   : > { %2060 = vst.msk [vmem:[#allocation4 + $0x78] sm:$0xff] %vm2044_vm9, %v1979_v29  ;;  %2063 = vst.msk [vmem:[#allocation4 + $0x90] sm:$0xff] %vm2044_vm9, %v1985_v34 }
 0x29a   : > { %2352 = vrot.lane.b32.xlu1 %v5831_v26, %s4703_s8  ;;  %2358 = vrot.lane.b32.xlu0 %v2282_v31, %s4703_s8  ;;  %v5901_v31 = vld [vmem:[#allocation3 + $0x52] sm:$0xff] }
 0x29c   : > { %v1983_v42 = vpop.permute.xlu1 %1982  ;;  %v1989_v50 = vpop.permute.xlu0 %1988 }
 0x29d   : > { %2062 = vst.msk [vmem:[#allocation4 + $0x88] sm:$0xff] %vm2044_vm9, %v1983_v42  ;;  %2065 = vst.msk [vmem:[#allocation4 + $0xa0] sm:$0xff] %vm2044_vm9, %v1989_v50 }
 0x29e   : > { %2356 = vrot.lane.b32.xlu1 %v2281_v38, %s4703_s8  ;;  %2362 = vrot.lane.b32.xlu0 %v2284_v46, %s4703_s8  ;;  %v5906_v38 = vld [vmem:[#allocation3 + $0x7a] sm:$0xff]  ;;  %v5911_v46 = vld [vmem:[#allocation3 + $0x6a] sm:$0xff] }
 0x2a0   : > { %v1987_v57 = vpop.permute.xlu1 %1986  ;;  %v1993_v60 = vpop.permute.xlu0 %1992 }
 0x2a1   : > { %2064 = vst.msk [vmem:[#allocation4 + $0x98] sm:$0xff] %vm2044_vm9, %v1987_v57  ;;  %2067 = vst.msk [vmem:[#allocation4 + $0xb0] sm:$0xff] %vm2044_vm9, %v1993_v60 }
 0x2a2   : > { %2360 = vrot.lane.b32.xlu1 %v2283_v54, %s4703_s8  ;;  %2366 = vrot.lane.b32.xlu0 %v2286_v59, %s4703_s8  ;;  %v5916_v54 = vld [vmem:[#allocation3 + $0x92] sm:$0xff]  ;;  %v5921_v59 = vld [vmem:[#allocation3 + $0x82] sm:$0xff] }
 0x2a4   : > { %v1991_v61 = vpop.permute.xlu1 %1990  ;;  %v1997_v17 = vpop.permute.xlu0 %1996 }
 0x2a5   : > { %2066 = vst.msk [vmem:[#allocation4 + $0xa8] sm:$0xff] %vm2044_vm9, %v1991_v61  ;;  %2069 = vst.msk [vmem:[#allocation4 + $0xc0] sm:$0xff] %vm2044_vm9, %v1997_v17 }
 0x2a6   : > { %2364 = vrot.lane.b32.xlu1 %v2285_v13, %s4703_s8  ;;  %2370 = vrot.lane.b32.xlu0 %v2288_v15, %s4703_s8  ;;  %v5926_v13 = vld [vmem:[#allocation3 + $0xaa] sm:$0xff]  ;;  %v5931_v15 = vld [vmem:[#allocation3 + $0x9a] sm:$0xff] }
 0x2a8   : > { %v1995_v21 = vpop.permute.xlu1 %1994  ;;  %v2001_v25 = vpop.permute.xlu0 %2000 }
 0x2a9   : > { %2068 = vst.msk [vmem:[#allocation4 + $0xb8] sm:$0xff] %vm2044_vm9, %v1995_v21  ;;  %2071 = vst.msk [vmem:[#allocation4 + $0xd0] sm:$0xff] %vm2044_vm9, %v2001_v25 }
 0x2aa   : > { %2368 = vrot.lane.b32.xlu1 %v2287_v19, %s4703_s8  ;;  %2374 = vrot.lane.b32.xlu0 %v2290_v22, %s4703_s8  ;;  %v5936_v19 = vld [vmem:[#allocation3 + $0xc2] sm:$0xff]  ;;  %v5941_v22 = vld [vmem:[#allocation3 + $0xb2] sm:$0xff] }
 0x2ac   : > { %v1999_v28 = vpop.permute.xlu1 %1998  ;;  %v2005_v32 = vpop.permute.xlu0 %2004 }
 0x2ad   : > { %2070 = vst.msk [vmem:[#allocation4 + $0xc8] sm:$0xff] %vm2044_vm9, %v1999_v28  ;;  %2073 = vst.msk [vmem:[#allocation4 + $0xe0] sm:$0xff] %vm2044_vm9, %v2005_v32 }
 0x2ae   : > { %2372 = vrot.lane.b32.xlu1 %v2289_v27, %s4703_s8  ;;  %2378 = vrot.lane.b32.xlu0 %v2292_v30, %s4703_s8  ;;  %v5946_v27 = vld [vmem:[#allocation3 + $0xda] sm:$0xff]  ;;  %v5951_v30 = vld [vmem:[#allocation3 + $0xca] sm:$0xff] }
 0x2b0   : > { %v2003_v35 = vpop.permute.xlu1 %2002  ;;  %v2009_v37 = vpop.permute.xlu0 %2008 }
 0x2b1   : > { %2072 = vst.msk [vmem:[#allocation4 + $0xd8] sm:$0xff] %vm2044_vm9, %v2003_v35  ;;  %2075 = vst.msk [vmem:[#allocation4 + $0xf0] sm:$0xff] %vm2044_vm9, %v2009_v37 }
 0x2b2   : > { %2376 = vrot.lane.b32.xlu1 %v2291_v33, %s4703_s8  ;;  %2382 = vrot.lane.b32.xlu0 %v2294_v36, %s4703_s8  ;;  %v2481_v33 = vld [vmem:[#allocation3 + $0xf2] sm:$0xff]  ;;  %v5959_v36 = vld [vmem:[#allocation3 + $0xe2] sm:$0xff] }
 0x2b4   : > { %v2007_v40 = vpop.permute.xlu1 %2006  ;;  %v2142_v43 = vpop.permute.xlu0 %2141 }
 0x2b5   : > { %2074 = vst.msk [vmem:[#allocation4 + $0xe8] sm:$0xff] %vm2044_vm9, %v2007_v40 }
 0x2b6   : > { %2380 = vrot.lane.b32.xlu1 %v2293_v39, %s4703_s8  ;;  %2238 = vst.msk [vmem:[#allocation4] sm:$0xff] %vm2237_vm10, %v2142_v43  ;;  %2386 = vrot.lane.b32.xlu0 %v2296_v41, %s4703_s8  ;;  %v2483_v39 = vld [vmem:[#allocation3 + $0x10a] sm:$0xff]  ;;  %v2482_v41 = vld [vmem:[#allocation3 + $0xfa] sm:$0xff] }
 0x2b8   : > { %v2011_v45 = vpop.permute.xlu1 %2010  ;;  %v2146_v48 = vpop.permute.xlu0 %2145 }
 0x2b9   : > { %2076 = vst.msk [vmem:[#allocation4 + $0xf8] sm:$0xff] %vm2044_vm9, %v2011_v45 }
 0x2ba   : > { %2384 = vrot.lane.b32.xlu1 %v2295_v44, %s4703_s8  ;;  %2240 = vst.msk [vmem:[#allocation4 + $0x10] sm:$0xff] %vm2237_vm10, %v2146_v48  ;;  %2390 = vrot.lane.b32.xlu0 %v2298_v47, %s4703_s8  ;;  %v2485_v44 = vld [vmem:[#allocation3 + $0x122] sm:$0xff]  ;;  %v2484_v47 = vld [vmem:[#allocation3 + $0x112] sm:$0xff] }
 0x2bc   : > { %v2144_v51 = vpop.permute.xlu1 %2143  ;;  %v2150_v52 = vpop.permute.xlu0 %2149 }
 0x2bd   : > { %2239 = vst.msk [vmem:[#allocation4 + $0x8] sm:$0xff] %vm2237_vm10, %v2144_v51  ;;  %2242 = vst.msk [vmem:[#allocation4 + $0x20] sm:$0xff] %vm2237_vm10, %v2150_v52 }
 0x2be   : > { %2388 = vrot.lane.b32.xlu1 %v2297_v49, %s4703_s8  ;;  %2394 = vrot.lane.b32.xlu0 %v2300_v62, %s4703_s8  ;;  %v2487_v49 = vld [vmem:[#allocation3 + $0x13a] sm:$0xff]  ;;  %v2486_v62 = vld [vmem:[#allocation3 + $0x12a] sm:$0xff] }
 0x2c0   : > { %v2148_v63 = vpop.permute.xlu1 %2147  ;;  %v2154_v0 = vpop.permute.xlu0 %2153 }
 0x2c1   : > { %2241 = vst.msk [vmem:[#allocation4 + $0x18] sm:$0xff] %vm2237_vm10, %v2148_v63  ;;  %2244 = vst.msk [vmem:[#allocation4 + $0x30] sm:$0xff] %vm2237_vm10, %v2154_v0 }
 0x2c2   : > { %2392 = vrot.lane.b32.xlu1 %v2299_v53, %s4703_s8  ;;  %2527 = vrot.lane.b32.xlu0 %v2463_v55, %s4704_s9  ;;  %v2489_v53 = vld [vmem:[#allocation3 + $0x152] sm:$0xff]  ;;  %v2488_v55 = vld [vmem:[#allocation3 + $0x142] sm:$0xff] }
 0x2c4   : > { %v2152_v3 = vpop.permute.xlu1 %2151  ;;  %v2158_v6 = vpop.permute.xlu0 %2157 }
 0x2c5   : > { %2243 = vst.msk [vmem:[#allocation4 + $0x28] sm:$0xff] %vm2237_vm10, %v2152_v3  ;;  %2246 = vst.msk [vmem:[#allocation4 + $0x40] sm:$0xff] %vm2237_vm10, %v2158_v6  ;;  %v2490_v6 = vld [vmem:[#allocation3 + $0x15a] sm:$0xff] }
 0x2c6   : > { %2396 = vrot.lane.b32.xlu1 %v2301_v2, %s4703_s8  ;;  %2531 = vrot.lane.b32.xlu0 %v5880_v58, %s4704_s9  ;;  %v2491_v2 = vld [vmem:[#allocation3 + $0x16a] sm:$0xff] }
 0x2c8   : > { %v2156_v10 = vpop.permute.xlu1 %2155  ;;  %v2162_v16 = vpop.permute.xlu0 %2161 }
 0x2c9   : > { %2245 = vst.msk [vmem:[#allocation4 + $0x38] sm:$0xff] %vm2237_vm10, %v2156_v10  ;;  %2248 = vst.msk [vmem:[#allocation4 + $0x50] sm:$0xff] %vm2237_vm10, %v2162_v16  ;;  %v2493_v10 = vld [vmem:[#allocation3 + $0x182] sm:$0xff] }
 0x2ca   : > { %2529 = vrot.lane.b32.xlu1 %v2464_v8, %s4704_s9  ;;  %2535 = vrot.lane.b32.xlu0 %v5887_v12, %s4704_s9 }
 0x2cc   : > { %v2160_v23 = vpop.permute.xlu1 %2159  ;;  %v2166_v29 = vpop.permute.xlu0 %2165 }
 0x2cd   : > { %2247 = vst.msk [vmem:[#allocation4 + $0x48] sm:$0xff] %vm2237_vm10, %v2160_v23  ;;  %2250 = vst.msk [vmem:[#allocation4 + $0x60] sm:$0xff] %vm2237_vm10, %v2166_v29  ;;  %v2492_v23 = vld [vmem:[#allocation3 + $0x172] sm:$0xff] }
 0x2ce   : > { %2533 = vrot.lane.b32.xlu1 %v5891_v20, %s4704_s9  ;;  %2539 = vrot.lane.b32.xlu0 %v5896_v24, %s4704_s9 }
 0x2d0   : > { %v2164_v34 = vpop.permute.xlu1 %2163  ;;  %v2170_v42 = vpop.permute.xlu0 %2169 }
 0x2d1   : > { %2249 = vst.msk [vmem:[#allocation4 + $0x58] sm:$0xff] %vm2237_vm10, %v2164_v34  ;;  %2252 = vst.msk [vmem:[#allocation4 + $0x70] sm:$0xff] %vm2237_vm10, %v2170_v42  ;;  %v2657_v34 = vld [vmem:[#allocation2 + $0x30] sm:$0xff] }
 0x2d2   : > { %2537 = vrot.lane.b32.xlu1 %v5901_v31, %s4704_s9  ;;  %2543 = vrot.lane.b32.xlu0 %v5906_v38, %s4704_s9 }
 0x2d4   : > { %v2168_v50 = vpop.permute.xlu1 %2167  ;;  %v2174_v57 = vpop.permute.xlu0 %2173 }
 0x2d5   : > { %2251 = vst.msk [vmem:[#allocation4 + $0x68] sm:$0xff] %vm2237_vm10, %v2168_v50  ;;  %2254 = vst.msk [vmem:[#allocation4 + $0x80] sm:$0xff] %vm2237_vm10, %v2174_v57  ;;  %v2494_v50 = vld [vmem:[#allocation3 + $0x18a] sm:$0xff] }
 0x2d6   : > { %2541 = vrot.lane.b32.xlu1 %v5911_v46, %s4704_s9  ;;  %2547 = vrot.lane.b32.xlu0 %v5916_v54, %s4704_s9 }
 0x2d8   : > { %v2172_v60 = vpop.permute.xlu1 %2171  ;;  %v2178_v61 = vpop.permute.xlu0 %2177 }
 0x2d9   : > { %2253 = vst.msk [vmem:[#allocation4 + $0x78] sm:$0xff] %vm2237_vm10, %v2172_v60  ;;  %2256 = vst.msk [vmem:[#allocation4 + $0x90] sm:$0xff] %vm2237_vm10, %v2178_v61  ;;  %v2659_v60 = vld [vmem:[#allocation2 + $0x48] sm:$0xff] }
 0x2da   : > { %2545 = vrot.lane.b32.xlu1 %v5921_v59, %s4704_s9  ;;  %2551 = vrot.lane.b32.xlu0 %v5926_v13, %s4704_s9 }
 0x2dc   : > { %v2176_v17 = vpop.permute.xlu1 %2175  ;;  %v2182_v21 = vpop.permute.xlu0 %2181 }
 0x2dd   : > { %2255 = vst.msk [vmem:[#allocation4 + $0x88] sm:$0xff] %vm2237_vm10, %v2176_v17  ;;  %2258 = vst.msk [vmem:[#allocation4 + $0xa0] sm:$0xff] %vm2237_vm10, %v2182_v21  ;;  %v2658_v17 = vld [vmem:[#allocation2 + $0x38] sm:$0xff] }
 0x2de   : > { %2549 = vrot.lane.b32.xlu1 %v5931_v15, %s4704_s9  ;;  %2555 = vrot.lane.b32.xlu0 %v5936_v19, %s4704_s9 }
 0x2e0   : > { %v2180_v25 = vpop.permute.xlu1 %2179  ;;  %v2186_v28 = vpop.permute.xlu0 %2185 }
 0x2e1   : > { %2257 = vst.msk [vmem:[#allocation4 + $0x98] sm:$0xff] %vm2237_vm10, %v2180_v25  ;;  %2260 = vst.msk [vmem:[#allocation4 + $0xb0] sm:$0xff] %vm2237_vm10, %v2186_v28  ;;  %v2661_v25 = vld [vmem:[#allocation2 + $0x60] sm:$0xff] }
 0x2e2   : > { %2553 = vrot.lane.b32.xlu1 %v5941_v22, %s4704_s9  ;;  %2559 = vrot.lane.b32.xlu0 %v5946_v27, %s4704_s9 }
 0x2e4   : > { %v2184_v32 = vpop.permute.xlu1 %2183  ;;  %v2190_v35 = vpop.permute.xlu0 %2189 }
 0x2e5   : > { %2259 = vst.msk [vmem:[#allocation4 + $0xa8] sm:$0xff] %vm2237_vm10, %v2184_v32  ;;  %2262 = vst.msk [vmem:[#allocation4 + $0xc0] sm:$0xff] %vm2237_vm10, %v2190_v35  ;;  %v2660_v32 = vld [vmem:[#allocation2 + $0x50] sm:$0xff]  ;;  %v2663_v35 = vld [vmem:[#allocation2 + $0x78] sm:$0xff] }
 0x2e6   : > { %2557 = vrot.lane.b32.xlu1 %v5951_v30, %s4704_s9  ;;  %2563 = vrot.lane.b32.xlu0 %v2481_v33, %s4704_s9 }
 0x2e8   : > { %v2188_v37 = vpop.permute.xlu1 %2187  ;;  %v2194_v40 = vpop.permute.xlu0 %2193 }
 0x2e9   : > { %2261 = vst.msk [vmem:[#allocation4 + $0xb8] sm:$0xff] %vm2237_vm10, %v2188_v37  ;;  %2264 = vst.msk [vmem:[#allocation4 + $0xd0] sm:$0xff] %vm2237_vm10, %v2194_v40 }
 0x2ea   : > { %2561 = vrot.lane.b32.xlu1 %v5959_v36, %s4704_s9  ;;  %2567 = vrot.lane.b32.xlu0 %v2483_v39, %s4704_s9  ;;  %v2662_v39 = vld [vmem:[#allocation2 + $0x68] sm:$0xff] }
 0x2ec   : > { %v2192_v43 = vpop.permute.xlu1 %2191  ;;  %v2198_v45 = vpop.permute.xlu0 %2197 }
 0x2ed   : > { %2263 = vst.msk [vmem:[#allocation4 + $0xc8] sm:$0xff] %vm2237_vm10, %v2192_v43  ;;  %2266 = vst.msk [vmem:[#allocation4 + $0xe0] sm:$0xff] %vm2237_vm10, %v2198_v45 }
 0x2ee   : > { %2565 = vrot.lane.b32.xlu1 %v2482_v41, %s4704_s9  ;;  %2571 = vrot.lane.b32.xlu0 %v2485_v44, %s4704_s9  ;;  %v2665_v41 = vld [vmem:[#allocation2 + $0x90] sm:$0xff]  ;;  %v2664_v44 = vld [vmem:[#allocation2 + $0x80] sm:$0xff] }
 0x2f0   : > { %v2196_v48 = vpop.permute.xlu1 %2195  ;;  %v2202_v51 = vpop.permute.xlu0 %2201 }
 0x2f1   : > { %2265 = vst.msk [vmem:[#allocation4 + $0xd8] sm:$0xff] %vm2237_vm10, %v2196_v48  ;;  %2268 = vst.msk [vmem:[#allocation4 + $0xf0] sm:$0xff] %vm2237_vm10, %v2202_v51 }
 0x2f2   : > { %2569 = vrot.lane.b32.xlu1 %v2484_v47, %s4704_s9  ;;  %2575 = vrot.lane.b32.xlu0 %v2487_v49, %s4704_s9  ;;  %v2667_v47 = vld [vmem:[#allocation2 + $0xa8] sm:$0xff]  ;;  %v2666_v49 = vld [vmem:[#allocation2 + $0x98] sm:$0xff] }
 0x2f4   : > { %v2200_v52 = vpop.permute.xlu1 %2199  ;;  %v2335_v63 = vpop.permute.xlu0 %2334 }
 0x2f5   : > { %2267 = vst.msk [vmem:[#allocation4 + $0xe8] sm:$0xff] %vm2237_vm10, %v2200_v52 }
 0x2f6   : > { %2573 = vrot.lane.b32.xlu1 %v2486_v62, %s4704_s9  ;;  %2431 = vst.msk [vmem:[#allocation4] sm:$0xff] %vm2430_vm11, %v2335_v63  ;;  %2579 = vrot.lane.b32.xlu0 %v2489_v53, %s4704_s9  ;;  %v2669_v62 = vld [vmem:[#allocation2 + $0xc0] sm:$0xff]  ;;  %v2668_v53 = vld [vmem:[#allocation2 + $0xb0] sm:$0xff] }
 0x2f8   : > { %v2204_v0 = vpop.permute.xlu1 %2203  ;;  %v2339_v3 = vpop.permute.xlu0 %2338 }
 0x2f9   : > { %2269 = vst.msk [vmem:[#allocation4 + $0xf8] sm:$0xff] %vm2237_vm10, %v2204_v0 }
 0x2fa   : > { %2577 = vrot.lane.b32.xlu1 %v2488_v55, %s4704_s9  ;;  %2433 = vst.msk [vmem:[#allocation4 + $0x10] sm:$0xff] %vm2430_vm11, %v2339_v3  ;;  %2583 = vrot.lane.b32.xlu0 %v2491_v2, %s4704_s9  ;;  %v2671_v55 = vld [vmem:[#allocation2 + $0xd8] sm:$0xff]  ;;  %v2670_v2 = vld [vmem:[#allocation2 + $0xc8] sm:$0xff] }
 0x2fc   : > { %v2337_v8 = vpop.permute.xlu1 %2336  ;;  %v2343_v16 = vpop.permute.xlu0 %2342 }
 0x2fd   : > { %2432 = vst.msk [vmem:[#allocation4 + $0x8] sm:$0xff] %vm2430_vm11, %v2337_v8  ;;  %2435 = vst.msk [vmem:[#allocation4 + $0x20] sm:$0xff] %vm2430_vm11, %v2343_v16 }
 0x2fe   : > { %2581 = vrot.lane.b32.xlu1 %v2490_v6, %s4704_s9  ;;  %2587 = vrot.lane.b32.xlu0 %v2493_v10, %s4704_s9  ;;  %v2673_v6 = vld [vmem:[#allocation2 + $0xf0] sm:$0xff]  ;;  %v2672_v10 = vld [vmem:[#allocation2 + $0xe0] sm:$0xff] }
 0x300   : > { %v2341_v29 = vpop.permute.xlu1 %2340  ;;  %v2347_v42 = vpop.permute.xlu0 %2346 }
 0x301   : > { %2434 = vst.msk [vmem:[#allocation4 + $0x18] sm:$0xff] %vm2430_vm11, %v2341_v29  ;;  %2437 = vst.msk [vmem:[#allocation4 + $0x30] sm:$0xff] %vm2430_vm11, %v2347_v42 }
 0x302   : > { %2585 = vrot.lane.b32.xlu1 %v2492_v23, %s4704_s9  ;;  %2721 = vrot.lane.b32.xlu0 %v2657_v34, %s4705_s10  ;;  %v2675_v23 = vld [vmem:[#allocation2 + $0x108] sm:$0xff]  ;;  %v2674_v34 = vld [vmem:[#allocation2 + $0xf8] sm:$0xff] }
 0x304   : > { %v2345_v57 = vpop.permute.xlu1 %2344  ;;  %v2351_v61 = vpop.permute.xlu0 %2350 }
 0x305   : > { %2436 = vst.msk [vmem:[#allocation4 + $0x28] sm:$0xff] %vm2430_vm11, %v2345_v57  ;;  %2439 = vst.msk [vmem:[#allocation4 + $0x40] sm:$0xff] %vm2430_vm11, %v2351_v61 }
 0x306   : > { %2589 = vrot.lane.b32.xlu1 %v2494_v50, %s4704_s9  ;;  %2725 = vrot.lane.b32.xlu0 %v2659_v60, %s4705_s10  ;;  %v2851_v50 = vld [vmem:[#allocation3 + $0x30] sm:$0xff]  ;;  %v2676_v60 = vld [vmem:[#allocation2 + $0x110] sm:$0xff] }
 0x308   : > { %v2349_v21 = vpop.permute.xlu1 %2348  ;;  %v2355_v28 = vpop.permute.xlu0 %2354 }
 0x309   : > { %2438 = vst.msk [vmem:[#allocation4 + $0x38] sm:$0xff] %vm2430_vm11, %v2349_v21  ;;  %2441 = vst.msk [vmem:[#allocation4 + $0x50] sm:$0xff] %vm2430_vm11, %v2355_v28  ;;  %v3856_v28 = vld [vmem:[%s6661_s2 + $0x40] sm:$0xff] }
 0x30a   : > { %2723 = vrot.lane.b32.xlu1 %v2658_v17, %s4705_s10  ;;  %2729 = vrot.lane.b32.xlu0 %v2661_v25, %s4705_s10  ;;  %v3044_v17 = vld [vmem:[#allocation2 + $0x31] sm:$0xff]  ;;  %v2852_v25 = vld [vmem:[#allocation3 + $0x38] sm:$0xff] }
 0x30b   : > { %4573 = vmatprep.subr.mxu0 %v3856_v28  ;;  %4639 = vmatprep.subr.mxu1 %v3856_v28 }
 0x30c   : > { %v2353_v33 = vpop.permute.xlu1 %2352  ;;  %v2359_v37 = vpop.permute.xlu0 %2358  ;;  %4574 = vmatpush3.msra.mxu0 %v3856_v28  ;;  %4648 = vmatpush3.msra.mxu1 %v3856_v28  ;;  %v2857_v28 = vld [vmem:[#allocation3 + $0x78] sm:$0xff] }
 0x30d   : > { %2440 = vst.msk [vmem:[#allocation4 + $0x48] sm:$0xff] %vm2430_vm11, %v2353_v33  ;;  %2443 = vst.msk [vmem:[#allocation4 + $0x60] sm:$0xff] %vm2430_vm11, %v2359_v37  ;;  %v3855_v33 = vld [vmem:[%s6661_s2 + $0x38] sm:$0xff] }
 0x30e   : > { %2727 = vrot.lane.b32.xlu1 %v2660_v32, %s4705_s10  ;;  %2733 = vrot.lane.b32.xlu0 %v2663_v35, %s4705_s10  ;;  %v3045_v37 = vld [vmem:[#allocation2 + $0x39] sm:$0xff] }
 0x30f   : > { %4575 = vmatprep.subr.mxu0 %v3855_v33  ;;  %4640 = vmatprep.subr.mxu1 %v3855_v33 }
 0x310   : > { %v2357_v40 = vpop.permute.xlu1 %2356  ;;  %v2363_v43 = vpop.permute.xlu0 %2362  ;;  %4576 = vmatpush3.msra.mxu0 %v3855_v33  ;;  %4649 = vmatpush3.msra.mxu1 %v3855_v33  ;;  %v2858_v33 = vld [vmem:[#allocation3 + $0x80] sm:$0xff] }
 0x311   : > { %2442 = vst.msk [vmem:[#allocation4 + $0x58] sm:$0xff] %vm2430_vm11, %v2357_v40  ;;  %2445 = vst.msk [vmem:[#allocation4 + $0x70] sm:$0xff] %vm2430_vm11, %v2363_v43 }
 0x312   : > { %2731 = vrot.lane.b32.xlu1 %v2662_v39, %s4705_s10  ;;  %2737 = vrot.lane.b32.xlu0 %v2665_v41, %s4705_s10  ;;  %v3854_v39 = vld [vmem:[%s6661_s2 + $0x30] sm:$0xff]  ;;  %v3853_v41 = vld [vmem:[%s6661_s2 + $0x28] sm:$0xff] }
 0x313   : > { %4577 = vmatprep.subr.mxu0 %v3854_v39  ;;  %4641 = vmatprep.subr.mxu1 %v3854_v39 }
 0x314   : > { %v2361_v45 = vpop.permute.xlu1 %2360  ;;  %v2367_v48 = vpop.permute.xlu0 %2366  ;;  %4578 = vmatpush3.msra.mxu0 %v3854_v39  ;;  %4650 = vmatpush3.msra.mxu1 %v3854_v39 }
 0x315   : > { %2444 = vst.msk [vmem:[#allocation4 + $0x68] sm:$0xff] %vm2430_vm11, %v2361_v45  ;;  %2447 = vst.msk [vmem:[#allocation4 + $0x80] sm:$0xff] %vm2430_vm11, %v2367_v48  ;;  %4579 = vmatprep.subr.mxu0 %v3853_v41  ;;  %v3851_v45 = vld [vmem:[%s6661_s2 + $0x18] sm:$0xff]  ;;  %4642 = vmatprep.subr.mxu1 %v3853_v41 }
 0x316   : > { %2735 = vrot.lane.b32.xlu1 %v2664_v44, %s4705_s10  ;;  %2741 = vrot.lane.b32.xlu0 %v2667_v47, %s4705_s10  ;;  %v2853_v48 = vld [vmem:[#allocation3 + $0x48] sm:$0xff] }
 0x317   : > { %4580 = vmatpush3.msra.mxu0 %v3853_v41  ;;  %4651 = vmatpush3.msra.mxu1 %v3853_v41 }
 0x318   : > { %v2365_v51 = vpop.permute.xlu1 %2364  ;;  %v2371_v52 = vpop.permute.xlu0 %2370 }
 0x319   : > { %2446 = vst.msk [vmem:[#allocation4 + $0x78] sm:$0xff] %vm2430_vm11, %v2365_v51  ;;  %2449 = vst.msk [vmem:[#allocation4 + $0x90] sm:$0xff] %vm2430_vm11, %v2371_v52  ;;  %v2854_v51 = vld [vmem:[#allocation3 + $0x50] sm:$0xff] }
 0x31a   : > { %2739 = vrot.lane.b32.xlu1 %v2666_v49, %s4705_s10  ;;  %2745 = vrot.lane.b32.xlu0 %v2669_v62, %s4705_s10 }
 0x31c   : > { %v2369_v63 = vpop.permute.xlu1 %2368  ;;  %v2375_v0 = vpop.permute.xlu0 %2374 }
 0x31d   : > { %2448 = vst.msk [vmem:[#allocation4 + $0x88] sm:$0xff] %vm2430_vm11, %v2369_v63  ;;  %2451 = vst.msk [vmem:[#allocation4 + $0xa0] sm:$0xff] %vm2430_vm11, %v2375_v0  ;;  %v3046_v63 = vld [vmem:[#allocation2 + $0x49] sm:$0xff]  ;;  %v3239_v0 = vld [vmem:[#allocation3 + $0x49] sm:$0xff] }
 0x31e   : > { %2743 = vrot.lane.b32.xlu1 %v2668_v53, %s4705_s10  ;;  %2749 = vrot.lane.b32.xlu0 %v2671_v55, %s4705_s10 }
 0x320   : > { %v2373_v3 = vpop.permute.xlu1 %2372  ;;  %v2379_v8 = vpop.permute.xlu0 %2378 }
 0x321   : > { %2450 = vst.msk [vmem:[#allocation4 + $0x98] sm:$0xff] %vm2430_vm11, %v2373_v3  ;;  %2453 = vst.msk [vmem:[#allocation4 + $0xb0] sm:$0xff] %vm2430_vm11, %v2379_v8 }
 0x322   : > { %2747 = vrot.lane.b32.xlu1 %v2670_v2, %s4705_s10  ;;  %2753 = vrot.lane.b32.xlu0 %v2673_v6, %s4705_s10  ;;  %v3240_v6 = vld [vmem:[#allocation3 + $0x51] sm:$0xff] }
 0x324   : > { %v2377_v16 = vpop.permute.xlu1 %2376  ;;  %v2383_v29 = vpop.permute.xlu0 %2382 }
 0x325   : > { %2452 = vst.msk [vmem:[#allocation4 + $0xa8] sm:$0xff] %vm2430_vm11, %v2377_v16  ;;  %2455 = vst.msk [vmem:[#allocation4 + $0xc0] sm:$0xff] %vm2430_vm11, %v2383_v29  ;;  %v2855_v16 = vld [vmem:[#allocation3 + $0x60] sm:$0xff]  ;;  %v2856_v29 = vld [vmem:[#allocation3 + $0x68] sm:$0xff] }
 0x326   : > { %2751 = vrot.lane.b32.xlu1 %v2672_v10, %s4705_s10  ;;  %2757 = vrot.lane.b32.xlu0 %v2675_v23, %s4705_s10 }
 0x328   : > { %v2381_v42 = vpop.permute.xlu1 %2380  ;;  %v2387_v57 = vpop.permute.xlu0 %2386 }
 0x329   : > { %2454 = vst.msk [vmem:[#allocation4 + $0xb8] sm:$0xff] %vm2430_vm11, %v2381_v42  ;;  %2457 = vst.msk [vmem:[#allocation4 + $0xd0] sm:$0xff] %vm2430_vm11, %v2387_v57  ;;  %v3241_v57 = vld [vmem:[#allocation3 + $0x61] sm:$0xff] }
 0x32a   : > { %2755 = vrot.lane.b32.xlu1 %v2674_v34, %s4705_s10  ;;  %2915 = vrot.lane.b32.xlu0 %v2851_v50, %s4706_s11 }
 0x32c   : > { %v2385_v61 = vpop.permute.xlu1 %2384  ;;  %v2391_v21 = vpop.permute.xlu0 %2390 }
 0x32d   : > { %2456 = vst.msk [vmem:[#allocation4 + $0xc8] sm:$0xff] %vm2430_vm11, %v2385_v61  ;;  %2459 = vst.msk [vmem:[#allocation4 + $0xe0] sm:$0xff] %vm2430_vm11, %v2391_v21  ;;  %v3049_v61 = vld [vmem:[#allocation2 + $0x69] sm:$0xff] }
 0x32e   : > { %2759 = vrot.lane.b32.xlu1 %v2676_v60, %s4705_s10  ;;  %3108 = vrot.lane.b32.xlu0 %v3044_v17, %s4707_s14 }
 0x330   : > { %v2389_v32 = vpop.permute.xlu1 %2388  ;;  %v2395_v35 = vpop.permute.xlu0 %2394 }
 0x331   : > { %2458 = vst.msk [vmem:[#allocation4 + $0xd8] sm:$0xff] %vm2430_vm11, %v2389_v32  ;;  %2461 = vst.msk [vmem:[#allocation4 + $0xf0] sm:$0xff] %vm2430_vm11, %v2395_v35 }
 0x332   : > { %2917 = vrot.lane.b32.xlu1 %v2852_v25, %s4706_s11  ;;  %3301 = vrot.lane.b32.xlu0 %v5722_v56, %s4708_s22  ;;  %v3852_v56 = vld [vmem:[%s6661_s2 + $0x20] sm:$0xff] }
 0x333   : > { %4581 = vmatprep.subr.mxu0 %v3852_v56  ;;  %4643 = vmatprep.subr.mxu1 %v3852_v56 }
 0x334   : > { %v2393_v40 = vpop.permute.xlu1 %2392  ;;  %v2528_v43 = vpop.permute.xlu0 %2527  ;;  %4582 = vmatpush3.msra.mxu0 %v3852_v56  ;;  %4652 = vmatpush3.msra.mxu1 %v3852_v56 }
 0x335   : > { %2460 = vst.msk [vmem:[#allocation4 + $0xe8] sm:$0xff] %vm2430_vm11, %v2393_v40  ;;  %4583 = vmatprep.subr.mxu0 %v3851_v45  ;;  %4644 = vmatprep.subr.mxu1 %v3851_v45  ;;  %v3243_v40 = vld [vmem:[#allocation3 + $0x79] sm:$0xff] }
 0x336   : > { %3110 = vrot.lane.b32.xlu1 %v3045_v37, %s4707_s14  ;;  %2624 = vst.msk [vmem:[#allocation4] sm:$0xff] %vm2623_vm12, %v2528_v43  ;;  %3494 = vrot.lane.b32.xlu0 %v5792_v1, %s4709_s27  ;;  %v3850_v1 = vld [vmem:[%s6661_s2 + $0x10] sm:$0xff]  ;;  %v3051_v43 = vld [vmem:[#allocation2 + $0x81] sm:$0xff] }
 0x337   : > { %4584 = vmatpush3.msra.mxu0 %v3851_v45  ;;  %4653 = vmatpush3.msra.mxu1 %v3851_v45 }
 0x338   : > { %v2397_v44 = vpop.permute.xlu1 %2396  ;;  %v2532_v47 = vpop.permute.xlu0 %2531  ;;  %4585 = vmatprep.subr.mxu0 %v3850_v1  ;;  %4645 = vmatprep.subr.mxu1 %v3850_v1 }
 0x339   : > { %2462 = vst.msk [vmem:[#allocation4 + $0xf8] sm:$0xff] %vm2430_vm11, %v2397_v44  ;;  %4586 = vmatpush3.msra.mxu0 %v3850_v1  ;;  %4654 = vmatpush3.msra.mxu1 %v3850_v1  ;;  %v2860_v1 = vld [vmem:[#allocation3 + $0x98] sm:$0xff] }
 0x33a   : > { %3303 = vrot.lane.b32.xlu1 %v5731_v5, %s4708_s22  ;;  %2626 = vst.msk [vmem:[#allocation4 + $0x10] sm:$0xff] %vm2623_vm12, %v2532_v47  ;;  %3496 = vrot.lane.b32.xlu0 %v5803_v7, %s4709_s27  ;;  %v3849_v5 = vld [vmem:[%s6661_s2 + $0x8] sm:$0xff]  ;;  %v3848_v7 = vld [vmem:[%s6661_s2] sm:$0xff] }
 0x33b   : > { %4587 = vmatprep.subr.mxu0 %v3849_v5  ;;  %4646 = vmatprep.subr.mxu1 %v3849_v5  ;;  %v2859_v47 = vld [vmem:[#allocation3 + $0x90] sm:$0xff] }
 0x33c   : > { %v2530_v49 = vpop.permute.xlu1 %2529  ;;  %v2536_v62 = vpop.permute.xlu0 %2535  ;;  %4588 = vmatpush3.msra.mxu0 %v3849_v5  ;;  %4655 = vmatpush3.msra.mxu1 %v3849_v5 }
 0x33d   : > { %2625 = vst.msk [vmem:[#allocation4 + $0x8] sm:$0xff] %vm2623_vm12, %v2530_v49  ;;  %2628 = vst.msk [vmem:[#allocation4 + $0x20] sm:$0xff] %vm2623_vm12, %v2536_v62  ;;  %4589 = vmatprep.subr.mxu0 %v3848_v7  ;;  %4647 = vmatprep.subr.mxu1 %v3848_v7  ;;  %v3245_v62 = vld [vmem:[#allocation3 + $0x91] sm:$0xff] }
 0x33e   : > { %2919 = vrot.lane.b32.xlu1 %v2853_v48, %s4706_s11  ;;  %2921 = vrot.lane.b32.xlu0 %v2854_v51, %s4706_s11 }
 0x33f   : > { %4590 = vmatpush3.msra.mxu0 %v3848_v7  ;;  %4656 = vmatpush3.msra.mxu1 %v3848_v7 }
 0x340   : > { %v2534_v52 = vpop.permute.xlu1 %2533  ;;  %v2540_v53 = vpop.permute.xlu0 %2539 }
 0x341   : > { %2627 = vst.msk [vmem:[#allocation4 + $0x18] sm:$0xff] %vm2623_vm12, %v2534_v52  ;;  %2630 = vst.msk [vmem:[#allocation4 + $0x30] sm:$0xff] %vm2623_vm12, %v2540_v53  ;;  %v3053_v52 = vld [vmem:[#allocation2 + $0x99] sm:$0xff] }
 0x342   : > { %3687 = vrot.lane.b32.xlu1 %v5880_v58, %s4710_s12  ;;  %3689 = vrot.lane.b32.xlu0 %v5891_v20, %s4710_s12  ;;  %v3047_v58 = vld [vmem:[#allocation2 + $0x51] sm:$0xff] }
 0x344   : > { %v2538_v55 = vpop.permute.xlu1 %2537  ;;  %v2544_v2 = vpop.permute.xlu0 %2543 }
 0x345   : > { %2629 = vst.msk [vmem:[#allocation4 + $0x28] sm:$0xff] %vm2623_vm12, %v2538_v55  ;;  %2632 = vst.msk [vmem:[#allocation4 + $0x40] sm:$0xff] %vm2623_vm12, %v2544_v2  ;;  %v4683_v55 = vld [vmem:[#allocation2 + $0x92] sm:$0xff] }
 0x346   : > { %3112 = vrot.lane.b32.xlu1 %v3046_v63, %s4707_s14  ;;  %3305 = vrot.lane.b32.xlu0 %v3239_v0, %s4708_s22  ;;  %v2861_v2 = vld [vmem:[#allocation3 + $0xa8] sm:$0xff] }
 0x348   : > { %v2542_v3 = vpop.permute.xlu1 %2541  ;;  %v2548_v20 = vpop.permute.xlu0 %2547 }
 0x349   : > { %2631 = vst.msk [vmem:[#allocation4 + $0x38] sm:$0xff] %vm2623_vm12, %v2542_v3  ;;  %2634 = vst.msk [vmem:[#allocation4 + $0x50] sm:$0xff] %vm2623_vm12, %v2548_v20  ;;  %v4684_v3 = vld [vmem:[#allocation2 + $0x9a] sm:$0xff] }
 0x34a   : > { %3114 = vrot.lane.b32.xlu1 %v3047_v58, %s4707_s14  ;;  %3498 = vrot.lane.b32.xlu0 %v5799_v4, %s4709_s27  ;;  %v2862_v20 = vld [vmem:[#allocation3 + $0xb0] sm:$0xff] }
 0x34c   : > { %v2546_v8 = vpop.permute.xlu1 %2545  ;;  %v2552_v10 = vpop.permute.xlu0 %2551 }
 0x34d   : > { %2633 = vst.msk [vmem:[#allocation4 + $0x48] sm:$0xff] %vm2623_vm12, %v2546_v8  ;;  %2636 = vst.msk [vmem:[#allocation4 + $0x60] sm:$0xff] %vm2623_vm12, %v2552_v10 }
 0x34e   : > { %3307 = vrot.lane.b32.xlu1 %v3240_v6, %s4708_s22  ;;  %3500 = vrot.lane.b32.xlu0 %v5813_v11, %s4709_s27  ;;  %v3048_v11 = vld [vmem:[#allocation2 + $0x61] sm:$0xff] }
 0x350   : > { %v2550_v23 = vpop.permute.xlu1 %2549  ;;  %v2556_v34 = vpop.permute.xlu0 %2555 }
 0x351   : > { %2635 = vst.msk [vmem:[#allocation4 + $0x58] sm:$0xff] %vm2623_vm12, %v2550_v23  ;;  %2638 = vst.msk [vmem:[#allocation4 + $0x70] sm:$0xff] %vm2623_vm12, %v2556_v34 }
 0x352   : > { %2923 = vrot.lane.b32.xlu1 %v2855_v16, %s4706_s11  ;;  %2925 = vrot.lane.b32.xlu0 %v2856_v29, %s4706_s11  ;;  %v3054_v16 = vld [vmem:[#allocation2 + $0xa9] sm:$0xff]  ;;  %v3247_v29 = vld [vmem:[#allocation3 + $0xa9] sm:$0xff] }
 0x354   : > { %v2554_v4 = vpop.permute.xlu1 %2553  ;;  %v2560_v42 = vpop.permute.xlu0 %2559 }
 0x355   : > { %2637 = vst.msk [vmem:[#allocation4 + $0x68] sm:$0xff] %vm2623_vm12, %v2554_v4  ;;  %2640 = vst.msk [vmem:[#allocation4 + $0x80] sm:$0xff] %vm2623_vm12, %v2560_v42  ;;  %v3055_v4 = vld [vmem:[#allocation2 + $0xb1] sm:$0xff] }
 0x356   : > { %3691 = vrot.lane.b32.xlu1 %v5887_v12, %s4710_s12  ;;  %3693 = vrot.lane.b32.xlu0 %v5901_v31, %s4710_s12  ;;  %v3242_v31 = vld [vmem:[#allocation3 + $0x69] sm:$0xff] }
 0x358   : > { %v2558_v50 = vpop.permute.xlu1 %2557  ;;  %v2564_v60 = vpop.permute.xlu0 %2563 }
 0x359   : > { %2639 = vst.msk [vmem:[#allocation4 + $0x78] sm:$0xff] %vm2623_vm12, %v2558_v50  ;;  %2642 = vst.msk [vmem:[#allocation4 + $0x90] sm:$0xff] %vm2623_vm12, %v2564_v60 }
 0x35a   : > { %3116 = vrot.lane.b32.xlu1 %v3048_v11, %s4707_s14  ;;  %3309 = vrot.lane.b32.xlu0 %v3241_v57, %s4708_s22  ;;  %v3441_v57 = vld [vmem:[#allocation2 + $0xb2] sm:$0xff] }
 0x35c   : > { %v2562_v17 = vpop.permute.xlu1 %2561  ;;  %v2568_v12 = vpop.permute.xlu0 %2567 }
 0x35d   : > { %2641 = vst.msk [vmem:[#allocation4 + $0x88] sm:$0xff] %vm2623_vm12, %v2562_v17  ;;  %2644 = vst.msk [vmem:[#allocation4 + $0xa0] sm:$0xff] %vm2623_vm12, %v2568_v12  ;;  %v2864_v12 = vld [vmem:[#allocation3 + $0xc8] sm:$0xff] }
 0x35e   : > { %3118 = vrot.lane.b32.xlu1 %v3049_v61, %s4707_s14  ;;  %3502 = vrot.lane.b32.xlu0 %v5808_v9, %s4709_s27  ;;  %v2863_v61 = vld [vmem:[#allocation3 + $0xc0] sm:$0xff] }
 0x360   : > { %v2566_v21 = vpop.permute.xlu1 %2565  ;;  %v2572_v25 = vpop.permute.xlu0 %2571 }
 0x361   : > { %2643 = vst.msk [vmem:[#allocation4 + $0x98] sm:$0xff] %vm2623_vm12, %v2566_v21  ;;  %2646 = vst.msk [vmem:[#allocation4 + $0xb0] sm:$0xff] %vm2623_vm12, %v2572_v25 }
 0x362   : > { %3311 = vrot.lane.b32.xlu1 %v3242_v31, %s4708_s22  ;;  %3504 = vrot.lane.b32.xlu0 %v5823_v18, %s4709_s27  ;;  %v3050_v18 = vld [vmem:[#allocation2 + $0x79] sm:$0xff] }
 0x364   : > { %v2570_v32 = vpop.permute.xlu1 %2569  ;;  %v2576_v35 = vpop.permute.xlu0 %2575 }
 0x365   : > { %2645 = vst.msk [vmem:[#allocation4 + $0xa8] sm:$0xff] %vm2623_vm12, %v2570_v32  ;;  %2648 = vst.msk [vmem:[#allocation4 + $0xc0] sm:$0xff] %vm2623_vm12, %v2576_v35 }
 0x366   : > { %2927 = vrot.lane.b32.xlu1 %v2857_v28, %s4706_s11  ;;  %2929 = vrot.lane.b32.xlu0 %v2858_v33, %s4706_s11  ;;  %v3056_v28 = vld [vmem:[#allocation2 + $0xc1] sm:$0xff]  ;;  %v3249_v33 = vld [vmem:[#allocation3 + $0xc1] sm:$0xff] }
 0x368   : > { %v2574_v9 = vpop.permute.xlu1 %2573  ;;  %v2580_v37 = vpop.permute.xlu0 %2579 }
 0x369   : > { %2647 = vst.msk [vmem:[#allocation4 + $0xb8] sm:$0xff] %vm2623_vm12, %v2574_v9  ;;  %2650 = vst.msk [vmem:[#allocation4 + $0xd0] sm:$0xff] %vm2623_vm12, %v2580_v37  ;;  %v3057_v9 = vld [vmem:[#allocation2 + $0xc9] sm:$0xff] }
 0x36a   : > { %3695 = vrot.lane.b32.xlu1 %v5896_v24, %s4710_s12  ;;  %3697 = vrot.lane.b32.xlu0 %v5911_v46, %s4710_s12  ;;  %v3244_v46 = vld [vmem:[#allocation3 + $0x81] sm:$0xff] }
 0x36c   : > { %v2578_v39 = vpop.permute.xlu1 %2577  ;;  %v2584_v41 = vpop.permute.xlu0 %2583 }
 0x36d   : > { %2649 = vst.msk [vmem:[#allocation4 + $0xc8] sm:$0xff] %vm2623_vm12, %v2578_v39  ;;  %2652 = vst.msk [vmem:[#allocation4 + $0xe0] sm:$0xff] %vm2623_vm12, %v2584_v41 }
 0x36e   : > { %3120 = vrot.lane.b32.xlu1 %v3050_v18, %s4707_s14  ;;  %3313 = vrot.lane.b32.xlu0 %v3243_v40, %s4708_s22  ;;  %v3443_v40 = vld [vmem:[#allocation2 + $0xca] sm:$0xff] }
 0x370   : > { %v2582_v56 = vpop.permute.xlu1 %2581  ;;  %v2588_v24 = vpop.permute.xlu0 %2587 }
 0x371   : > { %2651 = vst.msk [vmem:[#allocation4 + $0xd8] sm:$0xff] %vm2623_vm12, %v2582_v56  ;;  %2654 = vst.msk [vmem:[#allocation4 + $0xf0] sm:$0xff] %vm2623_vm12, %v2588_v24  ;;  %v2866_v24 = vld [vmem:[#allocation3 + $0xe0] sm:$0xff] }
 0x372   : > { %3122 = vrot.lane.b32.xlu1 %v3051_v43, %s4707_s14  ;;  %3506 = vrot.lane.b32.xlu0 %v5818_v14, %s4709_s27  ;;  %v2865_v43 = vld [vmem:[#allocation3 + $0xd8] sm:$0xff] }
 0x374   : > { %v2586_v44 = vpop.permute.xlu1 %2585  ;;  %v2722_v45 = vpop.permute.xlu0 %2721 }
 0x375   : > { %2653 = vst.msk [vmem:[#allocation4 + $0xe8] sm:$0xff] %vm2623_vm12, %v2586_v44 }
 0x376   : > { %3315 = vrot.lane.b32.xlu1 %v3244_v46, %s4708_s22  ;;  %2818 = vst.msk [vmem:[#allocation4] sm:$0xff] %vm2817_vm13, %v2722_v45  ;;  %3508 = vrot.lane.b32.xlu0 %v5831_v26, %s4709_s27  ;;  %v3052_v26 = vld [vmem:[#allocation2 + $0x91] sm:$0xff] }
 0x378   : > { %v2590_v48 = vpop.permute.xlu1 %2589  ;;  %v2726_v49 = vpop.permute.xlu0 %2725 }
 0x379   : > { %2655 = vst.msk [vmem:[#allocation4 + $0xf8] sm:$0xff] %vm2623_vm12, %v2590_v48 }
 0x37a   : > { %2931 = vrot.lane.b32.xlu1 %v2859_v47, %s4706_s11  ;;  %2820 = vst.msk [vmem:[#allocation4 + $0x10] sm:$0xff] %vm2817_vm13, %v2726_v49  ;;  %2933 = vrot.lane.b32.xlu0 %v2860_v1, %s4706_s11  ;;  %v3058_v47 = vld [vmem:[#allocation2 + $0xd9] sm:$0xff]  ;;  %v3251_v49 = vld [vmem:[#allocation3 + $0xd9] sm:$0xff] }
 0x37c   : > { %v2724_v14 = vpop.permute.xlu1 %2723  ;;  %v2730_v51 = vpop.permute.xlu0 %2729 }
 0x37d   : > { %2819 = vst.msk [vmem:[#allocation4 + $0x8] sm:$0xff] %vm2817_vm13, %v2724_v14  ;;  %2822 = vst.msk [vmem:[#allocation4 + $0x20] sm:$0xff] %vm2817_vm13, %v2730_v51 }
 0x37e   : > { %3699 = vrot.lane.b32.xlu1 %v5906_v38, %s4710_s12  ;;  %3701 = vrot.lane.b32.xlu0 %v5921_v59, %s4710_s12  ;;  %v3246_v59 = vld [vmem:[#allocation3 + $0x99] sm:$0xff] }
 0x380   : > { %v2728_v5 = vpop.permute.xlu1 %2727  ;;  %v2734_v7 = vpop.permute.xlu0 %2733 }
 0x381   : > { %2821 = vst.msk [vmem:[#allocation4 + $0x18] sm:$0xff] %vm2817_vm13, %v2728_v5  ;;  %2824 = vst.msk [vmem:[#allocation4 + $0x30] sm:$0xff] %vm2817_vm13, %v2734_v7 }
 0x382   : > { %3124 = vrot.lane.b32.xlu1 %v3052_v26, %s4707_s14  ;;  %3317 = vrot.lane.b32.xlu0 %v3245_v62, %s4708_s22  ;;  %v3252_v62 = vld [vmem:[#allocation3 + $0xe1] sm:$0xff] }
 0x384   : > { %v2732_v53 = vpop.permute.xlu1 %2731  ;;  %v2738_v38 = vpop.permute.xlu0 %2737 }
 0x385   : > { %2823 = vst.msk [vmem:[#allocation4 + $0x28] sm:$0xff] %vm2817_vm13, %v2732_v53  ;;  %2826 = vst.msk [vmem:[#allocation4 + $0x40] sm:$0xff] %vm2817_vm13, %v2738_v38  ;;  %v2867_v38 = vld [vmem:[#allocation3 + $0xf0] sm:$0xff] }
 0x386   : > { %3126 = vrot.lane.b32.xlu1 %v3053_v52, %s4707_s14  ;;  %3510 = vrot.lane.b32.xlu0 %v4683_v55, %s4709_s27  ;;  %v3445_v52 = vld [vmem:[#allocation2 + $0xe2] sm:$0xff] }
 0x388   : > { %v2736_v63 = vpop.permute.xlu1 %2735  ;;  %v2742_v0 = vpop.permute.xlu0 %2741 }
 0x389   : > { %2825 = vst.msk [vmem:[#allocation4 + $0x38] sm:$0xff] %vm2817_vm13, %v2736_v63  ;;  %2828 = vst.msk [vmem:[#allocation4 + $0x50] sm:$0xff] %vm2817_vm13, %v2742_v0  ;;  %v2868_v63 = vld [vmem:[#allocation3 + $0xf8] sm:$0xff] }
 0x38a   : > { %3319 = vrot.lane.b32.xlu1 %v3246_v59, %s4708_s22  ;;  %3512 = vrot.lane.b32.xlu0 %v4684_v3, %s4709_s27 }
 0x38c   : > { %v2740_v58 = vpop.permute.xlu1 %2739  ;;  %v2746_v6 = vpop.permute.xlu0 %2745 }
 0x38d   : > { %2827 = vst.msk [vmem:[#allocation4 + $0x48] sm:$0xff] %vm2817_vm13, %v2740_v58  ;;  %2830 = vst.msk [vmem:[#allocation4 + $0x60] sm:$0xff] %vm2817_vm13, %v2746_v6  ;;  %v3060_v58 = vld [vmem:[#allocation2 + $0xf1] sm:$0xff]  ;;  %v3253_v6 = vld [vmem:[#allocation3 + $0xf1] sm:$0xff] }
 0x38e   : > { %2935 = vrot.lane.b32.xlu1 %v2861_v2, %s4706_s11  ;;  %2937 = vrot.lane.b32.xlu0 %v2862_v20, %s4706_s11 }
 0x390   : > { %v2744_v8 = vpop.permute.xlu1 %2743  ;;  %v2750_v10 = vpop.permute.xlu0 %2749 }
 0x391   : > { %2829 = vst.msk [vmem:[#allocation4 + $0x58] sm:$0xff] %vm2817_vm13, %v2744_v8  ;;  %2832 = vst.msk [vmem:[#allocation4 + $0x70] sm:$0xff] %vm2817_vm13, %v2750_v10 }
 0x392   : > { %3703 = vrot.lane.b32.xlu1 %v5916_v54, %s4710_s12  ;;  %3705 = vrot.lane.b32.xlu0 %v5931_v15, %s4710_s12  ;;  %v3440_v54 = vld [vmem:[#allocation2 + $0xaa] sm:$0xff]  ;;  %v3248_v15 = vld [vmem:[#allocation3 + $0xb1] sm:$0xff] }
 0x394   : > { %v2748_v23 = vpop.permute.xlu1 %2747  ;;  %v2754_v34 = vpop.permute.xlu0 %2753 }
 0x395   : > { %2831 = vst.msk [vmem:[#allocation4 + $0x68] sm:$0xff] %vm2817_vm13, %v2748_v23  ;;  %2834 = vst.msk [vmem:[#allocation4 + $0x80] sm:$0xff] %vm2817_vm13, %v2754_v34 }
 0x396   : > { %3128 = vrot.lane.b32.xlu1 %v3054_v16, %s4707_s14  ;;  %3321 = vrot.lane.b32.xlu0 %v3247_v29, %s4708_s22  ;;  %v3254_v29 = vld [vmem:[#allocation3 + $0xf9] sm:$0xff] }
 0x398   : > { %v2752_v42 = vpop.permute.xlu1 %2751  ;;  %v2758_v11 = vpop.permute.xlu0 %2757 }
 0x399   : > { %2833 = vst.msk [vmem:[#allocation4 + $0x78] sm:$0xff] %vm2817_vm13, %v2752_v42  ;;  %2836 = vst.msk [vmem:[#allocation4 + $0x90] sm:$0xff] %vm2817_vm13, %v2758_v11 }
 0x39a   : > { %3130 = vrot.lane.b32.xlu1 %v3055_v4, %s4707_s14  ;;  %3514 = vrot.lane.b32.xlu0 %v3440_v54, %s4709_s27  ;;  %v3447_v4 = vld [vmem:[#allocation2 + $0xfa] sm:$0xff] }
 0x39b   : > { %v2869_v54 = vld [vmem:[#allocation3 + $0x108] sm:$0xff] }
 0x39c   : > { %v2756_v50 = vpop.permute.xlu1 %2755  ;;  %v2916_v60 = vpop.permute.xlu0 %2915 }
 0x39d   : > { %2835 = vst.msk [vmem:[#allocation4 + $0x88] sm:$0xff] %vm2817_vm13, %v2756_v50 }
 0x39e   : > { %3323 = vrot.lane.b32.xlu1 %v3248_v15, %s4708_s22  ;;  %3012 = vst.msk [vmem:[#allocation4] sm:$0xff] %vm3011_vm14, %v2916_v60  ;;  %3516 = vrot.lane.b32.xlu0 %v3441_v57, %s4709_s27  ;;  %v2870_v15 = vld [vmem:[#allocation3 + $0x110] sm:$0xff] }
 0x39f   : > { %v3639_v57 = vld [vmem:[#allocation3 + $0xf2] sm:$0xff] }
 0x3a0   : > { %v2760_v17 = vpop.permute.xlu1 %2759  ;;  %v3109_v31 = vpop.permute.xlu0 %3108 }
 0x3a1   : > { %2837 = vst.msk [vmem:[#allocation4 + $0x98] sm:$0xff] %vm2817_vm13, %v2760_v17 }
 0x3a2   : > { %2939 = vrot.lane.b32.xlu1 %v2863_v61, %s4706_s11  ;;  %3205 = vst.msk [vmem:[#allocation4] sm:$0xff] %vm3204_vm15, %v3109_v31  ;;  %2941 = vrot.lane.b32.xlu0 %v2864_v12, %s4706_s11  ;;  %v3640_v61 = vld [vmem:[#allocation3 + $0xfa] sm:$0xff] }
 0x3a3   : > { %v3062_v12 = vld [vmem:[#allocation2 + $0x109] sm:$0xff] }
 0x3a4   : > { %v2918_v21 = vpop.permute.xlu1 %2917  ;;  %v3302_v25 = vpop.permute.xlu0 %3301 }
 0x3a5   : > { %3013 = vst.msk [vmem:[#allocation4 + $0x8] sm:$0xff] %vm3011_vm14, %v2918_v21 }
 0x3a6   : > { %3707 = vrot.lane.b32.xlu1 %v5926_v13, %s4710_s12  ;;  %3398 = vst.msk [vmem:[#allocation4] sm:$0xff] %vm3397_vm0, %v3302_v25  ;;  %3709 = vrot.lane.b32.xlu0 %v5941_v22, %s4710_s12  ;;  %v3442_v13 = vld [vmem:[#allocation2 + $0xc2] sm:$0xff]  ;;  %v3250_v22 = vld [vmem:[#allocation3 + $0xc9] sm:$0xff] }
 0x3a7   : > { %v3255_v25 = vld [vmem:[#allocation3 + $0x109] sm:$0xff] }
 0x3a8   : > { %v3111_v32 = vpop.permute.xlu1 %3110  ;;  %v3495_v35 = vpop.permute.xlu0 %3494 }
 0x3a9   : > { %3206 = vst.msk [vmem:[#allocation4 + $0x8] sm:$0xff] %vm3204_vm15, %v3111_v32 }
 0x3aa   : > { %3132 = vrot.lane.b32.xlu1 %v3056_v28, %s4707_s14  ;;  %3591 = vst.msk [vmem:[#allocation4] sm:$0xff] %vm3590_vm1, %v3495_v35  ;;  %3325 = vrot.lane.b32.xlu0 %v3249_v33, %s4708_s22  ;;  %v3063_v33 = vld [vmem:[#allocation2 + $0x111] sm:$0xff] }
 0x3ac   : > { %v3304_v37 = vpop.permute.xlu1 %3303  ;;  %v3497_v18 = vpop.permute.xlu0 %3496 }
 0x3ad   : > { %3399 = vst.msk [vmem:[#allocation4 + $0x8] sm:$0xff] %vm3397_vm0, %v3304_v37 }
 0x3ae   : > { %3134 = vrot.lane.b32.xlu1 %v3057_v9, %s4707_s14  ;;  %3592 = vst.msk [vmem:[#allocation4 + $0x8] sm:$0xff] %vm3590_vm1, %v3497_v18  ;;  %3518 = vrot.lane.b32.xlu0 %v3442_v13, %s4709_s27  ;;  %v3256_v9 = vld [vmem:[#allocation3 + $0x111] sm:$0xff] }
 0x3af   : > { %v2677_v13 = vld [vmem:[#allocation2 + $0x120] sm:$0xff] }
 0x3b0   : > { %v2920_v39 = vpop.permute.xlu1 %2919  ;;  %v2922_v41 = vpop.permute.xlu0 %2921 }
 0x3b1   : > { %3014 = vst.msk [vmem:[#allocation4 + $0x10] sm:$0xff] %vm3011_vm14, %v2920_v39  ;;  %3015 = vst.msk [vmem:[#allocation4 + $0x18] sm:$0xff] %vm3011_vm14, %v2922_v41 }
 0x3b2   : > { %3327 = vrot.lane.b32.xlu1 %v3250_v22, %s4708_s22  ;;  %3520 = vrot.lane.b32.xlu0 %v3443_v40, %s4709_s27  ;;  %v2678_v22 = vld [vmem:[#allocation2 + $0x128] sm:$0xff] }
 0x3b3   : > { %v3448_v40 = vld [vmem:[#allocation2 + $0x10a] sm:$0xff] }
 0x3b4   : > { %v3688_v56 = vpop.permute.xlu1 %3687  ;;  %v3690_v46 = vpop.permute.xlu0 %3689 }
 0x3b5   : > { %3784 = vst.msk [vmem:[#allocation4] sm:$0xff] %vm3783_vm2, %v3688_v56  ;;  %3785 = vst.msk [vmem:[#allocation4 + $0x8] sm:$0xff] %vm3783_vm2, %v3690_v46 }
 0x3b6   : > { %2943 = vrot.lane.b32.xlu1 %v2865_v43, %s4706_s11  ;;  %2945 = vrot.lane.b32.xlu0 %v2866_v24, %s4706_s11  ;;  %v3449_v43 = vld [vmem:[#allocation2 + $0x112] sm:$0xff] }
 0x3b7   : > { %v2871_v24 = vld [vmem:[#allocation3 + $0x120] sm:$0xff] }
 0x3b8   : > { %v3113_v44 = vpop.permute.xlu1 %3112  ;;  %v3306_v45 = vpop.permute.xlu0 %3305 }
 0x3b9   : > { %3207 = vst.msk [vmem:[#allocation4 + $0x10] sm:$0xff] %vm3204_vm15, %v3113_v44  ;;  %v2872_v44 = vld [vmem:[#allocation3 + $0x128] sm:$0xff] }
 0x3ba   : > { %3711 = vrot.lane.b32.xlu1 %v5936_v19, %s4710_s12  ;;  %3400 = vst.msk [vmem:[#allocation4 + $0x10] sm:$0xff] %vm3397_vm0, %v3306_v45  ;;  %3713 = vrot.lane.b32.xlu0 %v5951_v30, %s4710_s12  ;;  %v3059_v19 = vld [vmem:[#allocation2 + $0xe1] sm:$0xff] }
 0x3bb   : > { %v3444_v30 = vld [vmem:[#allocation2 + $0xda] sm:$0xff] }
 0x3bc   : > { %v3115_v48 = vpop.permute.xlu1 %3114  ;;  %v3816_v1 = vld [vmem:[#allocation4] sm:$0xff]  ;;  %v3499_v14 = vpop.permute.xlu0 %3498  ;;  %v3817_v51 = vld [vmem:[#allocation4 + $0x8] sm:$0xff] }
 0x3bd   : > { %3208 = vst.msk [vmem:[#allocation4 + $0x18] sm:$0xff] %vm3204_vm15, %v3115_v48  ;;  %4591 = vmatprep.mubr.msk.f32.mxu0 %vm3857_vm3, %v3816_v1 }
 0x3be   : > { %3136 = vrot.lane.b32.xlu1 %v3058_v47, %s4707_s14  ;;  %3593 = vst.msk [vmem:[#allocation4 + $0x10] sm:$0xff] %vm3590_vm1, %v3499_v14  ;;  %4592 = vmatmul.mubr.msk.f32.vlgmr.msra.gmra.mxu0 %vm3857_vm3, %v3817_v51  ;;  %v3641_v47 = vld [vmem:[#allocation3 + $0x10a] sm:$0xff] }
 0x3bf   : > { %3329 = vrot.lane.b32.xlu0 %v3251_v49, %s4708_s22  ;;  %v3642_v49 = vld [vmem:[#allocation3 + $0x112] sm:$0xff] }
 0x3c0   : > { %v3308_v26 = vpop.permute.xlu1 %3307  ;;  %v3501_v5 = vpop.permute.xlu0 %3500 }
 0x3c1   : > { %3401 = vst.msk [vmem:[#allocation4 + $0x18] sm:$0xff] %vm3397_vm0, %v3308_v26 }
 0x3c2   : > { %3138 = vrot.lane.b32.xlu1 %v3059_v19, %s4707_s14  ;;  %3594 = vst.msk [vmem:[#allocation4 + $0x18] sm:$0xff] %vm3590_vm1, %v3501_v5  ;;  %v3064_v19 = vld [vmem:[#allocation2 + $0x121] sm:$0xff] }
 0x3c3   : > { %3522 = vrot.lane.b32.xlu0 %v3444_v30, %s4709_s27  ;;  %v3257_v30 = vld [vmem:[#allocation3 + $0x121] sm:$0xff] }
 0x3c4   : > { %v2924_v7 = vpop.permute.xlu1 %2923  ;;  %v2926_v53 = vpop.permute.xlu0 %2925 }
 0x3c5   : > { %3016 = vst.msk [vmem:[#allocation4 + $0x20] sm:$0xff] %vm3011_vm14, %v2924_v7  ;;  %3017 = vst.msk [vmem:[#allocation4 + $0x28] sm:$0xff] %vm3011_vm14, %v2926_v53 }
 0x3c6   : > { %3331 = vrot.lane.b32.xlu1 %v3252_v62, %s4708_s22  ;;  %v3065_v62 = vld [vmem:[#allocation2 + $0x129] sm:$0xff] }
 0x3c7   : > { %3524 = vrot.lane.b32.xlu0 %v3445_v52, %s4709_s27  ;;  %v3258_v52 = vld [vmem:[#allocation3 + $0x129] sm:$0xff] }
 0x3c8   : > { %v3692_v59 = vpop.permute.xlu1 %3691  ;;  %v3694_v55 = vpop.permute.xlu0 %3693 }
 0x3c9   : > { %3786 = vst.msk [vmem:[#allocation4 + $0x10] sm:$0xff] %vm3783_vm2, %v3692_v59  ;;  %3787 = vst.msk [vmem:[#allocation4 + $0x18] sm:$0xff] %vm3783_vm2, %v3694_v55 }
 0x3ca   : > { %2947 = vrot.lane.b32.xlu1 %v2867_v38, %s4706_s11  ;;  %v2679_v38 = vld [vmem:[#allocation2 + $0x138] sm:$0xff] }
 0x3cb   : > { %2949 = vrot.lane.b32.xlu0 %v2868_v63, %s4706_s11  ;;  %v2680_v63 = vld [vmem:[#allocation2 + $0x140] sm:$0xff] }
 0x3cc   : > { %v3117_v0 = vpop.permute.xlu1 %3116  ;;  %v3310_v2 = vpop.permute.xlu0 %3309 }
 0x3cd   : > { %3209 = vst.msk [vmem:[#allocation4 + $0x20] sm:$0xff] %vm3204_vm15, %v3117_v0  ;;  %v3450_v0 = vld [vmem:[#allocation2 + $0x122] sm:$0xff] }
 0x3ce   : > { %3715 = vrot.lane.b32.xlu1 %v5946_v27, %s4710_s12  ;;  %3402 = vst.msk [vmem:[#allocation4 + $0x20] sm:$0xff] %vm3397_vm0, %v3310_v2  ;;  %v3061_v27 = vld [vmem:[#allocation2 + $0xf9] sm:$0xff] }
 0x3cf   : > { %3717 = vrot.lane.b32.xlu0 %v5959_v36, %s4710_s12  ;;  %v3446_v36 = vld [vmem:[#allocation2 + $0xf2] sm:$0xff] }
 0x3d0   : > { %v3119_v3 = vpop.permute.xlu1 %3118  ;;  %v3818_v20 = vld [vmem:[#allocation4 + $0x10] sm:$0xff]  ;;  %v3503_v8 = vpop.permute.xlu0 %3502  ;;  %v3819_v10 = vld [vmem:[#allocation4 + $0x18] sm:$0xff] }
 0x3d1   : > { %3210 = vst.msk [vmem:[#allocation4 + $0x28] sm:$0xff] %vm3204_vm15, %v3119_v3  ;;  %4594 = vmatprep.mubr.msk.f32.mxu0 %vm3857_vm3, %v3818_v20  ;;  %v2873_v20 = vld [vmem:[#allocation3 + $0x138] sm:$0xff] }
 0x3d2   : > { %3140 = vrot.lane.b32.xlu1 %v3060_v58, %s4707_s14  ;;  %3595 = vst.msk [vmem:[#allocation4 + $0x20] sm:$0xff] %vm3590_vm1, %v3503_v8  ;;  %4595 = vmatmul.mubr.msk.f32.gmra.mxu0 %vm3857_vm3, %v3819_v10  ;;  %v3451_v58 = vld [vmem:[#allocation2 + $0x12a] sm:$0xff] }
 0x3d3   : > { %3333 = vrot.lane.b32.xlu0 %v3253_v6, %s4708_s22  ;;  %v2874_v10 = vld [vmem:[#allocation3 + $0x140] sm:$0xff] }
 0x3d4   : > { %v3312_v16 = vpop.permute.xlu1 %3311  ;;  %v3505_v23 = vpop.permute.xlu0 %3504 }
 0x3d5   : > { %3403 = vst.msk [vmem:[#allocation4 + $0x28] sm:$0xff] %vm3397_vm0, %v3312_v16 }
 0x3d6   : > { %3142 = vrot.lane.b32.xlu1 %v3061_v27, %s4707_s14  ;;  %3596 = vst.msk [vmem:[#allocation4 + $0x28] sm:$0xff] %vm3590_vm1, %v3505_v23 }
 0x3d7   : > { %3526 = vrot.lane.b32.xlu0 %v3446_v36, %s4709_s27  ;;  %v3643_v36 = vld [vmem:[#allocation3 + $0x122] sm:$0xff] }
 0x3d8   : > { %v2928_v34 = vpop.permute.xlu1 %2927  ;;  %v2930_v42 = vpop.permute.xlu0 %2929 }
 0x3d9   : > { %3018 = vst.msk [vmem:[#allocation4 + $0x30] sm:$0xff] %vm3011_vm14, %v2928_v34  ;;  %3019 = vst.msk [vmem:[#allocation4 + $0x38] sm:$0xff] %vm3011_vm14, %v2930_v42 }
 0x3da   : > { %3335 = vrot.lane.b32.xlu1 %v3254_v29, %s4708_s22  ;;  %v3644_v29 = vld [vmem:[#allocation3 + $0x12a] sm:$0xff] }
 0x3db   : > { %3528 = vrot.lane.b32.xlu0 %v3447_v4, %s4709_s27  ;;  %v3066_v4 = vld [vmem:[#allocation2 + $0x139] sm:$0xff] }
 0x3dc   : > { %v3696_v11 = vpop.permute.xlu1 %3695  ;;  %v3698_v50 = vpop.permute.xlu0 %3697 }
 0x3dd   : > { %3788 = vst.msk [vmem:[#allocation4 + $0x20] sm:$0xff] %vm3783_vm2, %v3696_v11  ;;  %3789 = vst.msk [vmem:[#allocation4 + $0x28] sm:$0xff] %vm3783_vm2, %v3698_v50 }
 0x3de   : > { %2951 = vrot.lane.b32.xlu1 %v2869_v54, %s4706_s11  ;;  %v3259_v54 = vld [vmem:[#allocation3 + $0x139] sm:$0xff] }
 0x3df   : > { %2953 = vrot.lane.b32.xlu0 %v2870_v15, %s4706_s11  ;;  %v3067_v15 = vld [vmem:[#allocation2 + $0x141] sm:$0xff] }
 0x3e0   : > { %v3121_v60 = vpop.permute.xlu1 %3120  ;;  %v3314_v17 = vpop.permute.xlu0 %3313 }
 0x3e1   : > { %3211 = vst.msk [vmem:[#allocation4 + $0x30] sm:$0xff] %vm3204_vm15, %v3121_v60 }
 0x3e2   : > { %3719 = vrot.lane.b32.xlu1 %v3639_v57, %s4710_s12  ;;  %3404 = vst.msk [vmem:[#allocation4 + $0x30] sm:$0xff] %vm3397_vm0, %v3314_v17  ;;  %v3260_v57 = vld [vmem:[#allocation3 + $0x141] sm:$0xff] }
 0x3e3   : > { %3721 = vrot.lane.b32.xlu0 %v3640_v61, %s4710_s12  ;;  %v2681_v61 = vld [vmem:[#allocation2 + $0x150] sm:$0xff] }
 0x3e4   : > { %v3123_v31 = vpop.permute.xlu1 %3122  ;;  %v3820_v21 = vld [vmem:[#allocation4 + $0x20] sm:$0xff]  ;;  %v3507_v28 = vpop.permute.xlu0 %3506  ;;  %v3821_v32 = vld [vmem:[#allocation4 + $0x28] sm:$0xff] }
 0x3e5   : > { %3212 = vst.msk [vmem:[#allocation4 + $0x38] sm:$0xff] %vm3204_vm15, %v3123_v31  ;;  %4597 = vmatprep.mubr.msk.f32.mxu0 %vm3857_vm3, %v3820_v21  ;;  %v3452_v21 = vld [vmem:[#allocation2 + $0x13a] sm:$0xff] }
 0x3e6   : > { %3144 = vrot.lane.b32.xlu1 %v3062_v12, %s4707_s14  ;;  %3597 = vst.msk [vmem:[#allocation4 + $0x30] sm:$0xff] %vm3590_vm1, %v3507_v28  ;;  %4598 = vmatmul.mubr.msk.f32.gmra.mxu0 %vm3857_vm3, %v3821_v32  ;;  %v2682_v12 = vld [vmem:[#allocation2 + $0x158] sm:$0xff]  ;;  %v3453_v32 = vld [vmem:[#allocation2 + $0x142] sm:$0xff] }
 0x3e7   : > { %3337 = vrot.lane.b32.xlu0 %v3255_v25, %s4708_s22 }
 0x3e8   : > { %v3316_v35 = vpop.permute.xlu1 %3315  ;;  %v3509_v37 = vpop.permute.xlu0 %3508 }
 0x3e9   : > { %3405 = vst.msk [vmem:[#allocation4 + $0x38] sm:$0xff] %vm3397_vm0, %v3316_v35 }
 0x3ea   : > { %3146 = vrot.lane.b32.xlu1 %v3063_v33, %s4707_s14  ;;  %3598 = vst.msk [vmem:[#allocation4 + $0x38] sm:$0xff] %vm3590_vm1, %v3509_v37 }
 0x3eb   : > { %3339 = vrot.lane.b32.xlu0 %v3256_v9, %s4708_s22  ;;  %v2875_v9 = vld [vmem:[#allocation3 + $0x150] sm:$0xff] }
 0x3ec   : > { %v2932_v18 = vpop.permute.xlu1 %2931  ;;  %v2934_v39 = vpop.permute.xlu0 %2933 }
 0x3ed   : > { %3020 = vst.msk [vmem:[#allocation4 + $0x40] sm:$0xff] %vm3011_vm14, %v2932_v18  ;;  %3021 = vst.msk [vmem:[#allocation4 + $0x48] sm:$0xff] %vm3011_vm14, %v2934_v39 }
 0x3ee   : > { %2761 = vrot.lane.b32.xlu1 %v2677_v13, %s4705_s10  ;;  %v2876_v13 = vld [vmem:[#allocation3 + $0x158] sm:$0xff] }
 0x3ef   : > { %2763 = vrot.lane.b32.xlu0 %v2678_v22, %s4705_s10  ;;  %v3645_v22 = vld [vmem:[#allocation3 + $0x13a] sm:$0xff] }
 0x3f0   : > { %v3700_v41 = vpop.permute.xlu1 %3699  ;;  %v3702_v56 = vpop.permute.xlu0 %3701 }
 0x3f1   : > { %3790 = vst.msk [vmem:[#allocation4 + $0x30] sm:$0xff] %vm3783_vm2, %v3700_v41  ;;  %3791 = vst.msk [vmem:[#allocation4 + $0x38] sm:$0xff] %vm3783_vm2, %v3702_v56 }
 0x3f2   : > { %3530 = vrot.lane.b32.xlu1 %v3448_v40, %s4709_s27  ;;  %v3646_v40 = vld [vmem:[#allocation3 + $0x142] sm:$0xff] }
 0x3f3   : > { %3532 = vrot.lane.b32.xlu0 %v3449_v43, %s4709_s27  ;;  %v3068_v43 = vld [vmem:[#allocation2 + $0x151] sm:$0xff] }
 0x3f4   : > { %v3125_v46 = vpop.permute.xlu1 %3124  ;;  %v3318_v45 = vpop.permute.xlu0 %3317 }
 0x3f5   : > { %3213 = vst.msk [vmem:[#allocation4 + $0x40] sm:$0xff] %vm3204_vm15, %v3125_v46 }
 0x3f6   : > { %2955 = vrot.lane.b32.xlu1 %v2871_v24, %s4706_s11  ;;  %3406 = vst.msk [vmem:[#allocation4 + $0x40] sm:$0xff] %vm3397_vm0, %v3318_v45  ;;  %v3261_v24 = vld [vmem:[#allocation3 + $0x151] sm:$0xff] }
 0x3f7   : > { %2957 = vrot.lane.b32.xlu0 %v2872_v44, %s4706_s11  ;;  %v3069_v44 = vld [vmem:[#allocation2 + $0x159] sm:$0xff] }
 0x3f8   : > { %v3127_v48 = vpop.permute.xlu1 %3126  ;;  %v3822_v1 = vld [vmem:[#allocation4 + $0x30] sm:$0xff]  ;;  %v3511_v14 = vpop.permute.xlu0 %3510  ;;  %v3823_v51 = vld [vmem:[#allocation4 + $0x38] sm:$0xff] }
 0x3f9   : > { %3214 = vst.msk [vmem:[#allocation4 + $0x48] sm:$0xff] %vm3204_vm15, %v3127_v48  ;;  %4600 = vmatprep.mubr.msk.f32.mxu0 %vm3857_vm3, %v3822_v1  ;;  %v2683_v1 = vld [vmem:[#allocation2 + $0x168] sm:$0xff] }
 0x3fa   : > { %3723 = vrot.lane.b32.xlu1 %v3641_v47, %s4710_s12  ;;  %3599 = vst.msk [vmem:[#allocation4 + $0x40] sm:$0xff] %vm3590_vm1, %v3511_v14  ;;  %4601 = vmatmul.mubr.msk.f32.gmra.mxu0 %vm3857_vm3, %v3823_v51  ;;  %v3262_v47 = vld [vmem:[#allocation3 + $0x159] sm:$0xff] }
 0x3fb   : > { %3725 = vrot.lane.b32.xlu0 %v3642_v49, %s4710_s12  ;;  %v2684_v51 = vld [vmem:[#allocation2 + $0x170] sm:$0xff] }
 0x3fc   : > { %v3320_v26 = vpop.permute.xlu1 %3319  ;;  %v3513_v5 = vpop.permute.xlu0 %3512 }
 0x3fd   : > { %3407 = vst.msk [vmem:[#allocation4 + $0x48] sm:$0xff] %vm3397_vm0, %v3320_v26 }
 0x3fe   : > { %3148 = vrot.lane.b32.xlu1 %v3064_v19, %s4707_s14  ;;  %3600 = vst.msk [vmem:[#allocation4 + $0x48] sm:$0xff] %vm3590_vm1, %v3513_v5 }
 0x3ff   : > { %3341 = vrot.lane.b32.xlu0 %v3257_v30, %s4708_s22  ;;  %v3454_v30 = vld [vmem:[#allocation2 + $0x152] sm:$0xff] }
 0x400   : > { %v2936_v7 = vpop.permute.xlu1 %2935  ;;  %v2938_v53 = vpop.permute.xlu0 %2937 }
 0x401   : > { %3022 = vst.msk [vmem:[#allocation4 + $0x50] sm:$0xff] %vm3011_vm14, %v2936_v7  ;;  %3023 = vst.msk [vmem:[#allocation4 + $0x58] sm:$0xff] %vm3011_vm14, %v2938_v53 }
 0x402   : > { %3150 = vrot.lane.b32.xlu1 %v3065_v62, %s4707_s14  ;;  %v3455_v62 = vld [vmem:[#allocation2 + $0x15a] sm:$0xff] }
 0x403   : > { %3343 = vrot.lane.b32.xlu0 %v3258_v52, %s4708_s22  ;;  %v2877_v52 = vld [vmem:[#allocation3 + $0x168] sm:$0xff] }
 0x404   : > { %v3704_v59 = vpop.permute.xlu1 %3703  ;;  %v3706_v55 = vpop.permute.xlu0 %3705 }
 0x405   : > { %3792 = vst.msk [vmem:[#allocation4 + $0x40] sm:$0xff] %vm3783_vm2, %v3704_v59  ;;  %3793 = vst.msk [vmem:[#allocation4 + $0x48] sm:$0xff] %vm3783_vm2, %v3706_v55 }
 0x406   : > { %2765 = vrot.lane.b32.xlu1 %v2679_v38, %s4705_s10  ;;  %v2878_v38 = vld [vmem:[#allocation3 + $0x170] sm:$0xff] }
 0x407   : > { %2767 = vrot.lane.b32.xlu0 %v2680_v63, %s4705_s10  ;;  %v3647_v63 = vld [vmem:[#allocation3 + $0x152] sm:$0xff] }
 0x408   : > { %v3129_v2 = vpop.permute.xlu1 %3128  ;;  %v3322_v3 = vpop.permute.xlu0 %3321 }
 0x409   : > { %3215 = vst.msk [vmem:[#allocation4 + $0x50] sm:$0xff] %vm3204_vm15, %v3129_v2 }
 0x40a   : > { %3534 = vrot.lane.b32.xlu1 %v3450_v0, %s4709_s27  ;;  %3408 = vst.msk [vmem:[#allocation4 + $0x50] sm:$0xff] %vm3397_vm0, %v3322_v3  ;;  %v3648_v0 = vld [vmem:[#allocation3 + $0x15a] sm:$0xff] }
 0x40b   : > { %3536 = vrot.lane.b32.xlu0 %v3451_v58, %s4709_s27  ;;  %v3070_v58 = vld [vmem:[#allocation2 + $0x169] sm:$0xff] }
 0x40c   : > { %v3131_v6 = vpop.permute.xlu1 %3130  ;;  %v3824_v8 = vld [vmem:[#allocation4 + $0x40] sm:$0xff]  ;;  %v3515_v27 = vpop.permute.xlu0 %3514  ;;  %v3825_v16 = vld [vmem:[#allocation4 + $0x48] sm:$0xff] }
 0x40d   : > { %3216 = vst.msk [vmem:[#allocation4 + $0x58] sm:$0xff] %vm3204_vm15, %v3131_v6  ;;  %4603 = vmatprep.mubr.msk.f32.mxu0 %vm3857_vm3, %v3824_v8  ;;  %v3071_v8 = vld [vmem:[#allocation2 + $0x171] sm:$0xff] }
 0x40e   : > { %2959 = vrot.lane.b32.xlu1 %v2873_v20, %s4706_s11  ;;  %3601 = vst.msk [vmem:[#allocation4 + $0x50] sm:$0xff] %vm3590_vm1, %v3515_v27  ;;  %4604 = vmatmul.mubr.msk.f32.gmra.mxu0 %vm3857_vm3, %v3825_v16  ;;  %v3263_v20 = vld [vmem:[#allocation3 + $0x169] sm:$0xff]  ;;  %v3264_v16 = vld [vmem:[#allocation3 + $0x171] sm:$0xff] }
 0x40f   : > { %2961 = vrot.lane.b32.xlu0 %v2874_v10, %s4706_s11 }
 0x410   : > { %v3324_v23 = vpop.permute.xlu1 %3323  ;;  %v3517_v34 = vpop.permute.xlu0 %3516 }
 0x411   : > { %3409 = vst.msk [vmem:[#allocation4 + $0x58] sm:$0xff] %vm3397_vm0, %v3324_v23 }
 0x412   : > { %3727 = vrot.lane.b32.xlu1 %v3643_v36, %s4710_s12  ;;  %3602 = vst.msk [vmem:[#allocation4 + $0x58] sm:$0xff] %vm3590_vm1, %v3517_v34 }
 0x413   : > { %3729 = vrot.lane.b32.xlu0 %v3644_v29, %s4710_s12  ;;  %v2685_v29 = vld [vmem:[#allocation2 + $0x180] sm:$0xff] }
 0x414   : > { %v2940_v42 = vpop.permute.xlu1 %2939  ;;  %v2942_v11 = vpop.permute.xlu0 %2941 }
 0x415   : > { %3024 = vst.msk [vmem:[#allocation4 + $0x60] sm:$0xff] %vm3011_vm14, %v2940_v42  ;;  %3025 = vst.msk [vmem:[#allocation4 + $0x68] sm:$0xff] %vm3011_vm14, %v2942_v11 }
 0x416   : > { %3152 = vrot.lane.b32.xlu1 %v3066_v4, %s4707_s14  ;;  %v2686_v4 = vld [vmem:[#allocation2 + $0x188] sm:$0xff] }
 0x417   : > { %3345 = vrot.lane.b32.xlu0 %v3259_v54, %s4708_s22  ;;  %v3456_v54 = vld [vmem:[#allocation2 + $0x16a] sm:$0xff] }
 0x418   : > { %v3708_v50 = vpop.permute.xlu1 %3707  ;;  %v3710_v60 = vpop.permute.xlu0 %3709 }
 0x419   : > { %3794 = vst.msk [vmem:[#allocation4 + $0x50] sm:$0xff] %vm3783_vm2, %v3708_v50  ;;  %3795 = vst.msk [vmem:[#allocation4 + $0x58] sm:$0xff] %vm3783_vm2, %v3710_v60 }
 0x41a   : > { %3154 = vrot.lane.b32.xlu1 %v3067_v15, %s4707_s14  ;;  %v3457_v15 = vld [vmem:[#allocation2 + $0x172] sm:$0xff] }
 0x41b   : > { %3347 = vrot.lane.b32.xlu0 %v3260_v57, %s4708_s22  ;;  %v2879_v57 = vld [vmem:[#allocation3 + $0x180] sm:$0xff] }
 0x41c   : > { %v3133_v17 = vpop.permute.xlu1 %3132  ;;  %v3326_v31 = vpop.permute.xlu0 %3325 }
 0x41d   : > { %3217 = vst.msk [vmem:[#allocation4 + $0x60] sm:$0xff] %vm3204_vm15, %v3133_v17 }
 0x41e   : > { %2769 = vrot.lane.b32.xlu1 %v2681_v61, %s4705_s10  ;;  %3410 = vst.msk [vmem:[#allocation4 + $0x60] sm:$0xff] %vm3397_vm0, %v3326_v31  ;;  %v2880_v61 = vld [vmem:[#allocation3 + $0x188] sm:$0xff] }
 0x41f   : > { %2771 = vrot.lane.b32.xlu0 %v2682_v12, %s4705_s10  ;;  %v3649_v12 = vld [vmem:[#allocation3 + $0x16a] sm:$0xff] }
 0x420   : > { %v3135_v25 = vpop.permute.xlu1 %3134  ;;  %v3826_v28 = vld [vmem:[#allocation4 + $0x50] sm:$0xff]  ;;  %v3519_v33 = vpop.permute.xlu0 %3518  ;;  %v3827_v35 = vld [vmem:[#allocation4 + $0x58] sm:$0xff] }
 0x421   : > { %3218 = vst.msk [vmem:[#allocation4 + $0x68] sm:$0xff] %vm3204_vm15, %v3135_v25  ;;  %4606 = vmatprep.mubr.msk.f32.mxu0 %vm3857_vm3, %v3826_v28  ;;  %v3072_v28 = vld [vmem:[#allocation2 + $0x181] sm:$0xff] }
 0x422   : > { %3538 = vrot.lane.b32.xlu1 %v3452_v21, %s4709_s27  ;;  %3603 = vst.msk [vmem:[#allocation4 + $0x60] sm:$0xff] %vm3590_vm1, %v3519_v33  ;;  %4607 = vmatmul.mubr.msk.f32.gmra.mxu0 %vm3857_vm3, %v3827_v35  ;;  %v3650_v21 = vld [vmem:[#allocation3 + $0x172] sm:$0xff]  ;;  %v3265_v35 = vld [vmem:[#allocation3 + $0x181] sm:$0xff] }
 0x423   : > { %3540 = vrot.lane.b32.xlu0 %v3453_v32, %s4709_s27 }
 0x424   : > { %v3328_v37 = vpop.permute.xlu1 %3327  ;;  %v3521_v18 = vpop.permute.xlu0 %3520 }
 0x425   : > { %3411 = vst.msk [vmem:[#allocation4 + $0x68] sm:$0xff] %vm3397_vm0, %v3328_v37 }
 0x426   : > { %2963 = vrot.lane.b32.xlu1 %v2875_v9, %s4706_s11  ;;  %3604 = vst.msk [vmem:[#allocation4 + $0x68] sm:$0xff] %vm3590_vm1, %v3521_v18 }
 0x427   : > { %2965 = vrot.lane.b32.xlu0 %v2876_v13, %s4706_s11  ;;  %v3073_v13 = vld [vmem:[#allocation2 + $0x189] sm:$0xff] }
 0x428   : > { %v2944_v39 = vpop.permute.xlu1 %2943  ;;  %v2946_v41 = vpop.permute.xlu0 %2945 }
 0x429   : > { %3026 = vst.msk [vmem:[#allocation4 + $0x70] sm:$0xff] %vm3011_vm14, %v2944_v39  ;;  %3027 = vst.msk [vmem:[#allocation4 + $0x78] sm:$0xff] %vm3011_vm14, %v2946_v41 }
 0x42a   : > { %3731 = vrot.lane.b32.xlu1 %v3645_v22, %s4710_s12  ;;  %v3266_v22 = vld [vmem:[#allocation3 + $0x189] sm:$0xff] }
 0x42b   : > { %3733 = vrot.lane.b32.xlu0 %v3646_v40, %s4710_s12  ;;  %v2687_v40 = vld [vmem:[#allocation2 + $0x198] sm:$0xff] }
 0x42c   : > { %v3712_v56 = vpop.permute.xlu1 %3711  ;;  %v3714_v46 = vpop.permute.xlu0 %3713 }
 0x42d   : > { %3796 = vst.msk [vmem:[#allocation4 + $0x60] sm:$0xff] %vm3783_vm2, %v3712_v56  ;;  %3797 = vst.msk [vmem:[#allocation4 + $0x68] sm:$0xff] %vm3783_vm2, %v3714_v46 }
 0x42e   : > { %3156 = vrot.lane.b32.xlu1 %v3068_v43, %s4707_s14  ;;  %v2688_v43 = vld [vmem:[#allocation2 + $0x1a0] sm:$0xff] }
 0x42f   : > { %3349 = vrot.lane.b32.xlu0 %v3261_v24, %s4708_s22  ;;  %v3458_v24 = vld [vmem:[#allocation2 + $0x182] sm:$0xff] }
 0x430   : > { %v3137_v45 = vpop.permute.xlu1 %3136 }
 0x431   : > { %3219 = vst.msk [vmem:[#allocation4 + $0x70] sm:$0xff] %vm3204_vm15, %v3137_v45  ;;  %v3330_v48 = vpop.permute.xlu0 %3329 }
 0x432   : > { %3158 = vrot.lane.b32.xlu1 %v3069_v44, %s4707_s14  ;;  %3412 = vst.msk [vmem:[#allocation4 + $0x70] sm:$0xff] %vm3397_vm0, %v3330_v48  ;;  %v3459_v44 = vld [vmem:[#allocation2 + $0x18a] sm:$0xff] }
 0x433   : > { %3351 = vrot.lane.b32.xlu0 %v3262_v47, %s4708_s22  ;;  %v2881_v47 = vld [vmem:[#allocation3 + $0x198] sm:$0xff] }
 0x434   : > { %v3139_v49 = vpop.permute.xlu1 %3138  ;;  %v3828_v14 = vld [vmem:[#allocation4 + $0x60] sm:$0xff]  ;;  %v3829_v26 = vld [vmem:[#allocation4 + $0x68] sm:$0xff] }
 0x435   : > { %3220 = vst.msk [vmem:[#allocation4 + $0x78] sm:$0xff] %vm3204_vm15, %v3139_v49  ;;  %4609 = vmatprep.mubr.msk.f32.mxu0 %vm3857_vm3, %v3828_v14  ;;  %v3523_v19 = vpop.permute.xlu0 %3522  ;;  %v3651_v14 = vld [vmem:[#allocation3 + $0x182] sm:$0xff] }
 0x436   : > { %2773 = vrot.lane.b32.xlu1 %v2683_v1, %s4705_s10  ;;  %3605 = vst.msk [vmem:[#allocation4 + $0x70] sm:$0xff] %vm3590_vm1, %v3523_v19  ;;  %4610 = vmatmul.mubr.msk.f32.gmra.mxu0 %vm3857_vm3, %v3829_v26  ;;  %v2882_v1 = vld [vmem:[#allocation3 + $0x1a0] sm:$0xff]  ;;  %v3652_v19 = vld [vmem:[#allocation3 + $0x18a] sm:$0xff] }
 0x437   : > { %2775 = vrot.lane.b32.xlu0 %v2684_v51, %s4705_s10 }
 0x438   : > { %v3332_v5 = vpop.permute.xlu1 %3331 }
 0x439   : > { %3413 = vst.msk [vmem:[#allocation4 + $0x78] sm:$0xff] %vm3397_vm0, %v3332_v5  ;;  %v3525_v7 = vpop.permute.xlu0 %3524 }
 0x43a   : > { %3542 = vrot.lane.b32.xlu1 %v3454_v30, %s4709_s27  ;;  %3606 = vst.msk [vmem:[#allocation4 + $0x78] sm:$0xff] %vm3590_vm1, %v3525_v7  ;;  %v3074_v30 = vld [vmem:[#allocation2 + $0x199] sm:$0xff]  ;;  %v3267_v7 = vld [vmem:[#allocation3 + $0x199] sm:$0xff] }
 0x43b   : > { %3544 = vrot.lane.b32.xlu0 %v3455_v62, %s4709_s27 }
 0x43c   : > { %v2948_v53 = vpop.permute.xlu1 %2947 }
 0x43d   : > { %3028 = vst.msk [vmem:[#allocation4 + $0x80] sm:$0xff] %vm3011_vm14, %v2948_v53  ;;  %v2950_v59 = vpop.permute.xlu0 %2949 }
 0x43e   : > { %2967 = vrot.lane.b32.xlu1 %v2877_v52, %s4706_s11  ;;  %3029 = vst.msk [vmem:[#allocation4 + $0x88] sm:$0xff] %vm3011_vm14, %v2950_v59 }
 0x43f   : > { %2969 = vrot.lane.b32.xlu0 %v2878_v38, %s4706_s11  ;;  %v3075_v38 = vld [vmem:[#allocation2 + $0x1a1] sm:$0xff] }
 0x440   : > { %v3716_v55 = vpop.permute.xlu1 %3715 }
 0x441   : > { %3798 = vst.msk [vmem:[#allocation4 + $0x70] sm:$0xff] %vm3783_vm2, %v3716_v55  ;;  %v3718_v2 = vpop.permute.xlu0 %3717 }
 0x442   : > { %3735 = vrot.lane.b32.xlu1 %v3647_v63, %s4710_s12  ;;  %3799 = vst.msk [vmem:[#allocation4 + $0x78] sm:$0xff] %vm3783_vm2, %v3718_v2  ;;  %v3460_v63 = vld [vmem:[#allocation2 + $0x19a] sm:$0xff] }
 0x443   : > { %3737 = vrot.lane.b32.xlu0 %v3648_v0, %s4710_s12  ;;  %v3268_v0 = vld [vmem:[#allocation3 + $0x1a1] sm:$0xff] }
 0x444   : > { %v3141_v3 = vpop.permute.xlu1 %3140 }
 0x445   : > { %3221 = vst.msk [vmem:[#allocation4 + $0x80] sm:$0xff] %vm3204_vm15, %v3141_v3  ;;  %v3334_v6 = vpop.permute.xlu0 %3333 }
 0x446   : > { %3160 = vrot.lane.b32.xlu1 %v3070_v58, %s4707_s14  ;;  %3414 = vst.msk [vmem:[#allocation4 + $0x80] sm:$0xff] %vm3397_vm0, %v3334_v6  ;;  %v3653_v58 = vld [vmem:[#allocation3 + $0x19a] sm:$0xff] }
 0x447   : > { %3353 = vrot.lane.b32.xlu0 %v3263_v20, %s4708_s22  ;;  %v3461_v20 = vld [vmem:[#allocation2 + $0x1a2] sm:$0xff] }
 0x448   : > { %v3143_v10 = vpop.permute.xlu1 %3142  ;;  %v3830_v27 = vld [vmem:[#allocation4 + $0x70] sm:$0xff] }
 0x449   : > { %3222 = vst.msk [vmem:[#allocation4 + $0x88] sm:$0xff] %vm3204_vm15, %v3143_v10  ;;  %4612 = vmatprep.mubr.msk.f32.mxu0 %vm3857_vm3, %v3830_v27  ;;  %v3527_v36 = vpop.permute.xlu0 %3526  ;;  %v3831_v23 = vld [vmem:[#allocation4 + $0x78] sm:$0xff] }
 0x44a   : > { %3162 = vrot.lane.b32.xlu1 %v3071_v8, %s4707_s14  ;;  %3607 = vst.msk [vmem:[#allocation4 + $0x80] sm:$0xff] %vm3590_vm1, %v3527_v36  ;;  %4613 = vmatmul.mubr.msk.f32.gmra.mxu0 %vm3857_vm3, %v3831_v23 }
 0x44b   : > { %3355 = vrot.lane.b32.xlu0 %v3264_v16, %s4708_s22 }
 0x44c   : > { %v3336_v34 = vpop.permute.xlu1 %3335 }
 0x44d   : > { %3415 = vst.msk [vmem:[#allocation4 + $0x88] sm:$0xff] %vm3397_vm0, %v3336_v34  ;;  %v3529_v42 = vpop.permute.xlu0 %3528 }
 0x44e   : > { %2777 = vrot.lane.b32.xlu1 %v2685_v29, %s4705_s10  ;;  %3608 = vst.msk [vmem:[#allocation4 + $0x88] sm:$0xff] %vm3590_vm1, %v3529_v42  ;;  %v3654_v42 = vld [vmem:[#allocation3 + $0x1a2] sm:$0xff] }
 0x44f   : > { %2779 = vrot.lane.b32.xlu0 %v2686_v4, %s4705_s10 }
 0x450   : > { %v2952_v11 = vpop.permute.xlu1 %2951 }
 0x451   : > { %3030 = vst.msk [vmem:[#allocation4 + $0x90] sm:$0xff] %vm3011_vm14, %v2952_v11  ;;  %v2954_v50 = vpop.permute.xlu0 %2953 }
 0x452   : > { %3546 = vrot.lane.b32.xlu1 %v3456_v54, %s4709_s27  ;;  %3031 = vst.msk [vmem:[#allocation4 + $0x98] sm:$0xff] %vm3011_vm14, %v2954_v50 }
 0x453   : > { %3548 = vrot.lane.b32.xlu0 %v3457_v15, %s4709_s27 }
 0x454   : > { %v3720_v60 = vpop.permute.xlu1 %3719 }
 0x455   : > { %3800 = vst.msk [vmem:[#allocation4 + $0x80] sm:$0xff] %vm3783_vm2, %v3720_v60  ;;  %v3722_v17 = vpop.permute.xlu0 %3721 }
 0x456   : > { %2971 = vrot.lane.b32.xlu1 %v2879_v57, %s4706_s11  ;;  %3801 = vst.msk [vmem:[#allocation4 + $0x88] sm:$0xff] %vm3783_vm2, %v3722_v17 }
 0x457   : > { %2973 = vrot.lane.b32.xlu0 %v2880_v61, %s4706_s11 }
 0x458   : > { %v3145_v31 = vpop.permute.xlu1 %3144 }
 0x459   : > { %3223 = vst.msk [vmem:[#allocation4 + $0x90] sm:$0xff] %vm3204_vm15, %v3145_v31  ;;  %v3338_v25 = vpop.permute.xlu0 %3337 }
 0x45a   : > { %3739 = vrot.lane.b32.xlu1 %v3649_v12, %s4710_s12  ;;  %3416 = vst.msk [vmem:[#allocation4 + $0x90] sm:$0xff] %vm3397_vm0, %v3338_v25 }
 0x45b   : > { %3741 = vrot.lane.b32.xlu0 %v3650_v21, %s4710_s12 }
 0x45c   : > { %v3147_v32 = vpop.permute.xlu1 %3146  ;;  %v3832_v33 = vld [vmem:[#allocation4 + $0x80] sm:$0xff] }
 0x45d   : > { %3224 = vst.msk [vmem:[#allocation4 + $0x98] sm:$0xff] %vm3204_vm15, %v3147_v32  ;;  %4615 = vmatprep.mubr.msk.f32.mxu1 %vm3857_vm3, %v3832_v33  ;;  %v3340_v9 = vpop.permute.xlu0 %3339  ;;  %v3833_v37 = vld [vmem:[#allocation4 + $0x88] sm:$0xff] }
 0x45e   : > { %3164 = vrot.lane.b32.xlu1 %v3072_v28, %s4707_s14  ;;  %3417 = vst.msk [vmem:[#allocation4 + $0x98] sm:$0xff] %vm3397_vm0, %v3340_v9  ;;  %4616 = vmatmul.mubr.msk.f32.vlgmr.msra.gmra.mxu1 %vm3857_vm3, %v3833_v37 }
 0x45f   : > { %3357 = vrot.lane.b32.xlu0 %v3265_v35, %s4708_s22 }
 0x460   : > { %v2762_v18 = vpop.permute.xlu1 %2761 }
 0x461   : > { %2838 = vst.msk [vmem:[#allocation4 + $0xa0] sm:$0xff] %vm2817_vm13, %v2762_v18  ;;  %v2764_v39 = vpop.permute.xlu0 %2763 }
 0x462   : > { %3166 = vrot.lane.b32.xlu1 %v3073_v13, %s4707_s14  ;;  %2839 = vst.msk [vmem:[#allocation4 + $0xa8] sm:$0xff] %vm2817_vm13, %v2764_v39 }
 0x463   : > { %3359 = vrot.lane.b32.xlu0 %v3266_v22, %s4708_s22 }
 0x464   : > { %v3531_v41 = vpop.permute.xlu1 %3530 }
 0x465   : > { %3609 = vst.msk [vmem:[#allocation4 + $0x90] sm:$0xff] %vm3590_vm1, %v3531_v41  ;;  %v3533_v56 = vpop.permute.xlu0 %3532 }
 0x466   : > { %2781 = vrot.lane.b32.xlu1 %v2687_v40, %s4705_s10  ;;  %3610 = vst.msk [vmem:[#allocation4 + $0x98] sm:$0xff] %vm3590_vm1, %v3533_v56 }
 0x467   : > { %2783 = vrot.lane.b32.xlu0 %v2688_v43, %s4705_s10 }
 0x468   : > { %v2956_v46 = vpop.permute.xlu1 %2955 }
 0x469   : > { %3032 = vst.msk [vmem:[#allocation4 + $0xa0] sm:$0xff] %vm3011_vm14, %v2956_v46  ;;  %v2958_v45 = vpop.permute.xlu0 %2957 }
 0x46a   : > { %3550 = vrot.lane.b32.xlu1 %v3458_v24, %s4709_s27  ;;  %3033 = vst.msk [vmem:[#allocation4 + $0xa8] sm:$0xff] %vm3011_vm14, %v2958_v45 }
 0x46b   : > { %3552 = vrot.lane.b32.xlu0 %v3459_v44, %s4709_s27 }
 0x46c   : > { %v3724_v48 = vpop.permute.xlu1 %3723 }
 0x46d   : > { %3802 = vst.msk [vmem:[#allocation4 + $0x90] sm:$0xff] %vm3783_vm2, %v3724_v48  ;;  %v3726_v49 = vpop.permute.xlu0 %3725 }
 0x46e   : > { %2975 = vrot.lane.b32.xlu1 %v2881_v47, %s4706_s11  ;;  %3803 = vst.msk [vmem:[#allocation4 + $0x98] sm:$0xff] %vm3783_vm2, %v3726_v49 }
 0x46f   : > { %2977 = vrot.lane.b32.xlu0 %v2882_v1, %s4706_s11 }
 0x470   : > { %v3149_v51 = vpop.permute.xlu1 %3148 }
 0x471   : > { %3225 = vst.msk [vmem:[#allocation4 + $0xa0] sm:$0xff] %vm3204_vm15, %v3149_v51  ;;  %v3342_v26 = vpop.permute.xlu0 %3341 }
 0x472   : > { %3743 = vrot.lane.b32.xlu1 %v3651_v14, %s4710_s12  ;;  %3418 = vst.msk [vmem:[#allocation4 + $0xa0] sm:$0xff] %vm3397_vm0, %v3342_v26 }
 0x473   : > { %3745 = vrot.lane.b32.xlu0 %v3652_v19, %s4710_s12 }
 0x474   : > { %v3151_v5 = vpop.permute.xlu1 %3150  ;;  %v3834_v62 = vld [vmem:[#allocation4 + $0x90] sm:$0xff] }
 0x475   : > { %3226 = vst.msk [vmem:[#allocation4 + $0xa8] sm:$0xff] %vm3204_vm15, %v3151_v5  ;;  %4618 = vmatprep.mubr.msk.f32.mxu1 %vm3857_vm3, %v3834_v62  ;;  %v3344_v52 = vpop.permute.xlu0 %3343  ;;  %v3835_v53 = vld [vmem:[#allocation4 + $0x98] sm:$0xff] }
 0x476   : > { %3168 = vrot.lane.b32.xlu1 %v3074_v30, %s4707_s14  ;;  %3419 = vst.msk [vmem:[#allocation4 + $0xa8] sm:$0xff] %vm3397_vm0, %v3344_v52  ;;  %4619 = vmatmul.mubr.msk.f32.gmra.mxu1 %vm3857_vm3, %v3835_v53 }
 0x477   : > { %3361 = vrot.lane.b32.xlu0 %v3267_v7, %s4708_s22 }
 0x478   : > { %v2766_v59 = vpop.permute.xlu1 %2765 }
 0x479   : > { %2840 = vst.msk [vmem:[#allocation4 + $0xb0] sm:$0xff] %vm2817_vm13, %v2766_v59  ;;  %v2768_v55 = vpop.permute.xlu0 %2767 }
 0x47a   : > { %3170 = vrot.lane.b32.xlu1 %v3075_v38, %s4707_s14  ;;  %2841 = vst.msk [vmem:[#allocation4 + $0xb8] sm:$0xff] %vm2817_vm13, %v2768_v55 }
 0x47b   : > { %3554 = vrot.lane.b32.xlu0 %v3460_v63, %s4709_s27 }
 0x47c   : > { %v3535_v2 = vpop.permute.xlu1 %3534 }
 0x47d   : > { %3611 = vst.msk [vmem:[#allocation4 + $0xa0] sm:$0xff] %vm3590_vm1, %v3535_v2  ;;  %v3537_v3 = vpop.permute.xlu0 %3536 }
 0x47e   : > { %3363 = vrot.lane.b32.xlu1 %v3268_v0, %s4708_s22  ;;  %3612 = vst.msk [vmem:[#allocation4 + $0xa8] sm:$0xff] %vm3590_vm1, %v3537_v3  ;;  %v4593_v6 = vpop.f32.mrf.mxu0 }
 0x47f   : > { %4181 = vst.msk [vmem:[%s6445_s13 + $0x8] sm:$0xff] %vm4179_vm4, %v4593_v6  ;;  %v4213_v10 = vsel %vm4179_vm4, %v4593_v6, 0.0  ;;  %v4284_v27 = vmul.f32 %v4593_v6, %v4593_v6  ;;  %3747 = vrot.lane.b32.xlu0 %v3653_v58, %s4710_s12 }
 0x480   : > { %v2960_v8 = vpop.permute.xlu1 %2959  ;;  %v4020_v16 = vpop.f32.mrf.mxu0 }
 0x481   : > { %3034 = vst.msk [vmem:[#allocation4 + $0xb0] sm:$0xff] %vm3011_vm14, %v2960_v8  ;;  %v4316_v36 = vsel %vm4179_vm4, %v4284_v27, 0.0  ;;  %v2962_v23 = vpop.permute.xlu0 %2961  ;;  %v4212_v29 = vsel %vm4179_vm4, %v4020_v16, 0.0  ;;  %v4283_v34 = vmul.f32 %v4020_v16, %v4020_v16 }
 0x482   : > { %3556 = vrot.lane.b32.xlu1 %v3461_v20, %s4709_s27  ;;  %4180 = vst.msk [vmem:[%s6445_s13] sm:$0xff] %vm4179_vm4, %v4020_v16  ;;  %v4214_v4 = vadd.f32 %v4213_v10, %v4212_v29 }
 0x483   : > { %3035 = vst.msk [vmem:[#allocation4 + $0xb8] sm:$0xff] %vm3011_vm14, %v2962_v23  ;;  %v4315_v11 = vsel %vm4179_vm4, %v4283_v34, 0.0 }
 0x484   : > { %v3728_v54 = vpop.permute.xlu1 %3727  ;;  %v4317_v15 = vadd.f32 %v4316_v36, %v4315_v11 }
 0x485   : > { %3804 = vst.msk [vmem:[#allocation4 + $0xa0] sm:$0xff] %vm3783_vm2, %v3728_v54  ;;  %v3730_v50 = vpop.permute.xlu0 %3729 }
 0x486   : > { %3749 = vrot.lane.b32.xlu1 %v3654_v42, %s4710_s12  ;;  %3805 = vst.msk [vmem:[#allocation4 + $0xa8] sm:$0xff] %vm3783_vm2, %v3730_v50 }
 0x488   : > { %v3153_v57 = vpop.permute.xlu1 %3152 }
 0x489   : > { %3227 = vst.msk [vmem:[#allocation4 + $0xb0] sm:$0xff] %vm3204_vm15, %v3153_v57  ;;  %v3346_v60 = vpop.permute.xlu0 %3345 }
 0x48a   : > { %3420 = vst.msk [vmem:[#allocation4 + $0xb0] sm:$0xff] %vm3397_vm0, %v3346_v60 }
 0x48c   : > { %v3155_v61 = vpop.permute.xlu1 %3154  ;;  %v3836_v17 = vld [vmem:[#allocation4 + $0xa0] sm:$0xff] }
 0x48d   : > { %3228 = vst.msk [vmem:[#allocation4 + $0xb8] sm:$0xff] %vm3204_vm15, %v3155_v61  ;;  %4621 = vmatprep.mubr.msk.f32.mxu1 %vm3857_vm3, %v3836_v17  ;;  %v3348_v12 = vpop.permute.xlu0 %3347  ;;  %v3837_v31 = vld [vmem:[#allocation4 + $0xa8] sm:$0xff] }
 0x48e   : > { %3421 = vst.msk [vmem:[#allocation4 + $0xb8] sm:$0xff] %vm3397_vm0, %v3348_v12  ;;  %4622 = vmatmul.mubr.msk.f32.gmra.mxu1 %vm3857_vm3, %v3837_v31 }
 0x490   : > { %v2770_v21 = vpop.permute.xlu1 %2769 }
 0x491   : > { %2842 = vst.msk [vmem:[#allocation4 + $0xc0] sm:$0xff] %vm2817_vm13, %v2770_v21  ;;  %v2772_v25 = vpop.permute.xlu0 %2771 }
 0x492   : > { %2843 = vst.msk [vmem:[#allocation4 + $0xc8] sm:$0xff] %vm2817_vm13, %v2772_v25  ;;  %v4596_v28 = vpop.f32.mrf.mxu0 }
 0x493   : > { %4183 = vst.msk [vmem:[%s6445_s13 + $0x18] sm:$0xff] %vm4179_vm4, %v4596_v28  ;;  %v4286_v32 = vmul.f32 %v4596_v28, %v4596_v28  ;;  %v4217_v9 = vsel %vm4179_vm4, %v4596_v28, 0.0 }
 0x494   : > { %v3539_v33 = vpop.permute.xlu1 %3538  ;;  %v4030_v35 = vpop.f32.mrf.mxu0 }
 0x495   : > { %3613 = vst.msk [vmem:[#allocation4 + $0xb0] sm:$0xff] %vm3590_vm1, %v3539_v33  ;;  %v4215_v37 = vsel %vm4179_vm4, %v4030_v35, 0.0  ;;  %v4285_v13 = vmul.f32 %v4030_v35, %v4030_v35  ;;  %v3541_v18 = vpop.permute.xlu0 %3540  ;;  %v4320_v39 = vsel %vm4179_vm4, %v4286_v32, 0.0 }
 0x496   : > { %4182 = vst.msk [vmem:[%s6445_s13 + $0x10] sm:$0xff] %vm4179_vm4, %v4030_v35  ;;  %v4216_v22 = vadd.f32 %v4215_v37, %v4214_v4 }
 0x497   : > { %3614 = vst.msk [vmem:[#allocation4 + $0xb8] sm:$0xff] %vm3590_vm1, %v3541_v18  ;;  %v4318_v40 = vsel %vm4179_vm4, %v4285_v13, 0.0 }
 0x498   : > { %v2964_v41 = vpop.permute.xlu1 %2963  ;;  %v4319_v43 = vadd.f32 %v4318_v40, %v4317_v15  ;;  %v4218_v56 = vadd.f32 %v4217_v9, %v4216_v22 }
 0x499   : > { %3036 = vst.msk [vmem:[#allocation4 + $0xc0] sm:$0xff] %vm3011_vm14, %v2964_v41  ;;  %v2966_v24 = vpop.permute.xlu0 %2965 }
 0x49a   : > { %3037 = vst.msk [vmem:[#allocation4 + $0xc8] sm:$0xff] %vm3011_vm14, %v2966_v24  ;;  %v4321_v46 = vadd.f32 %v4320_v39, %v4319_v43 }
 0x49c   : > { %v3732_v44 = vpop.permute.xlu1 %3731 }
 0x49d   : > { %3806 = vst.msk [vmem:[#allocation4 + $0xb0] sm:$0xff] %vm3783_vm2, %v3732_v44  ;;  %v3734_v45 = vpop.permute.xlu0 %3733 }
 0x49e   : > { %3807 = vst.msk [vmem:[#allocation4 + $0xb8] sm:$0xff] %vm3783_vm2, %v3734_v45 }
 0x4a0   : > { %v3157_v47 = vpop.permute.xlu1 %3156 }
 0x4a1   : > { %3229 = vst.msk [vmem:[#allocation4 + $0xc0] sm:$0xff] %vm3204_vm15, %v3157_v47  ;;  %v3350_v48 = vpop.permute.xlu0 %3349 }
 0x4a2   : > { %3422 = vst.msk [vmem:[#allocation4 + $0xc0] sm:$0xff] %vm3397_vm0, %v3350_v48 }
 0x4a4   : > { %v3159_v1 = vpop.permute.xlu1 %3158  ;;  %v3838_v49 = vld [vmem:[#allocation4 + $0xb0] sm:$0xff] }
 0x4a5   : > { %3230 = vst.msk [vmem:[#allocation4 + $0xc8] sm:$0xff] %vm3204_vm15, %v3159_v1  ;;  %4624 = vmatprep.mubr.msk.f32.mxu1 %vm3857_vm3, %v3838_v49  ;;  %v3352_v14 = vpop.permute.xlu0 %3351  ;;  %v3839_v51 = vld [vmem:[#allocation4 + $0xb8] sm:$0xff] }
 0x4a6   : > { %3423 = vst.msk [vmem:[#allocation4 + $0xc8] sm:$0xff] %vm3397_vm0, %v3352_v14  ;;  %v4599_v19 = vpop.f32.mrf.mxu0  ;;  %4625 = vmatmul.mubr.msk.f32.gmra.mxu1 %vm3857_vm3, %v3839_v51 }
 0x4a7   : > { %4185 = vst.msk [vmem:[%s6445_s13 + $0x28] sm:$0xff] %vm4179_vm4, %v4599_v19  ;;  %v4288_v26 = vmul.f32 %v4599_v19, %v4599_v19  ;;  %v4221_v62 = vsel %vm4179_vm4, %v4599_v19, 0.0 }
 0x4a8   : > { %v2774_v30 = vpop.permute.xlu1 %2773  ;;  %v4040_v5 = vpop.f32.mrf.mxu0 }
 0x4a9   : > { %2844 = vst.msk [vmem:[#allocation4 + $0xd0] sm:$0xff] %vm2817_vm13, %v2774_v30  ;;  %v4219_v7 = vsel %vm4179_vm4, %v4040_v5, 0.0  ;;  %v4287_v52 = vmul.f32 %v4040_v5, %v4040_v5  ;;  %v2776_v53 = vpop.permute.xlu0 %2775  ;;  %v4324_v59 = vsel %vm4179_vm4, %v4288_v26, 0.0 }
 0x4aa   : > { %4184 = vst.msk [vmem:[%s6445_s13 + $0x20] sm:$0xff] %vm4179_vm4, %v4040_v5  ;;  %v4220_v38 = vadd.f32 %v4219_v7, %v4218_v56 }
 0x4ab   : > { %2845 = vst.msk [vmem:[#allocation4 + $0xd8] sm:$0xff] %vm2817_vm13, %v2776_v53  ;;  %v4322_v63 = vsel %vm4179_vm4, %v4287_v52, 0.0 }
 0x4ac   : > { %v3543_v55 = vpop.permute.xlu1 %3542  ;;  %v4323_v0 = vadd.f32 %v4322_v63, %v4321_v46  ;;  %v4222_v2 = vadd.f32 %v4221_v62, %v4220_v38 }
 0x4ad   : > { %3615 = vst.msk [vmem:[#allocation4 + $0xc0] sm:$0xff] %vm3590_vm1, %v3543_v55  ;;  %v3545_v58 = vpop.permute.xlu0 %3544 }
 0x4ae   : > { %3616 = vst.msk [vmem:[#allocation4 + $0xc8] sm:$0xff] %vm3590_vm1, %v3545_v58  ;;  %v4325_v3 = vadd.f32 %v4324_v59, %v4323_v0 }
 0x4b0   : > { %v2968_v20 = vpop.permute.xlu1 %2967 }
 0x4b1   : > { %3038 = vst.msk [vmem:[#allocation4 + $0xd0] sm:$0xff] %vm3011_vm14, %v2968_v20  ;;  %v2970_v6 = vpop.permute.xlu0 %2969 }
 0x4b2   : > { %3039 = vst.msk [vmem:[#allocation4 + $0xd8] sm:$0xff] %vm3011_vm14, %v2970_v6 }
 0x4b4   : > { %v3736_v8 = vpop.permute.xlu1 %3735 }
 0x4b5   : > { %3808 = vst.msk [vmem:[#allocation4 + $0xc0] sm:$0xff] %vm3783_vm2, %v3736_v8  ;;  %v3738_v10 = vpop.permute.xlu0 %3737 }
 0x4b6   : > { %3809 = vst.msk [vmem:[#allocation4 + $0xc8] sm:$0xff] %vm3783_vm2, %v3738_v10 }
 0x4b8   : > { %v3161_v27 = vpop.permute.xlu1 %3160 }
 0x4b9   : > { %3231 = vst.msk [vmem:[#allocation4 + $0xd0] sm:$0xff] %vm3204_vm15, %v3161_v27  ;;  %v3354_v16 = vpop.permute.xlu0 %3353 }
 0x4ba   : > { %3424 = vst.msk [vmem:[#allocation4 + $0xd0] sm:$0xff] %vm3397_vm0, %v3354_v16  ;;  %v4602_v36 = vpop.f32.mrf.mxu0 }
 0x4bb   : > { %4187 = vst.msk [vmem:[%s6445_s13 + $0x38] sm:$0xff] %vm4179_vm4, %v4602_v36  ;;  %v4290_v23 = vmul.f32 %v4602_v36, %v4602_v36  ;;  %v4225_v42 = vsel %vm4179_vm4, %v4602_v36, 0.0 }
 0x4bc   : > { %v3163_v29 = vpop.permute.xlu1 %3162  ;;  %v3840_v34 = vld [vmem:[#allocation4 + $0xc0] sm:$0xff]  ;;  %v4050_v4 = vpop.f32.mrf.mxu0 }
 0x4bd   : > { %3232 = vst.msk [vmem:[#allocation4 + $0xd8] sm:$0xff] %vm3204_vm15, %v3163_v29  ;;  %4627 = vmatprep.mubr.msk.f32.mxu1 %vm3857_vm3, %v3840_v34  ;;  %v4223_v54 = vsel %vm4179_vm4, %v4050_v4, 0.0  ;;  %v4289_v11 = vmul.f32 %v4050_v4, %v4050_v4  ;;  %v3356_v15 = vpop.permute.xlu0 %3355  ;;  %v3841_v50 = vld [vmem:[#allocation4 + $0xc8] sm:$0xff]  ;;  %v4328_v60 = vsel %vm4179_vm4, %v4290_v23, 0.0 }
 0x4be   : > { %4186 = vst.msk [vmem:[%s6445_s13 + $0x30] sm:$0xff] %vm4179_vm4, %v4050_v4  ;;  %v4224_v57 = vadd.f32 %v4223_v54, %v4222_v2  ;;  %4628 = vmatmul.mubr.msk.f32.gmra.mxu1 %vm3857_vm3, %v3841_v50 }
 0x4bf   : > { %3425 = vst.msk [vmem:[#allocation4 + $0xd8] sm:$0xff] %vm3397_vm0, %v3356_v15  ;;  %v4326_v61 = vsel %vm4179_vm4, %v4289_v11, 0.0 }
 0x4c0   : > { %v2778_v17 = vpop.permute.xlu1 %2777  ;;  %v4327_v12 = vadd.f32 %v4326_v61, %v4325_v3  ;;  %v4226_v31 = vadd.f32 %v4225_v42, %v4224_v57 }
 0x4c1   : > { %2846 = vst.msk [vmem:[#allocation4 + $0xe0] sm:$0xff] %vm2817_vm13, %v2778_v17  ;;  %v2780_v21 = vpop.permute.xlu0 %2779 }
 0x4c2   : > { %2847 = vst.msk [vmem:[#allocation4 + $0xe8] sm:$0xff] %vm2817_vm13, %v2780_v21  ;;  %v4329_v25 = vadd.f32 %v4328_v60, %v4327_v12 }
 0x4c4   : > { %v3547_v28 = vpop.permute.xlu1 %3546 }
 0x4c5   : > { %3617 = vst.msk [vmem:[#allocation4 + $0xd0] sm:$0xff] %vm3590_vm1, %v3547_v28  ;;  %v3549_v32 = vpop.permute.xlu0 %3548 }
 0x4c6   : > { %3618 = vst.msk [vmem:[#allocation4 + $0xd8] sm:$0xff] %vm3590_vm1, %v3549_v32 }
 0x4c8   : > { %v2972_v33 = vpop.permute.xlu1 %2971 }
 0x4c9   : > { %3040 = vst.msk [vmem:[#allocation4 + $0xe0] sm:$0xff] %vm3011_vm14, %v2972_v33  ;;  %v2974_v35 = vpop.permute.xlu0 %2973 }
 0x4ca   : > { %3041 = vst.msk [vmem:[#allocation4 + $0xe8] sm:$0xff] %vm3011_vm14, %v2974_v35 }
 0x4cc   : > { %v3740_v9 = vpop.permute.xlu1 %3739 }
 0x4cd   : > { %3810 = vst.msk [vmem:[#allocation4 + $0xd0] sm:$0xff] %vm3783_vm2, %v3740_v9  ;;  %v3742_v37 = vpop.permute.xlu0 %3741 }
 0x4ce   : > { %3811 = vst.msk [vmem:[#allocation4 + $0xd8] sm:$0xff] %vm3783_vm2, %v3742_v37  ;;  %v4605_v13 = vpop.f32.mrf.mxu0 }
 0x4cf   : > { %4189 = vst.msk [vmem:[%s6445_s13 + $0x48] sm:$0xff] %vm4179_vm4, %v4605_v13  ;;  %v4292_v18 = vmul.f32 %v4605_v13, %v4605_v13  ;;  %v4229_v40 = vsel %vm4179_vm4, %v4605_v13, 0.0 }
 0x4d0   : > { %v3165_v22 = vpop.permute.xlu1 %3164  ;;  %v4060_v39 = vpop.f32.mrf.mxu0 }
 0x4d1   : > { %3233 = vst.msk [vmem:[#allocation4 + $0xe0] sm:$0xff] %vm3204_vm15, %v3165_v22  ;;  %v4227_v41 = vsel %vm4179_vm4, %v4060_v39, 0.0  ;;  %v4291_v43 = vmul.f32 %v4060_v39, %v4060_v39  ;;  %v3358_v56 = vpop.permute.xlu0 %3357  ;;  %v4332_v46 = vsel %vm4179_vm4, %v4292_v18, 0.0 }
 0x4d2   : > { %4188 = vst.msk [vmem:[%s6445_s13 + $0x40] sm:$0xff] %vm4179_vm4, %v4060_v39  ;;  %v4228_v24 = vadd.f32 %v4227_v41, %v4226_v31 }
 0x4d3   : > { %3426 = vst.msk [vmem:[#allocation4 + $0xe0] sm:$0xff] %vm3397_vm0, %v3358_v56  ;;  %v4330_v44 = vsel %vm4179_vm4, %v4291_v43, 0.0 }
 0x4d4   : > { %v3167_v45 = vpop.permute.xlu1 %3166  ;;  %v3842_v47 = vld [vmem:[#allocation4 + $0xd0] sm:$0xff]  ;;  %v4331_v48 = vadd.f32 %v4330_v44, %v4329_v25  ;;  %v4230_v1 = vadd.f32 %v4229_v40, %v4228_v24 }
 0x4d5   : > { %3234 = vst.msk [vmem:[#allocation4 + $0xe8] sm:$0xff] %vm3204_vm15, %v3167_v45  ;;  %4630 = vmatprep.mubr.msk.f32.mxu1 %vm3857_vm3, %v3842_v47  ;;  %v3360_v49 = vpop.permute.xlu0 %3359  ;;  %v3843_v14 = vld [vmem:[#allocation4 + $0xd8] sm:$0xff] }
 0x4d6   : > { %3427 = vst.msk [vmem:[#allocation4 + $0xe8] sm:$0xff] %vm3397_vm0, %v3360_v49  ;;  %4631 = vmatmul.mubr.msk.f32.gmra.mxu1 %vm3857_vm3, %v3843_v14  ;;  %v4333_v51 = vadd.f32 %v4332_v46, %v4331_v48 }
 0x4d8   : > { %v2782_v19 = vpop.permute.xlu1 %2781 }
 0x4d9   : > { %2848 = vst.msk [vmem:[#allocation4 + $0xf0] sm:$0xff] %vm2817_vm13, %v2782_v19  ;;  %v2784_v26 = vpop.permute.xlu0 %2783 }
 0x4da   : > { %2849 = vst.msk [vmem:[#allocation4 + $0xf8] sm:$0xff] %vm2817_vm13, %v2784_v26 }
 0x4dc   : > { %v3551_v30 = vpop.permute.xlu1 %3550 }
 0x4dd   : > { %3619 = vst.msk [vmem:[#allocation4 + $0xe0] sm:$0xff] %vm3590_vm1, %v3551_v30  ;;  %v3553_v5 = vpop.permute.xlu0 %3552 }
 0x4de   : > { %3620 = vst.msk [vmem:[#allocation4 + $0xe8] sm:$0xff] %vm3590_vm1, %v3553_v5 }
 0x4e0   : > { %v2976_v62 = vpop.permute.xlu1 %2975 }
 0x4e1   : > { %3042 = vst.msk [vmem:[#allocation4 + $0xf0] sm:$0xff] %vm3011_vm14, %v2976_v62  ;;  %v2978_v7 = vpop.permute.xlu0 %2977 }
 0x4e2   : > { %3043 = vst.msk [vmem:[#allocation4 + $0xf8] sm:$0xff] %vm3011_vm14, %v2978_v7  ;;  %v4608_v52 = vpop.f32.mrf.mxu0 }
 0x4e3   : > { %4191 = vst.msk [vmem:[%s6445_s13 + $0x58] sm:$0xff] %vm4179_vm4, %v4608_v52  ;;  %v4294_v53 = vmul.f32 %v4608_v52, %v4608_v52  ;;  %v4233_v63 = vsel %vm4179_vm4, %v4608_v52, 0.0 }
 0x4e4   : > { %v3744_v38 = vpop.permute.xlu1 %3743  ;;  %v4070_v59 = vpop.f32.mrf.mxu0 }
 0x4e5   : > { %3812 = vst.msk [vmem:[#allocation4 + $0xe0] sm:$0xff] %vm3783_vm2, %v3744_v38  ;;  %v4231_v55 = vsel %vm4179_vm4, %v4070_v59, 0.0  ;;  %v4293_v0 = vmul.f32 %v4070_v59, %v4070_v59  ;;  %v3746_v2 = vpop.permute.xlu0 %3745  ;;  %v4336_v3 = vsel %vm4179_vm4, %v4294_v53, 0.0 }
 0x4e6   : > { %4190 = vst.msk [vmem:[%s6445_s13 + $0x50] sm:$0xff] %vm4179_vm4, %v4070_v59  ;;  %v4232_v58 = vadd.f32 %v4231_v55, %v4230_v1 }
 0x4e7   : > { %3813 = vst.msk [vmem:[#allocation4 + $0xe8] sm:$0xff] %vm3783_vm2, %v3746_v2  ;;  %v4334_v20 = vsel %vm4179_vm4, %v4293_v0, 0.0 }
 0x4e8   : > { %v3169_v6 = vpop.permute.xlu1 %3168  ;;  %v4335_v8 = vadd.f32 %v4334_v20, %v4333_v51  ;;  %v4234_v10 = vadd.f32 %v4233_v63, %v4232_v58 }
 0x4e9   : > { %3235 = vst.msk [vmem:[#allocation4 + $0xf0] sm:$0xff] %vm3204_vm15, %v3169_v6  ;;  %v3362_v27 = vpop.permute.xlu0 %3361 }
 0x4ea   : > { %3428 = vst.msk [vmem:[#allocation4 + $0xf0] sm:$0xff] %vm3397_vm0, %v3362_v27  ;;  %v4337_v16 = vadd.f32 %v4336_v3, %v4335_v8 }
 0x4ec   : > { %v3171_v36 = vpop.permute.xlu1 %3170  ;;  %v3844_v23 = vld [vmem:[#allocation4 + $0xe0] sm:$0xff] }
 0x4ed   : > { %3236 = vst.msk [vmem:[#allocation4 + $0xf8] sm:$0xff] %vm3204_vm15, %v3171_v36  ;;  %4633 = vmatprep.mubr.msk.f32.mxu1 %vm3857_vm3, %v3844_v23  ;;  %v3555_v34 = vpop.permute.xlu0 %3554 }
 0x4ee   : > { %v3845_v29 = vld [vmem:[#allocation4 + $0xe8] sm:$0xff]  ;;  %3621 = vst.msk [vmem:[#allocation4 + $0xf0] sm:$0xff] %vm3590_vm1, %v3555_v34 }
 0x4ef   : > { %4634 = vmatmul.mubr.msk.f32.gmra.mxu1 %vm3857_vm3, %v3845_v29 }
 0x4f0   : > { %v3364_v4 = vpop.permute.xlu1 %3363 }
 0x4f1   : > { %3429 = vst.msk [vmem:[#allocation4 + $0xf8] sm:$0xff] %vm3397_vm0, %v3364_v4  ;;  %v3748_v42 = vpop.permute.xlu0 %3747 }
 0x4f2   : > { %3814 = vst.msk [vmem:[#allocation4 + $0xf0] sm:$0xff] %vm3783_vm2, %v3748_v42 }
 0x4f4   : > { %v3557_v54 = vpop.permute.xlu1 %3556 }
 0x4f5   : > { %3622 = vst.msk [vmem:[#allocation4 + $0xf8] sm:$0xff] %vm3590_vm1, %v3557_v54 }
 0x4f6   : > { %v4611_v11 = vpop.f32.mrf.mxu0 }
 0x4f7   : > { %4193 = vst.msk [vmem:[%s6445_s13 + $0x68] sm:$0xff] %vm4179_vm4, %v4611_v11  ;;  %v4296_v15 = vmul.f32 %v4611_v11, %v4611_v11  ;;  %v4237_v60 = vsel %vm4179_vm4, %v4611_v11, 0.0 }
 0x4f8   : > { %v3750_v50 = vpop.permute.xlu1 %3749  ;;  %v4080_v57 = vpop.f32.mrf.mxu0 }
 0x4f9   : > { %3815 = vst.msk [vmem:[#allocation4 + $0xf8] sm:$0xff] %vm3783_vm2, %v3750_v50  ;;  %v4235_v61 = vsel %vm4179_vm4, %v4080_v57, 0.0  ;;  %v4295_v17 = vmul.f32 %v4080_v57, %v4080_v57  ;;  %v3846_v12 = vld [vmem:[#allocation4 + $0xf0] sm:$0xff]  ;;  %v4340_v21 = vsel %vm4179_vm4, %v4296_v15, 0.0 }
 0x4fa   : > { %4192 = vst.msk [vmem:[%s6445_s13 + $0x60] sm:$0xff] %vm4179_vm4, %v4080_v57  ;;  %v4236_v31 = vadd.f32 %v4235_v61, %v4234_v10  ;;  %4636 = vmatprep.mubr.msk.f32.mxu1 %vm3857_vm3, %v3846_v12 }
 0x4fb   : > { %v4338_v25 = vsel %vm4179_vm4, %v4295_v17, 0.0 }
 0x4fc   : > { %v4339_v28 = vadd.f32 %v4338_v25, %v4337_v16  ;;  %v4238_v32 = vadd.f32 %v4237_v60, %v4236_v31 }
 0x4fe   : > { %v4341_v33 = vadd.f32 %v4340_v21, %v4339_v28 }
 0x500   : > { %v3847_v35 = vld [vmem:[#allocation4 + $0xf8] sm:$0xff] }
 0x501   : > { %4637 = vmatmul.mubr.msk.f32.gmra.mxu1 %vm3857_vm3, %v3847_v35 }
 0x50a   : > { %v4614_v9 = vpop.f32.mrf.mxu0 }
 0x50b   : > { %4195 = vst.msk [vmem:[%s6445_s13 + $0x78] sm:$0xff] %vm4179_vm4, %v4614_v9  ;;  %v4298_v37 = vmul.f32 %v4614_v9, %v4614_v9  ;;  %v4241_v18 = vsel %vm4179_vm4, %v4614_v9, 0.0 }
 0x50c   : > { %v4090_v13 = vpop.f32.mrf.mxu0 }
 0x50d   : > { %4194 = vst.msk [vmem:[%s6445_s13 + $0x70] sm:$0xff] %vm4179_vm4, %v4090_v13  ;;  %v4239_v22 = vsel %vm4179_vm4, %v4090_v13, 0.0  ;;  %v4297_v39 = vmul.f32 %v4090_v13, %v4090_v13  ;;  %v4344_v41 = vsel %vm4179_vm4, %v4298_v37, 0.0 }
 0x50e   : > { %v4240_v40 = vadd.f32 %v4239_v22, %v4238_v32 }
 0x50f   : > { %v4342_v43 = vsel %vm4179_vm4, %v4297_v39, 0.0 }
 0x510   : > { %v4242_v56 = vadd.f32 %v4241_v18, %v4240_v40  ;;  %v4343_v24 = vadd.f32 %v4342_v43, %v4341_v33 }
 0x512   : > { %v4345_v46 = vadd.f32 %v4344_v41, %v4343_v24 }
 0x51e   : > { %v4617_v44 = vpop.f32.mrf.mxu1 }
 0x51f   : > { %4197 = vst.msk [vmem:[%s6445_s13 + $0x88] sm:$0xff] %vm4179_vm4, %v4617_v44  ;;  %v4300_v45 = vmul.f32 %v4617_v44, %v4617_v44  ;;  %v4245_v48 = vsel %vm4179_vm4, %v4617_v44, 0.0 }
 0x520   : > { %v4100_v47 = vpop.f32.mrf.mxu1 }
 0x521   : > { %4196 = vst.msk [vmem:[%s6445_s13 + $0x80] sm:$0xff] %vm4179_vm4, %v4100_v47  ;;  %v4243_v1 = vsel %vm4179_vm4, %v4100_v47, 0.0  ;;  %v4299_v49 = vmul.f32 %v4100_v47, %v4100_v47  ;;  %v4348_v51 = vsel %vm4179_vm4, %v4300_v45, 0.0 }
 0x522   : > { %v4244_v14 = vadd.f32 %v4243_v1, %v4242_v56 }
 0x523   : > { %v4346_v19 = vsel %vm4179_vm4, %v4299_v49, 0.0 }
 0x524   : > { %v4347_v26 = vadd.f32 %v4346_v19, %v4345_v46  ;;  %v4246_v30 = vadd.f32 %v4245_v48, %v4244_v14 }
 0x526   : > { %v4349_v5 = vadd.f32 %v4348_v51, %v4347_v26 }
 0x536   : > { %v4620_v62 = vpop.f32.mrf.mxu1 }
 0x537   : > { %4199 = vst.msk [vmem:[%s6445_s13 + $0x98] sm:$0xff] %vm4179_vm4, %v4620_v62  ;;  %v4302_v7 = vmul.f32 %v4620_v62, %v4620_v62  ;;  %v4249_v53 = vsel %vm4179_vm4, %v4620_v62, 0.0 }
 0x538   : > { %v4110_v52 = vpop.f32.mrf.mxu1 }
 0x539   : > { %4198 = vst.msk [vmem:[%s6445_s13 + $0x90] sm:$0xff] %vm4179_vm4, %v4110_v52  ;;  %v4247_v38 = vsel %vm4179_vm4, %v4110_v52, 0.0  ;;  %v4301_v59 = vmul.f32 %v4110_v52, %v4110_v52  ;;  %v4352_v55 = vsel %vm4179_vm4, %v4302_v7, 0.0 }
 0x53a   : > { %v4248_v63 = vadd.f32 %v4247_v38, %v4246_v30 }
 0x53b   : > { %v4350_v0 = vsel %vm4179_vm4, %v4301_v59, 0.0 }
 0x53c   : > { %v4351_v2 = vadd.f32 %v4350_v0, %v4349_v5  ;;  %v4250_v58 = vadd.f32 %v4249_v53, %v4248_v63 }
 0x53e   : > { %v4353_v3 = vadd.f32 %v4352_v55, %v4351_v2 }
 0x54e   : > { %v4623_v20 = vpop.f32.mrf.mxu1 }
 0x54f   : > { %4201 = vst.msk [vmem:[%s6445_s13 + $0xa8] sm:$0xff] %vm4179_vm4, %v4623_v20  ;;  %v4304_v6 = vmul.f32 %v4623_v20, %v4623_v20  ;;  %v4253_v10 = vsel %vm4179_vm4, %v4623_v20, 0.0 }
 0x550   : > { %v4120_v8 = vpop.f32.mrf.mxu1 }
 0x551   : > { %4200 = vst.msk [vmem:[%s6445_s13 + $0xa0] sm:$0xff] %vm4179_vm4, %v4120_v8  ;;  %v4251_v27 = vsel %vm4179_vm4, %v4120_v8, 0.0  ;;  %v4303_v16 = vmul.f32 %v4120_v8, %v4120_v8  ;;  %v4356_v23 = vsel %vm4179_vm4, %v4304_v6, 0.0 }
 0x552   : > { %v4252_v36 = vadd.f32 %v4251_v27, %v4250_v58 }
 0x553   : > { %v4354_v29 = vsel %vm4179_vm4, %v4303_v16, 0.0 }
 0x554   : > { %v4355_v34 = vadd.f32 %v4354_v29, %v4353_v3  ;;  %v4254_v4 = vadd.f32 %v4253_v10, %v4252_v36 }
 0x556   : > { %v4357_v42 = vadd.f32 %v4356_v23, %v4355_v34 }
 0x566   : > { %v4626_v54 = vpop.f32.mrf.mxu1 }
 0x567   : > { %4203 = vst.msk [vmem:[%s6445_s13 + $0xb8] sm:$0xff] %vm4179_vm4, %v4626_v54  ;;  %v4306_v11 = vmul.f32 %v4626_v54, %v4626_v54  ;;  %v4257_v50 = vsel %vm4179_vm4, %v4626_v54, 0.0 }
 0x568   : > { %v4130_v15 = vpop.f32.mrf.mxu1 }
 0x569   : > { %4202 = vst.msk [vmem:[%s6445_s13 + $0xb0] sm:$0xff] %vm4179_vm4, %v4130_v15  ;;  %v4255_v57 = vsel %vm4179_vm4, %v4130_v15, 0.0  ;;  %v4305_v60 = vmul.f32 %v4130_v15, %v4130_v15  ;;  %v4360_v17 = vsel %vm4179_vm4, %v4306_v11, 0.0 }
 0x56a   : > { %v4256_v61 = vadd.f32 %v4255_v57, %v4254_v4 }
 0x56b   : > { %v4358_v12 = vsel %vm4179_vm4, %v4305_v60, 0.0 }
 0x56c   : > { %v4359_v31 = vadd.f32 %v4358_v12, %v4357_v42  ;;  %v4258_v21 = vadd.f32 %v4257_v50, %v4256_v61 }
 0x56e   : > { %v4361_v25 = vadd.f32 %v4360_v17, %v4359_v31 }
 0x57e   : > { %v4629_v28 = vpop.f32.mrf.mxu1 }
 0x57f   : > { %4205 = vst.msk [vmem:[%s6445_s13 + $0xc8] sm:$0xff] %vm4179_vm4, %v4629_v28  ;;  %v4308_v22 = vmul.f32 %v4629_v28, %v4629_v28  ;;  %v4261_v41 = vsel %vm4179_vm4, %v4629_v28, 0.0 }
 0x580   : > { %v4140_v32 = vpop.f32.mrf.mxu1 }
 0x581   : > { %4204 = vst.msk [vmem:[%s6445_s13 + $0xc0] sm:$0xff] %vm4179_vm4, %v4140_v32  ;;  %v4307_v9 = vmul.f32 %v4140_v32, %v4140_v32  ;;  %v4259_v13 = vsel %vm4179_vm4, %v4140_v32, 0.0  ;;  %v4364_v24 = vsel %vm4179_vm4, %v4308_v22, 0.0 }
 0x582   : > { %v4260_v40 = vadd.f32 %v4259_v13, %v4258_v21 }
 0x583   : > { %v4362_v39 = vsel %vm4179_vm4, %v4307_v9, 0.0 }
 0x584   : > { %v4363_v56 = vadd.f32 %v4362_v39, %v4361_v25  ;;  %v4262_v44 = vadd.f32 %v4261_v41, %v4260_v40 }
 0x586   : > { %v4365_v1 = vadd.f32 %v4364_v24, %v4363_v56 }
 0x596   : > { %v4632_v33 = vpop.f32.mrf.mxu1 }
 0x597   : > { %4207 = vst.msk [vmem:[%s6445_s13 + $0xd8] sm:$0xff] %vm4179_vm4, %v4632_v33  ;;  %v4310_v45 = vmul.f32 %v4632_v33, %v4632_v33  ;;  %v4265_v49 = vsel %vm4179_vm4, %v4632_v33, 0.0 }
 0x598   : > { %v4150_v35 = vpop.f32.mrf.mxu1 }
 0x599   : > { %4206 = vst.msk [vmem:[%s6445_s13 + $0xd0] sm:$0xff] %vm4179_vm4, %v4150_v35  ;;  %v4309_v43 = vmul.f32 %v4150_v35, %v4150_v35  ;;  %v4263_v46 = vsel %vm4179_vm4, %v4150_v35, 0.0  ;;  %v4368_v19 = vsel %vm4179_vm4, %v4310_v45, 0.0 }
 0x59a   : > { %v4264_v48 = vadd.f32 %v4263_v46, %v4262_v44 }
 0x59b   : > { %v4366_v47 = vsel %vm4179_vm4, %v4309_v43, 0.0 }
 0x59c   : > { %v4367_v51 = vadd.f32 %v4366_v47, %v4365_v1  ;;  %v4266_v30 = vadd.f32 %v4265_v49, %v4264_v48 }
 0x59e   : > { %v4369_v52 = vadd.f32 %v4368_v19, %v4367_v51 }
 0x5af   : > { %v4635_v37 = vpop.f32.mrf.mxu1 }
 0x5b0   : > { %4209 = vst.msk [vmem:[%s6445_s13 + $0xe8] sm:$0xff] %vm4179_vm4, %v4635_v37  ;;  %v4312_v5 = vmul.f32 %v4635_v37, %v4635_v37  ;;  %v4269_v53 = vsel %vm4179_vm4, %v4635_v37, 0.0 }
 0x5b1   : > { %v4160_v18 = vpop.f32.mrf.mxu1 }
 0x5b2   : > { %4208 = vst.msk [vmem:[%s6445_s13 + $0xe0] sm:$0xff] %vm4179_vm4, %v4160_v18  ;;  %v4311_v14 = vmul.f32 %v4160_v18, %v4160_v18  ;;  %v4267_v26 = vsel %vm4179_vm4, %v4160_v18, 0.0  ;;  %v4372_v63 = vsel %vm4179_vm4, %v4312_v5, 0.0 }
 0x5b3   : > { %v4268_v7 = vadd.f32 %v4267_v26, %v4266_v30 }
 0x5b4   : > { %v4370_v62 = vsel %vm4179_vm4, %v4311_v14, 0.0 }
 0x5b5   : > { %v4371_v38 = vadd.f32 %v4370_v62, %v4369_v52  ;;  %v4270_v0 = vadd.f32 %v4269_v53, %v4268_v7 }
 0x5b7   : > { %v4373_v6 = vadd.f32 %v4372_v63, %v4371_v38 }
 0x5c1   : > { %v4638_v59 = vpop.f32.mrf.mxu1 }
 0x5c2   : > { %4211 = vst.msk [vmem:[%s6445_s13 + $0xf8] sm:$0xff] %vm4179_vm4, %v4638_v59  ;;  %v4314_v2 = vmul.f32 %v4638_v59, %v4638_v59  ;;  %v4273_v8 = vsel %vm4179_vm4, %v4638_v59, 0.0 }
 0x5c3   : > { %v4170_v55 = vpop.f32.mrf.mxu1 }
 0x5c4   : > { %4210 = vst.msk [vmem:[%s6445_s13 + $0xf0] sm:$0xff] %vm4179_vm4, %v4170_v55  ;;  %v4271_v58 = vsel %vm4179_vm4, %v4170_v55, 0.0  ;;  %v4313_v3 = vmul.f32 %v4170_v55, %v4170_v55  ;;  %v4376_v36 = vsel %vm4179_vm4, %v4314_v2, 0.0 }
 0x5c5   : > { %v4272_v20 = vadd.f32 %v4271_v58, %v4270_v0 }
 0x5c6   : > { %v4374_v10 = vsel %vm4179_vm4, %v4313_v3, 0.0 }
 0x5c7   : > { %v4274_v27 = vadd.f32 %v4273_v8, %v4272_v20  ;;  %v4375_v16 = vadd.f32 %v4374_v10, %v4373_v6 }
 0x5c9   : > { %v4275_v23 = vrot.slane %v4274_v27, 4  ;;  %v4377_v29 = vadd.f32 %v4376_v36, %v4375_v16 }
 0x5cb   : > { %v4276_v34 = vadd.f32 %v4275_v23, %v4274_v27  ;;  %v4378_v4 = vrot.slane %v4377_v29, 4 }
 0x5cd   : > { %v4277_v42 = vrot.slane %v4276_v34, 2  ;;  %v4379_v54 = vadd.f32 %v4378_v4, %v4377_v29 }
 0x5cf   : > { %v4278_v11 = vadd.f32 %v4277_v42, %v4276_v34  ;;  %v4380_v15 = vrot.slane %v4379_v54, 2 }
 0x5d1   : > { %v4279_v50 = vrot.slane %v4278_v11, 1  ;;  %v4381_v57 = vadd.f32 %v4380_v15, %v4379_v54 }
 0x5d3   : > { %v4280_v60 = vadd.f32 %v4279_v50, %v4278_v11  ;;  %v4382_v61 = vrot.slane %v4381_v57, 1 }
 0x5d5   : > { %4282 = vst.msk [vmem:[%s228_s19] sm:$0x1] %vm4281_vm5, %v4280_v60  ;;  %v4383_v17 = vadd.f32 %v4382_v61, %v4381_v57 }
 0x5d7   : > { %4384 = vst.msk [vmem:[%s228_s19 + $0x1] sm:$0x1] %vm4281_vm5, %v4383_v17 }
 0x5d8 PF: > { %s15_s15 = sadd.s32 1, %s4691_s15  }
 0x5d9   : > { %p12_p4 = scmp.ge.s32.totalorder %s15_s15, 4  }
 0x5db   :  { %14 = sbr.rel (!%p12_p4) target bundleno = 1 (0x1), region = 81 }

</bundles_post_ra>
